<compile_context>
chip_gen: v7x
topology: tpu7x:2x2x1
jax: 0.10.0
libtpu: 0.0.40
codegen_flags: <defaults>
</compile_context>

<pallas_src>
import functools

import jax
import jax.numpy as jnp
from jax.experimental import pallas as pl
from jax.experimental.pallas import tpu as pltpu


# ----------------------------- configuration --------------------------------
class Cfg:
    d_model = 32
    n_heads = 4
    n_levels = 2
    n_points = 2
    d_ffn = 64
    spatial_shapes = ((8, 8), (4, 4))   # (H_l, W_l) per level
    level_start = (0, 64)               # flattened start index per level


# --------------------------- small math helpers ------------------------------
def _layer_norm(x, g, b, eps=1e-5):
    mu = jnp.mean(x, axis=-1, keepdims=True)
    xc = x - mu
    var = jnp.mean(xc * xc, axis=-1, keepdims=True)
    return xc * jax.lax.rsqrt(var + eps) * g + b


def _softmax_approx(x):
    """Softmax over the last axis with an EUP approximate reciprocal (kernel only)."""
    m = jnp.max(x, axis=-1, keepdims=True)
    e = jnp.exp(x - m)
    s = jnp.sum(e, axis=-1, keepdims=True)
    return e * pl.reciprocal(s, approx=True)


# ------------------------------ fused kernel ---------------------------------
def _decoder_kernel(tgt_r, qpos_r, ref_r, src_r,
                    qkv_w_r, qkv_b_r, proj_w_r, samp_w_r, samp_b_r,
                    dmat_w_r, l2_w_r, dvec_r, lvec_r,
                    out_r, *, cfg, num_layers):
    D, H = cfg.d_model, cfg.n_heads
    Dh = D // H
    L, P = cfg.n_levels, cfg.n_points

    x = tgt_r[...]            # (Nq, D)
    qpos = qpos_r[...]        # (Nq, D)
    ref = ref_r[...]          # (Nq, 3)
    src = src_r[...]          # (S, D)
    Nq = x.shape[0]

    # ---- static per-level spatial grids + pixel-space reference bases ------
    # (hoisted out of the head / point / layer loops; computed once per call)
    ref_x = ref[:, 0:1]
    ref_y = ref[:, 1:2]
    grids, bases = [], []
    for (Hl, Wl) in cfg.spatial_shapes:
        Sl = Hl * Wl
        sf = jax.lax.broadcasted_iota(jnp.int32, (1, Sl), 1).astype(jnp.float32)
        fy = jnp.floor(sf / float(Wl))                  # (1, Sl)
        fx = sf - fy * float(Wl)                        # (1, Sl)
        grids.append((fx, fy))
        # grid_sample(align_corners=False): pix = (ref + off/size) * size - 0.5
        #                                       = ref*size - 0.5 + off
        bases.append((ref_x * float(Wl) - 0.5, ref_y * float(Hl) - 0.5))

    # batched dot dimension-numbers (flash-attention style rank-3 matmuls)
    dn_aw = (((2,), (1,)), ((0,), (0,)))   # (H,M,K) x (H,K,N) -> (H,M,N)
    dn_qk = (((2,), (2,)), ((0,), (0,)))   # (H,M,K) x (H,N,K) -> (H,M,N)
    scale = 1.0 / float(Dh) ** 0.5

    for li in range(num_layers):
        qkv_w = qkv_w_r[li]      # (3H, D, Dh)
        qkv_b = qkv_b_r[li]      # (3H, 1, Dh)
        proj_w = proj_w_r[li]    # (2H, Dh, D)   rows 0:H self-attn out, H:2H cross out
        samp_w = samp_w_r[li]    # (H, D, 3*L*P) cols 0:2LP offsets, 2LP:3LP attn weights
        samp_b = samp_b_r[li]    # (H, 1, 3*L*P)
        dmat_w = dmat_w_r[li]    # (D, D + Dffn) cols 0:D value_proj, D: linear1
        l2_w = l2_w_r[li]        # (Dffn, D)
        dvec = dvec_r[li]        # (10, D)
        l1_b = lvec_r[li]        # (1, Dffn)

        sa_out_b = dvec[0:1]
        op_b = dvec[1:2]
        v_b = dvec[2:3]
        l2_b = dvec[3:4]
        n2_g, n2_b = dvec[4:5], dvec[5:6]
        n1_g, n1_b = dvec[6:7], dvec[7:8]
        n3_g, n3_b = dvec[8:9], dvec[9:10]

        # ----------------- self attention (heads batched) -------------------
        qk_in = x + qpos
        qk_b = jnp.broadcast_to(qk_in[None], (H, Nq, D))
        xv_b = jnp.broadcast_to(x[None], (H, Nq, D))
        q_h = jax.lax.dot_general(qk_b, qkv_w[0:H], dn_aw,
                                  preferred_element_type=jnp.float32) + qkv_b[0:H]
        k_h = jax.lax.dot_general(qk_b, qkv_w[H:2 * H], dn_aw,
                                  preferred_element_type=jnp.float32) + qkv_b[H:2 * H]
        v_h = jax.lax.dot_general(xv_b, qkv_w[2 * H:3 * H], dn_aw,
                                  preferred_element_type=jnp.float32) + qkv_b[2 * H:3 * H]
        logits = jax.lax.dot_general(q_h * scale, k_h, dn_qk,
                                     preferred_element_type=jnp.float32)   # (H,Nq,Nq)
        attn = _softmax_approx(logits)
        ctx = jax.lax.dot_general(attn, v_h, dn_aw,
                                  preferred_element_type=jnp.float32)      # (H,Nq,Dh)
        sa = jax.lax.dot_general(ctx, proj_w[0:H], dn_aw,
                                 preferred_element_type=jnp.float32)       # (H,Nq,D)
        sa = jnp.sum(sa, axis=0) + sa_out_b
        x = _layer_norm(x + sa, n2_g, n2_b)                                # norm2

        # ----------------- deformable multi-scale cross attention -----------
        query = x + qpos
        q_b = jnp.broadcast_to(query[None], (H, Nq, D))
        value = jnp.dot(src, dmat_w[:, 0:D],
                        preferred_element_type=jnp.float32) + v_b          # (S, D)
        samp = jax.lax.dot_general(q_b, samp_w, dn_aw,
                                   preferred_element_type=jnp.float32) + samp_b
        off3 = samp[:, :, 0:2 * L * P]                                     # (H,Nq,2LP)
        aw3 = _softmax_approx(samp[:, :, 2 * L * P:])                      # (H,Nq,LP)

        head_out = []
        for h in range(H):
            off_h = off3[h]                                                # (Nq, 2LP)
            aw_h = aw3[h]                                                  # (Nq, LP)
            acc = None
            for l, (Hl, Wl) in enumerate(cfg.spatial_shapes):
                start = cfg.level_start[l]
                Sl = Hl * Wl
                fx, fy = grids[l]
                bx, by = bases[l]
                vh = value[start:start + Sl, h * Dh:(h + 1) * Dh]          # (Sl, Dh)
                # fold the attention weight into the bilinear weight so only
                # one (Nq, Sl) x (Sl, Dh) matmul per (head, level) is needed
                wsum = None
                for pt in range(P):
                    c = (l * P + pt) * 2
                    px = bx + off_h[:, c:c + 1]                            # (Nq, 1)
                    py = by + off_h[:, c + 1:c + 2]
                    w = (jnp.maximum(0.0, 1.0 - jnp.abs(py - fy)) *
                         jnp.maximum(0.0, 1.0 - jnp.abs(px - fx)))         # (Nq, Sl)
                    wa = aw_h[:, l * P + pt:l * P + pt + 1] * w
                    wsum = wa if wsum is None else wsum + wa
                part = jnp.dot(wsum, vh, preferred_element_type=jnp.float32)
                acc = part if acc is None else acc + part
            head_out.append(acc)
        ctx2 = jnp.stack(head_out, axis=0)                                 # (H,Nq,Dh)
        cross = jax.lax.dot_general(ctx2, proj_w[H:2 * H], dn_aw,
                                    preferred_element_type=jnp.float32)    # (H,Nq,D)
        cross = jnp.sum(cross, axis=0) + op_b
        x = _layer_norm(x + cross, n1_g, n1_b)                             # norm1

        # ----------------- FFN ----------------------------------------------
        ff = jnp.maximum(jnp.dot(x, dmat_w[:, D:],
                                 preferred_element_type=jnp.float32) + l1_b, 0.0)
        ff = jnp.dot(ff, l2_w, preferred_element_type=jnp.float32) + l2_b
        x = _layer_norm(x + ff, n3_g, n3_b)                                # norm3

        out_r[li] = x.astype(out_r.dtype)


# ------------------------ host-side parameter packing ------------------------
def pack_layer_params(p, cfg):
    """Repack one layer's PyTorch-layout params into the kernel layout."""
    D, H = cfg.d_model, cfg.n_heads
    Dh = D // H
    L, P = cfg.n_levels, cfg.n_points
    Dffn = cfg.d_ffn
    (sa_in_w, sa_in_b, sa_out_w, sa_out_b, n2_g, n2_b,
     v_w, v_b, off_w, off_b, aw_w, aw_b, op_w, op_b, n1_g, n1_b,
     l1_w, l1_b, l2_w, l2_b, n3_g, n3_b) = p

    def head_major(W):       # W: (D, D_in) rows are per-head outputs
        return jnp.transpose(W.reshape(H, Dh, D), (0, 2, 1))      # (H, D, Dh)

    def head_major_in(W):    # W: (D_out, H*Dh) columns are per-head inputs
        return jnp.transpose(W.reshape(D, H, Dh), (1, 2, 0))      # (H, Dh, D_out)

    qkv_w = jnp.concatenate([head_major(sa_in_w[0:D]),
                             head_major(sa_in_w[D:2 * D]),
                             head_major(sa_in_w[2 * D:3 * D])], axis=0)     # (3H,D,Dh)
    qkv_b = sa_in_b.reshape(3 * H, Dh)[:, None, :]                          # (3H,1,Dh)
    proj_w = jnp.concatenate([head_major_in(sa_out_w),
                              head_major_in(op_w)], axis=0)                 # (2H,Dh,D)
    off_wh = jnp.transpose(off_w.reshape(H, L * P * 2, D), (0, 2, 1))       # (H,D,2LP)
    aw_wh = jnp.transpose(aw_w.reshape(H, L * P, D), (0, 2, 1))             # (H,D,LP)
    samp_w = jnp.concatenate([off_wh, aw_wh], axis=-1)                      # (H,D,3LP)
    samp_b = jnp.concatenate([off_b.reshape(H, L * P * 2)[:, None, :],
                              aw_b.reshape(H, L * P)[:, None, :]], axis=-1) # (H,1,3LP)
    dmat_w = jnp.concatenate([v_w.T, l1_w.T], axis=1)                       # (D,D+Dffn)
    l2_wt = l2_w.T                                                          # (Dffn,D)
    dvec = jnp.concatenate([sa_out_b, op_b, v_b, l2_b,
                            n2_g, n2_b, n1_g, n1_b, n3_g, n3_b], axis=0)    # (10,D)
    lvec = l1_b                                                             # (1,Dffn)
    del Dffn
    return (qkv_w, qkv_b, proj_w, samp_w, samp_b, dmat_w, l2_wt, dvec, lvec)


# --------------------------- Pallas kernel wrapper ---------------------------
def _decoder_fused_pallas(tgt, qpos, ref_pts, src, stacked_params, cfg, num_layers):
    B, Nq, D = tgt.shape
    S = src.shape[1]
    NL = num_layers

    kernel = functools.partial(_decoder_kernel, cfg=cfg, num_layers=NL)

    def rep(a):  # full-array block, replicated across the batch grid
        return pl.BlockSpec(a.shape, lambda b, nd=a.ndim: (0,) * nd)

    in_specs = [
        pl.BlockSpec((None, Nq, D), lambda b: (b, 0, 0)),    # tgt
        pl.BlockSpec((None, Nq, D), lambda b: (b, 0, 0)),    # query_pos
        pl.BlockSpec((None, Nq, 3), lambda b: (b, 0, 0)),    # reference_points
        pl.BlockSpec((None, S, D), lambda b: (b, 0, 0)),     # src
    ] + [rep(a) for a in stacked_params]

    out_spec = pl.BlockSpec((None, NL, Nq, D), lambda b: (b, 0, 0, 0))

    return pl.pallas_call(
        kernel,
        out_shape=jax.ShapeDtypeStruct((B, NL, Nq, D), jnp.float32),
        grid=(B,),
        in_specs=in_specs,
        out_specs=out_spec,
        compiler_params=pltpu.CompilerParams(
            dimension_semantics=("parallel",)),   # v7x: one batch elem per TC
    )(tgt, qpos, ref_pts, src, *stacked_params)


def deformable_transformer_decoder(tgt, reference_points, src,
                                   src_spatial_shapes, src_level_start_index,
                                   layer_params, query_pos=None,
                                   return_intermediate=False, cfg=None):
    """Mirrors DeformableTransformerDecoder.forward (bbox_embed is None)."""
    del src_spatial_shapes, src_level_start_index  # static in cfg for the kernel
    if reference_points.shape[-1] != 3:
        raise ValueError(
            'Last dim of reference_points must be 3, but get {} instead.'
            .format(reference_points.shape[-1]))
    if query_pos is None:
        query_pos = jnp.zeros_like(tgt)

    num_layers = len(layer_params)
    packed = [pack_layer_params(p, cfg) for p in layer_params]
    stacked = [jnp.stack([pk[i] for pk in packed], axis=0)
               for i in range(len(packed[0]))]

    inter = _decoder_fused_pallas(tgt, query_pos, reference_points, src,
                                  stacked, cfg, num_layers)   # (B, NL, Nq, D)
    if return_intermediate:
        inter_t = jnp.transpose(inter, (1, 0, 2, 3))
        ref_stack = jnp.broadcast_to(reference_points[None],
                                     (num_layers,) + reference_points.shape)
        return inter_t, ref_stack
    return inter[:, -1], reference_points


# ----------------------- pure-JAX reference (validation) ---------------------
def _decoder_layer_reference(tgt, qpos, ref_pts, src, p, cfg):
    """One deformable decoder layer for one batch element (original layout)."""
    D, H = cfg.d_model, cfg.n_heads
    Dh = D // H
    L, P = cfg.n_levels, cfg.n_points
    Nq = tgt.shape[0]

    (sa_in_w, sa_in_b, sa_out_w, sa_out_b, n2_g, n2_b,
     v_w, v_b, off_w, off_b, aw_w, aw_b, op_w, op_b, n1_g, n1_b,
     l1_w, l1_b, l2_w, l2_b, n3_g, n3_b) = p

    def lin(x, w, b):
        return x @ w.T + b

    def softmax(x):
        m = jnp.max(x, axis=-1, keepdims=True)
        e = jnp.exp(x - m)
        return e / jnp.sum(e, axis=-1, keepdims=True)

    # self attention
    qk_in = tgt + qpos
    q = lin(qk_in, sa_in_w[0:D], sa_in_b[:, 0:D])
    k = lin(qk_in, sa_in_w[D:2 * D], sa_in_b[:, D:2 * D])
    v = lin(tgt, sa_in_w[2 * D:3 * D], sa_in_b[:, 2 * D:3 * D])
    scale = 1.0 / (Dh ** 0.5)
    heads = []
    for h in range(H):
        sl = slice(h * Dh, (h + 1) * Dh)
        attn = softmax((q[:, sl] * scale) @ k[:, sl].T)
        heads.append(attn @ v[:, sl])
    sa = jnp.concatenate(heads, axis=-1)
    sa = lin(sa, sa_out_w, sa_out_b)
    tgt = _layer_norm(tgt + sa, n2_g, n2_b)

    # deformable cross attention
    query = tgt + qpos
    value = lin(src, v_w, v_b)
    off = lin(query, off_w, off_b)
    aw = lin(query, aw_w, aw_b)
    ref_x = ref_pts[:, 0:1]
    ref_y = ref_pts[:, 1:2]
    head_acc = []
    for h in range(H):
        acc = jnp.zeros((Nq, Dh), jnp.float32)
        aw_h = softmax(aw[:, h * L * P:(h + 1) * L * P])
        for l, (Hl, Wl) in enumerate(cfg.spatial_shapes):
            start = cfg.level_start[l]
            vh = value[start:start + Hl * Wl, h * Dh:(h + 1) * Dh]
            sf = jnp.arange(Hl * Wl, dtype=jnp.float32)[None, :]
            fy = jnp.floor(sf / float(Wl))
            fx = sf - fy * float(Wl)
            for pt in range(P):
                base = ((h * L + l) * P + pt) * 2
                loc_x = ref_x + off[:, base:base + 1] / float(Wl)
                loc_y = ref_y + off[:, base + 1:base + 2] / float(Hl)
                px = loc_x * float(Wl) - 0.5
                py = loc_y * float(Hl) - 0.5
                w = (jnp.maximum(0.0, 1.0 - jnp.abs(py - fy)) *
                     jnp.maximum(0.0, 1.0 - jnp.abs(px - fx)))
                acc = acc + aw_h[:, l * P + pt:l * P + pt + 1] * (w @ vh)
        head_acc.append(acc)
    cross = lin(jnp.concatenate(head_acc, axis=-1), op_w, op_b)
    tgt = _layer_norm(tgt + cross, n1_g, n1_b)

    # FFN
    ff = jnp.maximum(lin(tgt, l1_w, l1_b), 0.0)
    ff = lin(ff, l2_w, l2_b)
    return _layer_norm(tgt + ff, n3_g, n3_b)


# ------------------------------ parameter init --------------------------------
def init_layer_params(key, cfg):
    D, Dffn = cfg.d_model, cfg.d_ffn
    H, L, P = cfg.n_heads, cfg.n_levels, cfg.n_points
    shapes = [
        (3 * D, D), (1, 3 * D), (D, D), (1, D),        # 0-3  self-attn in/out proj
        (1, D), (1, D),                                # 4-5  norm2 (gamma, beta)
        (D, D), (1, D),                                # 6-7  value_proj
        (H * L * P * 2, D), (1, H * L * P * 2),        # 8-9  sampling_offsets
        (H * L * P, D), (1, H * L * P),                # 10-11 attention_weights
        (D, D), (1, D),                                # 12-13 output_proj
        (1, D), (1, D),                                # 14-15 norm1
        (Dffn, D), (1, Dffn), (D, Dffn), (1, D),       # 16-19 FFN linear1/linear2
        (1, D), (1, D),                                # 20-21 norm3
    ]
    gamma_idx = {4, 14, 20}
    beta_idx = {5, 15, 21}
    keys = jax.random.split(key, len(shapes))
    params = []
    for i, (k, s) in enumerate(zip(keys, shapes)):
        if i in gamma_idx:
            params.append(jnp.ones(s, jnp.float32))
        elif i in beta_idx:
            params.append(jnp.zeros(s, jnp.float32))
        else:
            params.append(0.05 * jax.random.normal(k, s, jnp.float32))
    return params


# ----------------------------------- main -------------------------------------
if __name__ == "__main__":
    cfg = Cfg()
    B, Nq, D = 2, 8, cfg.d_model
    S = sum(h * w for h, w in cfg.spatial_shapes)
    num_layers = 2

    key = jax.random.PRNGKey(0)
    k_tgt, k_ref, k_src, k_qp, k_par = jax.random.split(key, 5)
    tgt = 0.1 * jax.random.normal(k_tgt, (B, Nq, D), jnp.float32)
    reference_points = jax.nn.sigmoid(
        jax.random.normal(k_ref, (B, Nq, 3), jnp.float32))
    src = 0.1 * jax.random.normal(k_src, (B, S, D), jnp.float32)
    query_pos = 0.1 * jax.random.normal(k_qp, (B, Nq, D), jnp.float32)
    src_spatial_shapes = jnp.array(cfg.spatial_shapes, jnp.int32)
    src_level_start_index = jnp.array(cfg.level_start, jnp.int32)

    layer_keys = jax.random.split(k_par, num_layers)
    layer_params = [init_layer_params(k, cfg) for k in layer_keys]

    out, out_ref_pts = deformable_transformer_decoder(
        tgt, reference_points, src, src_spatial_shapes, src_level_start_index,
        layer_params, query_pos=query_pos, return_intermediate=False, cfg=cfg)
    out = jax.block_until_ready(out)
    out_ref_pts = jax.block_until_ready(out_ref_pts)

    # ---- pure-JAX reference (original PyTorch math, original param layout) ----
    ref_out = tgt
    for params in layer_params:
        per_b = [_decoder_layer_reference(ref_out[b], query_pos[b],
                                          reference_points[b], src[b], params, cfg)
                 for b in range(B)]
        ref_out = jnp.stack(per_b)

    assert out.shape == (B, Nq, D)
    assert jnp.all(jnp.isfinite(out))
    assert jnp.allclose(out, ref_out, atol=2e-2, rtol=2e-2), (
        float(jnp.max(jnp.abs(out - ref_out))))
    assert jnp.allclose(out_ref_pts, reference_points)
    print("KERNEL_OK")
</pallas_src>

<mosaic_0001>
module attributes {stable_mosaic.version = 11 : i64} {
  func.func @_decoder_kernel(%arg0: i32, %arg1: memref<1x8x32xf32, #tpu.memory_space<vmem>>, %arg2: memref<1x8x32xf32, #tpu.memory_space<vmem>>, %arg3: memref<1x8x3xf32, #tpu.memory_space<vmem>>, %arg4: memref<1x80x32xf32, #tpu.memory_space<vmem>>, %arg5: memref<2x12x32x8xf32, #tpu.memory_space<vmem>>, %arg6: memref<2x12x1x8xf32, #tpu.memory_space<vmem>>, %arg7: memref<2x8x8x32xf32, #tpu.memory_space<vmem>>, %arg8: memref<2x4x32x12xf32, #tpu.memory_space<vmem>>, %arg9: memref<2x4x1x12xf32, #tpu.memory_space<vmem>>, %arg10: memref<2x32x96xf32, #tpu.memory_space<vmem>>, %arg11: memref<2x64x32xf32, #tpu.memory_space<vmem>>, %arg12: memref<2x10x32xf32, #tpu.memory_space<vmem>>, %arg13: memref<2x1x64xf32, #tpu.memory_space<vmem>>, %arg14: memref<1x2x8x32xf32, #tpu.memory_space<vmem>>) attributes {dimension_semantics = [#tpu.dimension_semantics<parallel>], iteration_bounds = array<i64: 2>, scalar_prefetch = 0 : i64, scratch_operands = 0 : i64, tpu.core_type = #tpu.core_type<tc>, window_params = [{transform_indices = @transform_0, window_bounds = array<i64: 1, 8, 32>}, {transform_indices = @transform_1, window_bounds = array<i64: 1, 8, 32>}, {transform_indices = @transform_2, window_bounds = array<i64: 1, 8, 3>}, {transform_indices = @transform_3, window_bounds = array<i64: 1, 80, 32>}, {pipeline_mode = #tpu.pipeline_mode<synchronous>, transform_indices = @transform_4, window_bounds = array<i64: 2, 12, 32, 8>}, {pipeline_mode = #tpu.pipeline_mode<synchronous>, transform_indices = @transform_5, window_bounds = array<i64: 2, 12, 1, 8>}, {pipeline_mode = #tpu.pipeline_mode<synchronous>, transform_indices = @transform_6, window_bounds = array<i64: 2, 8, 8, 32>}, {pipeline_mode = #tpu.pipeline_mode<synchronous>, transform_indices = @transform_7, window_bounds = array<i64: 2, 4, 32, 12>}, {pipeline_mode = #tpu.pipeline_mode<synchronous>, transform_indices = @transform_8, window_bounds = array<i64: 2, 4, 1, 12>}, {pipeline_mode = #tpu.pipeline_mode<synchronous>, transform_indices = @transform_9, window_bounds = array<i64: 2, 32, 96>}, {pipeline_mode = #tpu.pipeline_mode<synchronous>, transform_indices = @transform_10, window_bounds = array<i64: 2, 64, 32>}, {pipeline_mode = #tpu.pipeline_mode<synchronous>, transform_indices = @transform_11, window_bounds = array<i64: 2, 10, 32>}, {pipeline_mode = #tpu.pipeline_mode<synchronous>, transform_indices = @transform_12, window_bounds = array<i64: 2, 1, 64>}, {transform_indices = @transform_13, window_bounds = array<i64: 1, 2, 8, 32>}]} {
    %c0 = arith.constant 0 : index
    %c0_0 = arith.constant 0 : index
    %c0_1 = arith.constant 0 : index
    %0 = vector.load %arg1[%c0, %c0_0, %c0_1] : memref<1x8x32xf32, #tpu.memory_space<vmem>>, vector<1x8x32xf32>
    %1 = vector.shape_cast %0 : vector<1x8x32xf32> to vector<8x32xf32>
    %c0_2 = arith.constant 0 : index
    %c0_3 = arith.constant 0 : index
    %c0_4 = arith.constant 0 : index
    %2 = vector.load %arg2[%c0_2, %c0_3, %c0_4] : memref<1x8x32xf32, #tpu.memory_space<vmem>>, vector<1x8x32xf32>
    %3 = vector.shape_cast %2 : vector<1x8x32xf32> to vector<8x32xf32>
    %c0_5 = arith.constant 0 : index
    %c0_6 = arith.constant 0 : index
    %c0_7 = arith.constant 0 : index
    %4 = vector.load %arg3[%c0_5, %c0_6, %c0_7] : memref<1x8x3xf32, #tpu.memory_space<vmem>>, vector<1x8x3xf32>
    %5 = vector.shape_cast %4 : vector<1x8x3xf32> to vector<8x3xf32>
    %c0_8 = arith.constant 0 : index
    %c0_9 = arith.constant 0 : index
    %c0_10 = arith.constant 0 : index
    %6 = vector.load %arg4[%c0_8, %c0_9, %c0_10] : memref<1x80x32xf32, #tpu.memory_space<vmem>>, vector<1x80x32xf32>
    %7 = vector.shape_cast %6 : vector<1x80x32xf32> to vector<80x32xf32>
    %8 = vector.extract_strided_slice %5 {offsets = [0, 0], sizes = [8, 1], strides = [1, 1]} : vector<8x3xf32> to vector<8x1xf32>
    %9 = vector.extract_strided_slice %5 {offsets = [0, 1], sizes = [8, 1], strides = [1, 1]} : vector<8x3xf32> to vector<8x1xf32>
    %10 = tpu.iota {dimensions = array<i32: 1>} : vector<1x64xi32>
    %11 = arith.sitofp %10 : vector<1x64xi32> to vector<1x64xf32>
    %cst = arith.constant 8.000000e+00 : f32
    %12 = vector.broadcast %cst : f32 to vector<1x64xf32>
    %13 = arith.divf %11, %12 : vector<1x64xf32>
    %14 = math.floor %13 : vector<1x64xf32>
    %cst_11 = arith.constant 8.000000e+00 : f32
    %15 = vector.broadcast %cst_11 : f32 to vector<1x64xf32>
    %16 = arith.mulf %14, %15 : vector<1x64xf32>
    %17 = arith.subf %11, %16 : vector<1x64xf32>
    %cst_12 = arith.constant 8.000000e+00 : f32
    %18 = vector.broadcast %cst_12 : f32 to vector<8x1xf32>
    %19 = arith.mulf %8, %18 : vector<8x1xf32>
    %cst_13 = arith.constant 5.000000e-01 : f32
    %20 = vector.broadcast %cst_13 : f32 to vector<8x1xf32>
    %21 = arith.subf %19, %20 : vector<8x1xf32>
    %cst_14 = arith.constant 8.000000e+00 : f32
    %22 = vector.broadcast %cst_14 : f32 to vector<8x1xf32>
    %23 = arith.mulf %9, %22 : vector<8x1xf32>
    %cst_15 = arith.constant 5.000000e-01 : f32
    %24 = vector.broadcast %cst_15 : f32 to vector<8x1xf32>
    %25 = arith.subf %23, %24 : vector<8x1xf32>
    %26 = tpu.iota {dimensions = array<i32: 1>} : vector<1x16xi32>
    %27 = arith.sitofp %26 : vector<1x16xi32> to vector<1x16xf32>
    %cst_16 = arith.constant 4.000000e+00 : f32
    %28 = vector.broadcast %cst_16 : f32 to vector<1x16xf32>
    %29 = arith.divf %27, %28 : vector<1x16xf32>
    %30 = math.floor %29 : vector<1x16xf32>
    %cst_17 = arith.constant 4.000000e+00 : f32
    %31 = vector.broadcast %cst_17 : f32 to vector<1x16xf32>
    %32 = arith.mulf %30, %31 : vector<1x16xf32>
    %33 = arith.subf %27, %32 : vector<1x16xf32>
    %cst_18 = arith.constant 4.000000e+00 : f32
    %34 = vector.broadcast %cst_18 : f32 to vector<8x1xf32>
    %35 = arith.mulf %8, %34 : vector<8x1xf32>
    %cst_19 = arith.constant 5.000000e-01 : f32
    %36 = vector.broadcast %cst_19 : f32 to vector<8x1xf32>
    %37 = arith.subf %35, %36 : vector<8x1xf32>
    %cst_20 = arith.constant 4.000000e+00 : f32
    %38 = vector.broadcast %cst_20 : f32 to vector<8x1xf32>
    %39 = arith.mulf %9, %38 : vector<8x1xf32>
    %cst_21 = arith.constant 5.000000e-01 : f32
    %40 = vector.broadcast %cst_21 : f32 to vector<8x1xf32>
    %41 = arith.subf %39, %40 : vector<8x1xf32>
    %c0_22 = arith.constant 0 : index
    %c0_23 = arith.constant 0 : index
    %c0_24 = arith.constant 0 : index
    %c0_25 = arith.constant 0 : index
    %42 = vector.load %arg5[%c0_22, %c0_23, %c0_24, %c0_25] : memref<2x12x32x8xf32, #tpu.memory_space<vmem>>, vector<1x12x32x8xf32>
    %43 = vector.shape_cast %42 : vector<1x12x32x8xf32> to vector<12x32x8xf32>
    %c0_26 = arith.constant 0 : index
    %c0_27 = arith.constant 0 : index
    %c0_28 = arith.constant 0 : index
    %c0_29 = arith.constant 0 : index
    %44 = vector.load %arg6[%c0_26, %c0_27, %c0_28, %c0_29] : memref<2x12x1x8xf32, #tpu.memory_space<vmem>>, vector<1x12x1x8xf32>
    %45 = vector.shape_cast %44 : vector<1x12x1x8xf32> to vector<12x1x8xf32>
    %c0_30 = arith.constant 0 : index
    %c0_31 = arith.constant 0 : index
    %c0_32 = arith.constant 0 : index
    %c0_33 = arith.constant 0 : index
    %46 = vector.load %arg7[%c0_30, %c0_31, %c0_32, %c0_33] : memref<2x8x8x32xf32, #tpu.memory_space<vmem>>, vector<1x8x8x32xf32>
    %47 = vector.shape_cast %46 : vector<1x8x8x32xf32> to vector<8x8x32xf32>
    %c0_34 = arith.constant 0 : index
    %c0_35 = arith.constant 0 : index
    %c0_36 = arith.constant 0 : index
    %c0_37 = arith.constant 0 : index
    %48 = vector.load %arg8[%c0_34, %c0_35, %c0_36, %c0_37] : memref<2x4x32x12xf32, #tpu.memory_space<vmem>>, vector<1x4x32x12xf32>
    %49 = vector.shape_cast %48 : vector<1x4x32x12xf32> to vector<4x32x12xf32>
    %c0_38 = arith.constant 0 : index
    %c0_39 = arith.constant 0 : index
    %c0_40 = arith.constant 0 : index
    %c0_41 = arith.constant 0 : index
    %50 = vector.load %arg9[%c0_38, %c0_39, %c0_40, %c0_41] : memref<2x4x1x12xf32, #tpu.memory_space<vmem>>, vector<1x4x1x12xf32>
    %51 = vector.shape_cast %50 : vector<1x4x1x12xf32> to vector<4x1x12xf32>
    %c0_42 = arith.constant 0 : index
    %c0_43 = arith.constant 0 : index
    %c0_44 = arith.constant 0 : index
    %52 = vector.load %arg10[%c0_42, %c0_43, %c0_44] : memref<2x32x96xf32, #tpu.memory_space<vmem>>, vector<1x32x96xf32>
    %53 = vector.shape_cast %52 : vector<1x32x96xf32> to vector<32x96xf32>
    %c0_45 = arith.constant 0 : index
    %c0_46 = arith.constant 0 : index
    %c0_47 = arith.constant 0 : index
    %54 = vector.load %arg11[%c0_45, %c0_46, %c0_47] : memref<2x64x32xf32, #tpu.memory_space<vmem>>, vector<1x64x32xf32>
    %55 = vector.shape_cast %54 : vector<1x64x32xf32> to vector<64x32xf32>
    %c0_48 = arith.constant 0 : index
    %c0_49 = arith.constant 0 : index
    %c0_50 = arith.constant 0 : index
    %56 = vector.load %arg12[%c0_48, %c0_49, %c0_50] : memref<2x10x32xf32, #tpu.memory_space<vmem>>, vector<1x10x32xf32>
    %57 = vector.shape_cast %56 : vector<1x10x32xf32> to vector<10x32xf32>
    %c0_51 = arith.constant 0 : index
    %c0_52 = arith.constant 0 : index
    %c0_53 = arith.constant 0 : index
    %58 = vector.load %arg13[%c0_51, %c0_52, %c0_53] : memref<2x1x64xf32, #tpu.memory_space<vmem>>, vector<1x1x64xf32>
    %59 = vector.shape_cast %58 : vector<1x1x64xf32> to vector<1x64xf32>
    %60 = vector.extract_strided_slice %57 {offsets = [0, 0], sizes = [1, 32], strides = [1, 1]} : vector<10x32xf32> to vector<1x32xf32>
    %61 = vector.extract_strided_slice %57 {offsets = [1, 0], sizes = [1, 32], strides = [1, 1]} : vector<10x32xf32> to vector<1x32xf32>
    %62 = vector.extract_strided_slice %57 {offsets = [2, 0], sizes = [1, 32], strides = [1, 1]} : vector<10x32xf32> to vector<1x32xf32>
    %63 = vector.extract_strided_slice %57 {offsets = [3, 0], sizes = [1, 32], strides = [1, 1]} : vector<10x32xf32> to vector<1x32xf32>
    %64 = vector.extract_strided_slice %57 {offsets = [4, 0], sizes = [1, 32], strides = [1, 1]} : vector<10x32xf32> to vector<1x32xf32>
    %65 = vector.extract_strided_slice %57 {offsets = [5, 0], sizes = [1, 32], strides = [1, 1]} : vector<10x32xf32> to vector<1x32xf32>
    %66 = vector.extract_strided_slice %57 {offsets = [6, 0], sizes = [1, 32], strides = [1, 1]} : vector<10x32xf32> to vector<1x32xf32>
    %67 = vector.extract_strided_slice %57 {offsets = [7, 0], sizes = [1, 32], strides = [1, 1]} : vector<10x32xf32> to vector<1x32xf32>
    %68 = vector.extract_strided_slice %57 {offsets = [8, 0], sizes = [1, 32], strides = [1, 1]} : vector<10x32xf32> to vector<1x32xf32>
    %69 = vector.extract_strided_slice %57 {offsets = [9, 0], sizes = [1, 32], strides = [1, 1]} : vector<10x32xf32> to vector<1x32xf32>
    %70 = arith.addf %1, %3 : vector<8x32xf32>
    %71 = vector.shape_cast %70 : vector<8x32xf32> to vector<1x8x32xf32>
    %72 = vector.shape_cast %71 : vector<1x8x32xf32> to vector<1x8x32xf32>
    %73 = vector.broadcast %72 : vector<1x8x32xf32> to vector<4x8x32xf32>
    %74 = vector.shape_cast %1 : vector<8x32xf32> to vector<1x8x32xf32>
    %75 = vector.shape_cast %74 : vector<1x8x32xf32> to vector<1x8x32xf32>
    %76 = vector.broadcast %75 : vector<1x8x32xf32> to vector<4x8x32xf32>
    %77 = vector.extract_strided_slice %43 {offsets = [0, 0, 0], sizes = [4, 32, 8], strides = [1, 1, 1]} : vector<12x32x8xf32> to vector<4x32x8xf32>
    %cst_54 = arith.constant dense<0.000000e+00> : vector<4x8x8xf32>
    %78 = tpu.matmul %73, %77, %cst_54 {dimension_numbers = #tpu.dot_dimension_numbers<[2], [1], [1], [2], [0, 0, 0, 1, 1, 2], [0], [0]>} : vector<4x8x32xf32>, vector<4x32x8xf32>, vector<4x8x8xf32> -> vector<4x8x8xf32>
    %79 = vector.extract_strided_slice %45 {offsets = [0, 0, 0], sizes = [4, 1, 8], strides = [1, 1, 1]} : vector<12x1x8xf32> to vector<4x1x8xf32>
    %80 = vector.broadcast %79 : vector<4x1x8xf32> to vector<4x8x8xf32>
    %81 = arith.addf %78, %80 : vector<4x8x8xf32>
    %82 = vector.extract_strided_slice %43 {offsets = [4, 0, 0], sizes = [4, 32, 8], strides = [1, 1, 1]} : vector<12x32x8xf32> to vector<4x32x8xf32>
    %cst_55 = arith.constant dense<0.000000e+00> : vector<4x8x8xf32>
    %83 = tpu.matmul %73, %82, %cst_55 {dimension_numbers = #tpu.dot_dimension_numbers<[2], [1], [1], [2], [0, 0, 0, 1, 1, 2], [0], [0]>} : vector<4x8x32xf32>, vector<4x32x8xf32>, vector<4x8x8xf32> -> vector<4x8x8xf32>
    %84 = vector.extract_strided_slice %45 {offsets = [4, 0, 0], sizes = [4, 1, 8], strides = [1, 1, 1]} : vector<12x1x8xf32> to vector<4x1x8xf32>
    %85 = vector.broadcast %84 : vector<4x1x8xf32> to vector<4x8x8xf32>
    %86 = arith.addf %83, %85 : vector<4x8x8xf32>
    %87 = vector.extract_strided_slice %43 {offsets = [8, 0, 0], sizes = [4, 32, 8], strides = [1, 1, 1]} : vector<12x32x8xf32> to vector<4x32x8xf32>
    %cst_56 = arith.constant dense<0.000000e+00> : vector<4x8x8xf32>
    %88 = tpu.matmul %76, %87, %cst_56 {dimension_numbers = #tpu.dot_dimension_numbers<[2], [1], [1], [2], [0, 0, 0, 1, 1, 2], [0], [0]>} : vector<4x8x32xf32>, vector<4x32x8xf32>, vector<4x8x8xf32> -> vector<4x8x8xf32>
    %89 = vector.extract_strided_slice %45 {offsets = [8, 0, 0], sizes = [4, 1, 8], strides = [1, 1, 1]} : vector<12x1x8xf32> to vector<4x1x8xf32>
    %90 = vector.broadcast %89 : vector<4x1x8xf32> to vector<4x8x8xf32>
    %91 = arith.addf %88, %90 : vector<4x8x8xf32>
    %cst_57 = arith.constant 0.353553385 : f32
    %92 = vector.broadcast %cst_57 : f32 to vector<4x8x8xf32>
    %93 = arith.mulf %81, %92 : vector<4x8x8xf32>
    %cst_58 = arith.constant dense<0.000000e+00> : vector<4x8x8xf32>
    %94 = tpu.matmul %93, %86, %cst_58 {dimension_numbers = #tpu.dot_dimension_numbers<[2], [2], [1], [1], [0, 0, 0, 1, 1, 1], [0], [0]>} : vector<4x8x8xf32>, vector<4x8x8xf32>, vector<4x8x8xf32> -> vector<4x8x8xf32>
    %cst_59 = arith.constant dense<0xFF800000> : vector<4x8xf32>
    %95 = vector.multi_reduction <maximumf>, %94, %cst_59 [2] : vector<4x8x8xf32> to vector<4x8xf32>
    %96 = vector.shape_cast %95 : vector<4x8xf32> to vector<4x8x1xf32>
    %97 = vector.broadcast %96 : vector<4x8x1xf32> to vector<4x8x8xf32>
    %98 = arith.subf %94, %97 : vector<4x8x8xf32>
    %99 = math.exp %98 : vector<4x8x8xf32>
    %cst_60 = arith.constant dense<0.000000e+00> : vector<4x8xf32>
    %100 = vector.multi_reduction <add>, %99, %cst_60 [2] : vector<4x8x8xf32> to vector<4x8xf32>
    %101 = vector.shape_cast %100 : vector<4x8xf32> to vector<4x8x1xf32>
    %102 = tpu.reciprocal %101 {approx = true} : vector<4x8x1xf32> -> vector<4x8x1xf32>
    %103 = vector.broadcast %102 : vector<4x8x1xf32> to vector<4x8x8xf32>
    %104 = arith.mulf %99, %103 : vector<4x8x8xf32>
    %cst_61 = arith.constant dense<0.000000e+00> : vector<4x8x8xf32>
    %105 = tpu.matmul %104, %91, %cst_61 {dimension_numbers = #tpu.dot_dimension_numbers<[2], [1], [1], [2], [0, 0, 0, 1, 1, 2], [0], [0]>} : vector<4x8x8xf32>, vector<4x8x8xf32>, vector<4x8x8xf32> -> vector<4x8x8xf32>
    %106 = vector.extract_strided_slice %47 {offsets = [0, 0, 0], sizes = [4, 8, 32], strides = [1, 1, 1]} : vector<8x8x32xf32> to vector<4x8x32xf32>
    %cst_62 = arith.constant dense<0.000000e+00> : vector<4x8x32xf32>
    %107 = tpu.matmul %105, %106, %cst_62 {dimension_numbers = #tpu.dot_dimension_numbers<[2], [1], [1], [2], [0, 0, 0, 1, 1, 2], [0], [0]>} : vector<4x8x8xf32>, vector<4x8x32xf32>, vector<4x8x32xf32> -> vector<4x8x32xf32>
    %cst_63 = arith.constant dense<0.000000e+00> : vector<8x32xf32>
    %108 = vector.multi_reduction <add>, %107, %cst_63 [0] : vector<4x8x32xf32> to vector<8x32xf32>
    %109 = vector.broadcast %60 : vector<1x32xf32> to vector<8x32xf32>
    %110 = arith.addf %108, %109 : vector<8x32xf32>
    %111 = arith.addf %1, %110 : vector<8x32xf32>
    %cst_64 = arith.constant dense<0.000000e+00> : vector<8xf32>
    %112 = vector.multi_reduction <add>, %111, %cst_64 [1] : vector<8x32xf32> to vector<8xf32>
    %113 = vector.shape_cast %112 : vector<8xf32> to vector<8x1xf32>
    %cst_65 = arith.constant 3.200000e+01 : f32
    %114 = vector.broadcast %cst_65 : f32 to vector<8x1xf32>
    %115 = arith.divf %113, %114 : vector<8x1xf32>
    %116 = vector.broadcast %115 : vector<8x1xf32> to vector<8x32xf32>
    %117 = arith.subf %111, %116 : vector<8x32xf32>
    %118 = arith.mulf %117, %117 : vector<8x32xf32>
    %cst_66 = arith.constant dense<0.000000e+00> : vector<8xf32>
    %119 = vector.multi_reduction <add>, %118, %cst_66 [1] : vector<8x32xf32> to vector<8xf32>
    %120 = vector.shape_cast %119 : vector<8xf32> to vector<8x1xf32>
    %cst_67 = arith.constant 3.200000e+01 : f32
    %121 = vector.broadcast %cst_67 : f32 to vector<8x1xf32>
    %122 = arith.divf %120, %121 : vector<8x1xf32>
    %cst_68 = arith.constant 9.99999974E-6 : f32
    %123 = vector.broadcast %cst_68 : f32 to vector<8x1xf32>
    %124 = arith.addf %122, %123 : vector<8x1xf32>
    %125 = math.rsqrt %124 : vector<8x1xf32>
    %126 = vector.broadcast %125 : vector<8x1xf32> to vector<8x32xf32>
    %127 = arith.mulf %117, %126 : vector<8x32xf32>
    %128 = vector.broadcast %64 : vector<1x32xf32> to vector<8x32xf32>
    %129 = arith.mulf %127, %128 : vector<8x32xf32>
    %130 = vector.broadcast %65 : vector<1x32xf32> to vector<8x32xf32>
    %131 = arith.addf %129, %130 : vector<8x32xf32>
    %132 = arith.addf %131, %3 : vector<8x32xf32>
    %133 = vector.shape_cast %132 : vector<8x32xf32> to vector<1x8x32xf32>
    %134 = vector.shape_cast %133 : vector<1x8x32xf32> to vector<1x8x32xf32>
    %135 = vector.broadcast %134 : vector<1x8x32xf32> to vector<4x8x32xf32>
    %136 = vector.extract_strided_slice %53 {offsets = [0, 0], sizes = [32, 32], strides = [1, 1]} : vector<32x96xf32> to vector<32x32xf32>
    %cst_69 = arith.constant dense<0.000000e+00> : vector<80x32xf32>
    %137 = tpu.matmul %7, %136, %cst_69 {dimension_numbers = #tpu.dot_dimension_numbers<[1], [0], [0], [1], [0, 0, 1, 1], [], []>} : vector<80x32xf32>, vector<32x32xf32>, vector<80x32xf32> -> vector<80x32xf32>
    %138 = vector.broadcast %62 : vector<1x32xf32> to vector<80x32xf32>
    %139 = arith.addf %137, %138 : vector<80x32xf32>
    %cst_70 = arith.constant dense<0.000000e+00> : vector<4x8x12xf32>
    %140 = tpu.matmul %135, %49, %cst_70 {dimension_numbers = #tpu.dot_dimension_numbers<[2], [1], [1], [2], [0, 0, 0, 1, 1, 2], [0], [0]>} : vector<4x8x32xf32>, vector<4x32x12xf32>, vector<4x8x12xf32> -> vector<4x8x12xf32>
    %141 = vector.broadcast %51 : vector<4x1x12xf32> to vector<4x8x12xf32>
    %142 = arith.addf %140, %141 : vector<4x8x12xf32>
    %143 = vector.extract_strided_slice %142 {offsets = [0, 0, 0], sizes = [4, 8, 8], strides = [1, 1, 1]} : vector<4x8x12xf32> to vector<4x8x8xf32>
    %144 = vector.extract_strided_slice %142 {offsets = [0, 0, 8], sizes = [4, 8, 4], strides = [1, 1, 1]} : vector<4x8x12xf32> to vector<4x8x4xf32>
    %cst_71 = arith.constant dense<0xFF800000> : vector<4x8xf32>
    %145 = vector.multi_reduction <maximumf>, %144, %cst_71 [2] : vector<4x8x4xf32> to vector<4x8xf32>
    %146 = vector.shape_cast %145 : vector<4x8xf32> to vector<4x8x1xf32>
    %147 = vector.broadcast %146 : vector<4x8x1xf32> to vector<4x8x4xf32>
    %148 = arith.subf %144, %147 : vector<4x8x4xf32>
    %149 = math.exp %148 : vector<4x8x4xf32>
    %cst_72 = arith.constant dense<0.000000e+00> : vector<4x8xf32>
    %150 = vector.multi_reduction <add>, %149, %cst_72 [2] : vector<4x8x4xf32> to vector<4x8xf32>
    %151 = vector.shape_cast %150 : vector<4x8xf32> to vector<4x8x1xf32>
    %152 = tpu.reciprocal %151 {approx = true} : vector<4x8x1xf32> -> vector<4x8x1xf32>
    %153 = vector.broadcast %152 : vector<4x8x1xf32> to vector<4x8x4xf32>
    %154 = arith.mulf %149, %153 : vector<4x8x4xf32>
    %155 = vector.extract_strided_slice %143 {offsets = [0, 0, 0], sizes = [1, 8, 8], strides = [1, 1, 1]} : vector<4x8x8xf32> to vector<1x8x8xf32>
    %156 = vector.shape_cast %155 : vector<1x8x8xf32> to vector<8x8xf32>
    %157 = vector.extract_strided_slice %154 {offsets = [0, 0, 0], sizes = [1, 8, 4], strides = [1, 1, 1]} : vector<4x8x4xf32> to vector<1x8x4xf32>
    %158 = vector.shape_cast %157 : vector<1x8x4xf32> to vector<8x4xf32>
    %159 = vector.extract_strided_slice %139 {offsets = [0, 0], sizes = [64, 8], strides = [1, 1]} : vector<80x32xf32> to vector<64x8xf32>
    %160 = vector.extract_strided_slice %156 {offsets = [0, 0], sizes = [8, 1], strides = [1, 1]} : vector<8x8xf32> to vector<8x1xf32>
    %161 = arith.addf %21, %160 : vector<8x1xf32>
    %162 = vector.extract_strided_slice %156 {offsets = [0, 1], sizes = [8, 1], strides = [1, 1]} : vector<8x8xf32> to vector<8x1xf32>
    %163 = arith.addf %25, %162 : vector<8x1xf32>
    %164 = vector.broadcast %163 : vector<8x1xf32> to vector<8x64xf32>
    %165 = vector.broadcast %14 : vector<1x64xf32> to vector<8x64xf32>
    %166 = arith.subf %164, %165 : vector<8x64xf32>
    %167 = math.absf %166 : vector<8x64xf32>
    %cst_73 = arith.constant 1.000000e+00 : f32
    %168 = vector.broadcast %cst_73 : f32 to vector<8x64xf32>
    %169 = arith.subf %168, %167 : vector<8x64xf32>
    %cst_74 = arith.constant 0.000000e+00 : f32
    %170 = vector.broadcast %cst_74 : f32 to vector<8x64xf32>
    %171 = arith.maximumf %170, %169 : vector<8x64xf32>
    %172 = vector.broadcast %161 : vector<8x1xf32> to vector<8x64xf32>
    %173 = vector.broadcast %17 : vector<1x64xf32> to vector<8x64xf32>
    %174 = arith.subf %172, %173 : vector<8x64xf32>
    %175 = math.absf %174 : vector<8x64xf32>
    %cst_75 = arith.constant 1.000000e+00 : f32
    %176 = vector.broadcast %cst_75 : f32 to vector<8x64xf32>
    %177 = arith.subf %176, %175 : vector<8x64xf32>
    %cst_76 = arith.constant 0.000000e+00 : f32
    %178 = vector.broadcast %cst_76 : f32 to vector<8x64xf32>
    %179 = arith.maximumf %178, %177 : vector<8x64xf32>
    %180 = arith.mulf %171, %179 : vector<8x64xf32>
    %181 = vector.extract_strided_slice %158 {offsets = [0, 0], sizes = [8, 1], strides = [1, 1]} : vector<8x4xf32> to vector<8x1xf32>
    %182 = vector.broadcast %181 : vector<8x1xf32> to vector<8x64xf32>
    %183 = arith.mulf %182, %180 : vector<8x64xf32>
    %184 = vector.extract_strided_slice %156 {offsets = [0, 2], sizes = [8, 1], strides = [1, 1]} : vector<8x8xf32> to vector<8x1xf32>
    %185 = arith.addf %21, %184 : vector<8x1xf32>
    %186 = vector.extract_strided_slice %156 {offsets = [0, 3], sizes = [8, 1], strides = [1, 1]} : vector<8x8xf32> to vector<8x1xf32>
    %187 = arith.addf %25, %186 : vector<8x1xf32>
    %188 = vector.broadcast %187 : vector<8x1xf32> to vector<8x64xf32>
    %189 = vector.broadcast %14 : vector<1x64xf32> to vector<8x64xf32>
    %190 = arith.subf %188, %189 : vector<8x64xf32>
    %191 = math.absf %190 : vector<8x64xf32>
    %cst_77 = arith.constant 1.000000e+00 : f32
    %192 = vector.broadcast %cst_77 : f32 to vector<8x64xf32>
    %193 = arith.subf %192, %191 : vector<8x64xf32>
    %cst_78 = arith.constant 0.000000e+00 : f32
    %194 = vector.broadcast %cst_78 : f32 to vector<8x64xf32>
    %195 = arith.maximumf %194, %193 : vector<8x64xf32>
    %196 = vector.broadcast %185 : vector<8x1xf32> to vector<8x64xf32>
    %197 = vector.broadcast %17 : vector<1x64xf32> to vector<8x64xf32>
    %198 = arith.subf %196, %197 : vector<8x64xf32>
    %199 = math.absf %198 : vector<8x64xf32>
    %cst_79 = arith.constant 1.000000e+00 : f32
    %200 = vector.broadcast %cst_79 : f32 to vector<8x64xf32>
    %201 = arith.subf %200, %199 : vector<8x64xf32>
    %cst_80 = arith.constant 0.000000e+00 : f32
    %202 = vector.broadcast %cst_80 : f32 to vector<8x64xf32>
    %203 = arith.maximumf %202, %201 : vector<8x64xf32>
    %204 = arith.mulf %195, %203 : vector<8x64xf32>
    %205 = vector.extract_strided_slice %158 {offsets = [0, 1], sizes = [8, 1], strides = [1, 1]} : vector<8x4xf32> to vector<8x1xf32>
    %206 = vector.broadcast %205 : vector<8x1xf32> to vector<8x64xf32>
    %207 = arith.mulf %206, %204 : vector<8x64xf32>
    %208 = arith.addf %183, %207 : vector<8x64xf32>
    %cst_81 = arith.constant dense<0.000000e+00> : vector<8x8xf32>
    %209 = tpu.matmul %208, %159, %cst_81 {dimension_numbers = #tpu.dot_dimension_numbers<[1], [0], [0], [1], [0, 0, 1, 1], [], []>} : vector<8x64xf32>, vector<64x8xf32>, vector<8x8xf32> -> vector<8x8xf32>
    %210 = vector.extract_strided_slice %139 {offsets = [64, 0], sizes = [16, 8], strides = [1, 1]} : vector<80x32xf32> to vector<16x8xf32>
    %211 = vector.extract_strided_slice %156 {offsets = [0, 4], sizes = [8, 1], strides = [1, 1]} : vector<8x8xf32> to vector<8x1xf32>
    %212 = arith.addf %37, %211 : vector<8x1xf32>
    %213 = vector.extract_strided_slice %156 {offsets = [0, 5], sizes = [8, 1], strides = [1, 1]} : vector<8x8xf32> to vector<8x1xf32>
    %214 = arith.addf %41, %213 : vector<8x1xf32>
    %215 = vector.broadcast %214 : vector<8x1xf32> to vector<8x16xf32>
    %216 = vector.broadcast %30 : vector<1x16xf32> to vector<8x16xf32>
    %217 = arith.subf %215, %216 : vector<8x16xf32>
    %218 = math.absf %217 : vector<8x16xf32>
    %cst_82 = arith.constant 1.000000e+00 : f32
    %219 = vector.broadcast %cst_82 : f32 to vector<8x16xf32>
    %220 = arith.subf %219, %218 : vector<8x16xf32>
    %cst_83 = arith.constant 0.000000e+00 : f32
    %221 = vector.broadcast %cst_83 : f32 to vector<8x16xf32>
    %222 = arith.maximumf %221, %220 : vector<8x16xf32>
    %223 = vector.broadcast %212 : vector<8x1xf32> to vector<8x16xf32>
    %224 = vector.broadcast %33 : vector<1x16xf32> to vector<8x16xf32>
    %225 = arith.subf %223, %224 : vector<8x16xf32>
    %226 = math.absf %225 : vector<8x16xf32>
    %cst_84 = arith.constant 1.000000e+00 : f32
    %227 = vector.broadcast %cst_84 : f32 to vector<8x16xf32>
    %228 = arith.subf %227, %226 : vector<8x16xf32>
    %cst_85 = arith.constant 0.000000e+00 : f32
    %229 = vector.broadcast %cst_85 : f32 to vector<8x16xf32>
    %230 = arith.maximumf %229, %228 : vector<8x16xf32>
    %231 = arith.mulf %222, %230 : vector<8x16xf32>
    %232 = vector.extract_strided_slice %158 {offsets = [0, 2], sizes = [8, 1], strides = [1, 1]} : vector<8x4xf32> to vector<8x1xf32>
    %233 = vector.broadcast %232 : vector<8x1xf32> to vector<8x16xf32>
    %234 = arith.mulf %233, %231 : vector<8x16xf32>
    %235 = vector.extract_strided_slice %156 {offsets = [0, 6], sizes = [8, 1], strides = [1, 1]} : vector<8x8xf32> to vector<8x1xf32>
    %236 = arith.addf %37, %235 : vector<8x1xf32>
    %237 = vector.extract_strided_slice %156 {offsets = [0, 7], sizes = [8, 1], strides = [1, 1]} : vector<8x8xf32> to vector<8x1xf32>
    %238 = arith.addf %41, %237 : vector<8x1xf32>
    %239 = vector.broadcast %238 : vector<8x1xf32> to vector<8x16xf32>
    %240 = vector.broadcast %30 : vector<1x16xf32> to vector<8x16xf32>
    %241 = arith.subf %239, %240 : vector<8x16xf32>
    %242 = math.absf %241 : vector<8x16xf32>
    %cst_86 = arith.constant 1.000000e+00 : f32
    %243 = vector.broadcast %cst_86 : f32 to vector<8x16xf32>
    %244 = arith.subf %243, %242 : vector<8x16xf32>
    %cst_87 = arith.constant 0.000000e+00 : f32
    %245 = vector.broadcast %cst_87 : f32 to vector<8x16xf32>
    %246 = arith.maximumf %245, %244 : vector<8x16xf32>
    %247 = vector.broadcast %236 : vector<8x1xf32> to vector<8x16xf32>
    %248 = vector.broadcast %33 : vector<1x16xf32> to vector<8x16xf32>
    %249 = arith.subf %247, %248 : vector<8x16xf32>
    %250 = math.absf %249 : vector<8x16xf32>
    %cst_88 = arith.constant 1.000000e+00 : f32
    %251 = vector.broadcast %cst_88 : f32 to vector<8x16xf32>
    %252 = arith.subf %251, %250 : vector<8x16xf32>
    %cst_89 = arith.constant 0.000000e+00 : f32
    %253 = vector.broadcast %cst_89 : f32 to vector<8x16xf32>
    %254 = arith.maximumf %253, %252 : vector<8x16xf32>
    %255 = arith.mulf %246, %254 : vector<8x16xf32>
    %256 = vector.extract_strided_slice %158 {offsets = [0, 3], sizes = [8, 1], strides = [1, 1]} : vector<8x4xf32> to vector<8x1xf32>
    %257 = vector.broadcast %256 : vector<8x1xf32> to vector<8x16xf32>
    %258 = arith.mulf %257, %255 : vector<8x16xf32>
    %259 = arith.addf %234, %258 : vector<8x16xf32>
    %cst_90 = arith.constant dense<0.000000e+00> : vector<8x8xf32>
    %260 = tpu.matmul %259, %210, %cst_90 {dimension_numbers = #tpu.dot_dimension_numbers<[1], [0], [0], [1], [0, 0, 1, 1], [], []>} : vector<8x16xf32>, vector<16x8xf32>, vector<8x8xf32> -> vector<8x8xf32>
    %261 = arith.addf %209, %260 : vector<8x8xf32>
    %262 = vector.extract_strided_slice %143 {offsets = [1, 0, 0], sizes = [1, 8, 8], strides = [1, 1, 1]} : vector<4x8x8xf32> to vector<1x8x8xf32>
    %263 = vector.shape_cast %262 : vector<1x8x8xf32> to vector<8x8xf32>
    %264 = vector.extract_strided_slice %154 {offsets = [1, 0, 0], sizes = [1, 8, 4], strides = [1, 1, 1]} : vector<4x8x4xf32> to vector<1x8x4xf32>
    %265 = vector.shape_cast %264 : vector<1x8x4xf32> to vector<8x4xf32>
    %266 = vector.extract_strided_slice %139 {offsets = [0, 8], sizes = [64, 8], strides = [1, 1]} : vector<80x32xf32> to vector<64x8xf32>
    %267 = vector.extract_strided_slice %263 {offsets = [0, 0], sizes = [8, 1], strides = [1, 1]} : vector<8x8xf32> to vector<8x1xf32>
    %268 = arith.addf %21, %267 : vector<8x1xf32>
    %269 = vector.extract_strided_slice %263 {offsets = [0, 1], sizes = [8, 1], strides = [1, 1]} : vector<8x8xf32> to vector<8x1xf32>
    %270 = arith.addf %25, %269 : vector<8x1xf32>
    %271 = vector.broadcast %270 : vector<8x1xf32> to vector<8x64xf32>
    %272 = vector.broadcast %14 : vector<1x64xf32> to vector<8x64xf32>
    %273 = arith.subf %271, %272 : vector<8x64xf32>
    %274 = math.absf %273 : vector<8x64xf32>
    %cst_91 = arith.constant 1.000000e+00 : f32
    %275 = vector.broadcast %cst_91 : f32 to vector<8x64xf32>
    %276 = arith.subf %275, %274 : vector<8x64xf32>
    %cst_92 = arith.constant 0.000000e+00 : f32
    %277 = vector.broadcast %cst_92 : f32 to vector<8x64xf32>
    %278 = arith.maximumf %277, %276 : vector<8x64xf32>
    %279 = vector.broadcast %268 : vector<8x1xf32> to vector<8x64xf32>
    %280 = vector.broadcast %17 : vector<1x64xf32> to vector<8x64xf32>
    %281 = arith.subf %279, %280 : vector<8x64xf32>
    %282 = math.absf %281 : vector<8x64xf32>
    %cst_93 = arith.constant 1.000000e+00 : f32
    %283 = vector.broadcast %cst_93 : f32 to vector<8x64xf32>
    %284 = arith.subf %283, %282 : vector<8x64xf32>
    %cst_94 = arith.constant 0.000000e+00 : f32
    %285 = vector.broadcast %cst_94 : f32 to vector<8x64xf32>
    %286 = arith.maximumf %285, %284 : vector<8x64xf32>
    %287 = arith.mulf %278, %286 : vector<8x64xf32>
    %288 = vector.extract_strided_slice %265 {offsets = [0, 0], sizes = [8, 1], strides = [1, 1]} : vector<8x4xf32> to vector<8x1xf32>
    %289 = vector.broadcast %288 : vector<8x1xf32> to vector<8x64xf32>
    %290 = arith.mulf %289, %287 : vector<8x64xf32>
    %291 = vector.extract_strided_slice %263 {offsets = [0, 2], sizes = [8, 1], strides = [1, 1]} : vector<8x8xf32> to vector<8x1xf32>
    %292 = arith.addf %21, %291 : vector<8x1xf32>
    %293 = vector.extract_strided_slice %263 {offsets = [0, 3], sizes = [8, 1], strides = [1, 1]} : vector<8x8xf32> to vector<8x1xf32>
    %294 = arith.addf %25, %293 : vector<8x1xf32>
    %295 = vector.broadcast %294 : vector<8x1xf32> to vector<8x64xf32>
    %296 = vector.broadcast %14 : vector<1x64xf32> to vector<8x64xf32>
    %297 = arith.subf %295, %296 : vector<8x64xf32>
    %298 = math.absf %297 : vector<8x64xf32>
    %cst_95 = arith.constant 1.000000e+00 : f32
    %299 = vector.broadcast %cst_95 : f32 to vector<8x64xf32>
    %300 = arith.subf %299, %298 : vector<8x64xf32>
    %cst_96 = arith.constant 0.000000e+00 : f32
    %301 = vector.broadcast %cst_96 : f32 to vector<8x64xf32>
    %302 = arith.maximumf %301, %300 : vector<8x64xf32>
    %303 = vector.broadcast %292 : vector<8x1xf32> to vector<8x64xf32>
    %304 = vector.broadcast %17 : vector<1x64xf32> to vector<8x64xf32>
    %305 = arith.subf %303, %304 : vector<8x64xf32>
    %306 = math.absf %305 : vector<8x64xf32>
    %cst_97 = arith.constant 1.000000e+00 : f32
    %307 = vector.broadcast %cst_97 : f32 to vector<8x64xf32>
    %308 = arith.subf %307, %306 : vector<8x64xf32>
    %cst_98 = arith.constant 0.000000e+00 : f32
    %309 = vector.broadcast %cst_98 : f32 to vector<8x64xf32>
    %310 = arith.maximumf %309, %308 : vector<8x64xf32>
    %311 = arith.mulf %302, %310 : vector<8x64xf32>
    %312 = vector.extract_strided_slice %265 {offsets = [0, 1], sizes = [8, 1], strides = [1, 1]} : vector<8x4xf32> to vector<8x1xf32>
    %313 = vector.broadcast %312 : vector<8x1xf32> to vector<8x64xf32>
    %314 = arith.mulf %313, %311 : vector<8x64xf32>
    %315 = arith.addf %290, %314 : vector<8x64xf32>
    %cst_99 = arith.constant dense<0.000000e+00> : vector<8x8xf32>
    %316 = tpu.matmul %315, %266, %cst_99 {dimension_numbers = #tpu.dot_dimension_numbers<[1], [0], [0], [1], [0, 0, 1, 1], [], []>} : vector<8x64xf32>, vector<64x8xf32>, vector<8x8xf32> -> vector<8x8xf32>
    %317 = vector.extract_strided_slice %139 {offsets = [64, 8], sizes = [16, 8], strides = [1, 1]} : vector<80x32xf32> to vector<16x8xf32>
    %318 = vector.extract_strided_slice %263 {offsets = [0, 4], sizes = [8, 1], strides = [1, 1]} : vector<8x8xf32> to vector<8x1xf32>
    %319 = arith.addf %37, %318 : vector<8x1xf32>
    %320 = vector.extract_strided_slice %263 {offsets = [0, 5], sizes = [8, 1], strides = [1, 1]} : vector<8x8xf32> to vector<8x1xf32>
    %321 = arith.addf %41, %320 : vector<8x1xf32>
    %322 = vector.broadcast %321 : vector<8x1xf32> to vector<8x16xf32>
    %323 = vector.broadcast %30 : vector<1x16xf32> to vector<8x16xf32>
    %324 = arith.subf %322, %323 : vector<8x16xf32>
    %325 = math.absf %324 : vector<8x16xf32>
    %cst_100 = arith.constant 1.000000e+00 : f32
    %326 = vector.broadcast %cst_100 : f32 to vector<8x16xf32>
    %327 = arith.subf %326, %325 : vector<8x16xf32>
    %cst_101 = arith.constant 0.000000e+00 : f32
    %328 = vector.broadcast %cst_101 : f32 to vector<8x16xf32>
    %329 = arith.maximumf %328, %327 : vector<8x16xf32>
    %330 = vector.broadcast %319 : vector<8x1xf32> to vector<8x16xf32>
    %331 = vector.broadcast %33 : vector<1x16xf32> to vector<8x16xf32>
    %332 = arith.subf %330, %331 : vector<8x16xf32>
    %333 = math.absf %332 : vector<8x16xf32>
    %cst_102 = arith.constant 1.000000e+00 : f32
    %334 = vector.broadcast %cst_102 : f32 to vector<8x16xf32>
    %335 = arith.subf %334, %333 : vector<8x16xf32>
    %cst_103 = arith.constant 0.000000e+00 : f32
    %336 = vector.broadcast %cst_103 : f32 to vector<8x16xf32>
    %337 = arith.maximumf %336, %335 : vector<8x16xf32>
    %338 = arith.mulf %329, %337 : vector<8x16xf32>
    %339 = vector.extract_strided_slice %265 {offsets = [0, 2], sizes = [8, 1], strides = [1, 1]} : vector<8x4xf32> to vector<8x1xf32>
    %340 = vector.broadcast %339 : vector<8x1xf32> to vector<8x16xf32>
    %341 = arith.mulf %340, %338 : vector<8x16xf32>
    %342 = vector.extract_strided_slice %263 {offsets = [0, 6], sizes = [8, 1], strides = [1, 1]} : vector<8x8xf32> to vector<8x1xf32>
    %343 = arith.addf %37, %342 : vector<8x1xf32>
    %344 = vector.extract_strided_slice %263 {offsets = [0, 7], sizes = [8, 1], strides = [1, 1]} : vector<8x8xf32> to vector<8x1xf32>
    %345 = arith.addf %41, %344 : vector<8x1xf32>
    %346 = vector.broadcast %345 : vector<8x1xf32> to vector<8x16xf32>
    %347 = vector.broadcast %30 : vector<1x16xf32> to vector<8x16xf32>
    %348 = arith.subf %346, %347 : vector<8x16xf32>
    %349 = math.absf %348 : vector<8x16xf32>
    %cst_104 = arith.constant 1.000000e+00 : f32
    %350 = vector.broadcast %cst_104 : f32 to vector<8x16xf32>
    %351 = arith.subf %350, %349 : vector<8x16xf32>
    %cst_105 = arith.constant 0.000000e+00 : f32
    %352 = vector.broadcast %cst_105 : f32 to vector<8x16xf32>
    %353 = arith.maximumf %352, %351 : vector<8x16xf32>
    %354 = vector.broadcast %343 : vector<8x1xf32> to vector<8x16xf32>
    %355 = vector.broadcast %33 : vector<1x16xf32> to vector<8x16xf32>
    %356 = arith.subf %354, %355 : vector<8x16xf32>
    %357 = math.absf %356 : vector<8x16xf32>
    %cst_106 = arith.constant 1.000000e+00 : f32
    %358 = vector.broadcast %cst_106 : f32 to vector<8x16xf32>
    %359 = arith.subf %358, %357 : vector<8x16xf32>
    %cst_107 = arith.constant 0.000000e+00 : f32
    %360 = vector.broadcast %cst_107 : f32 to vector<8x16xf32>
    %361 = arith.maximumf %360, %359 : vector<8x16xf32>
    %362 = arith.mulf %353, %361 : vector<8x16xf32>
    %363 = vector.extract_strided_slice %265 {offsets = [0, 3], sizes = [8, 1], strides = [1, 1]} : vector<8x4xf32> to vector<8x1xf32>
    %364 = vector.broadcast %363 : vector<8x1xf32> to vector<8x16xf32>
    %365 = arith.mulf %364, %362 : vector<8x16xf32>
    %366 = arith.addf %341, %365 : vector<8x16xf32>
    %cst_108 = arith.constant dense<0.000000e+00> : vector<8x8xf32>
    %367 = tpu.matmul %366, %317, %cst_108 {dimension_numbers = #tpu.dot_dimension_numbers<[1], [0], [0], [1], [0, 0, 1, 1], [], []>} : vector<8x16xf32>, vector<16x8xf32>, vector<8x8xf32> -> vector<8x8xf32>
    %368 = arith.addf %316, %367 : vector<8x8xf32>
    %369 = vector.extract_strided_slice %143 {offsets = [2, 0, 0], sizes = [1, 8, 8], strides = [1, 1, 1]} : vector<4x8x8xf32> to vector<1x8x8xf32>
    %370 = vector.shape_cast %369 : vector<1x8x8xf32> to vector<8x8xf32>
    %371 = vector.extract_strided_slice %154 {offsets = [2, 0, 0], sizes = [1, 8, 4], strides = [1, 1, 1]} : vector<4x8x4xf32> to vector<1x8x4xf32>
    %372 = vector.shape_cast %371 : vector<1x8x4xf32> to vector<8x4xf32>
    %373 = vector.extract_strided_slice %139 {offsets = [0, 16], sizes = [64, 8], strides = [1, 1]} : vector<80x32xf32> to vector<64x8xf32>
    %374 = vector.extract_strided_slice %370 {offsets = [0, 0], sizes = [8, 1], strides = [1, 1]} : vector<8x8xf32> to vector<8x1xf32>
    %375 = arith.addf %21, %374 : vector<8x1xf32>
    %376 = vector.extract_strided_slice %370 {offsets = [0, 1], sizes = [8, 1], strides = [1, 1]} : vector<8x8xf32> to vector<8x1xf32>
    %377 = arith.addf %25, %376 : vector<8x1xf32>
    %378 = vector.broadcast %377 : vector<8x1xf32> to vector<8x64xf32>
    %379 = vector.broadcast %14 : vector<1x64xf32> to vector<8x64xf32>
    %380 = arith.subf %378, %379 : vector<8x64xf32>
    %381 = math.absf %380 : vector<8x64xf32>
    %cst_109 = arith.constant 1.000000e+00 : f32
    %382 = vector.broadcast %cst_109 : f32 to vector<8x64xf32>
    %383 = arith.subf %382, %381 : vector<8x64xf32>
    %cst_110 = arith.constant 0.000000e+00 : f32
    %384 = vector.broadcast %cst_110 : f32 to vector<8x64xf32>
    %385 = arith.maximumf %384, %383 : vector<8x64xf32>
    %386 = vector.broadcast %375 : vector<8x1xf32> to vector<8x64xf32>
    %387 = vector.broadcast %17 : vector<1x64xf32> to vector<8x64xf32>
    %388 = arith.subf %386, %387 : vector<8x64xf32>
    %389 = math.absf %388 : vector<8x64xf32>
    %cst_111 = arith.constant 1.000000e+00 : f32
    %390 = vector.broadcast %cst_111 : f32 to vector<8x64xf32>
    %391 = arith.subf %390, %389 : vector<8x64xf32>
    %cst_112 = arith.constant 0.000000e+00 : f32
    %392 = vector.broadcast %cst_112 : f32 to vector<8x64xf32>
    %393 = arith.maximumf %392, %391 : vector<8x64xf32>
    %394 = arith.mulf %385, %393 : vector<8x64xf32>
    %395 = vector.extract_strided_slice %372 {offsets = [0, 0], sizes = [8, 1], strides = [1, 1]} : vector<8x4xf32> to vector<8x1xf32>
    %396 = vector.broadcast %395 : vector<8x1xf32> to vector<8x64xf32>
    %397 = arith.mulf %396, %394 : vector<8x64xf32>
    %398 = vector.extract_strided_slice %370 {offsets = [0, 2], sizes = [8, 1], strides = [1, 1]} : vector<8x8xf32> to vector<8x1xf32>
    %399 = arith.addf %21, %398 : vector<8x1xf32>
    %400 = vector.extract_strided_slice %370 {offsets = [0, 3], sizes = [8, 1], strides = [1, 1]} : vector<8x8xf32> to vector<8x1xf32>
    %401 = arith.addf %25, %400 : vector<8x1xf32>
    %402 = vector.broadcast %401 : vector<8x1xf32> to vector<8x64xf32>
    %403 = vector.broadcast %14 : vector<1x64xf32> to vector<8x64xf32>
    %404 = arith.subf %402, %403 : vector<8x64xf32>
    %405 = math.absf %404 : vector<8x64xf32>
    %cst_113 = arith.constant 1.000000e+00 : f32
    %406 = vector.broadcast %cst_113 : f32 to vector<8x64xf32>
    %407 = arith.subf %406, %405 : vector<8x64xf32>
    %cst_114 = arith.constant 0.000000e+00 : f32
    %408 = vector.broadcast %cst_114 : f32 to vector<8x64xf32>
    %409 = arith.maximumf %408, %407 : vector<8x64xf32>
    %410 = vector.broadcast %399 : vector<8x1xf32> to vector<8x64xf32>
    %411 = vector.broadcast %17 : vector<1x64xf32> to vector<8x64xf32>
    %412 = arith.subf %410, %411 : vector<8x64xf32>
    %413 = math.absf %412 : vector<8x64xf32>
    %cst_115 = arith.constant 1.000000e+00 : f32
    %414 = vector.broadcast %cst_115 : f32 to vector<8x64xf32>
    %415 = arith.subf %414, %413 : vector<8x64xf32>
    %cst_116 = arith.constant 0.000000e+00 : f32
    %416 = vector.broadcast %cst_116 : f32 to vector<8x64xf32>
    %417 = arith.maximumf %416, %415 : vector<8x64xf32>
    %418 = arith.mulf %409, %417 : vector<8x64xf32>
    %419 = vector.extract_strided_slice %372 {offsets = [0, 1], sizes = [8, 1], strides = [1, 1]} : vector<8x4xf32> to vector<8x1xf32>
    %420 = vector.broadcast %419 : vector<8x1xf32> to vector<8x64xf32>
    %421 = arith.mulf %420, %418 : vector<8x64xf32>
    %422 = arith.addf %397, %421 : vector<8x64xf32>
    %cst_117 = arith.constant dense<0.000000e+00> : vector<8x8xf32>
    %423 = tpu.matmul %422, %373, %cst_117 {dimension_numbers = #tpu.dot_dimension_numbers<[1], [0], [0], [1], [0, 0, 1, 1], [], []>} : vector<8x64xf32>, vector<64x8xf32>, vector<8x8xf32> -> vector<8x8xf32>
    %424 = vector.extract_strided_slice %139 {offsets = [64, 16], sizes = [16, 8], strides = [1, 1]} : vector<80x32xf32> to vector<16x8xf32>
    %425 = vector.extract_strided_slice %370 {offsets = [0, 4], sizes = [8, 1], strides = [1, 1]} : vector<8x8xf32> to vector<8x1xf32>
    %426 = arith.addf %37, %425 : vector<8x1xf32>
    %427 = vector.extract_strided_slice %370 {offsets = [0, 5], sizes = [8, 1], strides = [1, 1]} : vector<8x8xf32> to vector<8x1xf32>
    %428 = arith.addf %41, %427 : vector<8x1xf32>
    %429 = vector.broadcast %428 : vector<8x1xf32> to vector<8x16xf32>
    %430 = vector.broadcast %30 : vector<1x16xf32> to vector<8x16xf32>
    %431 = arith.subf %429, %430 : vector<8x16xf32>
    %432 = math.absf %431 : vector<8x16xf32>
    %cst_118 = arith.constant 1.000000e+00 : f32
    %433 = vector.broadcast %cst_118 : f32 to vector<8x16xf32>
    %434 = arith.subf %433, %432 : vector<8x16xf32>
    %cst_119 = arith.constant 0.000000e+00 : f32
    %435 = vector.broadcast %cst_119 : f32 to vector<8x16xf32>
    %436 = arith.maximumf %435, %434 : vector<8x16xf32>
    %437 = vector.broadcast %426 : vector<8x1xf32> to vector<8x16xf32>
    %438 = vector.broadcast %33 : vector<1x16xf32> to vector<8x16xf32>
    %439 = arith.subf %437, %438 : vector<8x16xf32>
    %440 = math.absf %439 : vector<8x16xf32>
    %cst_120 = arith.constant 1.000000e+00 : f32
    %441 = vector.broadcast %cst_120 : f32 to vector<8x16xf32>
    %442 = arith.subf %441, %440 : vector<8x16xf32>
    %cst_121 = arith.constant 0.000000e+00 : f32
    %443 = vector.broadcast %cst_121 : f32 to vector<8x16xf32>
    %444 = arith.maximumf %443, %442 : vector<8x16xf32>
    %445 = arith.mulf %436, %444 : vector<8x16xf32>
    %446 = vector.extract_strided_slice %372 {offsets = [0, 2], sizes = [8, 1], strides = [1, 1]} : vector<8x4xf32> to vector<8x1xf32>
    %447 = vector.broadcast %446 : vector<8x1xf32> to vector<8x16xf32>
    %448 = arith.mulf %447, %445 : vector<8x16xf32>
    %449 = vector.extract_strided_slice %370 {offsets = [0, 6], sizes = [8, 1], strides = [1, 1]} : vector<8x8xf32> to vector<8x1xf32>
    %450 = arith.addf %37, %449 : vector<8x1xf32>
    %451 = vector.extract_strided_slice %370 {offsets = [0, 7], sizes = [8, 1], strides = [1, 1]} : vector<8x8xf32> to vector<8x1xf32>
    %452 = arith.addf %41, %451 : vector<8x1xf32>
    %453 = vector.broadcast %452 : vector<8x1xf32> to vector<8x16xf32>
    %454 = vector.broadcast %30 : vector<1x16xf32> to vector<8x16xf32>
    %455 = arith.subf %453, %454 : vector<8x16xf32>
    %456 = math.absf %455 : vector<8x16xf32>
    %cst_122 = arith.constant 1.000000e+00 : f32
    %457 = vector.broadcast %cst_122 : f32 to vector<8x16xf32>
    %458 = arith.subf %457, %456 : vector<8x16xf32>
    %cst_123 = arith.constant 0.000000e+00 : f32
    %459 = vector.broadcast %cst_123 : f32 to vector<8x16xf32>
    %460 = arith.maximumf %459, %458 : vector<8x16xf32>
    %461 = vector.broadcast %450 : vector<8x1xf32> to vector<8x16xf32>
    %462 = vector.broadcast %33 : vector<1x16xf32> to vector<8x16xf32>
    %463 = arith.subf %461, %462 : vector<8x16xf32>
    %464 = math.absf %463 : vector<8x16xf32>
    %cst_124 = arith.constant 1.000000e+00 : f32
    %465 = vector.broadcast %cst_124 : f32 to vector<8x16xf32>
    %466 = arith.subf %465, %464 : vector<8x16xf32>
    %cst_125 = arith.constant 0.000000e+00 : f32
    %467 = vector.broadcast %cst_125 : f32 to vector<8x16xf32>
    %468 = arith.maximumf %467, %466 : vector<8x16xf32>
    %469 = arith.mulf %460, %468 : vector<8x16xf32>
    %470 = vector.extract_strided_slice %372 {offsets = [0, 3], sizes = [8, 1], strides = [1, 1]} : vector<8x4xf32> to vector<8x1xf32>
    %471 = vector.broadcast %470 : vector<8x1xf32> to vector<8x16xf32>
    %472 = arith.mulf %471, %469 : vector<8x16xf32>
    %473 = arith.addf %448, %472 : vector<8x16xf32>
    %cst_126 = arith.constant dense<0.000000e+00> : vector<8x8xf32>
    %474 = tpu.matmul %473, %424, %cst_126 {dimension_numbers = #tpu.dot_dimension_numbers<[1], [0], [0], [1], [0, 0, 1, 1], [], []>} : vector<8x16xf32>, vector<16x8xf32>, vector<8x8xf32> -> vector<8x8xf32>
    %475 = arith.addf %423, %474 : vector<8x8xf32>
    %476 = vector.extract_strided_slice %143 {offsets = [3, 0, 0], sizes = [1, 8, 8], strides = [1, 1, 1]} : vector<4x8x8xf32> to vector<1x8x8xf32>
    %477 = vector.shape_cast %476 : vector<1x8x8xf32> to vector<8x8xf32>
    %478 = vector.extract_strided_slice %154 {offsets = [3, 0, 0], sizes = [1, 8, 4], strides = [1, 1, 1]} : vector<4x8x4xf32> to vector<1x8x4xf32>
    %479 = vector.shape_cast %478 : vector<1x8x4xf32> to vector<8x4xf32>
    %480 = vector.extract_strided_slice %139 {offsets = [0, 24], sizes = [64, 8], strides = [1, 1]} : vector<80x32xf32> to vector<64x8xf32>
    %481 = vector.extract_strided_slice %477 {offsets = [0, 0], sizes = [8, 1], strides = [1, 1]} : vector<8x8xf32> to vector<8x1xf32>
    %482 = arith.addf %21, %481 : vector<8x1xf32>
    %483 = vector.extract_strided_slice %477 {offsets = [0, 1], sizes = [8, 1], strides = [1, 1]} : vector<8x8xf32> to vector<8x1xf32>
    %484 = arith.addf %25, %483 : vector<8x1xf32>
    %485 = vector.broadcast %484 : vector<8x1xf32> to vector<8x64xf32>
    %486 = vector.broadcast %14 : vector<1x64xf32> to vector<8x64xf32>
    %487 = arith.subf %485, %486 : vector<8x64xf32>
    %488 = math.absf %487 : vector<8x64xf32>
    %cst_127 = arith.constant 1.000000e+00 : f32
    %489 = vector.broadcast %cst_127 : f32 to vector<8x64xf32>
    %490 = arith.subf %489, %488 : vector<8x64xf32>
    %cst_128 = arith.constant 0.000000e+00 : f32
    %491 = vector.broadcast %cst_128 : f32 to vector<8x64xf32>
    %492 = arith.maximumf %491, %490 : vector<8x64xf32>
    %493 = vector.broadcast %482 : vector<8x1xf32> to vector<8x64xf32>
    %494 = vector.broadcast %17 : vector<1x64xf32> to vector<8x64xf32>
    %495 = arith.subf %493, %494 : vector<8x64xf32>
    %496 = math.absf %495 : vector<8x64xf32>
    %cst_129 = arith.constant 1.000000e+00 : f32
    %497 = vector.broadcast %cst_129 : f32 to vector<8x64xf32>
    %498 = arith.subf %497, %496 : vector<8x64xf32>
    %cst_130 = arith.constant 0.000000e+00 : f32
    %499 = vector.broadcast %cst_130 : f32 to vector<8x64xf32>
    %500 = arith.maximumf %499, %498 : vector<8x64xf32>
    %501 = arith.mulf %492, %500 : vector<8x64xf32>
    %502 = vector.extract_strided_slice %479 {offsets = [0, 0], sizes = [8, 1], strides = [1, 1]} : vector<8x4xf32> to vector<8x1xf32>
    %503 = vector.broadcast %502 : vector<8x1xf32> to vector<8x64xf32>
    %504 = arith.mulf %503, %501 : vector<8x64xf32>
    %505 = vector.extract_strided_slice %477 {offsets = [0, 2], sizes = [8, 1], strides = [1, 1]} : vector<8x8xf32> to vector<8x1xf32>
    %506 = arith.addf %21, %505 : vector<8x1xf32>
    %507 = vector.extract_strided_slice %477 {offsets = [0, 3], sizes = [8, 1], strides = [1, 1]} : vector<8x8xf32> to vector<8x1xf32>
    %508 = arith.addf %25, %507 : vector<8x1xf32>
    %509 = vector.broadcast %508 : vector<8x1xf32> to vector<8x64xf32>
    %510 = vector.broadcast %14 : vector<1x64xf32> to vector<8x64xf32>
    %511 = arith.subf %509, %510 : vector<8x64xf32>
    %512 = math.absf %511 : vector<8x64xf32>
    %cst_131 = arith.constant 1.000000e+00 : f32
    %513 = vector.broadcast %cst_131 : f32 to vector<8x64xf32>
    %514 = arith.subf %513, %512 : vector<8x64xf32>
    %cst_132 = arith.constant 0.000000e+00 : f32
    %515 = vector.broadcast %cst_132 : f32 to vector<8x64xf32>
    %516 = arith.maximumf %515, %514 : vector<8x64xf32>
    %517 = vector.broadcast %506 : vector<8x1xf32> to vector<8x64xf32>
    %518 = vector.broadcast %17 : vector<1x64xf32> to vector<8x64xf32>
    %519 = arith.subf %517, %518 : vector<8x64xf32>
    %520 = math.absf %519 : vector<8x64xf32>
    %cst_133 = arith.constant 1.000000e+00 : f32
    %521 = vector.broadcast %cst_133 : f32 to vector<8x64xf32>
    %522 = arith.subf %521, %520 : vector<8x64xf32>
    %cst_134 = arith.constant 0.000000e+00 : f32
    %523 = vector.broadcast %cst_134 : f32 to vector<8x64xf32>
    %524 = arith.maximumf %523, %522 : vector<8x64xf32>
    %525 = arith.mulf %516, %524 : vector<8x64xf32>
    %526 = vector.extract_strided_slice %479 {offsets = [0, 1], sizes = [8, 1], strides = [1, 1]} : vector<8x4xf32> to vector<8x1xf32>
    %527 = vector.broadcast %526 : vector<8x1xf32> to vector<8x64xf32>
    %528 = arith.mulf %527, %525 : vector<8x64xf32>
    %529 = arith.addf %504, %528 : vector<8x64xf32>
    %cst_135 = arith.constant dense<0.000000e+00> : vector<8x8xf32>
    %530 = tpu.matmul %529, %480, %cst_135 {dimension_numbers = #tpu.dot_dimension_numbers<[1], [0], [0], [1], [0, 0, 1, 1], [], []>} : vector<8x64xf32>, vector<64x8xf32>, vector<8x8xf32> -> vector<8x8xf32>
    %531 = vector.extract_strided_slice %139 {offsets = [64, 24], sizes = [16, 8], strides = [1, 1]} : vector<80x32xf32> to vector<16x8xf32>
    %532 = vector.extract_strided_slice %477 {offsets = [0, 4], sizes = [8, 1], strides = [1, 1]} : vector<8x8xf32> to vector<8x1xf32>
    %533 = arith.addf %37, %532 : vector<8x1xf32>
    %534 = vector.extract_strided_slice %477 {offsets = [0, 5], sizes = [8, 1], strides = [1, 1]} : vector<8x8xf32> to vector<8x1xf32>
    %535 = arith.addf %41, %534 : vector<8x1xf32>
    %536 = vector.broadcast %535 : vector<8x1xf32> to vector<8x16xf32>
    %537 = vector.broadcast %30 : vector<1x16xf32> to vector<8x16xf32>
    %538 = arith.subf %536, %537 : vector<8x16xf32>
    %539 = math.absf %538 : vector<8x16xf32>
    %cst_136 = arith.constant 1.000000e+00 : f32
    %540 = vector.broadcast %cst_136 : f32 to vector<8x16xf32>
    %541 = arith.subf %540, %539 : vector<8x16xf32>
    %cst_137 = arith.constant 0.000000e+00 : f32
    %542 = vector.broadcast %cst_137 : f32 to vector<8x16xf32>
    %543 = arith.maximumf %542, %541 : vector<8x16xf32>
    %544 = vector.broadcast %533 : vector<8x1xf32> to vector<8x16xf32>
    %545 = vector.broadcast %33 : vector<1x16xf32> to vector<8x16xf32>
    %546 = arith.subf %544, %545 : vector<8x16xf32>
    %547 = math.absf %546 : vector<8x16xf32>
    %cst_138 = arith.constant 1.000000e+00 : f32
    %548 = vector.broadcast %cst_138 : f32 to vector<8x16xf32>
    %549 = arith.subf %548, %547 : vector<8x16xf32>
    %cst_139 = arith.constant 0.000000e+00 : f32
    %550 = vector.broadcast %cst_139 : f32 to vector<8x16xf32>
    %551 = arith.maximumf %550, %549 : vector<8x16xf32>
    %552 = arith.mulf %543, %551 : vector<8x16xf32>
    %553 = vector.extract_strided_slice %479 {offsets = [0, 2], sizes = [8, 1], strides = [1, 1]} : vector<8x4xf32> to vector<8x1xf32>
    %554 = vector.broadcast %553 : vector<8x1xf32> to vector<8x16xf32>
    %555 = arith.mulf %554, %552 : vector<8x16xf32>
    %556 = vector.extract_strided_slice %477 {offsets = [0, 6], sizes = [8, 1], strides = [1, 1]} : vector<8x8xf32> to vector<8x1xf32>
    %557 = arith.addf %37, %556 : vector<8x1xf32>
    %558 = vector.extract_strided_slice %477 {offsets = [0, 7], sizes = [8, 1], strides = [1, 1]} : vector<8x8xf32> to vector<8x1xf32>
    %559 = arith.addf %41, %558 : vector<8x1xf32>
    %560 = vector.broadcast %559 : vector<8x1xf32> to vector<8x16xf32>
    %561 = vector.broadcast %30 : vector<1x16xf32> to vector<8x16xf32>
    %562 = arith.subf %560, %561 : vector<8x16xf32>
    %563 = math.absf %562 : vector<8x16xf32>
    %cst_140 = arith.constant 1.000000e+00 : f32
    %564 = vector.broadcast %cst_140 : f32 to vector<8x16xf32>
    %565 = arith.subf %564, %563 : vector<8x16xf32>
    %cst_141 = arith.constant 0.000000e+00 : f32
    %566 = vector.broadcast %cst_141 : f32 to vector<8x16xf32>
    %567 = arith.maximumf %566, %565 : vector<8x16xf32>
    %568 = vector.broadcast %557 : vector<8x1xf32> to vector<8x16xf32>
    %569 = vector.broadcast %33 : vector<1x16xf32> to vector<8x16xf32>
    %570 = arith.subf %568, %569 : vector<8x16xf32>
    %571 = math.absf %570 : vector<8x16xf32>
    %cst_142 = arith.constant 1.000000e+00 : f32
    %572 = vector.broadcast %cst_142 : f32 to vector<8x16xf32>
    %573 = arith.subf %572, %571 : vector<8x16xf32>
    %cst_143 = arith.constant 0.000000e+00 : f32
    %574 = vector.broadcast %cst_143 : f32 to vector<8x16xf32>
    %575 = arith.maximumf %574, %573 : vector<8x16xf32>
    %576 = arith.mulf %567, %575 : vector<8x16xf32>
    %577 = vector.extract_strided_slice %479 {offsets = [0, 3], sizes = [8, 1], strides = [1, 1]} : vector<8x4xf32> to vector<8x1xf32>
    %578 = vector.broadcast %577 : vector<8x1xf32> to vector<8x16xf32>
    %579 = arith.mulf %578, %576 : vector<8x16xf32>
    %580 = arith.addf %555, %579 : vector<8x16xf32>
    %cst_144 = arith.constant dense<0.000000e+00> : vector<8x8xf32>
    %581 = tpu.matmul %580, %531, %cst_144 {dimension_numbers = #tpu.dot_dimension_numbers<[1], [0], [0], [1], [0, 0, 1, 1], [], []>} : vector<8x16xf32>, vector<16x8xf32>, vector<8x8xf32> -> vector<8x8xf32>
    %582 = arith.addf %530, %581 : vector<8x8xf32>
    %583 = vector.shape_cast %261 : vector<8x8xf32> to vector<1x8x8xf32>
    %584 = vector.shape_cast %368 : vector<8x8xf32> to vector<1x8x8xf32>
    %585 = vector.shape_cast %475 : vector<8x8xf32> to vector<1x8x8xf32>
    %586 = vector.shape_cast %582 : vector<8x8xf32> to vector<1x8x8xf32>
    %587 = tpu.concatenate %583, %584, %585, %586 in 0 : vector<1x8x8xf32>, vector<1x8x8xf32>, vector<1x8x8xf32>, vector<1x8x8xf32> -> vector<4x8x8xf32>
    %588 = vector.extract_strided_slice %47 {offsets = [4, 0, 0], sizes = [4, 8, 32], strides = [1, 1, 1]} : vector<8x8x32xf32> to vector<4x8x32xf32>
    %cst_145 = arith.constant dense<0.000000e+00> : vector<4x8x32xf32>
    %589 = tpu.matmul %587, %588, %cst_145 {dimension_numbers = #tpu.dot_dimension_numbers<[2], [1], [1], [2], [0, 0, 0, 1, 1, 2], [0], [0]>} : vector<4x8x8xf32>, vector<4x8x32xf32>, vector<4x8x32xf32> -> vector<4x8x32xf32>
    %cst_146 = arith.constant dense<0.000000e+00> : vector<8x32xf32>
    %590 = vector.multi_reduction <add>, %589, %cst_146 [0] : vector<4x8x32xf32> to vector<8x32xf32>
    %591 = vector.broadcast %61 : vector<1x32xf32> to vector<8x32xf32>
    %592 = arith.addf %590, %591 : vector<8x32xf32>
    %593 = arith.addf %131, %592 : vector<8x32xf32>
    %cst_147 = arith.constant dense<0.000000e+00> : vector<8xf32>
    %594 = vector.multi_reduction <add>, %593, %cst_147 [1] : vector<8x32xf32> to vector<8xf32>
    %595 = vector.shape_cast %594 : vector<8xf32> to vector<8x1xf32>
    %cst_148 = arith.constant 3.200000e+01 : f32
    %596 = vector.broadcast %cst_148 : f32 to vector<8x1xf32>
    %597 = arith.divf %595, %596 : vector<8x1xf32>
    %598 = vector.broadcast %597 : vector<8x1xf32> to vector<8x32xf32>
    %599 = arith.subf %593, %598 : vector<8x32xf32>
    %600 = arith.mulf %599, %599 : vector<8x32xf32>
    %cst_149 = arith.constant dense<0.000000e+00> : vector<8xf32>
    %601 = vector.multi_reduction <add>, %600, %cst_149 [1] : vector<8x32xf32> to vector<8xf32>
    %602 = vector.shape_cast %601 : vector<8xf32> to vector<8x1xf32>
    %cst_150 = arith.constant 3.200000e+01 : f32
    %603 = vector.broadcast %cst_150 : f32 to vector<8x1xf32>
    %604 = arith.divf %602, %603 : vector<8x1xf32>
    %cst_151 = arith.constant 9.99999974E-6 : f32
    %605 = vector.broadcast %cst_151 : f32 to vector<8x1xf32>
    %606 = arith.addf %604, %605 : vector<8x1xf32>
    %607 = math.rsqrt %606 : vector<8x1xf32>
    %608 = vector.broadcast %607 : vector<8x1xf32> to vector<8x32xf32>
    %609 = arith.mulf %599, %608 : vector<8x32xf32>
    %610 = vector.broadcast %66 : vector<1x32xf32> to vector<8x32xf32>
    %611 = arith.mulf %609, %610 : vector<8x32xf32>
    %612 = vector.broadcast %67 : vector<1x32xf32> to vector<8x32xf32>
    %613 = arith.addf %611, %612 : vector<8x32xf32>
    %614 = vector.extract_strided_slice %53 {offsets = [0, 32], sizes = [32, 64], strides = [1, 1]} : vector<32x96xf32> to vector<32x64xf32>
    %cst_152 = arith.constant dense<0.000000e+00> : vector<8x64xf32>
    %615 = tpu.matmul %613, %614, %cst_152 {dimension_numbers = #tpu.dot_dimension_numbers<[1], [0], [0], [1], [0, 0, 1, 1], [], []>} : vector<8x32xf32>, vector<32x64xf32>, vector<8x64xf32> -> vector<8x64xf32>
    %616 = vector.broadcast %59 : vector<1x64xf32> to vector<8x64xf32>
    %617 = arith.addf %615, %616 : vector<8x64xf32>
    %cst_153 = arith.constant 0.000000e+00 : f32
    %618 = vector.broadcast %cst_153 : f32 to vector<8x64xf32>
    %619 = arith.maximumf %617, %618 : vector<8x64xf32>
    %cst_154 = arith.constant dense<0.000000e+00> : vector<8x32xf32>
    %620 = tpu.matmul %619, %55, %cst_154 {dimension_numbers = #tpu.dot_dimension_numbers<[1], [0], [0], [1], [0, 0, 1, 1], [], []>} : vector<8x64xf32>, vector<64x32xf32>, vector<8x32xf32> -> vector<8x32xf32>
    %621 = vector.broadcast %63 : vector<1x32xf32> to vector<8x32xf32>
    %622 = arith.addf %620, %621 : vector<8x32xf32>
    %623 = arith.addf %613, %622 : vector<8x32xf32>
    %cst_155 = arith.constant dense<0.000000e+00> : vector<8xf32>
    %624 = vector.multi_reduction <add>, %623, %cst_155 [1] : vector<8x32xf32> to vector<8xf32>
    %625 = vector.shape_cast %624 : vector<8xf32> to vector<8x1xf32>
    %cst_156 = arith.constant 3.200000e+01 : f32
    %626 = vector.broadcast %cst_156 : f32 to vector<8x1xf32>
    %627 = arith.divf %625, %626 : vector<8x1xf32>
    %628 = vector.broadcast %627 : vector<8x1xf32> to vector<8x32xf32>
    %629 = arith.subf %623, %628 : vector<8x32xf32>
    %630 = arith.mulf %629, %629 : vector<8x32xf32>
    %cst_157 = arith.constant dense<0.000000e+00> : vector<8xf32>
    %631 = vector.multi_reduction <add>, %630, %cst_157 [1] : vector<8x32xf32> to vector<8xf32>
    %632 = vector.shape_cast %631 : vector<8xf32> to vector<8x1xf32>
    %cst_158 = arith.constant 3.200000e+01 : f32
    %633 = vector.broadcast %cst_158 : f32 to vector<8x1xf32>
    %634 = arith.divf %632, %633 : vector<8x1xf32>
    %cst_159 = arith.constant 9.99999974E-6 : f32
    %635 = vector.broadcast %cst_159 : f32 to vector<8x1xf32>
    %636 = arith.addf %634, %635 : vector<8x1xf32>
    %637 = math.rsqrt %636 : vector<8x1xf32>
    %638 = vector.broadcast %637 : vector<8x1xf32> to vector<8x32xf32>
    %639 = arith.mulf %629, %638 : vector<8x32xf32>
    %640 = vector.broadcast %68 : vector<1x32xf32> to vector<8x32xf32>
    %641 = arith.mulf %639, %640 : vector<8x32xf32>
    %642 = vector.broadcast %69 : vector<1x32xf32> to vector<8x32xf32>
    %643 = arith.addf %641, %642 : vector<8x32xf32>
    %c0_160 = arith.constant 0 : index
    %c0_161 = arith.constant 0 : index
    %c0_162 = arith.constant 0 : index
    %c0_163 = arith.constant 0 : index
    %644 = vector.load %arg14[%c0_160, %c0_161, %c0_162, %c0_163] : memref<1x2x8x32xf32, #tpu.memory_space<vmem>>, vector<1x1x8x32xf32>
    %645 = vector.shape_cast %644 : vector<1x1x8x32xf32> to vector<8x32xf32>
    %646 = vector.shape_cast %643 : vector<8x32xf32> to vector<1x1x8x32xf32>
    tpu.vector_store %arg14[%c0_160, %c0_161, %c0_162, %c0_163], %646 {strides = array<i32>} : memref<1x2x8x32xf32, #tpu.memory_space<vmem>>, vector<1x1x8x32xf32>,
    %c1 = arith.constant 1 : index
    %c0_164 = arith.constant 0 : index
    %c0_165 = arith.constant 0 : index
    %c0_166 = arith.constant 0 : index
    %647 = vector.load %arg5[%c1, %c0_164, %c0_165, %c0_166] : memref<2x12x32x8xf32, #tpu.memory_space<vmem>>, vector<1x12x32x8xf32>
    %648 = vector.shape_cast %647 : vector<1x12x32x8xf32> to vector<12x32x8xf32>
    %c1_167 = arith.constant 1 : index
    %c0_168 = arith.constant 0 : index
    %c0_169 = arith.constant 0 : index
    %c0_170 = arith.constant 0 : index
    %649 = vector.load %arg6[%c1_167, %c0_168, %c0_169, %c0_170] : memref<2x12x1x8xf32, #tpu.memory_space<vmem>>, vector<1x12x1x8xf32>
    %650 = vector.shape_cast %649 : vector<1x12x1x8xf32> to vector<12x1x8xf32>
    %c1_171 = arith.constant 1 : index
    %c0_172 = arith.constant 0 : index
    %c0_173 = arith.constant 0 : index
    %c0_174 = arith.constant 0 : index
    %651 = vector.load %arg7[%c1_171, %c0_172, %c0_173, %c0_174] : memref<2x8x8x32xf32, #tpu.memory_space<vmem>>, vector<1x8x8x32xf32>
    %652 = vector.shape_cast %651 : vector<1x8x8x32xf32> to vector<8x8x32xf32>
    %c1_175 = arith.constant 1 : index
    %c0_176 = arith.constant 0 : index
    %c0_177 = arith.constant 0 : index
    %c0_178 = arith.constant 0 : index
    %653 = vector.load %arg8[%c1_175, %c0_176, %c0_177, %c0_178] : memref<2x4x32x12xf32, #tpu.memory_space<vmem>>, vector<1x4x32x12xf32>
    %654 = vector.shape_cast %653 : vector<1x4x32x12xf32> to vector<4x32x12xf32>
    %c1_179 = arith.constant 1 : index
    %c0_180 = arith.constant 0 : index
    %c0_181 = arith.constant 0 : index
    %c0_182 = arith.constant 0 : index
    %655 = vector.load %arg9[%c1_179, %c0_180, %c0_181, %c0_182] : memref<2x4x1x12xf32, #tpu.memory_space<vmem>>, vector<1x4x1x12xf32>
    %656 = vector.shape_cast %655 : vector<1x4x1x12xf32> to vector<4x1x12xf32>
    %c1_183 = arith.constant 1 : index
    %c0_184 = arith.constant 0 : index
    %c0_185 = arith.constant 0 : index
    %657 = vector.load %arg10[%c1_183, %c0_184, %c0_185] : memref<2x32x96xf32, #tpu.memory_space<vmem>>, vector<1x32x96xf32>
    %658 = vector.shape_cast %657 : vector<1x32x96xf32> to vector<32x96xf32>
    %c1_186 = arith.constant 1 : index
    %c0_187 = arith.constant 0 : index
    %c0_188 = arith.constant 0 : index
    %659 = vector.load %arg11[%c1_186, %c0_187, %c0_188] : memref<2x64x32xf32, #tpu.memory_space<vmem>>, vector<1x64x32xf32>
    %660 = vector.shape_cast %659 : vector<1x64x32xf32> to vector<64x32xf32>
    %c1_189 = arith.constant 1 : index
    %c0_190 = arith.constant 0 : index
    %c0_191 = arith.constant 0 : index
    %661 = vector.load %arg12[%c1_189, %c0_190, %c0_191] : memref<2x10x32xf32, #tpu.memory_space<vmem>>, vector<1x10x32xf32>
    %662 = vector.shape_cast %661 : vector<1x10x32xf32> to vector<10x32xf32>
    %c1_192 = arith.constant 1 : index
    %c0_193 = arith.constant 0 : index
    %c0_194 = arith.constant 0 : index
    %663 = vector.load %arg13[%c1_192, %c0_193, %c0_194] : memref<2x1x64xf32, #tpu.memory_space<vmem>>, vector<1x1x64xf32>
    %664 = vector.shape_cast %663 : vector<1x1x64xf32> to vector<1x64xf32>
    %665 = vector.extract_strided_slice %662 {offsets = [0, 0], sizes = [1, 32], strides = [1, 1]} : vector<10x32xf32> to vector<1x32xf32>
    %666 = vector.extract_strided_slice %662 {offsets = [1, 0], sizes = [1, 32], strides = [1, 1]} : vector<10x32xf32> to vector<1x32xf32>
    %667 = vector.extract_strided_slice %662 {offsets = [2, 0], sizes = [1, 32], strides = [1, 1]} : vector<10x32xf32> to vector<1x32xf32>
    %668 = vector.extract_strided_slice %662 {offsets = [3, 0], sizes = [1, 32], strides = [1, 1]} : vector<10x32xf32> to vector<1x32xf32>
    %669 = vector.extract_strided_slice %662 {offsets = [4, 0], sizes = [1, 32], strides = [1, 1]} : vector<10x32xf32> to vector<1x32xf32>
    %670 = vector.extract_strided_slice %662 {offsets = [5, 0], sizes = [1, 32], strides = [1, 1]} : vector<10x32xf32> to vector<1x32xf32>
    %671 = vector.extract_strided_slice %662 {offsets = [6, 0], sizes = [1, 32], strides = [1, 1]} : vector<10x32xf32> to vector<1x32xf32>
    %672 = vector.extract_strided_slice %662 {offsets = [7, 0], sizes = [1, 32], strides = [1, 1]} : vector<10x32xf32> to vector<1x32xf32>
    %673 = vector.extract_strided_slice %662 {offsets = [8, 0], sizes = [1, 32], strides = [1, 1]} : vector<10x32xf32> to vector<1x32xf32>
    %674 = vector.extract_strided_slice %662 {offsets = [9, 0], sizes = [1, 32], strides = [1, 1]} : vector<10x32xf32> to vector<1x32xf32>
    %675 = arith.addf %643, %3 : vector<8x32xf32>
    %676 = vector.shape_cast %675 : vector<8x32xf32> to vector<1x8x32xf32>
    %677 = vector.shape_cast %676 : vector<1x8x32xf32> to vector<1x8x32xf32>
    %678 = vector.broadcast %677 : vector<1x8x32xf32> to vector<4x8x32xf32>
    %679 = vector.shape_cast %643 : vector<8x32xf32> to vector<1x8x32xf32>
    %680 = vector.shape_cast %679 : vector<1x8x32xf32> to vector<1x8x32xf32>
    %681 = vector.broadcast %680 : vector<1x8x32xf32> to vector<4x8x32xf32>
    %682 = vector.extract_strided_slice %648 {offsets = [0, 0, 0], sizes = [4, 32, 8], strides = [1, 1, 1]} : vector<12x32x8xf32> to vector<4x32x8xf32>
    %cst_195 = arith.constant dense<0.000000e+00> : vector<4x8x8xf32>
    %683 = tpu.matmul %678, %682, %cst_195 {dimension_numbers = #tpu.dot_dimension_numbers<[2], [1], [1], [2], [0, 0, 0, 1, 1, 2], [0], [0]>} : vector<4x8x32xf32>, vector<4x32x8xf32>, vector<4x8x8xf32> -> vector<4x8x8xf32>
    %684 = vector.extract_strided_slice %650 {offsets = [0, 0, 0], sizes = [4, 1, 8], strides = [1, 1, 1]} : vector<12x1x8xf32> to vector<4x1x8xf32>
    %685 = vector.broadcast %684 : vector<4x1x8xf32> to vector<4x8x8xf32>
    %686 = arith.addf %683, %685 : vector<4x8x8xf32>
    %687 = vector.extract_strided_slice %648 {offsets = [4, 0, 0], sizes = [4, 32, 8], strides = [1, 1, 1]} : vector<12x32x8xf32> to vector<4x32x8xf32>
    %cst_196 = arith.constant dense<0.000000e+00> : vector<4x8x8xf32>
    %688 = tpu.matmul %678, %687, %cst_196 {dimension_numbers = #tpu.dot_dimension_numbers<[2], [1], [1], [2], [0, 0, 0, 1, 1, 2], [0], [0]>} : vector<4x8x32xf32>, vector<4x32x8xf32>, vector<4x8x8xf32> -> vector<4x8x8xf32>
    %689 = vector.extract_strided_slice %650 {offsets = [4, 0, 0], sizes = [4, 1, 8], strides = [1, 1, 1]} : vector<12x1x8xf32> to vector<4x1x8xf32>
    %690 = vector.broadcast %689 : vector<4x1x8xf32> to vector<4x8x8xf32>
    %691 = arith.addf %688, %690 : vector<4x8x8xf32>
    %692 = vector.extract_strided_slice %648 {offsets = [8, 0, 0], sizes = [4, 32, 8], strides = [1, 1, 1]} : vector<12x32x8xf32> to vector<4x32x8xf32>
    %cst_197 = arith.constant dense<0.000000e+00> : vector<4x8x8xf32>
    %693 = tpu.matmul %681, %692, %cst_197 {dimension_numbers = #tpu.dot_dimension_numbers<[2], [1], [1], [2], [0, 0, 0, 1, 1, 2], [0], [0]>} : vector<4x8x32xf32>, vector<4x32x8xf32>, vector<4x8x8xf32> -> vector<4x8x8xf32>
    %694 = vector.extract_strided_slice %650 {offsets = [8, 0, 0], sizes = [4, 1, 8], strides = [1, 1, 1]} : vector<12x1x8xf32> to vector<4x1x8xf32>
    %695 = vector.broadcast %694 : vector<4x1x8xf32> to vector<4x8x8xf32>
    %696 = arith.addf %693, %695 : vector<4x8x8xf32>
    %cst_198 = arith.constant 0.353553385 : f32
    %697 = vector.broadcast %cst_198 : f32 to vector<4x8x8xf32>
    %698 = arith.mulf %686, %697 : vector<4x8x8xf32>
    %cst_199 = arith.constant dense<0.000000e+00> : vector<4x8x8xf32>
    %699 = tpu.matmul %698, %691, %cst_199 {dimension_numbers = #tpu.dot_dimension_numbers<[2], [2], [1], [1], [0, 0, 0, 1, 1, 1], [0], [0]>} : vector<4x8x8xf32>, vector<4x8x8xf32>, vector<4x8x8xf32> -> vector<4x8x8xf32>
    %cst_200 = arith.constant dense<0xFF800000> : vector<4x8xf32>
    %700 = vector.multi_reduction <maximumf>, %699, %cst_200 [2] : vector<4x8x8xf32> to vector<4x8xf32>
    %701 = vector.shape_cast %700 : vector<4x8xf32> to vector<4x8x1xf32>
    %702 = vector.broadcast %701 : vector<4x8x1xf32> to vector<4x8x8xf32>
    %703 = arith.subf %699, %702 : vector<4x8x8xf32>
    %704 = math.exp %703 : vector<4x8x8xf32>
    %cst_201 = arith.constant dense<0.000000e+00> : vector<4x8xf32>
    %705 = vector.multi_reduction <add>, %704, %cst_201 [2] : vector<4x8x8xf32> to vector<4x8xf32>
    %706 = vector.shape_cast %705 : vector<4x8xf32> to vector<4x8x1xf32>
    %707 = tpu.reciprocal %706 {approx = true} : vector<4x8x1xf32> -> vector<4x8x1xf32>
    %708 = vector.broadcast %707 : vector<4x8x1xf32> to vector<4x8x8xf32>
    %709 = arith.mulf %704, %708 : vector<4x8x8xf32>
    %cst_202 = arith.constant dense<0.000000e+00> : vector<4x8x8xf32>
    %710 = tpu.matmul %709, %696, %cst_202 {dimension_numbers = #tpu.dot_dimension_numbers<[2], [1], [1], [2], [0, 0, 0, 1, 1, 2], [0], [0]>} : vector<4x8x8xf32>, vector<4x8x8xf32>, vector<4x8x8xf32> -> vector<4x8x8xf32>
    %711 = vector.extract_strided_slice %652 {offsets = [0, 0, 0], sizes = [4, 8, 32], strides = [1, 1, 1]} : vector<8x8x32xf32> to vector<4x8x32xf32>
    %cst_203 = arith.constant dense<0.000000e+00> : vector<4x8x32xf32>
    %712 = tpu.matmul %710, %711, %cst_203 {dimension_numbers = #tpu.dot_dimension_numbers<[2], [1], [1], [2], [0, 0, 0, 1, 1, 2], [0], [0]>} : vector<4x8x8xf32>, vector<4x8x32xf32>, vector<4x8x32xf32> -> vector<4x8x32xf32>
    %cst_204 = arith.constant dense<0.000000e+00> : vector<8x32xf32>
    %713 = vector.multi_reduction <add>, %712, %cst_204 [0] : vector<4x8x32xf32> to vector<8x32xf32>
    %714 = vector.broadcast %665 : vector<1x32xf32> to vector<8x32xf32>
    %715 = arith.addf %713, %714 : vector<8x32xf32>
    %716 = arith.addf %643, %715 : vector<8x32xf32>
    %cst_205 = arith.constant dense<0.000000e+00> : vector<8xf32>
    %717 = vector.multi_reduction <add>, %716, %cst_205 [1] : vector<8x32xf32> to vector<8xf32>
    %718 = vector.shape_cast %717 : vector<8xf32> to vector<8x1xf32>
    %cst_206 = arith.constant 3.200000e+01 : f32
    %719 = vector.broadcast %cst_206 : f32 to vector<8x1xf32>
    %720 = arith.divf %718, %719 : vector<8x1xf32>
    %721 = vector.broadcast %720 : vector<8x1xf32> to vector<8x32xf32>
    %722 = arith.subf %716, %721 : vector<8x32xf32>
    %723 = arith.mulf %722, %722 : vector<8x32xf32>
    %cst_207 = arith.constant dense<0.000000e+00> : vector<8xf32>
    %724 = vector.multi_reduction <add>, %723, %cst_207 [1] : vector<8x32xf32> to vector<8xf32>
    %725 = vector.shape_cast %724 : vector<8xf32> to vector<8x1xf32>
    %cst_208 = arith.constant 3.200000e+01 : f32
    %726 = vector.broadcast %cst_208 : f32 to vector<8x1xf32>
    %727 = arith.divf %725, %726 : vector<8x1xf32>
    %cst_209 = arith.constant 9.99999974E-6 : f32
    %728 = vector.broadcast %cst_209 : f32 to vector<8x1xf32>
    %729 = arith.addf %727, %728 : vector<8x1xf32>
    %730 = math.rsqrt %729 : vector<8x1xf32>
    %731 = vector.broadcast %730 : vector<8x1xf32> to vector<8x32xf32>
    %732 = arith.mulf %722, %731 : vector<8x32xf32>
    %733 = vector.broadcast %669 : vector<1x32xf32> to vector<8x32xf32>
    %734 = arith.mulf %732, %733 : vector<8x32xf32>
    %735 = vector.broadcast %670 : vector<1x32xf32> to vector<8x32xf32>
    %736 = arith.addf %734, %735 : vector<8x32xf32>
    %737 = arith.addf %736, %3 : vector<8x32xf32>
    %738 = vector.shape_cast %737 : vector<8x32xf32> to vector<1x8x32xf32>
    %739 = vector.shape_cast %738 : vector<1x8x32xf32> to vector<1x8x32xf32>
    %740 = vector.broadcast %739 : vector<1x8x32xf32> to vector<4x8x32xf32>
    %741 = vector.extract_strided_slice %658 {offsets = [0, 0], sizes = [32, 32], strides = [1, 1]} : vector<32x96xf32> to vector<32x32xf32>
    %cst_210 = arith.constant dense<0.000000e+00> : vector<80x32xf32>
    %742 = tpu.matmul %7, %741, %cst_210 {dimension_numbers = #tpu.dot_dimension_numbers<[1], [0], [0], [1], [0, 0, 1, 1], [], []>} : vector<80x32xf32>, vector<32x32xf32>, vector<80x32xf32> -> vector<80x32xf32>
    %743 = vector.broadcast %667 : vector<1x32xf32> to vector<80x32xf32>
    %744 = arith.addf %742, %743 : vector<80x32xf32>
    %cst_211 = arith.constant dense<0.000000e+00> : vector<4x8x12xf32>
    %745 = tpu.matmul %740, %654, %cst_211 {dimension_numbers = #tpu.dot_dimension_numbers<[2], [1], [1], [2], [0, 0, 0, 1, 1, 2], [0], [0]>} : vector<4x8x32xf32>, vector<4x32x12xf32>, vector<4x8x12xf32> -> vector<4x8x12xf32>
    %746 = vector.broadcast %656 : vector<4x1x12xf32> to vector<4x8x12xf32>
    %747 = arith.addf %745, %746 : vector<4x8x12xf32>
    %748 = vector.extract_strided_slice %747 {offsets = [0, 0, 0], sizes = [4, 8, 8], strides = [1, 1, 1]} : vector<4x8x12xf32> to vector<4x8x8xf32>
    %749 = vector.extract_strided_slice %747 {offsets = [0, 0, 8], sizes = [4, 8, 4], strides = [1, 1, 1]} : vector<4x8x12xf32> to vector<4x8x4xf32>
    %cst_212 = arith.constant dense<0xFF800000> : vector<4x8xf32>
    %750 = vector.multi_reduction <maximumf>, %749, %cst_212 [2] : vector<4x8x4xf32> to vector<4x8xf32>
    %751 = vector.shape_cast %750 : vector<4x8xf32> to vector<4x8x1xf32>
    %752 = vector.broadcast %751 : vector<4x8x1xf32> to vector<4x8x4xf32>
    %753 = arith.subf %749, %752 : vector<4x8x4xf32>
    %754 = math.exp %753 : vector<4x8x4xf32>
    %cst_213 = arith.constant dense<0.000000e+00> : vector<4x8xf32>
    %755 = vector.multi_reduction <add>, %754, %cst_213 [2] : vector<4x8x4xf32> to vector<4x8xf32>
    %756 = vector.shape_cast %755 : vector<4x8xf32> to vector<4x8x1xf32>
    %757 = tpu.reciprocal %756 {approx = true} : vector<4x8x1xf32> -> vector<4x8x1xf32>
    %758 = vector.broadcast %757 : vector<4x8x1xf32> to vector<4x8x4xf32>
    %759 = arith.mulf %754, %758 : vector<4x8x4xf32>
    %760 = vector.extract_strided_slice %748 {offsets = [0, 0, 0], sizes = [1, 8, 8], strides = [1, 1, 1]} : vector<4x8x8xf32> to vector<1x8x8xf32>
    %761 = vector.shape_cast %760 : vector<1x8x8xf32> to vector<8x8xf32>
    %762 = vector.extract_strided_slice %759 {offsets = [0, 0, 0], sizes = [1, 8, 4], strides = [1, 1, 1]} : vector<4x8x4xf32> to vector<1x8x4xf32>
    %763 = vector.shape_cast %762 : vector<1x8x4xf32> to vector<8x4xf32>
    %764 = vector.extract_strided_slice %744 {offsets = [0, 0], sizes = [64, 8], strides = [1, 1]} : vector<80x32xf32> to vector<64x8xf32>
    %765 = vector.extract_strided_slice %761 {offsets = [0, 0], sizes = [8, 1], strides = [1, 1]} : vector<8x8xf32> to vector<8x1xf32>
    %766 = arith.addf %21, %765 : vector<8x1xf32>
    %767 = vector.extract_strided_slice %761 {offsets = [0, 1], sizes = [8, 1], strides = [1, 1]} : vector<8x8xf32> to vector<8x1xf32>
    %768 = arith.addf %25, %767 : vector<8x1xf32>
    %769 = vector.broadcast %768 : vector<8x1xf32> to vector<8x64xf32>
    %770 = vector.broadcast %14 : vector<1x64xf32> to vector<8x64xf32>
    %771 = arith.subf %769, %770 : vector<8x64xf32>
    %772 = math.absf %771 : vector<8x64xf32>
    %cst_214 = arith.constant 1.000000e+00 : f32
    %773 = vector.broadcast %cst_214 : f32 to vector<8x64xf32>
    %774 = arith.subf %773, %772 : vector<8x64xf32>
    %cst_215 = arith.constant 0.000000e+00 : f32
    %775 = vector.broadcast %cst_215 : f32 to vector<8x64xf32>
    %776 = arith.maximumf %775, %774 : vector<8x64xf32>
    %777 = vector.broadcast %766 : vector<8x1xf32> to vector<8x64xf32>
    %778 = vector.broadcast %17 : vector<1x64xf32> to vector<8x64xf32>
    %779 = arith.subf %777, %778 : vector<8x64xf32>
    %780 = math.absf %779 : vector<8x64xf32>
    %cst_216 = arith.constant 1.000000e+00 : f32
    %781 = vector.broadcast %cst_216 : f32 to vector<8x64xf32>
    %782 = arith.subf %781, %780 : vector<8x64xf32>
    %cst_217 = arith.constant 0.000000e+00 : f32
    %783 = vector.broadcast %cst_217 : f32 to vector<8x64xf32>
    %784 = arith.maximumf %783, %782 : vector<8x64xf32>
    %785 = arith.mulf %776, %784 : vector<8x64xf32>
    %786 = vector.extract_strided_slice %763 {offsets = [0, 0], sizes = [8, 1], strides = [1, 1]} : vector<8x4xf32> to vector<8x1xf32>
    %787 = vector.broadcast %786 : vector<8x1xf32> to vector<8x64xf32>
    %788 = arith.mulf %787, %785 : vector<8x64xf32>
    %789 = vector.extract_strided_slice %761 {offsets = [0, 2], sizes = [8, 1], strides = [1, 1]} : vector<8x8xf32> to vector<8x1xf32>
    %790 = arith.addf %21, %789 : vector<8x1xf32>
    %791 = vector.extract_strided_slice %761 {offsets = [0, 3], sizes = [8, 1], strides = [1, 1]} : vector<8x8xf32> to vector<8x1xf32>
    %792 = arith.addf %25, %791 : vector<8x1xf32>
    %793 = vector.broadcast %792 : vector<8x1xf32> to vector<8x64xf32>
    %794 = vector.broadcast %14 : vector<1x64xf32> to vector<8x64xf32>
    %795 = arith.subf %793, %794 : vector<8x64xf32>
    %796 = math.absf %795 : vector<8x64xf32>
    %cst_218 = arith.constant 1.000000e+00 : f32
    %797 = vector.broadcast %cst_218 : f32 to vector<8x64xf32>
    %798 = arith.subf %797, %796 : vector<8x64xf32>
    %cst_219 = arith.constant 0.000000e+00 : f32
    %799 = vector.broadcast %cst_219 : f32 to vector<8x64xf32>
    %800 = arith.maximumf %799, %798 : vector<8x64xf32>
    %801 = vector.broadcast %790 : vector<8x1xf32> to vector<8x64xf32>
    %802 = vector.broadcast %17 : vector<1x64xf32> to vector<8x64xf32>
    %803 = arith.subf %801, %802 : vector<8x64xf32>
    %804 = math.absf %803 : vector<8x64xf32>
    %cst_220 = arith.constant 1.000000e+00 : f32
    %805 = vector.broadcast %cst_220 : f32 to vector<8x64xf32>
    %806 = arith.subf %805, %804 : vector<8x64xf32>
    %cst_221 = arith.constant 0.000000e+00 : f32
    %807 = vector.broadcast %cst_221 : f32 to vector<8x64xf32>
    %808 = arith.maximumf %807, %806 : vector<8x64xf32>
    %809 = arith.mulf %800, %808 : vector<8x64xf32>
    %810 = vector.extract_strided_slice %763 {offsets = [0, 1], sizes = [8, 1], strides = [1, 1]} : vector<8x4xf32> to vector<8x1xf32>
    %811 = vector.broadcast %810 : vector<8x1xf32> to vector<8x64xf32>
    %812 = arith.mulf %811, %809 : vector<8x64xf32>
    %813 = arith.addf %788, %812 : vector<8x64xf32>
    %cst_222 = arith.constant dense<0.000000e+00> : vector<8x8xf32>
    %814 = tpu.matmul %813, %764, %cst_222 {dimension_numbers = #tpu.dot_dimension_numbers<[1], [0], [0], [1], [0, 0, 1, 1], [], []>} : vector<8x64xf32>, vector<64x8xf32>, vector<8x8xf32> -> vector<8x8xf32>
    %815 = vector.extract_strided_slice %744 {offsets = [64, 0], sizes = [16, 8], strides = [1, 1]} : vector<80x32xf32> to vector<16x8xf32>
    %816 = vector.extract_strided_slice %761 {offsets = [0, 4], sizes = [8, 1], strides = [1, 1]} : vector<8x8xf32> to vector<8x1xf32>
    %817 = arith.addf %37, %816 : vector<8x1xf32>
    %818 = vector.extract_strided_slice %761 {offsets = [0, 5], sizes = [8, 1], strides = [1, 1]} : vector<8x8xf32> to vector<8x1xf32>
    %819 = arith.addf %41, %818 : vector<8x1xf32>
    %820 = vector.broadcast %819 : vector<8x1xf32> to vector<8x16xf32>
    %821 = vector.broadcast %30 : vector<1x16xf32> to vector<8x16xf32>
    %822 = arith.subf %820, %821 : vector<8x16xf32>
    %823 = math.absf %822 : vector<8x16xf32>
    %cst_223 = arith.constant 1.000000e+00 : f32
    %824 = vector.broadcast %cst_223 : f32 to vector<8x16xf32>
    %825 = arith.subf %824, %823 : vector<8x16xf32>
    %cst_224 = arith.constant 0.000000e+00 : f32
    %826 = vector.broadcast %cst_224 : f32 to vector<8x16xf32>
    %827 = arith.maximumf %826, %825 : vector<8x16xf32>
    %828 = vector.broadcast %817 : vector<8x1xf32> to vector<8x16xf32>
    %829 = vector.broadcast %33 : vector<1x16xf32> to vector<8x16xf32>
    %830 = arith.subf %828, %829 : vector<8x16xf32>
    %831 = math.absf %830 : vector<8x16xf32>
    %cst_225 = arith.constant 1.000000e+00 : f32
    %832 = vector.broadcast %cst_225 : f32 to vector<8x16xf32>
    %833 = arith.subf %832, %831 : vector<8x16xf32>
    %cst_226 = arith.constant 0.000000e+00 : f32
    %834 = vector.broadcast %cst_226 : f32 to vector<8x16xf32>
    %835 = arith.maximumf %834, %833 : vector<8x16xf32>
    %836 = arith.mulf %827, %835 : vector<8x16xf32>
    %837 = vector.extract_strided_slice %763 {offsets = [0, 2], sizes = [8, 1], strides = [1, 1]} : vector<8x4xf32> to vector<8x1xf32>
    %838 = vector.broadcast %837 : vector<8x1xf32> to vector<8x16xf32>
    %839 = arith.mulf %838, %836 : vector<8x16xf32>
    %840 = vector.extract_strided_slice %761 {offsets = [0, 6], sizes = [8, 1], strides = [1, 1]} : vector<8x8xf32> to vector<8x1xf32>
    %841 = arith.addf %37, %840 : vector<8x1xf32>
    %842 = vector.extract_strided_slice %761 {offsets = [0, 7], sizes = [8, 1], strides = [1, 1]} : vector<8x8xf32> to vector<8x1xf32>
    %843 = arith.addf %41, %842 : vector<8x1xf32>
    %844 = vector.broadcast %843 : vector<8x1xf32> to vector<8x16xf32>
    %845 = vector.broadcast %30 : vector<1x16xf32> to vector<8x16xf32>
    %846 = arith.subf %844, %845 : vector<8x16xf32>
    %847 = math.absf %846 : vector<8x16xf32>
    %cst_227 = arith.constant 1.000000e+00 : f32
    %848 = vector.broadcast %cst_227 : f32 to vector<8x16xf32>
    %849 = arith.subf %848, %847 : vector<8x16xf32>
    %cst_228 = arith.constant 0.000000e+00 : f32
    %850 = vector.broadcast %cst_228 : f32 to vector<8x16xf32>
    %851 = arith.maximumf %850, %849 : vector<8x16xf32>
    %852 = vector.broadcast %841 : vector<8x1xf32> to vector<8x16xf32>
    %853 = vector.broadcast %33 : vector<1x16xf32> to vector<8x16xf32>
    %854 = arith.subf %852, %853 : vector<8x16xf32>
    %855 = math.absf %854 : vector<8x16xf32>
    %cst_229 = arith.constant 1.000000e+00 : f32
    %856 = vector.broadcast %cst_229 : f32 to vector<8x16xf32>
    %857 = arith.subf %856, %855 : vector<8x16xf32>
    %cst_230 = arith.constant 0.000000e+00 : f32
    %858 = vector.broadcast %cst_230 : f32 to vector<8x16xf32>
    %859 = arith.maximumf %858, %857 : vector<8x16xf32>
    %860 = arith.mulf %851, %859 : vector<8x16xf32>
    %861 = vector.extract_strided_slice %763 {offsets = [0, 3], sizes = [8, 1], strides = [1, 1]} : vector<8x4xf32> to vector<8x1xf32>
    %862 = vector.broadcast %861 : vector<8x1xf32> to vector<8x16xf32>
    %863 = arith.mulf %862, %860 : vector<8x16xf32>
    %864 = arith.addf %839, %863 : vector<8x16xf32>
    %cst_231 = arith.constant dense<0.000000e+00> : vector<8x8xf32>
    %865 = tpu.matmul %864, %815, %cst_231 {dimension_numbers = #tpu.dot_dimension_numbers<[1], [0], [0], [1], [0, 0, 1, 1], [], []>} : vector<8x16xf32>, vector<16x8xf32>, vector<8x8xf32> -> vector<8x8xf32>
    %866 = arith.addf %814, %865 : vector<8x8xf32>
    %867 = vector.extract_strided_slice %748 {offsets = [1, 0, 0], sizes = [1, 8, 8], strides = [1, 1, 1]} : vector<4x8x8xf32> to vector<1x8x8xf32>
    %868 = vector.shape_cast %867 : vector<1x8x8xf32> to vector<8x8xf32>
    %869 = vector.extract_strided_slice %759 {offsets = [1, 0, 0], sizes = [1, 8, 4], strides = [1, 1, 1]} : vector<4x8x4xf32> to vector<1x8x4xf32>
    %870 = vector.shape_cast %869 : vector<1x8x4xf32> to vector<8x4xf32>
    %871 = vector.extract_strided_slice %744 {offsets = [0, 8], sizes = [64, 8], strides = [1, 1]} : vector<80x32xf32> to vector<64x8xf32>
    %872 = vector.extract_strided_slice %868 {offsets = [0, 0], sizes = [8, 1], strides = [1, 1]} : vector<8x8xf32> to vector<8x1xf32>
    %873 = arith.addf %21, %872 : vector<8x1xf32>
    %874 = vector.extract_strided_slice %868 {offsets = [0, 1], sizes = [8, 1], strides = [1, 1]} : vector<8x8xf32> to vector<8x1xf32>
    %875 = arith.addf %25, %874 : vector<8x1xf32>
    %876 = vector.broadcast %875 : vector<8x1xf32> to vector<8x64xf32>
    %877 = vector.broadcast %14 : vector<1x64xf32> to vector<8x64xf32>
    %878 = arith.subf %876, %877 : vector<8x64xf32>
    %879 = math.absf %878 : vector<8x64xf32>
    %cst_232 = arith.constant 1.000000e+00 : f32
    %880 = vector.broadcast %cst_232 : f32 to vector<8x64xf32>
    %881 = arith.subf %880, %879 : vector<8x64xf32>
    %cst_233 = arith.constant 0.000000e+00 : f32
    %882 = vector.broadcast %cst_233 : f32 to vector<8x64xf32>
    %883 = arith.maximumf %882, %881 : vector<8x64xf32>
    %884 = vector.broadcast %873 : vector<8x1xf32> to vector<8x64xf32>
    %885 = vector.broadcast %17 : vector<1x64xf32> to vector<8x64xf32>
    %886 = arith.subf %884, %885 : vector<8x64xf32>
    %887 = math.absf %886 : vector<8x64xf32>
    %cst_234 = arith.constant 1.000000e+00 : f32
    %888 = vector.broadcast %cst_234 : f32 to vector<8x64xf32>
    %889 = arith.subf %888, %887 : vector<8x64xf32>
    %cst_235 = arith.constant 0.000000e+00 : f32
    %890 = vector.broadcast %cst_235 : f32 to vector<8x64xf32>
    %891 = arith.maximumf %890, %889 : vector<8x64xf32>
    %892 = arith.mulf %883, %891 : vector<8x64xf32>
    %893 = vector.extract_strided_slice %870 {offsets = [0, 0], sizes = [8, 1], strides = [1, 1]} : vector<8x4xf32> to vector<8x1xf32>
    %894 = vector.broadcast %893 : vector<8x1xf32> to vector<8x64xf32>
    %895 = arith.mulf %894, %892 : vector<8x64xf32>
    %896 = vector.extract_strided_slice %868 {offsets = [0, 2], sizes = [8, 1], strides = [1, 1]} : vector<8x8xf32> to vector<8x1xf32>
    %897 = arith.addf %21, %896 : vector<8x1xf32>
    %898 = vector.extract_strided_slice %868 {offsets = [0, 3], sizes = [8, 1], strides = [1, 1]} : vector<8x8xf32> to vector<8x1xf32>
    %899 = arith.addf %25, %898 : vector<8x1xf32>
    %900 = vector.broadcast %899 : vector<8x1xf32> to vector<8x64xf32>
    %901 = vector.broadcast %14 : vector<1x64xf32> to vector<8x64xf32>
    %902 = arith.subf %900, %901 : vector<8x64xf32>
    %903 = math.absf %902 : vector<8x64xf32>
    %cst_236 = arith.constant 1.000000e+00 : f32
    %904 = vector.broadcast %cst_236 : f32 to vector<8x64xf32>
    %905 = arith.subf %904, %903 : vector<8x64xf32>
    %cst_237 = arith.constant 0.000000e+00 : f32
    %906 = vector.broadcast %cst_237 : f32 to vector<8x64xf32>
    %907 = arith.maximumf %906, %905 : vector<8x64xf32>
    %908 = vector.broadcast %897 : vector<8x1xf32> to vector<8x64xf32>
    %909 = vector.broadcast %17 : vector<1x64xf32> to vector<8x64xf32>
    %910 = arith.subf %908, %909 : vector<8x64xf32>
    %911 = math.absf %910 : vector<8x64xf32>
    %cst_238 = arith.constant 1.000000e+00 : f32
    %912 = vector.broadcast %cst_238 : f32 to vector<8x64xf32>
    %913 = arith.subf %912, %911 : vector<8x64xf32>
    %cst_239 = arith.constant 0.000000e+00 : f32
    %914 = vector.broadcast %cst_239 : f32 to vector<8x64xf32>
    %915 = arith.maximumf %914, %913 : vector<8x64xf32>
    %916 = arith.mulf %907, %915 : vector<8x64xf32>
    %917 = vector.extract_strided_slice %870 {offsets = [0, 1], sizes = [8, 1], strides = [1, 1]} : vector<8x4xf32> to vector<8x1xf32>
    %918 = vector.broadcast %917 : vector<8x1xf32> to vector<8x64xf32>
    %919 = arith.mulf %918, %916 : vector<8x64xf32>
    %920 = arith.addf %895, %919 : vector<8x64xf32>
    %cst_240 = arith.constant dense<0.000000e+00> : vector<8x8xf32>
    %921 = tpu.matmul %920, %871, %cst_240 {dimension_numbers = #tpu.dot_dimension_numbers<[1], [0], [0], [1], [0, 0, 1, 1], [], []>} : vector<8x64xf32>, vector<64x8xf32>, vector<8x8xf32> -> vector<8x8xf32>
    %922 = vector.extract_strided_slice %744 {offsets = [64, 8], sizes = [16, 8], strides = [1, 1]} : vector<80x32xf32> to vector<16x8xf32>
    %923 = vector.extract_strided_slice %868 {offsets = [0, 4], sizes = [8, 1], strides = [1, 1]} : vector<8x8xf32> to vector<8x1xf32>
    %924 = arith.addf %37, %923 : vector<8x1xf32>
    %925 = vector.extract_strided_slice %868 {offsets = [0, 5], sizes = [8, 1], strides = [1, 1]} : vector<8x8xf32> to vector<8x1xf32>
    %926 = arith.addf %41, %925 : vector<8x1xf32>
    %927 = vector.broadcast %926 : vector<8x1xf32> to vector<8x16xf32>
    %928 = vector.broadcast %30 : vector<1x16xf32> to vector<8x16xf32>
    %929 = arith.subf %927, %928 : vector<8x16xf32>
    %930 = math.absf %929 : vector<8x16xf32>
    %cst_241 = arith.constant 1.000000e+00 : f32
    %931 = vector.broadcast %cst_241 : f32 to vector<8x16xf32>
    %932 = arith.subf %931, %930 : vector<8x16xf32>
    %cst_242 = arith.constant 0.000000e+00 : f32
    %933 = vector.broadcast %cst_242 : f32 to vector<8x16xf32>
    %934 = arith.maximumf %933, %932 : vector<8x16xf32>
    %935 = vector.broadcast %924 : vector<8x1xf32> to vector<8x16xf32>
    %936 = vector.broadcast %33 : vector<1x16xf32> to vector<8x16xf32>
    %937 = arith.subf %935, %936 : vector<8x16xf32>
    %938 = math.absf %937 : vector<8x16xf32>
    %cst_243 = arith.constant 1.000000e+00 : f32
    %939 = vector.broadcast %cst_243 : f32 to vector<8x16xf32>
    %940 = arith.subf %939, %938 : vector<8x16xf32>
    %cst_244 = arith.constant 0.000000e+00 : f32
    %941 = vector.broadcast %cst_244 : f32 to vector<8x16xf32>
    %942 = arith.maximumf %941, %940 : vector<8x16xf32>
    %943 = arith.mulf %934, %942 : vector<8x16xf32>
    %944 = vector.extract_strided_slice %870 {offsets = [0, 2], sizes = [8, 1], strides = [1, 1]} : vector<8x4xf32> to vector<8x1xf32>
    %945 = vector.broadcast %944 : vector<8x1xf32> to vector<8x16xf32>
    %946 = arith.mulf %945, %943 : vector<8x16xf32>
    %947 = vector.extract_strided_slice %868 {offsets = [0, 6], sizes = [8, 1], strides = [1, 1]} : vector<8x8xf32> to vector<8x1xf32>
    %948 = arith.addf %37, %947 : vector<8x1xf32>
    %949 = vector.extract_strided_slice %868 {offsets = [0, 7], sizes = [8, 1], strides = [1, 1]} : vector<8x8xf32> to vector<8x1xf32>
    %950 = arith.addf %41, %949 : vector<8x1xf32>
    %951 = vector.broadcast %950 : vector<8x1xf32> to vector<8x16xf32>
    %952 = vector.broadcast %30 : vector<1x16xf32> to vector<8x16xf32>
    %953 = arith.subf %951, %952 : vector<8x16xf32>
    %954 = math.absf %953 : vector<8x16xf32>
    %cst_245 = arith.constant 1.000000e+00 : f32
    %955 = vector.broadcast %cst_245 : f32 to vector<8x16xf32>
    %956 = arith.subf %955, %954 : vector<8x16xf32>
    %cst_246 = arith.constant 0.000000e+00 : f32
    %957 = vector.broadcast %cst_246 : f32 to vector<8x16xf32>
    %958 = arith.maximumf %957, %956 : vector<8x16xf32>
    %959 = vector.broadcast %948 : vector<8x1xf32> to vector<8x16xf32>
    %960 = vector.broadcast %33 : vector<1x16xf32> to vector<8x16xf32>
    %961 = arith.subf %959, %960 : vector<8x16xf32>
    %962 = math.absf %961 : vector<8x16xf32>
    %cst_247 = arith.constant 1.000000e+00 : f32
    %963 = vector.broadcast %cst_247 : f32 to vector<8x16xf32>
    %964 = arith.subf %963, %962 : vector<8x16xf32>
    %cst_248 = arith.constant 0.000000e+00 : f32
    %965 = vector.broadcast %cst_248 : f32 to vector<8x16xf32>
    %966 = arith.maximumf %965, %964 : vector<8x16xf32>
    %967 = arith.mulf %958, %966 : vector<8x16xf32>
    %968 = vector.extract_strided_slice %870 {offsets = [0, 3], sizes = [8, 1], strides = [1, 1]} : vector<8x4xf32> to vector<8x1xf32>
    %969 = vector.broadcast %968 : vector<8x1xf32> to vector<8x16xf32>
    %970 = arith.mulf %969, %967 : vector<8x16xf32>
    %971 = arith.addf %946, %970 : vector<8x16xf32>
    %cst_249 = arith.constant dense<0.000000e+00> : vector<8x8xf32>
    %972 = tpu.matmul %971, %922, %cst_249 {dimension_numbers = #tpu.dot_dimension_numbers<[1], [0], [0], [1], [0, 0, 1, 1], [], []>} : vector<8x16xf32>, vector<16x8xf32>, vector<8x8xf32> -> vector<8x8xf32>
    %973 = arith.addf %921, %972 : vector<8x8xf32>
    %974 = vector.extract_strided_slice %748 {offsets = [2, 0, 0], sizes = [1, 8, 8], strides = [1, 1, 1]} : vector<4x8x8xf32> to vector<1x8x8xf32>
    %975 = vector.shape_cast %974 : vector<1x8x8xf32> to vector<8x8xf32>
    %976 = vector.extract_strided_slice %759 {offsets = [2, 0, 0], sizes = [1, 8, 4], strides = [1, 1, 1]} : vector<4x8x4xf32> to vector<1x8x4xf32>
    %977 = vector.shape_cast %976 : vector<1x8x4xf32> to vector<8x4xf32>
    %978 = vector.extract_strided_slice %744 {offsets = [0, 16], sizes = [64, 8], strides = [1, 1]} : vector<80x32xf32> to vector<64x8xf32>
    %979 = vector.extract_strided_slice %975 {offsets = [0, 0], sizes = [8, 1], strides = [1, 1]} : vector<8x8xf32> to vector<8x1xf32>
    %980 = arith.addf %21, %979 : vector<8x1xf32>
    %981 = vector.extract_strided_slice %975 {offsets = [0, 1], sizes = [8, 1], strides = [1, 1]} : vector<8x8xf32> to vector<8x1xf32>
    %982 = arith.addf %25, %981 : vector<8x1xf32>
    %983 = vector.broadcast %982 : vector<8x1xf32> to vector<8x64xf32>
    %984 = vector.broadcast %14 : vector<1x64xf32> to vector<8x64xf32>
    %985 = arith.subf %983, %984 : vector<8x64xf32>
    %986 = math.absf %985 : vector<8x64xf32>
    %cst_250 = arith.constant 1.000000e+00 : f32
    %987 = vector.broadcast %cst_250 : f32 to vector<8x64xf32>
    %988 = arith.subf %987, %986 : vector<8x64xf32>
    %cst_251 = arith.constant 0.000000e+00 : f32
    %989 = vector.broadcast %cst_251 : f32 to vector<8x64xf32>
    %990 = arith.maximumf %989, %988 : vector<8x64xf32>
    %991 = vector.broadcast %980 : vector<8x1xf32> to vector<8x64xf32>
    %992 = vector.broadcast %17 : vector<1x64xf32> to vector<8x64xf32>
    %993 = arith.subf %991, %992 : vector<8x64xf32>
    %994 = math.absf %993 : vector<8x64xf32>
    %cst_252 = arith.constant 1.000000e+00 : f32
    %995 = vector.broadcast %cst_252 : f32 to vector<8x64xf32>
    %996 = arith.subf %995, %994 : vector<8x64xf32>
    %cst_253 = arith.constant 0.000000e+00 : f32
    %997 = vector.broadcast %cst_253 : f32 to vector<8x64xf32>
    %998 = arith.maximumf %997, %996 : vector<8x64xf32>
    %999 = arith.mulf %990, %998 : vector<8x64xf32>
    %1000 = vector.extract_strided_slice %977 {offsets = [0, 0], sizes = [8, 1], strides = [1, 1]} : vector<8x4xf32> to vector<8x1xf32>
    %1001 = vector.broadcast %1000 : vector<8x1xf32> to vector<8x64xf32>
    %1002 = arith.mulf %1001, %999 : vector<8x64xf32>
    %1003 = vector.extract_strided_slice %975 {offsets = [0, 2], sizes = [8, 1], strides = [1, 1]} : vector<8x8xf32> to vector<8x1xf32>
    %1004 = arith.addf %21, %1003 : vector<8x1xf32>
    %1005 = vector.extract_strided_slice %975 {offsets = [0, 3], sizes = [8, 1], strides = [1, 1]} : vector<8x8xf32> to vector<8x1xf32>
    %1006 = arith.addf %25, %1005 : vector<8x1xf32>
    %1007 = vector.broadcast %1006 : vector<8x1xf32> to vector<8x64xf32>
    %1008 = vector.broadcast %14 : vector<1x64xf32> to vector<8x64xf32>
    %1009 = arith.subf %1007, %1008 : vector<8x64xf32>
    %1010 = math.absf %1009 : vector<8x64xf32>
    %cst_254 = arith.constant 1.000000e+00 : f32
    %1011 = vector.broadcast %cst_254 : f32 to vector<8x64xf32>
    %1012 = arith.subf %1011, %1010 : vector<8x64xf32>
    %cst_255 = arith.constant 0.000000e+00 : f32
    %1013 = vector.broadcast %cst_255 : f32 to vector<8x64xf32>
    %1014 = arith.maximumf %1013, %1012 : vector<8x64xf32>
    %1015 = vector.broadcast %1004 : vector<8x1xf32> to vector<8x64xf32>
    %1016 = vector.broadcast %17 : vector<1x64xf32> to vector<8x64xf32>
    %1017 = arith.subf %1015, %1016 : vector<8x64xf32>
    %1018 = math.absf %1017 : vector<8x64xf32>
    %cst_256 = arith.constant 1.000000e+00 : f32
    %1019 = vector.broadcast %cst_256 : f32 to vector<8x64xf32>
    %1020 = arith.subf %1019, %1018 : vector<8x64xf32>
    %cst_257 = arith.constant 0.000000e+00 : f32
    %1021 = vector.broadcast %cst_257 : f32 to vector<8x64xf32>
    %1022 = arith.maximumf %1021, %1020 : vector<8x64xf32>
    %1023 = arith.mulf %1014, %1022 : vector<8x64xf32>
    %1024 = vector.extract_strided_slice %977 {offsets = [0, 1], sizes = [8, 1], strides = [1, 1]} : vector<8x4xf32> to vector<8x1xf32>
    %1025 = vector.broadcast %1024 : vector<8x1xf32> to vector<8x64xf32>
    %1026 = arith.mulf %1025, %1023 : vector<8x64xf32>
    %1027 = arith.addf %1002, %1026 : vector<8x64xf32>
    %cst_258 = arith.constant dense<0.000000e+00> : vector<8x8xf32>
    %1028 = tpu.matmul %1027, %978, %cst_258 {dimension_numbers = #tpu.dot_dimension_numbers<[1], [0], [0], [1], [0, 0, 1, 1], [], []>} : vector<8x64xf32>, vector<64x8xf32>, vector<8x8xf32> -> vector<8x8xf32>
    %1029 = vector.extract_strided_slice %744 {offsets = [64, 16], sizes = [16, 8], strides = [1, 1]} : vector<80x32xf32> to vector<16x8xf32>
    %1030 = vector.extract_strided_slice %975 {offsets = [0, 4], sizes = [8, 1], strides = [1, 1]} : vector<8x8xf32> to vector<8x1xf32>
    %1031 = arith.addf %37, %1030 : vector<8x1xf32>
    %1032 = vector.extract_strided_slice %975 {offsets = [0, 5], sizes = [8, 1], strides = [1, 1]} : vector<8x8xf32> to vector<8x1xf32>
    %1033 = arith.addf %41, %1032 : vector<8x1xf32>
    %1034 = vector.broadcast %1033 : vector<8x1xf32> to vector<8x16xf32>
    %1035 = vector.broadcast %30 : vector<1x16xf32> to vector<8x16xf32>
    %1036 = arith.subf %1034, %1035 : vector<8x16xf32>
    %1037 = math.absf %1036 : vector<8x16xf32>
    %cst_259 = arith.constant 1.000000e+00 : f32
    %1038 = vector.broadcast %cst_259 : f32 to vector<8x16xf32>
    %1039 = arith.subf %1038, %1037 : vector<8x16xf32>
    %cst_260 = arith.constant 0.000000e+00 : f32
    %1040 = vector.broadcast %cst_260 : f32 to vector<8x16xf32>
    %1041 = arith.maximumf %1040, %1039 : vector<8x16xf32>
    %1042 = vector.broadcast %1031 : vector<8x1xf32> to vector<8x16xf32>
    %1043 = vector.broadcast %33 : vector<1x16xf32> to vector<8x16xf32>
    %1044 = arith.subf %1042, %1043 : vector<8x16xf32>
    %1045 = math.absf %1044 : vector<8x16xf32>
    %cst_261 = arith.constant 1.000000e+00 : f32
    %1046 = vector.broadcast %cst_261 : f32 to vector<8x16xf32>
    %1047 = arith.subf %1046, %1045 : vector<8x16xf32>
    %cst_262 = arith.constant 0.000000e+00 : f32
    %1048 = vector.broadcast %cst_262 : f32 to vector<8x16xf32>
    %1049 = arith.maximumf %1048, %1047 : vector<8x16xf32>
    %1050 = arith.mulf %1041, %1049 : vector<8x16xf32>
    %1051 = vector.extract_strided_slice %977 {offsets = [0, 2], sizes = [8, 1], strides = [1, 1]} : vector<8x4xf32> to vector<8x1xf32>
    %1052 = vector.broadcast %1051 : vector<8x1xf32> to vector<8x16xf32>
    %1053 = arith.mulf %1052, %1050 : vector<8x16xf32>
    %1054 = vector.extract_strided_slice %975 {offsets = [0, 6], sizes = [8, 1], strides = [1, 1]} : vector<8x8xf32> to vector<8x1xf32>
    %1055 = arith.addf %37, %1054 : vector<8x1xf32>
    %1056 = vector.extract_strided_slice %975 {offsets = [0, 7], sizes = [8, 1], strides = [1, 1]} : vector<8x8xf32> to vector<8x1xf32>
    %1057 = arith.addf %41, %1056 : vector<8x1xf32>
    %1058 = vector.broadcast %1057 : vector<8x1xf32> to vector<8x16xf32>
    %1059 = vector.broadcast %30 : vector<1x16xf32> to vector<8x16xf32>
    %1060 = arith.subf %1058, %1059 : vector<8x16xf32>
    %1061 = math.absf %1060 : vector<8x16xf32>
    %cst_263 = arith.constant 1.000000e+00 : f32
    %1062 = vector.broadcast %cst_263 : f32 to vector<8x16xf32>
    %1063 = arith.subf %1062, %1061 : vector<8x16xf32>
    %cst_264 = arith.constant 0.000000e+00 : f32
    %1064 = vector.broadcast %cst_264 : f32 to vector<8x16xf32>
    %1065 = arith.maximumf %1064, %1063 : vector<8x16xf32>
    %1066 = vector.broadcast %1055 : vector<8x1xf32> to vector<8x16xf32>
    %1067 = vector.broadcast %33 : vector<1x16xf32> to vector<8x16xf32>
    %1068 = arith.subf %1066, %1067 : vector<8x16xf32>
    %1069 = math.absf %1068 : vector<8x16xf32>
    %cst_265 = arith.constant 1.000000e+00 : f32
    %1070 = vector.broadcast %cst_265 : f32 to vector<8x16xf32>
    %1071 = arith.subf %1070, %1069 : vector<8x16xf32>
    %cst_266 = arith.constant 0.000000e+00 : f32
    %1072 = vector.broadcast %cst_266 : f32 to vector<8x16xf32>
    %1073 = arith.maximumf %1072, %1071 : vector<8x16xf32>
    %1074 = arith.mulf %1065, %1073 : vector<8x16xf32>
    %1075 = vector.extract_strided_slice %977 {offsets = [0, 3], sizes = [8, 1], strides = [1, 1]} : vector<8x4xf32> to vector<8x1xf32>
    %1076 = vector.broadcast %1075 : vector<8x1xf32> to vector<8x16xf32>
    %1077 = arith.mulf %1076, %1074 : vector<8x16xf32>
    %1078 = arith.addf %1053, %1077 : vector<8x16xf32>
    %cst_267 = arith.constant dense<0.000000e+00> : vector<8x8xf32>
    %1079 = tpu.matmul %1078, %1029, %cst_267 {dimension_numbers = #tpu.dot_dimension_numbers<[1], [0], [0], [1], [0, 0, 1, 1], [], []>} : vector<8x16xf32>, vector<16x8xf32>, vector<8x8xf32> -> vector<8x8xf32>
    %1080 = arith.addf %1028, %1079 : vector<8x8xf32>
    %1081 = vector.extract_strided_slice %748 {offsets = [3, 0, 0], sizes = [1, 8, 8], strides = [1, 1, 1]} : vector<4x8x8xf32> to vector<1x8x8xf32>
    %1082 = vector.shape_cast %1081 : vector<1x8x8xf32> to vector<8x8xf32>
    %1083 = vector.extract_strided_slice %759 {offsets = [3, 0, 0], sizes = [1, 8, 4], strides = [1, 1, 1]} : vector<4x8x4xf32> to vector<1x8x4xf32>
    %1084 = vector.shape_cast %1083 : vector<1x8x4xf32> to vector<8x4xf32>
    %1085 = vector.extract_strided_slice %744 {offsets = [0, 24], sizes = [64, 8], strides = [1, 1]} : vector<80x32xf32> to vector<64x8xf32>
    %1086 = vector.extract_strided_slice %1082 {offsets = [0, 0], sizes = [8, 1], strides = [1, 1]} : vector<8x8xf32> to vector<8x1xf32>
    %1087 = arith.addf %21, %1086 : vector<8x1xf32>
    %1088 = vector.extract_strided_slice %1082 {offsets = [0, 1], sizes = [8, 1], strides = [1, 1]} : vector<8x8xf32> to vector<8x1xf32>
    %1089 = arith.addf %25, %1088 : vector<8x1xf32>
    %1090 = vector.broadcast %1089 : vector<8x1xf32> to vector<8x64xf32>
    %1091 = vector.broadcast %14 : vector<1x64xf32> to vector<8x64xf32>
    %1092 = arith.subf %1090, %1091 : vector<8x64xf32>
    %1093 = math.absf %1092 : vector<8x64xf32>
    %cst_268 = arith.constant 1.000000e+00 : f32
    %1094 = vector.broadcast %cst_268 : f32 to vector<8x64xf32>
    %1095 = arith.subf %1094, %1093 : vector<8x64xf32>
    %cst_269 = arith.constant 0.000000e+00 : f32
    %1096 = vector.broadcast %cst_269 : f32 to vector<8x64xf32>
    %1097 = arith.maximumf %1096, %1095 : vector<8x64xf32>
    %1098 = vector.broadcast %1087 : vector<8x1xf32> to vector<8x64xf32>
    %1099 = vector.broadcast %17 : vector<1x64xf32> to vector<8x64xf32>
    %1100 = arith.subf %1098, %1099 : vector<8x64xf32>
    %1101 = math.absf %1100 : vector<8x64xf32>
    %cst_270 = arith.constant 1.000000e+00 : f32
    %1102 = vector.broadcast %cst_270 : f32 to vector<8x64xf32>
    %1103 = arith.subf %1102, %1101 : vector<8x64xf32>
    %cst_271 = arith.constant 0.000000e+00 : f32
    %1104 = vector.broadcast %cst_271 : f32 to vector<8x64xf32>
    %1105 = arith.maximumf %1104, %1103 : vector<8x64xf32>
    %1106 = arith.mulf %1097, %1105 : vector<8x64xf32>
    %1107 = vector.extract_strided_slice %1084 {offsets = [0, 0], sizes = [8, 1], strides = [1, 1]} : vector<8x4xf32> to vector<8x1xf32>
    %1108 = vector.broadcast %1107 : vector<8x1xf32> to vector<8x64xf32>
    %1109 = arith.mulf %1108, %1106 : vector<8x64xf32>
    %1110 = vector.extract_strided_slice %1082 {offsets = [0, 2], sizes = [8, 1], strides = [1, 1]} : vector<8x8xf32> to vector<8x1xf32>
    %1111 = arith.addf %21, %1110 : vector<8x1xf32>
    %1112 = vector.extract_strided_slice %1082 {offsets = [0, 3], sizes = [8, 1], strides = [1, 1]} : vector<8x8xf32> to vector<8x1xf32>
    %1113 = arith.addf %25, %1112 : vector<8x1xf32>
    %1114 = vector.broadcast %1113 : vector<8x1xf32> to vector<8x64xf32>
    %1115 = vector.broadcast %14 : vector<1x64xf32> to vector<8x64xf32>
    %1116 = arith.subf %1114, %1115 : vector<8x64xf32>
    %1117 = math.absf %1116 : vector<8x64xf32>
    %cst_272 = arith.constant 1.000000e+00 : f32
    %1118 = vector.broadcast %cst_272 : f32 to vector<8x64xf32>
    %1119 = arith.subf %1118, %1117 : vector<8x64xf32>
    %cst_273 = arith.constant 0.000000e+00 : f32
    %1120 = vector.broadcast %cst_273 : f32 to vector<8x64xf32>
    %1121 = arith.maximumf %1120, %1119 : vector<8x64xf32>
    %1122 = vector.broadcast %1111 : vector<8x1xf32> to vector<8x64xf32>
    %1123 = vector.broadcast %17 : vector<1x64xf32> to vector<8x64xf32>
    %1124 = arith.subf %1122, %1123 : vector<8x64xf32>
    %1125 = math.absf %1124 : vector<8x64xf32>
    %cst_274 = arith.constant 1.000000e+00 : f32
    %1126 = vector.broadcast %cst_274 : f32 to vector<8x64xf32>
    %1127 = arith.subf %1126, %1125 : vector<8x64xf32>
    %cst_275 = arith.constant 0.000000e+00 : f32
    %1128 = vector.broadcast %cst_275 : f32 to vector<8x64xf32>
    %1129 = arith.maximumf %1128, %1127 : vector<8x64xf32>
    %1130 = arith.mulf %1121, %1129 : vector<8x64xf32>
    %1131 = vector.extract_strided_slice %1084 {offsets = [0, 1], sizes = [8, 1], strides = [1, 1]} : vector<8x4xf32> to vector<8x1xf32>
    %1132 = vector.broadcast %1131 : vector<8x1xf32> to vector<8x64xf32>
    %1133 = arith.mulf %1132, %1130 : vector<8x64xf32>
    %1134 = arith.addf %1109, %1133 : vector<8x64xf32>
    %cst_276 = arith.constant dense<0.000000e+00> : vector<8x8xf32>
    %1135 = tpu.matmul %1134, %1085, %cst_276 {dimension_numbers = #tpu.dot_dimension_numbers<[1], [0], [0], [1], [0, 0, 1, 1], [], []>} : vector<8x64xf32>, vector<64x8xf32>, vector<8x8xf32> -> vector<8x8xf32>
    %1136 = vector.extract_strided_slice %744 {offsets = [64, 24], sizes = [16, 8], strides = [1, 1]} : vector<80x32xf32> to vector<16x8xf32>
    %1137 = vector.extract_strided_slice %1082 {offsets = [0, 4], sizes = [8, 1], strides = [1, 1]} : vector<8x8xf32> to vector<8x1xf32>
    %1138 = arith.addf %37, %1137 : vector<8x1xf32>
    %1139 = vector.extract_strided_slice %1082 {offsets = [0, 5], sizes = [8, 1], strides = [1, 1]} : vector<8x8xf32> to vector<8x1xf32>
    %1140 = arith.addf %41, %1139 : vector<8x1xf32>
    %1141 = vector.broadcast %1140 : vector<8x1xf32> to vector<8x16xf32>
    %1142 = vector.broadcast %30 : vector<1x16xf32> to vector<8x16xf32>
    %1143 = arith.subf %1141, %1142 : vector<8x16xf32>
    %1144 = math.absf %1143 : vector<8x16xf32>
    %cst_277 = arith.constant 1.000000e+00 : f32
    %1145 = vector.broadcast %cst_277 : f32 to vector<8x16xf32>
    %1146 = arith.subf %1145, %1144 : vector<8x16xf32>
    %cst_278 = arith.constant 0.000000e+00 : f32
    %1147 = vector.broadcast %cst_278 : f32 to vector<8x16xf32>
    %1148 = arith.maximumf %1147, %1146 : vector<8x16xf32>
    %1149 = vector.broadcast %1138 : vector<8x1xf32> to vector<8x16xf32>
    %1150 = vector.broadcast %33 : vector<1x16xf32> to vector<8x16xf32>
    %1151 = arith.subf %1149, %1150 : vector<8x16xf32>
    %1152 = math.absf %1151 : vector<8x16xf32>
    %cst_279 = arith.constant 1.000000e+00 : f32
    %1153 = vector.broadcast %cst_279 : f32 to vector<8x16xf32>
    %1154 = arith.subf %1153, %1152 : vector<8x16xf32>
    %cst_280 = arith.constant 0.000000e+00 : f32
    %1155 = vector.broadcast %cst_280 : f32 to vector<8x16xf32>
    %1156 = arith.maximumf %1155, %1154 : vector<8x16xf32>
    %1157 = arith.mulf %1148, %1156 : vector<8x16xf32>
    %1158 = vector.extract_strided_slice %1084 {offsets = [0, 2], sizes = [8, 1], strides = [1, 1]} : vector<8x4xf32> to vector<8x1xf32>
    %1159 = vector.broadcast %1158 : vector<8x1xf32> to vector<8x16xf32>
    %1160 = arith.mulf %1159, %1157 : vector<8x16xf32>
    %1161 = vector.extract_strided_slice %1082 {offsets = [0, 6], sizes = [8, 1], strides = [1, 1]} : vector<8x8xf32> to vector<8x1xf32>
    %1162 = arith.addf %37, %1161 : vector<8x1xf32>
    %1163 = vector.extract_strided_slice %1082 {offsets = [0, 7], sizes = [8, 1], strides = [1, 1]} : vector<8x8xf32> to vector<8x1xf32>
    %1164 = arith.addf %41, %1163 : vector<8x1xf32>
    %1165 = vector.broadcast %1164 : vector<8x1xf32> to vector<8x16xf32>
    %1166 = vector.broadcast %30 : vector<1x16xf32> to vector<8x16xf32>
    %1167 = arith.subf %1165, %1166 : vector<8x16xf32>
    %1168 = math.absf %1167 : vector<8x16xf32>
    %cst_281 = arith.constant 1.000000e+00 : f32
    %1169 = vector.broadcast %cst_281 : f32 to vector<8x16xf32>
    %1170 = arith.subf %1169, %1168 : vector<8x16xf32>
    %cst_282 = arith.constant 0.000000e+00 : f32
    %1171 = vector.broadcast %cst_282 : f32 to vector<8x16xf32>
    %1172 = arith.maximumf %1171, %1170 : vector<8x16xf32>
    %1173 = vector.broadcast %1162 : vector<8x1xf32> to vector<8x16xf32>
    %1174 = vector.broadcast %33 : vector<1x16xf32> to vector<8x16xf32>
    %1175 = arith.subf %1173, %1174 : vector<8x16xf32>
    %1176 = math.absf %1175 : vector<8x16xf32>
    %cst_283 = arith.constant 1.000000e+00 : f32
    %1177 = vector.broadcast %cst_283 : f32 to vector<8x16xf32>
    %1178 = arith.subf %1177, %1176 : vector<8x16xf32>
    %cst_284 = arith.constant 0.000000e+00 : f32
    %1179 = vector.broadcast %cst_284 : f32 to vector<8x16xf32>
    %1180 = arith.maximumf %1179, %1178 : vector<8x16xf32>
    %1181 = arith.mulf %1172, %1180 : vector<8x16xf32>
    %1182 = vector.extract_strided_slice %1084 {offsets = [0, 3], sizes = [8, 1], strides = [1, 1]} : vector<8x4xf32> to vector<8x1xf32>
    %1183 = vector.broadcast %1182 : vector<8x1xf32> to vector<8x16xf32>
    %1184 = arith.mulf %1183, %1181 : vector<8x16xf32>
    %1185 = arith.addf %1160, %1184 : vector<8x16xf32>
    %cst_285 = arith.constant dense<0.000000e+00> : vector<8x8xf32>
    %1186 = tpu.matmul %1185, %1136, %cst_285 {dimension_numbers = #tpu.dot_dimension_numbers<[1], [0], [0], [1], [0, 0, 1, 1], [], []>} : vector<8x16xf32>, vector<16x8xf32>, vector<8x8xf32> -> vector<8x8xf32>
    %1187 = arith.addf %1135, %1186 : vector<8x8xf32>
    %1188 = vector.shape_cast %866 : vector<8x8xf32> to vector<1x8x8xf32>
    %1189 = vector.shape_cast %973 : vector<8x8xf32> to vector<1x8x8xf32>
    %1190 = vector.shape_cast %1080 : vector<8x8xf32> to vector<1x8x8xf32>
    %1191 = vector.shape_cast %1187 : vector<8x8xf32> to vector<1x8x8xf32>
    %1192 = tpu.concatenate %1188, %1189, %1190, %1191 in 0 : vector<1x8x8xf32>, vector<1x8x8xf32>, vector<1x8x8xf32>, vector<1x8x8xf32> -> vector<4x8x8xf32>
    %1193 = vector.extract_strided_slice %652 {offsets = [4, 0, 0], sizes = [4, 8, 32], strides = [1, 1, 1]} : vector<8x8x32xf32> to vector<4x8x32xf32>
    %cst_286 = arith.constant dense<0.000000e+00> : vector<4x8x32xf32>
    %1194 = tpu.matmul %1192, %1193, %cst_286 {dimension_numbers = #tpu.dot_dimension_numbers<[2], [1], [1], [2], [0, 0, 0, 1, 1, 2], [0], [0]>} : vector<4x8x8xf32>, vector<4x8x32xf32>, vector<4x8x32xf32> -> vector<4x8x32xf32>
    %cst_287 = arith.constant dense<0.000000e+00> : vector<8x32xf32>
    %1195 = vector.multi_reduction <add>, %1194, %cst_287 [0] : vector<4x8x32xf32> to vector<8x32xf32>
    %1196 = vector.broadcast %666 : vector<1x32xf32> to vector<8x32xf32>
    %1197 = arith.addf %1195, %1196 : vector<8x32xf32>
    %1198 = arith.addf %736, %1197 : vector<8x32xf32>
    %cst_288 = arith.constant dense<0.000000e+00> : vector<8xf32>
    %1199 = vector.multi_reduction <add>, %1198, %cst_288 [1] : vector<8x32xf32> to vector<8xf32>
    %1200 = vector.shape_cast %1199 : vector<8xf32> to vector<8x1xf32>
    %cst_289 = arith.constant 3.200000e+01 : f32
    %1201 = vector.broadcast %cst_289 : f32 to vector<8x1xf32>
    %1202 = arith.divf %1200, %1201 : vector<8x1xf32>
    %1203 = vector.broadcast %1202 : vector<8x1xf32> to vector<8x32xf32>
    %1204 = arith.subf %1198, %1203 : vector<8x32xf32>
    %1205 = arith.mulf %1204, %1204 : vector<8x32xf32>
    %cst_290 = arith.constant dense<0.000000e+00> : vector<8xf32>
    %1206 = vector.multi_reduction <add>, %1205, %cst_290 [1] : vector<8x32xf32> to vector<8xf32>
    %1207 = vector.shape_cast %1206 : vector<8xf32> to vector<8x1xf32>
    %cst_291 = arith.constant 3.200000e+01 : f32
    %1208 = vector.broadcast %cst_291 : f32 to vector<8x1xf32>
    %1209 = arith.divf %1207, %1208 : vector<8x1xf32>
    %cst_292 = arith.constant 9.99999974E-6 : f32
    %1210 = vector.broadcast %cst_292 : f32 to vector<8x1xf32>
    %1211 = arith.addf %1209, %1210 : vector<8x1xf32>
    %1212 = math.rsqrt %1211 : vector<8x1xf32>
    %1213 = vector.broadcast %1212 : vector<8x1xf32> to vector<8x32xf32>
    %1214 = arith.mulf %1204, %1213 : vector<8x32xf32>
    %1215 = vector.broadcast %671 : vector<1x32xf32> to vector<8x32xf32>
    %1216 = arith.mulf %1214, %1215 : vector<8x32xf32>
    %1217 = vector.broadcast %672 : vector<1x32xf32> to vector<8x32xf32>
    %1218 = arith.addf %1216, %1217 : vector<8x32xf32>
    %1219 = vector.extract_strided_slice %658 {offsets = [0, 32], sizes = [32, 64], strides = [1, 1]} : vector<32x96xf32> to vector<32x64xf32>
    %cst_293 = arith.constant dense<0.000000e+00> : vector<8x64xf32>
    %1220 = tpu.matmul %1218, %1219, %cst_293 {dimension_numbers = #tpu.dot_dimension_numbers<[1], [0], [0], [1], [0, 0, 1, 1], [], []>} : vector<8x32xf32>, vector<32x64xf32>, vector<8x64xf32> -> vector<8x64xf32>
    %1221 = vector.broadcast %664 : vector<1x64xf32> to vector<8x64xf32>
    %1222 = arith.addf %1220, %1221 : vector<8x64xf32>
    %cst_294 = arith.constant 0.000000e+00 : f32
    %1223 = vector.broadcast %cst_294 : f32 to vector<8x64xf32>
    %1224 = arith.maximumf %1222, %1223 : vector<8x64xf32>
    %cst_295 = arith.constant dense<0.000000e+00> : vector<8x32xf32>
    %1225 = tpu.matmul %1224, %660, %cst_295 {dimension_numbers = #tpu.dot_dimension_numbers<[1], [0], [0], [1], [0, 0, 1, 1], [], []>} : vector<8x64xf32>, vector<64x32xf32>, vector<8x32xf32> -> vector<8x32xf32>
    %1226 = vector.broadcast %668 : vector<1x32xf32> to vector<8x32xf32>
    %1227 = arith.addf %1225, %1226 : vector<8x32xf32>
    %1228 = arith.addf %1218, %1227 : vector<8x32xf32>
    %cst_296 = arith.constant dense<0.000000e+00> : vector<8xf32>
    %1229 = vector.multi_reduction <add>, %1228, %cst_296 [1] : vector<8x32xf32> to vector<8xf32>
    %1230 = vector.shape_cast %1229 : vector<8xf32> to vector<8x1xf32>
    %cst_297 = arith.constant 3.200000e+01 : f32
    %1231 = vector.broadcast %cst_297 : f32 to vector<8x1xf32>
    %1232 = arith.divf %1230, %1231 : vector<8x1xf32>
    %1233 = vector.broadcast %1232 : vector<8x1xf32> to vector<8x32xf32>
    %1234 = arith.subf %1228, %1233 : vector<8x32xf32>
    %1235 = arith.mulf %1234, %1234 : vector<8x32xf32>
    %cst_298 = arith.constant dense<0.000000e+00> : vector<8xf32>
    %1236 = vector.multi_reduction <add>, %1235, %cst_298 [1] : vector<8x32xf32> to vector<8xf32>
    %1237 = vector.shape_cast %1236 : vector<8xf32> to vector<8x1xf32>
    %cst_299 = arith.constant 3.200000e+01 : f32
    %1238 = vector.broadcast %cst_299 : f32 to vector<8x1xf32>
    %1239 = arith.divf %1237, %1238 : vector<8x1xf32>
    %cst_300 = arith.constant 9.99999974E-6 : f32
    %1240 = vector.broadcast %cst_300 : f32 to vector<8x1xf32>
    %1241 = arith.addf %1239, %1240 : vector<8x1xf32>
    %1242 = math.rsqrt %1241 : vector<8x1xf32>
    %1243 = vector.broadcast %1242 : vector<8x1xf32> to vector<8x32xf32>
    %1244 = arith.mulf %1234, %1243 : vector<8x32xf32>
    %1245 = vector.broadcast %673 : vector<1x32xf32> to vector<8x32xf32>
    %1246 = arith.mulf %1244, %1245 : vector<8x32xf32>
    %1247 = vector.broadcast %674 : vector<1x32xf32> to vector<8x32xf32>
    %1248 = arith.addf %1246, %1247 : vector<8x32xf32>
    %c0_301 = arith.constant 0 : index
    %c1_302 = arith.constant 1 : index
    %c0_303 = arith.constant 0 : index
    %c0_304 = arith.constant 0 : index
    %1249 = vector.load %arg14[%c0_301, %c1_302, %c0_303, %c0_304] : memref<1x2x8x32xf32, #tpu.memory_space<vmem>>, vector<1x1x8x32xf32>
    %1250 = vector.shape_cast %1249 : vector<1x1x8x32xf32> to vector<8x32xf32>
    %1251 = vector.shape_cast %1248 : vector<8x32xf32> to vector<1x1x8x32xf32>
    tpu.vector_store %arg14[%c0_301, %c1_302, %c0_303, %c0_304], %1251 {strides = array<i32>} : memref<1x2x8x32xf32, #tpu.memory_space<vmem>>, vector<1x1x8x32xf32>,
    return
  }
  func.func @transform_0(%arg0: i32) -> (i32, i32, i32) {
    %c0_i32 = arith.constant 0 : i32
    %c0_i32_0 = arith.constant 0 : i32
    %c0_i32_1 = arith.constant 0 : i32
    return %arg0, %c0_i32, %c0_i32_0 : i32, i32, i32
  }
  func.func @transform_1(%arg0: i32) -> (i32, i32, i32) {
    %c0_i32 = arith.constant 0 : i32
    %c0_i32_0 = arith.constant 0 : i32
    %c0_i32_1 = arith.constant 0 : i32
    return %arg0, %c0_i32, %c0_i32_0 : i32, i32, i32
  }
  func.func @transform_2(%arg0: i32) -> (i32, i32, i32) {
    %c0_i32 = arith.constant 0 : i32
    %c0_i32_0 = arith.constant 0 : i32
    %c0_i32_1 = arith.constant 0 : i32
    return %arg0, %c0_i32, %c0_i32_0 : i32, i32, i32
  }
  func.func @transform_3(%arg0: i32) -> (i32, i32, i32) {
    %c0_i32 = arith.constant 0 : i32
    %c0_i32_0 = arith.constant 0 : i32
    %c0_i32_1 = arith.constant 0 : i32
    return %arg0, %c0_i32, %c0_i32_0 : i32, i32, i32
  }
  func.func @transform_4(%arg0: i32) -> (i32, i32, i32, i32) {
    %c0_i32 = arith.constant 0 : i32
    %c0_i32_0 = arith.constant 0 : i32
    %c0_i32_1 = arith.constant 0 : i32
    %c0_i32_2 = arith.constant 0 : i32
    %c0_i32_3 = arith.constant 0 : i32
    return %c0_i32, %c0_i32_0, %c0_i32_1, %c0_i32_2 : i32, i32, i32, i32
  }
  func.func @transform_5(%arg0: i32) -> (i32, i32, i32, i32) {
    %c0_i32 = arith.constant 0 : i32
    %c0_i32_0 = arith.constant 0 : i32
    %c0_i32_1 = arith.constant 0 : i32
    %c0_i32_2 = arith.constant 0 : i32
    %c0_i32_3 = arith.constant 0 : i32
    return %c0_i32, %c0_i32_0, %c0_i32_1, %c0_i32_2 : i32, i32, i32, i32
  }
  func.func @transform_6(%arg0: i32) -> (i32, i32, i32, i32) {
    %c0_i32 = arith.constant 0 : i32
    %c0_i32_0 = arith.constant 0 : i32
    %c0_i32_1 = arith.constant 0 : i32
    %c0_i32_2 = arith.constant 0 : i32
    %c0_i32_3 = arith.constant 0 : i32
    return %c0_i32, %c0_i32_0, %c0_i32_1, %c0_i32_2 : i32, i32, i32, i32
  }
  func.func @transform_7(%arg0: i32) -> (i32, i32, i32, i32) {
    %c0_i32 = arith.constant 0 : i32
    %c0_i32_0 = arith.constant 0 : i32
    %c0_i32_1 = arith.constant 0 : i32
    %c0_i32_2 = arith.constant 0 : i32
    %c0_i32_3 = arith.constant 0 : i32
    return %c0_i32, %c0_i32_0, %c0_i32_1, %c0_i32_2 : i32, i32, i32, i32
  }
  func.func @transform_8(%arg0: i32) -> (i32, i32, i32, i32) {
    %c0_i32 = arith.constant 0 : i32
    %c0_i32_0 = arith.constant 0 : i32
    %c0_i32_1 = arith.constant 0 : i32
    %c0_i32_2 = arith.constant 0 : i32
    %c0_i32_3 = arith.constant 0 : i32
    return %c0_i32, %c0_i32_0, %c0_i32_1, %c0_i32_2 : i32, i32, i32, i32
  }
  func.func @transform_9(%arg0: i32) -> (i32, i32, i32) {
    %c0_i32 = arith.constant 0 : i32
    %c0_i32_0 = arith.constant 0 : i32
    %c0_i32_1 = arith.constant 0 : i32
    %c0_i32_2 = arith.constant 0 : i32
    return %c0_i32, %c0_i32_0, %c0_i32_1 : i32, i32, i32
  }
  func.func @transform_10(%arg0: i32) -> (i32, i32, i32) {
    %c0_i32 = arith.constant 0 : i32
    %c0_i32_0 = arith.constant 0 : i32
    %c0_i32_1 = arith.constant 0 : i32
    %c0_i32_2 = arith.constant 0 : i32
    return %c0_i32, %c0_i32_0, %c0_i32_1 : i32, i32, i32
  }
  func.func @transform_11(%arg0: i32) -> (i32, i32, i32) {
    %c0_i32 = arith.constant 0 : i32
    %c0_i32_0 = arith.constant 0 : i32
    %c0_i32_1 = arith.constant 0 : i32
    %c0_i32_2 = arith.constant 0 : i32
    return %c0_i32, %c0_i32_0, %c0_i32_1 : i32, i32, i32
  }
  func.func @transform_12(%arg0: i32) -> (i32, i32, i32) {
    %c0_i32 = arith.constant 0 : i32
    %c0_i32_0 = arith.constant 0 : i32
    %c0_i32_1 = arith.constant 0 : i32
    %c0_i32_2 = arith.constant 0 : i32
    return %c0_i32, %c0_i32_0, %c0_i32_1 : i32, i32, i32
  }
  func.func @transform_13(%arg0: i32) -> (i32, i32, i32, i32) {
    %c0_i32 = arith.constant 0 : i32
    %c0_i32_0 = arith.constant 0 : i32
    %c0_i32_1 = arith.constant 0 : i32
    %c0_i32_2 = arith.constant 0 : i32
    return %arg0, %c0_i32, %c0_i32_0, %c0_i32_1 : i32, i32, i32, i32
  }
}

</mosaic_0001>

<bundles_post_ra>
// kernel: tpu_custom_call.1
= control target key start
LH: loop header
LB: loop body
LE: loop exit
PB: predicated region body
PF: predicated region fallthrough
CT: control target
= control target key end

     0   :  { %s13425_s0 = inlined_call_operand.vmem [shape: f32[2,8,32], index: 0, kind: input, shape index: {}]   ;;  %s13426_s1 = inlined_call_operand.vmem [shape: f32[2,8,32], index: 1, kind: input, shape index: {}]   ;;  %s13427_s2 = inlined_call_operand.vmem [shape: f32[2,8,3], index: 2, kind: input, shape index: {}]   ;;  %s13428_s3 = inlined_call_operand.vmem [shape: f32[2,80,32], index: 3, kind: input, shape index: {}]   ;;  %s13429_s4 = inlined_call_operand.vmem [shape: f32[2,12,32,8], index: 4, kind: input, shape index: {}]   ;;  %s13430_s5 = inlined_call_operand.vmem [shape: f32[2,12,1,8], index: 5, kind: input, shape index: {}]   ;;  %s13431_s6 = inlined_call_operand.vmem [shape: f32[2,8,8,32], index: 6, kind: input, shape index: {}]   ;;  %s13432_s7 = inlined_call_operand.vmem [shape: f32[2,4,32,12], index: 7, kind: input, shape index: {}]   ;;  %s13433_s8 = inlined_call_operand.vmem [shape: f32[2,4,1,12], index: 8, kind: input, shape index: {}]   ;;  %s13434_s9 = inlined_call_operand.vmem [shape: f32[2,32,96], index: 9, kind: input, shape index: {}]   ;;  %s13435_s10 = inlined_call_operand.vmem [shape: f32[2,64,32], index: 10, kind: input, shape index: {}]   ;;  %s13436_s11 = inlined_call_operand.vmem [shape: f32[2,10,32], index: 11, kind: input, shape index: {}]   ;;  %s13437_s12 = inlined_call_operand.vmem [shape: f32[2,1,64], index: 12, kind: input, shape index: {}]   ;;  %s13438_s13 = inlined_call_operand.hbm [shape: f32[2,2,8,32], index: 13, kind: output, shape index: {}]  }
   0x1   :  { %13491 = sst [smem:[#allocation17_spill]] %s13425_s0 }
   0x2   :  { %18 = vsyncpa [#allocation3], 0 }
   0x3   :  { %20 = vsyncpa [#allocation3 + $0x1], 0  ;;  %s11307_s25 = smov 0   ;;  %s11309_s26 = smov 0  }
   0x4   :  { %s11311_s27 = smov 0   ;;  %s11313_s28 = smov 0  }
   0x5 LB: > { %13492 = sst [smem:[#allocation5_spill]] %s11212_s27  ;;  %s11328_s29 = sadd.s32 4294967295, %s11216_s28   ;;  %s11216_s28 = sphi %s11313_s28, %s13550_s28   ;;  %s11212_s27 = sphi %s11311_s27, %s13552_s27   ;;  %s11208_s26 = sphi %s11309_s26, %s13554_s26   ;;  %s11204_s25 = sphi %s11307_s25, %s13553_s25  }
   0x6   : > { %s8933_s30 = sadd.s32 4294967294, %s11216_s28   ;;  %s11332_s14 = sadd.s32 1, %s11216_s28  }
   0x7   : > { %13493 = sst [smem:[#allocation6_spill]] %s11332_s14  ;;  %s326_s15 = sadd.s32 1, %s11212_s27 }
   0x8   : > { %s323_s16 = ssub.s32 %s11216_s28, %s11332_s14  ;;  %p336_p0 = scmp.ne.s32.totalorder %s11212_s27, %s11208_s26 }
   0x9   : > { %p324_p1 = scmp.eq.s32.totalorder %s323_s16, 0  ;;  %p337_p2 = scmp.eq.s32.totalorder %s11328_s29, 1 }
   0xa   : > { %p342_p3 = scmp.ne.s32.totalorder %s11208_s26, %s11204_s25  ;;  %p343_p4 = scmp.eq.s32.totalorder %s8933_s30, 1 }
   0xb   : > { %s11343_s17 = scalar_select %p324_p1, %s11212_s27, %s326_s15  }
   0xc   : > { %p11345_p5 = por %p337_p2, %p336_p0  ;;  %p11349_p6 = por %p343_p4, %p342_p3 }
   0xd   : > { %13494 = sst [smem:[#allocation7_spill]] %s11343_s17  ;;  %p8936_p7 = scmp.ge.s32.totalorder %s11216_s28, 1 }
   0xe   : > { %s13496_s19 = scalar_select %p11349_p6, 1, 0 }
   0xf   : > { %p417_p8 = scmp.lt.s32.totalorder %s11216_s28, 3 }
  0x10   : > { %13497 = sst [smem:[#allocation8_spill]] %s13496_s19 }
  0x11   : > { %p418_p9 = pnand %p8936_p7, %p417_p8 }
  0x13   : > { %421 = sbr.rel (%p418_p9) target bundleno = 7882 (0x1eca), region = 72 }
  0x1a   : > { %v520_v0 = vld [vmem:[%s13429_s4] sm:$0xff]  ;;  %v521_v1 = vld [vmem:[%s13429_s4 + $0x8] sm:$0xff]  ;;  %v13458_v3 = vmov 0.0|0.0   ;;  %v522_v6 = vld [vmem:[%s13429_s4 + $0x10] sm:$0xff]  ;;  %p473_p10 = scmp.lt.s32.totalorder %s11328_s29, 1  ;;  %vm11219_vm0 = vmmov 0  }
  0x1b   : > { %v524_v2 = vld [vmem:[%s13429_s4 + $0x20] sm:$0xff]  ;;  %10402 = vmatprep.subr.bf16.mxu0 %v13458_v3  ;;  %10408 = vmatprep.subr.bf16.mxu1 %v13458_v3  ;;  %v10403_v4 = vpack.c.bf16 %v521_v1, %v520_v0  ;;  %v525_v5 = vld [vmem:[%s13429_s4 + $0x28] sm:$0xff]  ;;  %v523_v7 = vld [vmem:[%s13429_s4 + $0x18] sm:$0xff]  ;;  %v13460_v11 = vmov 0.0   ;;  %s13498_s0 = sld [smem:[#allocation17_spill]]  ;;  %vm648_vm1 = vcmask 261120  }
  0x1c   : > { %v10409_v8 = vpack.c.bf16 %v525_v5, %v524_v2  ;;  %v526_v9 = vld [vmem:[%s13429_s4 + $0x30] sm:$0xff]  ;;  %v527_v10 = vld [vmem:[%s13429_s4 + $0x38] sm:$0xff]  ;;  %9584 = vmatprep.mubr.msk.f32.mxu0 %vm11219_vm0, %v13460_v11  ;;  %9595 = vmatprep.mubr.msk.f32.mxu1 %vm11219_vm0, %v13460_v11  ;;  %v10406_v12 = vpack.c.bf16 %v523_v7, %v522_v6  ;;  %s11387_s15 = scalar_select %p473_p10, %s11328_s29, 1  ;;  %v528_v14 = vld [vmem:[%s13429_s4 + $0x40] sm:$0xff]  ;;  %vm1547_vm2 = vcmask 64512   ;;  %vm2974_vm3 = vcmask 97344  }
  0x1d   : > { %10404 = vmatpush3.bf16.msra.mxu0 %v10403_v4  ;;  %v10412_v13 = vpack.c.bf16 %v527_v10, %v526_v9  ;;  %v529_v15 = vld [vmem:[%s13429_s4 + $0x48] sm:$0xff]  ;;  %v532_v16 = vld [vmem:[%s13429_s4 + $0x60] sm:$0xff]  ;;  %v530_v23 = vld [vmem:[%s13429_s4 + $0x50] sm:$0xff]  ;;  %s11223_s17 = smov 124   ;;  %s13483_s23 = smov 122   ;;  %vm3015_vm4 = vcmask 31744  }
  0x1e   : > { %10410 = vmatpush3.bf16.msra.mxu1 %v10409_v8  ;;  %10405 = vmatprep.subr.bf16.mxu0 %v13458_v3  ;;  %s11398_s21 = sshll.u32 %s11387_s15, 3  ;;  %v533_v17 = vld [vmem:[%s13429_s4 + $0x68] sm:$0xff]  ;;  %v10415_v20 = vpack.c.bf16 %v529_v15, %v528_v14  ;;  %v531_v24 = vld [vmem:[%s13429_s4 + $0x58] sm:$0xff]  ;;  %v534_v25 = vld [vmem:[%s13429_s4 + $0x70] sm:$0xff]  ;;  %s10782_s20 = smul.u32 80, %s11387_s15  ;;  %vm3145_vm5 = vcmask 130048  }
  0x1f   : > { %10411 = vmatprep.subr.bf16.mxu1 %v13458_v3  ;;  %s11414_s19 = scalar_lea.vmem %s13426_s1, %s11398_s21  ;;  %v10421_v22 = vpack.c.bf16 %v533_v17, %v532_v16  ;;  %v535_v26 = vld [vmem:[%s13429_s4 + $0x78] sm:$0xff]  ;;  %v10418_v27 = vpack.c.bf16 %v531_v24, %v530_v23  ;;  %v536_v29 = vld [vmem:[%s13429_s4 + $0x80] sm:$0xff]  ;;  %v537_v30 = vld [vmem:[%s13429_s4 + $0x88] sm:$0xff]  ;;  %s484_s30 = scalar_lea.vmem %s13427_s2, %s11398_s21  ;;  %vm3219_vm6 = vcmask 523264  }
  0x20   : > { %v11419_v19 = vld [vmem:[%s11414_s19] sm:$0xff]  ;;  %v10424_v28 = vpack.c.bf16 %v535_v26, %v534_v25  ;;  %v541_v32 = vld [vmem:[%s13429_s4 + $0xa8] sm:$0xff]  ;;  %v10427_v33 = vpack.c.bf16 %v537_v30, %v536_v29  ;;  %v538_v35 = vld [vmem:[%s13429_s4 + $0x90] sm:$0xff]  ;;  %s11756_s24 = scalar_lea.vmem %s13428_s3, %s10782_s20  ;;  %s13479_s27 = smov 120  }
  0x21   : > { %s476_s14 = scalar_lea.vmem %s13498_s0, %s11398_s21  ;;  %10407 = vmatpush3.bf16.msra.mxu0 %v10406_v12  ;;  %v540_v31 = vld [vmem:[%s13429_s4 + $0xa0] sm:$0xff]  ;;  %v539_v36 = vld [vmem:[%s13429_s4 + $0x98] sm:$0xff]  ;;  %v542_v37 = vld [vmem:[%s13429_s4 + $0xb0] sm:$0xff]  ;;  %s13475_s20 = smov 112  }
  0x22   : > { %v11416_v18 = vld [vmem:[%s476_s14] sm:$0xff]  ;;  %10413 = vmatpush3.bf16.msra.mxu1 %v10412_v13  ;;  %10414 = vmatprep.subr.bf16.mxu0 %v13458_v3  ;;  %v10433_v34 = vpack.c.bf16 %v541_v32, %v540_v31  ;;  %v543_v38 = vld [vmem:[%s13429_s4 + $0xb8] sm:$0xff]  ;;  %v10430_v39 = vpack.c.bf16 %v539_v36, %v538_v35  ;;  %v545_v42 = vld [vmem:[%s13429_s4 + $0xc8] sm:$0xff]  ;;  %s13481_s14 = smov 126   ;;  %s13473_s22 = smov 104  }
  0x23   : > { %v11423_v21 = vadd.f32 %v11419_v19, %v11416_v18  ;;  %10420 = vmatprep.subr.bf16.mxu1 %v13458_v3  ;;  %v10436_v40 = vpack.c.bf16 %v543_v38, %v542_v37  ;;  %v544_v41 = vld [vmem:[%s13429_s4 + $0xc0] sm:$0xff]  ;;  %v549_v44 = vld [vmem:[%s13429_s4 + $0xe8] sm:$0xff]  ;;  %v546_v47 = vld [vmem:[%s13429_s4 + $0xd0] sm:$0xff]  ;;  %s13477_s16 = smov 96   ;;  %s13485_s15 = sand.u32 1, %s11208_s26  }
  0x24   : > { %v548_v43 = vld [vmem:[%s13429_s4 + $0xe0] sm:$0xff]  ;;  %v10439_v45 = vpack.c.bf16 %v545_v42, %v544_v41  ;;  %v547_v48 = vld [vmem:[%s13429_s4 + $0xd8] sm:$0xff]  ;;  %v550_v49 = vld [vmem:[%s13429_s4 + $0xf0] sm:$0xff]  ;;  %s8937_s0 = sshll.u32 %s13485_s15, 4  ;;  %s13524_s21 = smov 126  }
  0x25   : > { %9585 = vmatmul.mubr.msk.f32.vlgmr.msra.gmra.mrb[0].mxu0 %vm648_vm1, %v11423_v21  ;;  %9596 = vmatmul.mubr.msk.f32.vlgmr.msra.gmra.mrb[0].mxu1 %vm648_vm1, %v11423_v21  ;;  %v10445_v46 = vpack.c.bf16 %v549_v44, %v548_v43  ;;  %v551_v50 = vld [vmem:[%s13429_s4 + $0xf8] sm:$0xff]  ;;  %v10442_v51 = vpack.c.bf16 %v547_v48, %v546_v47  ;;  %v552_v53 = vld [vmem:[%s13429_s4 + $0x100] sm:$0xff]  ;;  %v553_v54 = vld [vmem:[%s13429_s4 + $0x108] sm:$0xff]  ;;  %s12469_s15 = scalar_lea.vmem [#allocation2], %s8937_s0  ;;  %s9199_s0 = sshll.u32 %s11328_s29, 8 }
  0x26   : > { %10416 = vmatpush3.bf16.msra.mxu0 %v10415_v20  ;;  %10422 = vmatpush3.bf16.msra.mxu1 %v10421_v22  ;;  %v10448_v52 = vpack.c.bf16 %v551_v50, %v550_v49  ;;  %v10451_v55 = vpack.c.bf16 %v553_v54, %v552_v53  ;;  %v554_v56 = vld [vmem:[%s13429_s4 + $0x110] sm:$0xff]  ;;  %v555_v57 = vld [vmem:[%s13429_s4 + $0x118] sm:$0xff]  ;;  %v556_v59 = vld [vmem:[%s13429_s4 + $0x120] sm:$0xff]  ;;  %s11234_s29 = smov [#allocation2]  }
  0x27   : > { %10417 = vmatprep.subr.bf16.mxu0 %v13458_v3  ;;  %10423 = vmatprep.subr.bf16.mxu1 %v13458_v3  ;;  %v10454_v58 = vpack.c.bf16 %v555_v57, %v554_v56  ;;  %v557_v60 = vld [vmem:[%s13429_s4 + $0x128] sm:$0xff]  ;;  %v560_v61 = vld [vmem:[%s13429_s4 + $0x140] sm:$0xff]  ;;  %v558_v1 = vld [vmem:[%s13429_s4 + $0x130] sm:$0xff] }
  0x28   : > { %9606 = vmatprep.mubr.msk.f32.mxu0 %vm11219_vm0, %v13460_v11  ;;  %9617 = vmatprep.mubr.msk.f32.mxu1 %vm11219_vm0, %v13460_v11  ;;  %v10457_v62 = vpack.c.bf16 %v557_v60, %v556_v59  ;;  %v561_v63 = vld [vmem:[%s13429_s4 + $0x148] sm:$0xff]  ;;  %v559_v2 = vld [vmem:[%s13429_s4 + $0x138] sm:$0xff]  ;;  %v562_v4 = vld [vmem:[%s13429_s4 + $0x150] sm:$0xff] }
  0x29   : > { %v10463_v0 = vpack.c.bf16 %v561_v63, %v560_v61  ;;  %v10460_v5 = vpack.c.bf16 %v559_v2, %v558_v1  ;;  %v563_v6 = vld [vmem:[%s13429_s4 + $0x158] sm:$0xff]  ;;  %v564_v8 = vld [vmem:[%s13429_s4 + $0x160] sm:$0xff]  ;;  %v565_v9 = vld [vmem:[%s13429_s4 + $0x168] sm:$0xff] }
  0x2a   : > { %10419 = vmatpush3.bf16.msra.mxu0 %v10418_v27  ;;  %10425 = vmatpush3.bf16.msra.mxu1 %v10424_v28  ;;  %v10466_v7 = vpack.c.bf16 %v563_v6, %v562_v4  ;;  %v10469_v10 = vpack.c.bf16 %v565_v9, %v564_v8  ;;  %v566_v12 = vld [vmem:[%s13429_s4 + $0x170] sm:$0xff]  ;;  %v567_v13 = vld [vmem:[%s13429_s4 + $0x178] sm:$0xff]  ;;  %v8944_v25 = vld [vmem:[%s13430_s5] ss:$0 sm:$0xff] }
  0x2b   : > { %10426 = vmatprep.subr.bf16.mxu0 %v13458_v3  ;;  %10432 = vmatprep.subr.bf16.mxu1 %v13458_v3  ;;  %v10472_v14 = vpack.c.bf16 %v567_v13, %v566_v12  ;;  %v8952_v26 = vld [vmem:[%s13430_s5 + $0x4] ss:$0 sm:$0xff]  ;;  %v8953_v29 = vld [vmem:[%s13430_s5 + $0x5] ss:$0 sm:$0xff]  ;;  %v8945_v30 = vld [vmem:[%s13430_s5 + $0x1] ss:$0 sm:$0xff] }
  0x2c   : > { %v8946_v38 = vld [vmem:[%s13430_s5 + $0x2] ss:$0 sm:$0xff]  ;;  %v8955_v41 = vld [vmem:[%s13430_s5 + $0x7] ss:$0 sm:$0xff]  ;;  %v8960_v53 = vld [vmem:[%s13430_s5 + $0x8] ss:$0 sm:$0xff] }
  0x2d   : > { %9607 = vmatmul.mubr.msk.f32.vlgmr.msra.gmra.mrb[2].mxu0 %vm648_vm1, %v11423_v21  ;;  %9618 = vmatmul.mubr.msk.f32.vlgmr.msra.gmra.mrb[2].mxu1 %vm648_vm1, %v11423_v21  ;;  %v8961_v57 = vld [vmem:[%s13430_s5 + $0x9] ss:$0 sm:$0xff] }
  0x2e   : > { %10428 = vmatpush3.bf16.msra.mxu0 %v10427_v33  ;;  %10434 = vmatpush3.bf16.msra.mxu1 %v10433_v34 }
  0x2f   : > { %10429 = vmatprep.subr.bf16.mxu0 %v13458_v3  ;;  %10435 = vmatprep.subr.bf16.mxu1 %v13458_v3 }
  0x30   : > { %9628 = vmatprep.mubr.msk.f32.mxu0 %vm11219_vm0, %v13460_v11  ;;  %9639 = vmatprep.mubr.msk.f32.mxu1 %vm11219_vm0, %v13460_v11 }
  0x32   : > { %10431 = vmatpush3.bf16.msra.mxu0 %v10430_v39  ;;  %10437 = vmatpush3.bf16.msra.mxu1 %v10436_v40  ;;  %v8947_v39 = vld [vmem:[%s13430_s5 + $0x3] ss:$0 sm:$0xff]  ;;  %v8954_v40 = vld [vmem:[%s13430_s5 + $0x6] ss:$0 sm:$0xff] }
  0x33   : > { %10438 = vmatprep.subr.bf16.mxu0 %v13458_v3  ;;  %10444 = vmatprep.subr.bf16.mxu1 %v13458_v3 }
  0x35   : > { %9629 = vmatmul.mubr.msk.f32.vlgmr.msra.gmra.mrb[4].mxu0 %vm648_vm1, %v11423_v21  ;;  %9640 = vmatmul.mubr.msk.f32.vlgmr.msra.gmra.mrb[4].mxu1 %vm648_vm1, %v11423_v21 }
  0x36   : > { %10440 = vmatpush3.bf16.msra.mxu0 %v10439_v45  ;;  %10446 = vmatpush3.bf16.msra.mxu1 %v10445_v46 }
  0x37   : > { %10441 = vmatprep.subr.bf16.mxu0 %v13458_v3  ;;  %10447 = vmatprep.subr.bf16.mxu1 %v13458_v3 }
  0x38   : > { %9650 = vmatprep.mubr.msk.f32.mxu0 %vm11219_vm0, %v13460_v11  ;;  %9661 = vmatprep.mubr.msk.f32.mxu1 %vm11219_vm0, %v13460_v11 }
  0x3a   : > { %10443 = vmatpush3.bf16.msra.mxu0 %v10442_v51  ;;  %10449 = vmatpush3.bf16.msra.mxu1 %v10448_v52 }
  0x3b   : > { %10450 = vmatprep.subr.bf16.mxu0 %v13458_v3  ;;  %10456 = vmatprep.subr.bf16.mxu1 %v13458_v3 }
  0x3d   : > { %9651 = vmatmul.mubr.msk.f32.vlgmr.msra.gmra.mrb[6].mxu0 %vm648_vm1, %v11423_v21  ;;  %9662 = vmatmul.mubr.msk.f32.vlgmr.msra.gmra.mrb[6].mxu1 %vm648_vm1, %v11423_v21 }
  0x3e   : > { %10452 = vmatpush3.bf16.msra.mxu0 %v10451_v55  ;;  %9672 = vmatprep.mubr.msk.f32.mxu0 %vm11219_vm0, %v13460_v11 }
  0x3f   : > { %10453 = vmatprep.subr.bf16.mxu0 %v13458_v3  ;;  %9683 = vmatprep.mubr.msk.f32.mxu1 %vm11219_vm0, %v13460_v11 }
  0x40   : > { %10458 = vmatpush3.bf16.msra.mxu1 %v10457_v62 }
  0x41   : > { %10459 = vmatprep.subr.bf16.mxu1 %v13458_v3 }
  0x42   : > { %10455 = vmatpush3.bf16.msra.mxu0 %v10454_v58 }
  0x43   : > { %10462 = vmatprep.subr.bf16.mxu0 %v13458_v3 }
  0x44   : > { %10461 = vmatpush3.bf16.msra.mxu1 %v10460_v5 }
  0x45   : > { %9673 = vmatmul.mubr.msk.f32.vlgmr.msra.gmra.mrb[8].mxu0 %vm648_vm1, %v11416_v18  ;;  %10468 = vmatprep.subr.bf16.mxu1 %v13458_v3 }
  0x46   : > { %9694 = vmatprep.mubr.msk.f32.mxu0 %vm11219_vm0, %v13460_v11  ;;  %10464 = vmatpush3.bf16.msra.mxu0 %v10463_v0 }
  0x47   : > { %10465 = vmatprep.subr.bf16.mxu0 %v13458_v3  ;;  %9684 = vmatmul.mubr.msk.f32.vlgmr.msra.gmra.mrb[8].mxu1 %vm648_vm1, %v11416_v18 }
  0x48   : > { %10470 = vmatpush3.bf16.msra.mxu1 %v10469_v10  ;;  %9705 = vmatprep.mubr.msk.f32.mxu1 %vm11219_vm0, %v13460_v11 }
  0x49   : > { %10471 = vmatprep.subr.bf16.mxu1 %v13458_v3 }
  0x4a   : > { %10467 = vmatpush3.bf16.msra.mxu0 %v10466_v7 }
  0x4b   : > { %9708 = vmatprep.subr.mxu0 %v13460_v11 }
  0x4c   : > { %10473 = vmatpush3.bf16.msra.mxu1 %v10472_v14 }
  0x4d   : > { %9695 = vmatmul.mubr.msk.f32.vlgmr.msra.gmra.mrb[10].mxu0 %vm648_vm1, %v11416_v18  ;;  %9723 = vmatprep.subr.mxu1 %v13460_v11 }
  0x4e   : > { %9710 = vmatprep.mubr.msk.f32.mxu0 %vm11219_vm0, %v13460_v11 }
  0x4f   : > { %9706 = vmatmul.mubr.msk.f32.vlgmr.msra.gmra.mrb[10].mxu1 %vm648_vm1, %v11416_v18 }
  0x50   : > { %9725 = vmatprep.mubr.msk.f32.mxu1 %vm11219_vm0, %v13460_v11 }
  0xf8   : > { %v718_v15 = vpop.f32.mrb[0].mxu0  ;;  %v788_v17 = vpop.f32.mrb[0].mxu1 }
  0xf9   : > { %v9586_v16 = vpop.f32.mrb[1].mxu0  ;;  %v9597_v20 = vpop.f32.mrb[1].mxu1  ;;  %v719_v27 = vadd.f32 %v8944_v25, %v718_v15  ;;  %v789_v37 = vadd.f32 %v8945_v30, %v788_v17 }
  0xfb   : > { %v1543_v36 = vmul.f32 0.35355338, %v719_v27  ;;  %v1544_v42 = vmul.f32 0.35355338, %v789_v37 }
 0x100   : > { %v858_v21 = vpop.f32.mrb[2].mxu0  ;;  %v928_v23 = vpop.f32.mrb[2].mxu1 }
 0x101   : > { %v9608_v22 = vpop.f32.mrb[3].mxu0  ;;  %v9619_v24 = vpop.f32.mrb[3].mxu1  ;;  %v859_v43 = vadd.f32 %v8946_v38, %v858_v21  ;;  %v929_v45 = vadd.f32 %v8947_v39, %v928_v23 }
 0x103   : > { %v1545_v51 = vmul.f32 0.35355338, %v859_v43  ;;  %v1546_v52 = vmul.f32 0.35355338, %v929_v45  ;;  %v8963_v45 = vld [vmem:[%s13430_s5 + $0xb] ss:$0 sm:$0xff] }
 0x108   : > { %v1022_v28 = vpop.f32.mrb[4].mxu0  ;;  %v1092_v33 = vpop.f32.mrb[4].mxu1 }
 0x109   : > { %v1023_v31 = vadd.f32 %v8952_v26, %v1022_v28  ;;  %v9630_v32 = vpop.f32.mrb[5].mxu0  ;;  %v9641_v34 = vpop.f32.mrb[5].mxu1  ;;  %v1093_v35 = vadd.f32 %v8953_v29, %v1092_v33 }
 0x10b   : > { %9709 = vmatpush3.xpose.msk.msra.mxu0 %vm1547_vm2, %v1023_v31 }
 0x10c   : > { %9713 = vmatprep.subr.mxu0 %v13460_v11 }
 0x10e   : > { %9711 = vmatmul.mubr.msk.f32.vlgmr.msra.gmra.mrb[12].mxu0 %vm1547_vm2, %v1543_v36 }
 0x10f   : > { %9714 = vmatpush3.xpose.msk.msra.mxu0 %vm1547_vm2, %v1093_v35  ;;  %9715 = vmatprep.mubr.msk.f32.mxu0 %vm11219_vm0, %v13460_v11 }
 0x110   : > { %v1162_v44 = vpop.f32.mrb[6].mxu0  ;;  %9718 = vmatprep.subr.mxu0 %v13460_v11  ;;  %v1232_v47 = vpop.f32.mrb[6].mxu1 }
 0x111   : > { %v1163_v46 = vadd.f32 %v8954_v40, %v1162_v44  ;;  %v9652_v48 = vpop.f32.mrb[7].mxu0  ;;  %v1233_v49 = vadd.f32 %v8955_v41, %v1232_v47  ;;  %v9663_v50 = vpop.f32.mrb[7].mxu1  ;;  %v8962_v40 = vld [vmem:[%s13430_s5 + $0xa] ss:$0 sm:$0xff] }
 0x112   : > { %9716 = vmatmul.mubr.msk.f32.vlgmr.msra.gmra.mrb[14].mxu0 %vm1547_vm2, %v1544_v42 }
 0x113   : > { %9719 = vmatpush3.xpose.msk.msra.mxu0 %vm1547_vm2, %v1163_v46  ;;  %9720 = vmatprep.mubr.msk.f32.mxu0 %vm11219_vm0, %v13460_v11 }
 0x114   : > { %9724 = vmatpush3.xpose.msk.msra.mxu1 %vm1547_vm2, %v1233_v49  ;;  %9728 = vmatprep.subr.mxu0 %v13460_v11 }
 0x115   : > { %9733 = vmatprep.subr.mxu1 %v13460_v11 }
 0x116   : > { %9721 = vmatmul.mubr.msk.f32.vlgmr.msra.gmra.mrb[16].mxu0 %vm1547_vm2, %v1545_v51 }
 0x117   : > { %9726 = vmatmul.mubr.msk.f32.vlgmr.msra.gmra.mrb[12].mxu1 %vm1547_vm2, %v1546_v52  ;;  %9730 = vmatprep.mubr.msk.f32.mxu0 %vm11219_vm0, %v13460_v11 }
 0x118   : > { %9735 = vmatprep.mubr.msk.f32.mxu1 %vm11219_vm0, %v13460_v11  ;;  %v1329_v54 = vpop.f32.mrb[8].mxu0 }
 0x119   : > { %v1330_v55 = vadd.f32 %v8960_v53, %v1329_v54  ;;  %v9674_v56 = vpop.f32.mrb[9].mxu0  ;;  %v580_v53 = vld [vmem:[%s13431_s6] sm:$0xff]  ;;  %v581_v54 = vld [vmem:[%s13431_s6 + $0x8] sm:$0xff] }
 0x11a   : > { %v1399_v58 = vpop.f32.mrb[8].mxu1 }
 0x11b   : > { %9729 = vmatpush3.msra.mxu0 %v1330_v55  ;;  %v1400_v59 = vadd.f32 %v8961_v57, %v1399_v58  ;;  %v9685_v61 = vpop.f32.mrb[9].mxu1  ;;  %v582_v55 = vld [vmem:[%s13431_s6 + $0x10] sm:$0xff]  ;;  %v583_v58 = vld [vmem:[%s13431_s6 + $0x18] sm:$0xff] }
 0x11c   : > { %9738 = vmatprep.subr.mxu0 %v13460_v11 }
 0x11d   : > { %9734 = vmatpush3.msra.mxu1 %v1400_v59 }
 0x11e   : > { %9743 = vmatprep.subr.mxu1 %v13460_v11 }
 0x120   : > { %v1469_v60 = vpop.f32.mrb[10].mxu0 }
 0x121   : > { %v9696_v62 = vpop.f32.mrb[11].mxu0  ;;  %v1470_v44 = vadd.f32 %v8962_v40, %v1469_v60  ;;  %v494_v40 = vld [vmem:[%s11756_s24 + $0x8] sm:$0xff] }
 0x122   : > { %v11655_v63 = vpop.f32.mrb[10].mxu1 }
 0x123   : > { %v9707_v0 = vpop.f32.mrb[11].mxu1  ;;  %v1540_v48 = vadd.f32 %v8963_v45, %v11655_v63  ;;  %v588_v45 = vld [vmem:[%s13432_s7] sm:$0xff] }
 0x1e1   : > { %v1620_v1 = vpop.f32.mrb[12].mxu0 }
 0x1e2   : > { %v9712_v2 = vpop.f32.mrb[13].mxu0  ;;  %v1852_v4 = vsel %vm1547_vm2, %v1620_v1, -inf }
 0x1e3   : > { %1853 = vmax.xlane.f32.xlu0 %v1852_v4  ;;  %v503_v2 = vlaneseq }
 0x1e5   : > { %v1696_v5 = vpop.f32.mrb[14].mxu0 }
 0x1e6   : > { %v9717_v6 = vpop.f32.mrb[15].mxu0  ;;  %v1855_v7 = vsel %vm1547_vm2, %v1696_v5, -inf }
 0x1e7   : > { %1856 = vmax.xlane.f32.xlu0 %v1855_v7  ;;  %v11712_v6 = vshrl.u32 %v503_v2, 7 }
 0x1e9   : > { %v1772_v8 = vpop.f32.mrb[16].mxu0  ;;  %13499 = vst [vmem:[#allocation9_spill] sm:$0xff] %v11712_v6 }
 0x1ea   : > { %v1848_v9 = vpop.f32.mrb[12].mxu1  ;;  %v9722_v10 = vpop.f32.mrb[17].mxu0  ;;  %v1858_v12 = vsel %vm1547_vm2, %v1772_v8, -inf }
 0x1eb   : > { %v9727_v13 = vpop.f32.mrb[13].mxu1  ;;  %1859 = vmax.xlane.f32.xlu1 %v1858_v12  ;;  %v1861_v14 = vsel %vm1547_vm2, %v1848_v9, -inf }
 0x1ec   : > { %v11717_v13 = vsub.s32 0, %v11712_v6 }
 0x1ee   : > { %13500 = vst [vmem:[#allocation10_spill] sm:$0xff] %v11717_v13 }
 0x1ef   : > { %1862 = vmax.xlane.f32.xlu1 %v1861_v14 }
 0x270   : > { %v1854_v15 = vpop.xlane.xlu0 %1853 }
 0x271   : > { %v1864_v16 = vsub.f32 %v1620_v1, %v1854_v15 }
 0x273   : > { %v1868_v17 = vmul.f32 1.442695, %v1864_v16  ;;  %v11723_v16 = vld [vmem:[%s13436_s11] sm:$0xff] }
 0x274   : > { %v1857_v20 = vpop.xlane.xlu0 %1856 }
 0x275   : > { %11063 = vpow2.f32 %v1868_v17  ;;  %v1865_v21 = vsub.f32 %v1696_v5, %v1857_v20 }
 0x277   : > { %v1870_v22 = vmul.f32 1.442695, %v1865_v21  ;;  %v2490_v21 = vrot.slane %v11723_v16, %v11717_v13 }
 0x278   : > { %v1860_v23 = vpop.xlane.xlu1 %1859 }
 0x279   : > { %11065 = vpow2.f32 %v1870_v22  ;;  %v1866_v24 = vsub.f32 %v1772_v8, %v1860_v23 }
 0x27b   : > { %v1872_v25 = vmul.f32 1.442695, %v1866_v24 }
 0x27c   : > { %v1863_v26 = vpop.xlane.xlu1 %1862 }
 0x27d   : > { %11067 = vpow2.f32 %v1872_v25  ;;  %v1867_v27 = vsub.f32 %v1848_v9, %v1863_v26 }
 0x27f   : > { %v11064_v28 = vpop.eup %11063  ;;  %v1874_v29 = vmul.f32 1.442695, %v1867_v27 }
 0x280   : > { %v1876_v30 = vsel %vm1547_vm2, %v11064_v28, 0.0 }
 0x281   : > { %11069 = vpow2.f32 %v1874_v29  ;;  %1877 = vadd.xlane.f32.xlu0 %v1876_v30  ;;  %v609_v29 = vld [vmem:[%s13434_s9 + $0x8] sm:$0xff]  ;;  %v11739_v30 = vld [vmem:[%s13434_s9 + $0x10] sm:$0xff] }
 0x282   : > { %13501 = vst [vmem:[#allocation11_spill] sm:$0xff] %v11739_v30 }
 0x283   : > { %v11066_v31 = vpop.eup %11065 }
 0x284   : > { %v1879_v32 = vsel %vm1547_vm2, %v11066_v31, 0.0 }
 0x285   : > { %1880 = vadd.xlane.f32.xlu1 %v1879_v32  ;;  %v13446_v32 = vmov 8  }
 0x287   : > { %v11068_v33 = vpop.eup %11067 }
 0x288   : > { %v1882_v34 = vsel %vm1547_vm2, %v11068_v33, 0.0 }
 0x289   : > { %1883 = vadd.xlane.f32.xlu0 %v1882_v34 }
 0x28b   : > { %v11070_v35 = vpop.eup %11069 }
 0x28c   : > { %v1885_v36 = vsel %vm1547_vm2, %v11070_v35, 0.0 }
 0x28d   : > { %1886 = vadd.xlane.f32.xlu1 %v1885_v36 }
 0x30e   : > { %v1878_v37 = vpop.xlane.xlu0 %1877 }
 0x30f   : > { %11071 = vrcp.f32 %v1878_v37 }
 0x312   : > { %v1881_v38 = vpop.xlane.xlu1 %1880 }
 0x313   : > { %11073 = vrcp.f32 %v1881_v38 }
 0x316   : > { %v1884_v39 = vpop.xlane.xlu0 %1883 }
 0x317   : > { %11075 = vrcp.f32 %v1884_v39  ;;  %v493_v39 = vld [vmem:[%s11756_s24] sm:$0xff] }
 0x319   : > { %v11072_v41 = vpop.eup %11071 }
 0x31a   : > { %v1887_v42 = vpop.xlane.xlu1 %1886  ;;  %v1892_v43 = vmul.f32 %v11072_v41, %v11064_v28  ;;  %v608_v28 = vld [vmem:[%s13434_s9] sm:$0xff]  ;;  %v495_v41 = vld [vmem:[%s11756_s24 + $0x10] sm:$0xff] }
 0x31b   : > { %11077 = vrcp.f32 %v1887_v42  ;;  %v496_v42 = vld [vmem:[%s11756_s24 + $0x18] sm:$0xff] }
 0x31c   : > { %9731 = vmatmul.mubr.msk.f32.vlgmr.msra.gmra.mrb[18].mxu0 %vm1547_vm2, %v1892_v43  ;;  %v497_v43 = vld [vmem:[%s11756_s24 + $0x20] sm:$0xff] }
 0x31d   : > { %v11074_v46 = vpop.eup %11073  ;;  %9739 = vmatpush3.msra.mxu0 %v1470_v44  ;;  %9740 = vmatprep.mubr.msk.f32.mxu0 %vm11219_vm0, %v13460_v11  ;;  %v498_v44 = vld [vmem:[%s11756_s24 + $0x28] sm:$0xff] }
 0x31e   : > { %v1893_v47 = vmul.f32 %v11074_v46, %v11066_v31  ;;  %9748 = vmatprep.subr.mxu0 %v13460_v11  ;;  %v10474_v31 = vpack.c.bf16 %v609_v29, %v608_v28  ;;  %v589_v46 = vld [vmem:[%s13432_s7 + $0x8] sm:$0xff]  ;;  %v13445_v28 = vsub.s32 2, %v11712_v6 }
 0x320   : > { %9736 = vmatmul.mubr.msk.f32.vlgmr.msra.gmra.mrb[14].mxu1 %vm1547_vm2, %v1893_v47  ;;  %v499_v47 = vld [vmem:[%s11756_s24 + $0x30] sm:$0xff]  ;;  %v2521_v29 = vrot.slane %v11723_v16, %v13445_v28  ;;  %v13448_v28 = vmov 9  }
 0x321   : > { %v11076_v49 = vpop.eup %11075  ;;  %9744 = vmatpush3.msra.mxu1 %v1540_v48  ;;  %9745 = vmatprep.mubr.msk.f32.mxu1 %vm11219_vm0, %v13460_v11  ;;  %v10483_v48 = vpack.c.bf16 %v589_v46, %v588_v45 }
 0x322   : > { %v1894_v50 = vmul.f32 %v11076_v49, %v11068_v33  ;;  %9753 = vmatprep.subr.mxu1 %v13460_v11  ;;  %v600_v49 = vld [vmem:[%s13432_s7 + $0x60] sm:$0xff] }
 0x324   : > { %9741 = vmatmul.mubr.msk.f32.vlgmr.msra.gmra.mrb[20].mxu0 %vm1547_vm2, %v1894_v50  ;;  %v601_v50 = vld [vmem:[%s13432_s7 + $0x68] sm:$0xff] }
 0x325   : > { %v11078_v51 = vpop.eup %11077  ;;  %9750 = vmatprep.mubr.msk.f32.mxu0 %vm11219_vm0, %v13460_v11  ;;  %9749 = vmatpush3.msra.mxu0 %v580_v53  ;;  %v501_v53 = vld [vmem:[%s11756_s24 + $0x40] sm:$0xff] }
 0x326   : > { %v1895_v52 = vmul.f32 %v11078_v51, %v11070_v35  ;;  %9758 = vmatprep.subr.mxu0 %v13460_v11  ;;  %v500_v51 = vld [vmem:[%s11756_s24 + $0x38] sm:$0xff] }
 0x328   : > { %9746 = vmatmul.mubr.msk.f32.vlgmr.msra.gmra.mrb[16].mxu1 %vm1547_vm2, %v1895_v52  ;;  %v10501_v52 = vpack.c.bf16 %v601_v50, %v600_v49 }
 0x329   : > { %9755 = vmatprep.mubr.msk.f32.mxu1 %vm11219_vm0, %v13460_v11  ;;  %9754 = vmatpush3.msra.mxu1 %v581_v54  ;;  %v502_v54 = vld [vmem:[%s11756_s24 + $0x48] sm:$0xff] }
 0x32a   : > { %9763 = vmatprep.subr.mxu1 %v13460_v11 }
 0x3ef   : > { %v1965_v56 = vpop.f32.mrb[18].mxu0 }
 0x3f0   : > { %v9732_v57 = vpop.f32.mrb[19].mxu0  ;;  %9751 = vmatmul.mubr.msk.f32.vlgmr.msra.gmra.mrb[22].mxu0 %vm1547_vm2, %v1965_v56  ;;  %v591_v56 = vld [vmem:[%s13432_s7 + $0x18] sm:$0xff] }
 0x3f1   : > { %9759 = vmatpush3.msra.mxu0 %v582_v55  ;;  %9760 = vmatprep.mubr.msk.f32.mxu0 %vm11219_vm0, %v13460_v11  ;;  %v590_v55 = vld [vmem:[%s13432_s7 + $0x10] sm:$0xff] }
 0x3f2   : > { %10475 = vmatprep.subr.bf16.mxu0 %v10474_v31  ;;  %v602_v57 = vld [vmem:[%s13432_s7 + $0x70] sm:$0xff] }
 0x3f3   : > { %v2038_v59 = vpop.f32.mrb[14].mxu1 }
 0x3f4   : > { %v9737_v60 = vpop.f32.mrb[15].mxu1  ;;  %9756 = vmatmul.mubr.msk.f32.vlgmr.msra.gmra.mrb[18].mxu1 %vm1547_vm2, %v2038_v59  ;;  %v10486_v59 = vpack.c.bf16 %v591_v56, %v590_v55 }
 0x3f5   : > { %9764 = vmatpush3.msra.mxu1 %v583_v58  ;;  %9765 = vmatprep.mubr.msk.f32.mxu1 %vm11219_vm0, %v13460_v11  ;;  %v603_v58 = vld [vmem:[%s13432_s7 + $0x78] sm:$0xff] }
 0x3f6   : > { %10482 = vmatprep.subr.bf16.mxu1 %v13458_v3  ;;  %v10504_v60 = vpack.c.bf16 %v603_v58, %v602_v57 }
 0x3f7   : > { %v2111_v61 = vpop.f32.mrb[20].mxu0 }
 0x3f8   : > { %v9742_v62 = vpop.f32.mrb[21].mxu0  ;;  %9761 = vmatmul.mubr.msk.f32.vlgmr.msra.gmra.mrb[24].mxu0 %vm1547_vm2, %v2111_v61 }
 0x3f9   : > { %10477 = vmatpush3.bf16.msra.mxu0 %v10474_v31  ;;  %9776 = vmatprep.mubr.msk.f32.mxu0 %vm648_vm1, %v493_v39 }
 0x3fb   : > { %v2184_v63 = vpop.f32.mrb[16].mxu1 }
 0x3fc   : > { %v9747_v0 = vpop.f32.mrb[17].mxu1  ;;  %9766 = vmatmul.mubr.msk.f32.vlgmr.msra.gmra.mrb[20].mxu1 %vm1547_vm2, %v2184_v63 }
 0x3fd   : > { %9799 = vmatprep.mubr.msk.f32.mxu1 %vm11219_vm0, %v13460_v11  ;;  %10484 = vmatpush3.bf16.msra.mxu1 %v10483_v48  ;;  %v13444_v0 = vsub.s32 4, %v11712_v6 }
 0x3fe   : > { %10485 = vmatprep.subr.bf16.mxu1 %v13458_v3 }
 0x401   : > { %10487 = vmatpush3.bf16.msra.mxu1 %v10486_v59 }
 0x402   : > { %10488 = vmatprep.subr.bf16.mxu1 %v13458_v3 }
 0x4c3   : > { %v2257_v1 = vpop.f32.mrb[22].mxu0 }
 0x4c4   : > { %v9752_v4 = vpop.f32.mrb[23].mxu0  ;;  %v2480_v7 = vsel %vm648_vm1, %v2257_v1, 0.0  ;;  %v13443_v1 = vsub.s32 5, %v11712_v6 }
 0x4c5   : > { %v2510_v4 = vrot.slane %v11723_v16, %v13444_v0 }
 0x4c7   : > { %v2330_v5 = vpop.f32.mrb[18].mxu1 }
 0x4c8   : > { %v2481_v8 = vsel %vm648_vm1, %v2330_v5, 0.0  ;;  %v9757_v9 = vpop.f32.mrb[19].mxu1 }
 0x4c9   : > { %v2482_v10 = vadd.f32 %v2481_v8, %v2480_v7  ;;  %v2515_v8 = vrot.slane %v11723_v16, %v13443_v1 }
 0x4cb   : > { %v2403_v12 = vpop.f32.mrb[24].mxu0 }
 0x4cc   : > { %v2483_v14 = vsel %vm648_vm1, %v2403_v12, 0.0  ;;  %v9762_v15 = vpop.f32.mrb[25].mxu0  ;;  %v593_v12 = vld [vmem:[%s13432_s7 + $0x28] sm:$0xff] }
 0x4cd   : > { %v2484_v17 = vadd.f32 %v2483_v14, %v2482_v10  ;;  %v592_v10 = vld [vmem:[%s13432_s7 + $0x20] sm:$0xff] }
 0x4ce   : > { %v10489_v15 = vpack.c.bf16 %v593_v12, %v592_v10 }
 0x4cf   : > { %v2476_v20 = vpop.f32.mrb[20].mxu1 }
 0x4d0   : > { %v2485_v22 = vsel %vm648_vm1, %v2476_v20, 0.0  ;;  %v9767_v23 = vpop.f32.mrb[21].mxu1  ;;  %v594_v20 = vld [vmem:[%s13432_s7 + $0x30] sm:$0xff] }
 0x4d1   : > { %v2486_v24 = vadd.f32 %v2485_v22, %v2484_v17  ;;  %v597_v23 = vld [vmem:[%s13432_s7 + $0x48] sm:$0xff] }
 0x4d3   : > { %v2491_v25 = vadd.f32 %v2490_v21, %v2486_v24  ;;  %v595_v21 = vld [vmem:[%s13432_s7 + $0x38] sm:$0xff] }
 0x4d4   : > { %v10492_v22 = vpack.c.bf16 %v595_v21, %v594_v20 }
 0x4d5   : > { %v2492_v26 = vadd.f32 %v2491_v25, %v11416_v18  ;;  %v11744_v18 = vld [vmem:[%s13434_s9 + $0x18] sm:$0xff]  ;;  %v598_v25 = vld [vmem:[%s13432_s7 + $0x50] sm:$0xff] }
 0x4d6   : > { %13502 = vst [vmem:[#allocation12_spill] sm:$0xff] %v11744_v18  ;;  %v10478_v33 = vpack.c.bf16 %v11744_v18, %v11739_v30 }
 0x4d7   : > { %v2493_v27 = vsel %vm648_vm1, %v2492_v26, 0.0 }
 0x4d8   : > { %2494 = vadd.xlane.f32.xlu0 %v2493_v27  ;;  %10479 = vmatprep.subr.bf16.mxu0 %v10478_v33 }
 0x4d9   : > { %10481 = vmatpush3.bf16.msra.mxu0 %v10478_v33 }
 0x4da   : > { %10500 = vmatprep.subr.bf16.mxu0 %v13458_v3 }
 0x4dc   : > { %9777 = vmatmul.mubr.msk.f32.vlgmr.msra.gmra.mrb[26].mxu0 %vm648_vm1, %v494_v40 }
 0x4dd   : > { %9779 = vmatprep.mubr.msk.f32.mxu0 %vm648_vm1, %v495_v41  ;;  %10502 = vmatpush3.bf16.msra.mxu0 %v10501_v52 }
 0x4de   : > { %10503 = vmatprep.subr.bf16.mxu0 %v13458_v3 }
 0x4e0   : > { %9780 = vmatmul.mubr.msk.f32.gmra.mrb[28].mxu0 %vm648_vm1, %v496_v42 }
 0x4e1   : > { %9782 = vmatprep.mubr.msk.f32.mxu0 %vm648_vm1, %v497_v43  ;;  %10505 = vmatpush3.bf16.msra.mxu0 %v10504_v60 }
 0x4e2   : > { %10521 = vmatprep.subr.bf16.mxu0 %v13458_v3 }
 0x4e4   : > { %9783 = vmatmul.mubr.msk.f32.gmra.mrb[30].mxu0 %vm648_vm1, %v498_v44 }
 0x4e5   : > { %9785 = vmatprep.mubr.msk.f32.mxu0 %vm648_vm1, %v499_v47 }
 0x4e8   : > { %9786 = vmatmul.mubr.msk.f32.gmra.mrb[32].mxu0 %vm648_vm1, %v500_v51 }
 0x4e9   : > { %9788 = vmatprep.mubr.msk.f32.mxu0 %vm648_vm1, %v501_v53 }
 0x4ec   : > { %9789 = vmatmul.mubr.msk.f32.gmra.mrb[34].mxu0 %vm648_vm1, %v502_v54 }
 0x4ed   : > { %9832 = vmatprep.mubr.msk.f32.mxu0 %vm11219_vm0, %v13460_v11 }
 0x565   : > { %v2495_v34 = vpop.xlane.xlu0 %2494 }
 0x566   : > { %v2497_v35 = vmul.f32 0.03125, %v2495_v34 }
 0x568   : > { %v2498_v36 = vsub.f32 %v2492_v26, %v2497_v35  ;;  %v599_v26 = vld [vmem:[%s13432_s7 + $0x58] sm:$0xff] }
 0x569   : > { %v10498_v27 = vpack.c.bf16 %v599_v26, %v598_v25  ;;  %v492_v26 = vld [vmem:[%s484_s30] sm:$0xff]  ;;  %s8835_s30 = sshll.u32 %s12469_s15, 4  ;;  %s13378_s30 = int_to_ptr.vmem [resolvable:$true] %s8835_s30 }
 0x56a   : > { %v2499_v37 = vmul.f32 %v2498_v36, %v2498_v36 }
 0x56c   : > { %v2500_v38 = vsel %vm648_vm1, %v2499_v37, 0.0 }
 0x56d   : > { %2501 = vadd.xlane.f32.xlu1 %v2500_v38 }
 0x5af   : > { %v9778_v31 = vpop.f32.mrb[26].mxu0 }
 0x5b0   : > { %v11864_v33 = vadd.f32 %v9778_v31, %v2521_v29  ;;  %v2618_v34 = vpop.f32.mrb[27].mxu0 }
 0x5b1   : > { %v11866_v35 = vadd.f32 %v2618_v34, %v2521_v29  ;;  %v8996_v34 = vld [vmem:[%s13433_s8 + $0x2] ss:$0 sm:$0xff] }
 0x5b3   : > { %v11882_v49 = vpack.i.bf16 %v11864_v33, %v11866_v35 }
 0x5fa   : > { %v2502_v61 = vpop.xlane.xlu1 %2501 }
 0x5fb   : > { %v2503_v62 = vmul.f32 0.03125, %v2502_v61  ;;  %v13454_v61 = vmov 0  }
 0x5fc   : > { %10841 = vset.pattern.permute.xlu1 %v13454_v61 }
 0x5fd   : > { %v2504_v63 = vadd.f32 1e-05, %v2503_v62  ;;  %v13456_v62 = vmov 1  }
 0x5fe   : > { %10840 = vset.pattern.permute.xlu0 %v13456_v62 }
 0x5ff   : > { %11079 = vrsqrt.f32 %v2504_v63  ;;  %v8994_v63 = vld [vmem:[%s13433_s8] ss:$0 sm:$0xff] }
 0x609   : > { %v11080_v5 = vpop.eup %11079 }
 0x60a   : > { %v2506_v7 = vmul.f32 %v11080_v5, %v2498_v36  ;;  %v9781_v36 = vpop.f32.mrb[28].mxu0 }
 0x60b   : > { %v11868_v37 = vadd.f32 %v9781_v36, %v2521_v29  ;;  %v2628_v38 = vpop.f32.mrb[29].mxu0 }
 0x60c   : > { %v2511_v9 = vmul.f32 %v2510_v4, %v2506_v7  ;;  %v11870_v39 = vadd.f32 %v2628_v38, %v2521_v29  ;;  %v9784_v40 = vpop.f32.mrb[30].mxu0  ;;  %v8997_v4 = vld [vmem:[%s13433_s8 + $0x3] ss:$0 sm:$0xff] }
 0x60d   : > { %v11872_v41 = vadd.f32 %v9784_v40, %v2521_v29  ;;  %v2638_v42 = vpop.f32.mrb[31].mxu0  ;;  %v518_v40 = vmul.f32 4.0, %v492_v26 }
 0x60e   : > { %v11822_v14 = vadd.f32 %v2515_v8, %v2511_v9  ;;  %v11874_v43 = vadd.f32 %v2638_v42, %v2521_v29  ;;  %v9787_v44 = vpop.f32.mrb[32].mxu0  ;;  %v11888_v51 = vpack.i.bf16 %v11868_v37, %v11870_v39 }
 0x60f   : > { %v11876_v16 = vadd.f32 %v9787_v44, %v2521_v29  ;;  %v2648_v45 = vpop.f32.mrb[33].mxu0  ;;  %v11962_v42 = vadd.f32 -0.5, %v518_v40 }
 0x610   : > { %13503 = vst [vmem:[#allocation13_spill] sm:$0xff] %v11822_v14  ;;  %v2517_v17 = vadd.f32 %v11822_v14, %v11419_v19  ;;  %v596_v19 = vld [vmem:[%s13432_s7 + $0x40] sm:$0xff]  ;;  %v11878_v46 = vadd.f32 %v2648_v45, %v2521_v29  ;;  %v9790_v47 = vpop.f32.mrb[34].mxu0  ;;  %v11894_v53 = vpack.i.bf16 %v11872_v41, %v11874_v43 }
 0x611   : > { %v10495_v24 = vpack.c.bf16 %v597_v23, %v596_v19  ;;  %v2658_v48 = vpop.f32.mrb[35].mxu0  ;;  %v2664_v55 = vadd.f32 %v9790_v47, %v2521_v29  ;;  %13505 = vst [vmem:[#allocation15_spill] sm:$0xff] %v11962_v42 }
 0x612   : > { %9800 = vmatmul.mubr.msk.f32.vlgmr.msra.gmra.mrb[22].mxu1 %vm648_vm1, %v2517_v17  ;;  %9833 = vmatmul.mubr.msk.f32.vlgmr.msra.gmra.mrb[36].mxu0 %vm648_vm1, %v2517_v17  ;;  %v2659_v56 = vadd.f32 %v2658_v48, %v2521_v29  ;;  %v11900_v57 = vpack.i.bf16 %v11876_v16, %v11878_v46 }
 0x613   : > { %10490 = vmatpush3.bf16.msra.mxu1 %v10489_v15  ;;  %9810 = vmatprep.mubr.msk.f32.mxu1 %vm11219_vm0, %v13460_v11 }
 0x614   : > { %10491 = vmatprep.subr.bf16.mxu1 %v13458_v3  ;;  %9865 = vmatprep.mubr.msk.f32.mxu0 %vm11219_vm0, %v13460_v11  ;;  %v10507_v59 = vpack.c.bf16 %v2664_v55, %v2659_v56  ;;  %v11904_v60 = vpack.i.bf16 %v2664_v55, %v2659_v56 }
 0x617   : > { %10493 = vmatpush3.bf16.msra.mxu1 %v10492_v22 }
 0x618   : > { %10494 = vmatprep.subr.bf16.mxu1 %v13458_v3 }
 0x61a   : > { %9811 = vmatmul.mubr.msk.f32.vlgmr.msra.gmra.mrb[24].mxu1 %vm648_vm1, %v2517_v17 }
 0x61b   : > { %10496 = vmatpush3.bf16.msra.mxu1 %v10495_v24  ;;  %9821 = vmatprep.mubr.msk.f32.mxu1 %vm11219_vm0, %v13460_v11 }
 0x61c   : > { %10497 = vmatprep.subr.bf16.mxu1 %v13458_v3 }
 0x61f   : > { %10499 = vmatpush3.bf16.msra.mxu1 %v10498_v27  ;;  %v511_v27 = vmul.f32 8.0, %v492_v26 }
 0x620   : > { %10506 = vmatprep.subr.bf16.mxu1 %v13458_v3 }
 0x621   : > { %v11939_v29 = vadd.f32 -0.5, %v511_v27 }
 0x622   : > { %9822 = vmatmul.mubr.msk.f32.vlgmr.msra.gmra.mrb[26].mxu1 %vm648_vm1, %v2517_v17  ;;  %v8995_v17 = vld [vmem:[%s13433_s8 + $0x1] ss:$0 sm:$0xff] }
 0x623   : > { %9839 = vmatprep.mubr.msk.f32.mxu1 %vm11219_vm0, %v13460_v11  ;;  %10508 = vmatpush3.bf16.msra.mxu1 %v10507_v59  ;;  %13504 = vst [vmem:[#allocation14_spill] sm:$0xff] %v11939_v29 }
 0x624   : > { %10509 = vmatprep.subr.bf16.mxu1 %v13458_v3 }
 0x6e5   : > { %v2760_v5 = vpop.f32.mrb[22].mxu1  ;;  %v2970_v7 = vpop.f32.mrb[36].mxu0 }
 0x6e6   : > { %v2761_v8 = vadd.f32 %v8994_v63, %v2760_v5  ;;  %v11915_v9 = vadd.f32 %v8997_v4, %v2970_v7  ;;  %v9801_v10 = vpop.f32.mrb[23].mxu1  ;;  %v9834_v12 = vpop.f32.mrb[37].mxu0 }
 0x6e8   : > { %3090 = vrot.lane.b32.xlu0 %v2761_v8, %s11223_s17  ;;  %v2984_v15 = vsel %vm2974_vm3, %v11915_v9, -inf  ;;  %v2975_v25 = vsel %vm2974_vm3, %v2761_v8, -inf  ;;  %v3036_v31 = vadd.f32 %v11939_v29, %v2761_v8 }
 0x6e9   : > { %2985 = vmax.xlane.f32.xlu1 %v2984_v15 }
 0x6ed   : > { %v2830_v20 = vpop.f32.mrb[24].mxu1 }
 0x6ee   : > { %v11923_v21 = vadd.f32 %v8995_v17, %v2830_v20  ;;  %v9812_v22 = vpop.f32.mrb[25].mxu1 }
 0x6f0   : > { %v2978_v19 = vsel %vm2974_vm3, %v11923_v21, -inf }
 0x6f1   : > { %2979 = vmax.xlane.f32.xlu1 %v2978_v19 }
 0x6f5   : > { %v2900_v23 = vpop.f32.mrb[26].mxu1 }
 0x6f6   : > { %v9823_v24 = vpop.f32.mrb[27].mxu1  ;;  %v11947_v36 = vadd.f32 %v8996_v34, %v2900_v23 }
 0x6f8   : > { %v2981_v38 = vsel %vm2974_vm3, %v11947_v36, -inf }
 0x702   : > { %3117 = vrot.lane.b32.xlu1 %v2761_v8, %s13483_s23 }
 0x706   : > { %3374 = vrot.lane.b32.xlu1 %v11923_v21, %s13483_s23 }
 0x707   : > { %2976 = vmax.xlane.f32.xlu0 %v2975_v25 }
 0x70a   : > { %3319 = vrot.lane.b32.xlu1 %v11923_v21, %s13481_s14 }
 0x70e   : > { %3954 = vrot.lane.b32.xlu1 %v11915_v9, %s13483_s23 }
 0x712   : > { %3899 = vrot.lane.b32.xlu1 %v11915_v9, %s13481_s14 }
 0x716   : > { %3047 = vperm.xlu1 %10841, %v3036_v31  }
 0x71a   : > { %3669 = vrot.lane.b32.xlu1 %v11947_v36, %s13483_s23  ;;  %s13548_s23 = sand.u32 1, %s11208_s26  }
 0x71d   : > { %3347 = vrot.lane.b32.xlu0 %v11923_v21, %s11223_s17 }
 0x721   : > { %3062 = vrot.lane.b32.xlu0 %v2761_v8, %s13481_s14 }
 0x725   : > { %3927 = vrot.lane.b32.xlu0 %v11915_v9, %s11223_s17 }
 0x729   : > { %3039 = vperm.xlu0 %10840, %v3036_v31  }
 0x72d   : > { %3642 = vrot.lane.b32.xlu0 %v11947_v36, %s11223_s17 }
 0x731   : > { %3614 = vrot.lane.b32.xlu0 %v11947_v36, %s13481_s14  ;;  %s13531_s14 = smov 112  }
 0x750   : > { %2982 = vmax.xlane.f32.xlu0 %v2981_v38 }
 0x75a   : > { %v3091_v44 = vpop.permute.xlu0 %3090 }
 0x75b   : > { %v3093_v45 = vadd.f32 %v11962_v42, %v3091_v44  ;;  %v3293_v44 = vadd.f32 %v11939_v29, %v11923_v21 }
 0x75d   : > { %3104 = vperm.xlu1 %10841, %v3093_v45  }
 0x761   : > { %10842 = vset.pattern.permute.xlu1 %v13456_v62 }
 0x766   : > { %3096 = vperm.xlu0 %10840, %v3093_v45  }
 0x776   : > { %v2986_v47 = vpop.xlane.xlu1 %2985 }
 0x777   : > { %v2990_v5 = vsub.f32 %v11915_v9, %v2986_v47 }
 0x779   : > { %v2997_v15 = vmul.f32 1.442695, %v2990_v5 }
 0x77e   : > { %v2980_v48 = vpop.xlane.xlu1 %2979 }
 0x77f   : > { %v2988_v17 = vsub.f32 %v11923_v21, %v2980_v48 }
 0x781   : > { %v2993_v22 = vmul.f32 1.442695, %v2988_v17 }
 0x782   : > { %v3118_v55 = vpop.permute.xlu1 %3117 }
 0x783   : > { %v3120_v56 = vadd.f32 %v11962_v42, %v3118_v55 }
 0x785   : > { %3123 = vperm.xlu1 %10842, %v3120_v56  }
 0x786   : > { %v3375_v59 = vpop.permute.xlu1 %3374 }
 0x787   : > { %v3377_v63 = vadd.f32 %v11962_v42, %v3375_v59 }
 0x789   : > { %3380 = vperm.xlu0 %10840, %v3377_v63  }
 0x794   : > { %v2977_v4 = vpop.xlane.xlu0 %2976 }
 0x795   : > { %v2987_v7 = vsub.f32 %v2761_v8, %v2977_v4  ;;  %v3320_v8 = vpop.permute.xlu1 %3319 }
 0x796   : > { %v3322_v47 = vadd.f32 %v11939_v29, %v3320_v8 }
 0x797   : > { %v2991_v10 = vmul.f32 1.442695, %v2987_v7 }
 0x798   : > { %v3348_v12 = vpop.permute.xlu0 %3347 }
 0x799   : > { %11081 = vpow2.f32 %v2991_v10  ;;  %v3350_v20 = vadd.f32 %v11962_v42, %v3348_v12  ;;  %v3955_v27 = vpop.permute.xlu1 %3954 }
 0x79a   : > { %11083 = vpow2.f32 %v2997_v15 }
 0x79b   : > { %3353 = vperm.xlu1 %10842, %v3350_v20   ;;  %11085 = vpow2.f32 %v2993_v22 }
 0x79c   : > { %v3063_v19 = vpop.permute.xlu0 %3062 }
 0x79d   : > { %v3065_v34 = vadd.f32 %v11939_v29, %v3063_v19  ;;  %v11988_v38 = vpop.permute.xlu1 %3899 }
 0x79f   : > { %10843 = vset.pattern.permute.xlu1 %v13454_v61 }
 0x7a0   : > { %3361 = vperm.xlu1 %10843, %v3350_v20   ;;  %v3928_v24 = vpop.permute.xlu0 %3927 }
 0x7a1   : > { %v3930_v25 = vadd.f32 %v11962_v42, %v3928_v24  ;;  %v11996_v45 = vpop.permute.xlu1 %3047 }
 0x7a3   : > { %v11972_v23 = vpop.eup %11081 }
 0x7a4   : > { %3388 = vperm.xlu1 %10843, %v3377_v63   ;;  %3003 = vrot.lane.b32.xlu0 %v11972_v23, %s13479_s27  ;;  %v11977_v26 = vpop.eup %11083 }
 0x7a5   : > { %v11982_v31 = vpop.eup %11085 }
 0x7a8   : > { %3009 = vrot.lane.b32.xlu1 %v11977_v26, %s13479_s27  ;;  %3933 = vperm.xlu0 %10840, %v3930_v25   ;;  %v11990_v40 = vpop.permute.xlu0 %3039 }
 0x7a9   : > { %10844 = vset.pattern.permute.xlu1 %v13456_v62 }
 0x7ac   : > { %3005 = vrot.lane.b32.xlu1 %v11982_v31, %s13479_s27  ;;  %10855 = vset.pattern.permute.xlu0 %v13454_v61  ;;  %v3643_v48 = vpop.permute.xlu0 %3642 }
 0x7ad   : > { %3131 = vperm.xlu0 %10855, %v3120_v56   ;;  %v3645_v55 = vadd.f32 %v11962_v42, %v3643_v48  ;;  %v3670_v56 = vpop.permute.xlu1 %3669 }
 0x7ae   : > { %v3672_v59 = vadd.f32 %v11962_v42, %v3670_v56 }
 0x7b0   : > { %3068 = vperm.xlu1 %10844, %v3065_v34   ;;  %v3615_v63 = vpop.permute.xlu0 %3614 }
 0x7b1   : > { %3076 = vperm.xlu0 %10855, %v3065_v34  }
 0x7b4   : > { %10846 = vrot.lane.b32.xlu1 %v11904_v60, %s13479_s27 }
 0x7b5   : > { %3304 = vperm.xlu0 %10855, %v3293_v44  }
 0x7b8   : > { %3296 = vperm.xlu1 %10844, %v3293_v44  }
 0x7b9   : > { %3333 = vperm.xlu0 %10855, %v3322_v47  }
 0x7bd   : > { %3656 = vperm.xlu0 %10855, %v3645_v55  }
 0x7c1   : > { %3683 = vperm.xlu0 %10855, %v3672_v59  }
 0x7dc   : > { %v12012_v12 = vpop.permute.xlu1 %3104 }
 0x7dd   : > { %v2983_v21 = vpop.xlane.xlu0 %2982 }
 0x7de   : > { %v2989_v4 = vsub.f32 %v11947_v36, %v2983_v21 }
 0x7e0   : > { %v2995_v5 = vmul.f32 1.442695, %v2989_v4 }
 0x7e2   : > { %11087 = vpow2.f32 %v2995_v5  ;;  %v3617_v5 = vadd.f32 %v11939_v29, %v3615_v63 }
 0x7e5   : > { %v12010_v10 = vpop.permute.xlu0 %3096 }
 0x7ec   : > { %v12002_v7 = vpop.eup %11087 }
 0x7ed   : > { %3007 = vrot.lane.b32.xlu1 %v12002_v7, %s13479_s27 }
 0x7f1   : > { %3325 = vperm.xlu1 %10844, %v3322_v47   ;;  %v3957_v47 = vadd.f32 %v11962_v42, %v3955_v27  ;;  %v3588_v27 = vadd.f32 %v11939_v29, %v11947_v36  ;;  %v13452_v36 = vmov 10  }
 0x7f5   : > { %3648 = vperm.xlu1 %10844, %v3645_v55  }
 0x7f9   : > { %3675 = vperm.xlu1 %10844, %v3672_v59  }
 0x7fd   : > { %10851 = vrot.lane.b32.xlu1 %v11882_v49, %s13479_s27 }
 0x7fe   : > { %10856 = vset.pattern.permute.xlu1 %v13454_v61 }
 0x801   : > { %3941 = vperm.xlu1 %10856, %v3930_v25  }
 0x804   : > { %v12016_v17 = vpop.permute.xlu1 %3123 }
 0x805   : > { %10857 = vset.pattern.permute.xlu1 %v13456_v62 }
 0x808   : > { %v12014_v15 = vpop.permute.xlu0 %3380 }
 0x816   : > { %v3004_v20 = vpop.permute.xlu0 %3003 }
 0x817   : > { %v3016_v22 = vsel %vm3015_vm4, %v3004_v20, 0.0  ;;  %v3873_v20 = vadd.f32 %v11939_v29, %v11915_v9 }
 0x818   : > { %3017 = vadd.xlane.f32.xlu0 %v3016_v22  ;;  %v3902_v22 = vadd.f32 %v11939_v29, %v11988_v38 }
 0x81a   : > { %v12019_v19 = vpop.permute.xlu1 %3353 }
 0x81f   : > { %v12021_v24 = vpop.permute.xlu1 %3361 }
 0x823   : > { %v12023_v8 = vpop.permute.xlu1 %3388 }
 0x827   : > { %v3010_v25 = vpop.permute.xlu1 %3009  ;;  %v12050_v9 = vpop.permute.xlu0 %3933 }
 0x828   : > { %v3025_v34 = vsel %vm3015_vm4, %v3010_v25, 0.0 }
 0x829   : > { %3026 = vadd.xlane.f32.xlu1 %v3025_v34 }
 0x82b   : > { %v3006_v44 = vpop.permute.xlu1 %3005 }
 0x82c   : > { %v3019_v48 = vsel %vm3015_vm4, %v3006_v44, 0.0  ;;  %v12052_v38 = vpop.permute.xlu0 %3131 }
 0x82d   : > { %3020 = vadd.xlane.f32.xlu1 %v3019_v48  ;;  %v13450_v48 = vmov 11  }
 0x82e   : > { %3968 = vperm.xlu0 %10855, %v3957_v47  }
 0x82f   : > { %v12028_v55 = vpop.permute.xlu1 %3068 }
 0x830   : > { %v12056_v44 = vpop.permute.xlu0 %3076 }
 0x833   : > { %v10847_v56 = vpop.permute.xlu1 %10846 }
 0x834   : > { %v10849_v59 = vunpack.i.h.bf16 %v10847_v56  ;;  %v10848_v21 = vunpack.i.l.bf16 %v10847_v56 }
 0x836   : > { %v10522_v4 = vpack.c.bf16 %v10849_v59, %v10848_v21 }
 0x837   : > { %v12042_v25 = vpop.permute.xlu1 %3296 }
 0x838   : > { %10523 = vmatpush3.bf16.msra.mxu0 %v10522_v4 }
 0x839   : > { %10524 = vmatprep.subr.bf16.mxu0 %v13458_v3 }
 0x83e   : > { %3960 = vperm.xlu1 %10857, %v3957_v47   ;;  %v12058_v47 = vpop.permute.xlu0 %3304 }
 0x842   : > { %10859 = vrot.lane.b32.xlu1 %v11888_v51, %s13479_s27  ;;  %v12061_v56 = vpop.permute.xlu0 %3333 }
 0x846   : > { %3591 = vperm.xlu1 %10857, %v3588_v27   ;;  %v12065_v21 = vpop.permute.xlu0 %3656 }
 0x84a   : > { %3620 = vperm.xlu1 %10857, %v3617_v5  }
 0x84e   : > { %10873 = vset.pattern.permute.xlu1 %v13454_v61 }
 0x84f   : > { %3628 = vperm.xlu1 %10873, %v3617_v5  }
 0x853   : > { %10879 = vset.pattern.permute.xlu1 %v13456_v62 }
 0x854   : > { %3876 = vperm.xlu1 %10879, %v3873_v20  }
 0x858   : > { %3905 = vperm.xlu1 %10879, %v3902_v22  }
 0x85c   : > { %10880 = vset.pattern.permute.xlu1 %v13452_v36 }
 0x85f   : > { %v3008_v63 = vpop.permute.xlu1 %3007 }
 0x860   : > { %v3022_v34 = vsel %vm3015_vm4, %v3008_v63, 0.0 }
 0x861   : > { %3023 = vadd.xlane.f32.xlu0 %v3022_v34 }
 0x870   : > { %v12063_v59 = vpop.permute.xlu1 %3325 }
 0x874   : > { %v12067_v4 = vpop.permute.xlu1 %3648 }
 0x877   : > { %10864 = vrot.lane.b32.xlu0 %v11894_v53, %s13479_s27 }
 0x87b   : > { %10869 = vrot.lane.b32.xlu0 %v11900_v57, %s13479_s27  ;;  %s13535_s27 = smov 104  }
 0x87f   : > { %3599 = vperm.xlu0 %10855, %v3588_v27   ;;  %v12069_v27 = vpop.permute.xlu0 %3683 }
 0x883   : > { %10875 = vrot.lane.b32.xlu0 %v11904_v60, %s13475_s20 }
 0x887   : > { %3884 = vperm.xlu0 %10855, %v3873_v20   ;;  %v12071_v20 = vpop.permute.xlu1 %3675 }
 0x88b   : > { %3913 = vperm.xlu0 %10855, %v3902_v22   ;;  %v12073_v22 = vpop.permute.xlu1 %10851 }
 0x88f   : > { %10881 = vset.pattern.permute.xlu0 %v13450_v48  ;;  %v12076_v1 = vpop.permute.xlu1 %3941 }
 0x8a5   : > { %v3018_v5 = vpop.xlane.xlu0 %3017 }
 0x8a6   : > { %11089 = vrcp.f32 %v3018_v5 }
 0x8b0   : > { %v11090_v63 = vpop.eup %11089 }
 0x8b1   : > { %v3032_v34 = vmul.f32 %v11090_v63, %v11972_v23 }
 0x8b3   : > { %3140 = vperm.xlu0 %10881, %v3032_v34   ;;  %3113 = vperm.xlu1 %10880, %v3032_v34  }
 0x8b6   : > { %v3027_v0 = vpop.xlane.xlu1 %3026 }
 0x8b7   : > { %11091 = vrcp.f32 %v3027_v0  ;;  %10883 = vset.pattern.permute.xlu0 %v13448_v28  ;;  %10882 = vset.pattern.permute.xlu1 %v13446_v32 }
 0x8b8   : > { %3085 = vperm.xlu0 %10883, %v3032_v34   ;;  %3057 = vperm.xlu1 %10882, %v3032_v34  }
 0x8ba   : > { %v3021_v5 = vpop.xlane.xlu1 %3020 }
 0x8bb   : > { %11093 = vrcp.f32 %v3021_v5 }
 0x8bc   : > { %10894 = vrot.lane.b32.xlu0 %v11882_v49, %s13475_s20  ;;  %10884 = vset.pattern.permute.xlu1 %v13452_v36 }
 0x8bd   : > { %10921 = vset.pattern.permute.xlu0 %v13450_v48 }
 0x8c0   : > { %10904 = vrot.lane.b32.xlu0 %v11888_v51, %s13475_s20 }
 0x8c1   : > { %v11092_v0 = vpop.eup %11091 }
 0x8c2   : > { %v3035_v23 = vmul.f32 %v11092_v0, %v11977_v26  ;;  %v12098_v26 = vpop.permute.xlu0 %3968 }
 0x8c4   : > { %3950 = vperm.xlu1 %10884, %v3035_v23  }
 0x8c5   : > { %v11094_v63 = vpop.eup %11093 }
 0x8c6   : > { %v3033_v34 = vmul.f32 %v11094_v63, %v11982_v31 }
 0x8c8   : > { %10885 = vset.pattern.permute.xlu1 %v13450_v48 }
 0x8c9   : > { %3977 = vperm.xlu1 %10885, %v3035_v23  }
 0x8cd   : > { %10886 = vset.pattern.permute.xlu1 %v13452_v36 }
 0x8ce   : > { %3370 = vperm.xlu1 %10886, %v3033_v34  }
 0x8d2   : > { %10887 = vset.pattern.permute.xlu1 %v13450_v48 }
 0x8d3   : > { %3397 = vperm.xlu1 %10887, %v3033_v34  }
 0x8d7   : > { %10889 = vrot.lane.b32.xlu1 %v11904_v60, %s13473_s22 }
 0x8d8   : > { %10908 = vset.pattern.permute.xlu1 %v13446_v32 }
 0x8db   : > { %10899 = vrot.lane.b32.xlu1 %v11882_v49, %s13473_s22  ;;  %v12108_v49 = vpop.permute.xlu1 %3960 }
 0x8df   : > { %3314 = vperm.xlu1 %10908, %v3033_v34   ;;  %v12115_v60 = vpop.permute.xlu1 %10859 }
 0x8e3   : > { %10909 = vset.pattern.permute.xlu1 %v13448_v28 }
 0x8e4   : > { %3342 = vperm.xlu1 %10909, %v3033_v34   ;;  %v12124_v34 = vpop.permute.xlu1 %3591 }
 0x8e8   : > { %10910 = vset.pattern.permute.xlu1 %v13452_v36 }
 0x8ee   : > { %v3024_v31 = vpop.xlane.xlu0 %3023 }
 0x8ef   : > { %11095 = vrcp.f32 %v3024_v31 }
 0x8f2   : > { %v12119_v63 = vpop.permute.xlu0 %10864 }
 0x8f9   : > { %v11096_v5 = vpop.eup %11095 }
 0x8fa   : > { %v3034_v0 = vmul.f32 %v11096_v5, %v12002_v7 }
 0x8fc   : > { %3692 = vperm.xlu0 %10921, %v3034_v0   ;;  %3665 = vperm.xlu1 %10910, %v3034_v0  }
 0x900   : > { %10922 = vset.pattern.permute.xlu0 %v13446_v32  ;;  %10912 = vrot.lane.b32.xlu1 %v11888_v51, %s13473_s22  ;;  %v504_v51 = vand.u32 127, %v503_v2  ;;  %v12128_v2 = vpop.permute.xlu0 %10869 }
 0x901   : > { %3894 = vperm.xlu0 %10922, %v3035_v23   ;;  %10923 = vset.pattern.permute.xlu1 %v13448_v28 }
 0x902   : > { %v505_v7 = vcvt.s32.f32 %v504_v51 }
 0x904   : > { %10917 = vrot.lane.b32.xlu1 %v11894_v53, %s13475_s20  ;;  %v12133_v51 = vpop.permute.xlu0 %3599 }
 0x905   : > { %10930 = vset.pattern.permute.xlu0 %v13448_v28 }
 0x906   : > { %3637 = vperm.xlu0 %10930, %v3034_v0  }
 0x908   : > { %3922 = vperm.xlu1 %10923, %v3035_v23   ;;  %v514_v23 = vmul.f32 0.25, %v505_v7 }
 0x90a   : > { %10932 = vrot.lane.b32.xlu0 %v11900_v57, %s13475_s20  ;;  %v12126_v31 = vfloor.f32 %v514_v23  ;;  %v12143_v23 = vpop.permute.xlu0 %10875  ;;  %s13384_s20 = scalar_lea.sflag [#allocation3], %s13548_s23 }
 0x90b   : > { %10951 = vset.pattern.permute.xlu0 %v13456_v62 }
 0x90c   : > { %10924 = vset.pattern.permute.xlu1 %v13446_v32  ;;  %v516_v5 = vmul.f32 4.0, %v12126_v31  ;;  %v507_v32 = vmul.f32 0.125, %v505_v7  ;;  %v3099_v28 = vsub.f32 %v12010_v10, %v12126_v31 }
 0x90d   : > { %3609 = vperm.xlu1 %10924, %v3034_v0   ;;  %v12131_v0 = vpop.permute.xlu1 %3620 }
 0x90e   : > { %v12149_v62 = vfloor.f32 %v507_v32  ;;  %v12153_v3 = vpop.permute.xlu0 %3884 }
 0x910   : > { %v3042_v32 = vsub.f32 %v11990_v40, %v12149_v62  ;;  %v3071_v30 = vsub.f32 %v12028_v55, %v12149_v62 }
 0x911   : > { %10926 = vrot.lane.b32.xlu1 %v11894_v53, %s13473_s22  ;;  %v12135_v53 = vsub.f32 %v505_v7, %v516_v5  ;;  %v12141_v48 = vpop.permute.xlu1 %3628  ;;  %v3100_v5 = vand.u32 2147483647, %v3099_v28 }
 0x912   : > { %10952 = vset.pattern.permute.xlu1 %v13454_v61  ;;  %v3126_v61 = vsub.f32 %v12016_v17, %v12126_v31 }
 0x913   : > { %v3107_v36 = vsub.f32 %v12012_v12, %v12135_v53  ;;  %v3101_v11 = vsub.f32 1.0, %v3100_v5  ;;  %v3072_v5 = vand.u32 2147483647, %v3071_v30  ;;  %v13509_v30 = vmov 0.0|0.0  }
 0x914   : > { %v3127_v52 = vand.u32 2147483647, %v3126_v61  ;;  %v12162_v61 = vpop.permute.xlu0 %3913 }
 0x915   : > { %10937 = vrot.lane.b32.xlu1 %v11900_v57, %s13473_s22  ;;  %v3134_v57 = vsub.f32 %v12052_v38, %v12135_v53  ;;  %v3108_v54 = vand.u32 2147483647, %v3107_v36  ;;  %v12151_v10 = vpop.permute.xlu1 %3876  ;;  %v509_v38 = vmul.f32 8.0, %v12149_v62  ;;  %v3102_v13 = vmax.f32 %v3101_v11, 0.0  ;;  %s11154_s22 = scalar_lea.vmem %s13378_s30, 256 }
 0x916   : > { %13506 = vst [vmem:[#allocation16_spill] sm:$0xff] %v12151_v10  ;;  %v3128_v29 = vsub.f32 1.0, %v3127_v52  ;;  %v3073_v55 = vsub.f32 1.0, %v3072_v5  ;;  %p11155_p11 = scmp.ne.s32.totalorder %s13378_s30, %s11154_s22 }
 0x917   : > { %v3135_v58 = vand.u32 2147483647, %v3134_v57  ;;  %v3109_v42 = vsub.f32 1.0, %v3108_v54  ;;  %v12156_v12 = vsub.f32 %v505_v7, %v509_v38 }
 0x918   : > { %v3129_v57 = vmax.f32 %v3128_v29, 0.0  ;;  %p11156_p12 = pnand %p11155_p11, %p11345_p5 }
 0x919   : > { %v3136_v50 = vsub.f32 1.0, %v3135_v58  ;;  %v12160_v28 = vpop.permute.xlu1 %3905  ;;  %v3110_v36 = vmax.f32 %v3109_v42, 0.0  ;;  %v3079_v54 = vsub.f32 %v12056_v44, %v12156_v12  ;;  %v3050_v52 = vsub.f32 %v11996_v45, %v12156_v12 }
 0x91a   : > { %v3043_v58 = vand.u32 2147483647, %v3042_v32  ;;  %v13507_v45 = vpack.c.bf16 %v11864_v33, %v11866_v35  ;;  %v3074_v32 = vmax.f32 %v3073_v55, 0.0  ;;  %p11157_p13 = pneg %p11156_p12 }
 0x91b   : > { %v3137_v17 = vmax.f32 %v3136_v50, 0.0  ;;  %v3111_v50 = vmul.f32 %v3110_v36, %v3102_v13  ;;  %v3080_v38 = vand.u32 2147483647, %v3079_v54  ;;  %v3051_v29 = vand.u32 2147483647, %v3050_v52 }
 0x91c   : > { %v3044_v6 = vsub.f32 1.0, %v3043_v58  ;;  %v13508_v13 = vmov 0.0   ;;  %v13511_v52 = vpack.c.bf16 %v11872_v41, %v11874_v43  ;;  %v3383_v58 = vsub.f32 %v12014_v15, %v12126_v31 }
 0x91d   : > { %v3138_v11 = vmul.f32 %v3137_v17, %v3129_v57  ;;  %v3081_v10 = vsub.f32 1.0, %v3080_v38  ;;  %v3052_v44 = vsub.f32 1.0, %v3051_v29  ;;  %v3356_v41 = vsub.f32 %v12019_v19, %v12126_v31 }
 0x91e   : > { %v3045_v17 = vmax.f32 %v3044_v6, 0.0  ;;  %v3364_v6 = vsub.f32 %v12021_v24, %v12135_v53  ;;  %v13512_v24 = vpack.c.bf16 %v11876_v16, %v11878_v46 }
 0x91f   : > { %v3082_v36 = vmax.f32 %v3081_v10, 0.0  ;;  %v3391_v10 = vsub.f32 %v12023_v8, %v12135_v53  ;;  %v3357_v38 = vand.u32 2147483647, %v3356_v41 }
 0x920   : > { %v3365_v8 = vand.u32 2147483647, %v3364_v6 }
 0x921   : > { %v3083_v33 = vmul.f32 %v3082_v36, %v3074_v32  ;;  %v3358_v29 = vsub.f32 1.0, %v3357_v38  ;;  %v3299_v32 = vsub.f32 %v12042_v25, %v12149_v62  ;;  %v3328_v36 = vsub.f32 %v12063_v59, %v12149_v62 }
 0x922   : > { %v3366_v19 = vsub.f32 1.0, %v3365_v8  ;;  %v3963_v25 = vsub.f32 %v12108_v49, %v12126_v31 }
 0x923   : > { %v3329_v59 = vand.u32 2147483647, %v3328_v36 }
 0x924   : > { %v3964_v8 = vand.u32 2147483647, %v3963_v25 }
 0x932   : > { %v3141_v7 = vpop.permute.xlu0 %3140  ;;  %v3114_v40 = vpop.permute.xlu1 %3113 }
 0x933   : > { %v3143_v18 = vmul.f32 %v3141_v7, %v3138_v11  ;;  %v3116_v14 = vmul.f32 %v3114_v40, %v3111_v50  ;;  %v10877_v50 = vunpack.i.l.bf16 %v12143_v23  ;;  %v3392_v7 = vand.u32 2147483647, %v3391_v10 }
 0x934   : > { %v3336_v10 = vsub.f32 %v12061_v56, %v12156_v12  ;;  %v3936_v56 = vsub.f32 %v12050_v9, %v12126_v31 }
 0x935   : > { %v3144_v42 = vadd.f32 %v3143_v18, %v3116_v14  ;;  %v13510_v18 = vpack.c.bf16 %v11868_v37, %v11870_v39  ;;  %v3053_v14 = vmax.f32 %v3052_v44, 0.0  ;;  %v10878_v39 = vunpack.i.h.bf16 %v12143_v23 }
 0x936   : > { %v3384_v23 = vand.u32 2147483647, %v3383_v58  ;;  %v3393_v16 = vsub.f32 1.0, %v3392_v7  ;;  %v10861_v58 = vunpack.i.l.bf16 %v12115_v60  ;;  %v3337_v49 = vand.u32 2147483647, %v3336_v10 }
 0x937   : > { %9840 = vmatmul.mubr.msk.f32.vlgmr.msra.gmra.mrb[28].mxu1 %vm3145_vm5, %v3144_v42  ;;  %v3086_v57 = vpop.permute.xlu0 %3085  ;;  %v3058_v54 = vpop.permute.xlu1 %3057  ;;  %v3054_v35 = vmul.f32 %v3053_v14, %v3045_v17  ;;  %v10537_v5 = vpack.c.bf16 %v10878_v39, %v10877_v50  ;;  %v3367_v42 = vmax.f32 %v3366_v19, 0.0  ;;  %v3359_v17 = vmax.f32 %v3358_v29, 0.0 }
 0x938   : > { %10511 = vmatpush3.bf16.msra.mxu1 %v13507_v45  ;;  %9858 = vmatprep.mubr.msk.f32.mxu1 %vm11219_vm0, %v13508_v13  ;;  %v3088_v11 = vmul.f32 %v3086_v57, %v3083_v33  ;;  %v3385_v46 = vsub.f32 1.0, %v3384_v23  ;;  %v3394_v55 = vmax.f32 %v3393_v16, 0.0  ;;  %v10854_v57 = vunpack.i.h.bf16 %v12073_v22 }
 0x939   : > { %10512 = vmatprep.subr.bf16.mxu1 %v13509_v30  ;;  %v3060_v37 = vmul.f32 %v3058_v54, %v3054_v35  ;;  %v10853_v54 = vunpack.i.l.bf16 %v12073_v22  ;;  %v3307_v35 = vsub.f32 %v12058_v47, %v12156_v12  ;;  %v3971_v22 = vsub.f32 %v12098_v26, %v12135_v53 }
 0x93a   : > { %v3386_v44 = vmax.f32 %v3385_v46, 0.0  ;;  %v10862_v47 = vunpack.i.h.bf16 %v12115_v60  ;;  %v3330_v7 = vsub.f32 1.0, %v3329_v59  ;;  %v10866_v23 = vunpack.i.l.bf16 %v12119_v63 }
 0x93b   : > { %v3089_v40 = vadd.f32 %v3088_v11, %v3060_v37  ;;  %v3300_v11 = vand.u32 2147483647, %v3299_v32  ;;  %v3944_v37 = vsub.f32 %v12076_v1, %v12135_v53  ;;  %v10525_v50 = vpack.c.bf16 %v10854_v57, %v10853_v54 }
 0x93c   : > { %10514 = vmatpush3.bf16.msra.mxu1 %v13510_v18  ;;  %v3368_v18 = vmul.f32 %v3367_v42, %v3359_v17  ;;  %v3395_v14 = vmul.f32 %v3394_v55, %v3386_v44  ;;  %v10528_v60 = vpack.c.bf16 %v10862_v47, %v10861_v58  ;;  %v3937_v9 = vand.u32 2147483647, %v3936_v56 }
 0x93d   : > { %10515 = vmatprep.subr.bf16.mxu1 %v13509_v30  ;;  %v3301_v1 = vsub.f32 1.0, %v3300_v11  ;;  %v3945_v26 = vand.u32 2147483647, %v3944_v37  ;;  %v3338_v16 = vsub.f32 1.0, %v3337_v49  ;;  %v3965_v46 = vsub.f32 1.0, %v3964_v8 }
 0x93e   : > { %v3331_v42 = vmax.f32 %v3330_v7, 0.0  ;;  %v10872_v17 = vunpack.i.h.bf16 %v12128_v2  ;;  %v10871_v32 = vunpack.i.l.bf16 %v12128_v2  ;;  %v3678_v8 = vsub.f32 %v12071_v20, %v12126_v31 }
 0x93f   : > { %v3302_v29 = vmax.f32 %v3301_v1, 0.0  ;;  %v3946_v55 = vsub.f32 1.0, %v3945_v26  ;;  %v3966_v57 = vmax.f32 %v3965_v46, 0.0  ;;  %v3659_v7 = vsub.f32 %v12065_v21, %v12135_v53 }
 0x940   : > { %10517 = vmatpush3.bf16.msra.mxu1 %v13511_v52  ;;  %v3679_v26 = vand.u32 2147483647, %v3678_v8  ;;  %v3887_v8 = vsub.f32 %v12153_v3, %v12156_v12 }
 0x941   : > { %10518 = vmatprep.subr.bf16.mxu1 %v13509_v30  ;;  %v3660_v20 = vand.u32 2147483647, %v3659_v7 }
 0x943   : > { %v12195_v43 = vpop.permute.xlu1 %3950 }
 0x944   : > { %10520 = vmatpush3.bf16.msra.mxu1 %v13512_v24  ;;  %v3308_v24 = vand.u32 2147483647, %v3307_v35 }
 0x945   : > { %10536 = vmatprep.subr.bf16.mxu1 %v13509_v30 }
 0x946   : > { %v3309_v19 = vsub.f32 1.0, %v3308_v24 }
 0x947   : > { %9859 = vmatmul.mubr.msk.f32.vlgmr.msra.gmra.mrb[28].mxu1 %vm3219_vm6, %v3089_v40  ;;  %v3972_v40 = vand.u32 2147483647, %v3971_v22 }
 0x948   : > { %10538 = vmatpush3.bf16.msra.mxu1 %v10537_v5  ;;  %v12202_v15 = vpop.permute.xlu1 %3977  ;;  %9891 = vmatprep.mubr.msk.f32.mxu1 %vm11219_vm0, %v13508_v13  ;;  %v10867_v5 = vunpack.i.h.bf16 %v12119_v63  ;;  %v3938_v63 = vsub.f32 1.0, %v3937_v9 }
 0x949   : > { %10539 = vmatprep.subr.bf16.mxu1 %v13509_v30 }
 0x94a   : > { %v10531_v44 = vpack.c.bf16 %v10867_v5, %v10866_v23  ;;  %v3939_v59 = vmax.f32 %v3938_v63, 0.0  ;;  %v3680_v23 = vsub.f32 1.0, %v3679_v26 }
 0x94c   : > { %v3681_v9 = vmax.f32 %v3680_v23, 0.0  ;;  %v3888_v23 = vand.u32 2147483647, %v3887_v8 }
 0x94d   : > { %v3371_v45 = vpop.permute.xlu1 %3370 }
 0x94e   : > { %v3373_v52 = vmul.f32 %v3371_v45, %v3368_v18  ;;  %v3973_v45 = vsub.f32 1.0, %v3972_v40  ;;  %v3310_v18 = vmax.f32 %v3309_v19, 0.0 }
 0x950   : > { %v3311_v54 = vmul.f32 %v3310_v18, %v3302_v29  ;;  %v3974_v35 = vmax.f32 %v3973_v45, 0.0  ;;  %v3631_v29 = vsub.f32 %v12141_v48, %v12156_v12  ;;  %v3602_v45 = vsub.f32 %v12133_v51, %v12156_v12 }
 0x952   : > { %v3398_v33 = vpop.permute.xlu1 %3397  ;;  %v3975_v37 = vmul.f32 %v3974_v35, %v3966_v57  ;;  %v3623_v57 = vsub.f32 %v12131_v0, %v12149_v62  ;;  %v3603_v48 = vand.u32 2147483647, %v3602_v45 }
 0x953   : > { %v3400_v6 = vmul.f32 %v3398_v33, %v3395_v14  ;;  %v3339_v14 = vmax.f32 %v3338_v16, 0.0  ;;  %v3947_v33 = vmax.f32 %v3946_v55, 0.0 }
 0x954   : > { %v3980_v22 = vmul.f32 %v12202_v15, %v3975_v37  ;;  %v3624_v37 = vand.u32 2147483647, %v3623_v57 }
 0x955   : > { %v3401_v39 = vadd.f32 %v3400_v6, %v3373_v52  ;;  %v10534_v52 = vpack.c.bf16 %v10872_v17, %v10871_v32  ;;  %v3340_v6 = vmul.f32 %v3339_v14, %v3331_v42  ;;  %v3594_v14 = vsub.f32 %v12124_v34, %v12149_v62 }
 0x956   : > { %v10890_v41 = vpop.permute.xlu1 %10889 }
 0x957   : > { %9866 = vmatmul.mubr.msk.f32.vlgmr.msra.gmra.mrb[38].mxu0 %vm3145_vm5, %v3401_v39  ;;  %v10892_v10 = vunpack.i.h.bf16 %v10890_v41  ;;  %v10891_v25 = vunpack.i.l.bf16 %v10890_v41  ;;  %v3651_v41 = vsub.f32 %v12067_v4, %v12126_v31 }
 0x958   : > { %10526 = vmatpush3.bf16.msra.mxu0 %v10525_v50  ;;  %9884 = vmatprep.mubr.msk.f32.mxu0 %vm11219_vm0, %v13508_v13  ;;  %v3948_v50 = vmul.f32 %v3947_v33, %v3939_v59  ;;  %v3595_v59 = vand.u32 2147483647, %v3594_v14 }
 0x959   : > { %10527 = vmatprep.subr.bf16.mxu0 %v13509_v30  ;;  %v10552_v58 = vpack.c.bf16 %v10892_v10, %v10891_v25  ;;  %v3652_v4 = vand.u32 2147483647, %v3651_v41  ;;  %v3908_v41 = vsub.f32 %v12160_v28, %v12149_v62 }
 0x95a   : > { %v10900_v38 = vpop.permute.xlu1 %10899  ;;  %v3953_v49 = vmul.f32 %v12195_v43, %v3948_v50  ;;  %v3686_v43 = vsub.f32 %v12069_v27, %v12135_v53 }
 0x95b   : > { %v10902_v24 = vunpack.i.h.bf16 %v10900_v38  ;;  %v10901_v56 = vunpack.i.l.bf16 %v10900_v38  ;;  %v3653_v5 = vsub.f32 1.0, %v3652_v4  ;;  %v3661_v38 = vsub.f32 1.0, %v3660_v20 }
 0x95c   : > { %10529 = vmatpush3.bf16.msra.mxu0 %v10528_v60  ;;  %v3981_v1 = vadd.f32 %v3980_v22, %v3953_v49  ;;  %v3687_v40 = vand.u32 2147483647, %v3686_v43  ;;  %v10895_v60 = vpop.permute.xlu0 %10894  ;;  %v3916_v22 = vsub.f32 %v12162_v61, %v12156_v12  ;;  %v13513_v43 = vld [vmem:[#allocation16_spill] sm:$0xff] }
 0x95d   : > { %10530 = vmatprep.subr.bf16.mxu0 %v13509_v30  ;;  %v10555_v15 = vpack.c.bf16 %v10902_v24, %v10901_v56  ;;  %v3654_v19 = vmax.f32 %v3653_v5, 0.0  ;;  %v3662_v16 = vmax.f32 %v3661_v38, 0.0  ;;  %v10896_v17 = vunpack.i.l.bf16 %v10895_v60 }
 0x95e   : > { %v3315_v36 = vpop.permute.xlu1 %3314  ;;  %v3688_v21 = vsub.f32 1.0, %v3687_v40  ;;  %v3596_v24 = vsub.f32 1.0, %v3595_v59  ;;  %v3625_v56 = vsub.f32 1.0, %v3624_v37  ;;  %v3879_v4 = vsub.f32 %v13513_v43, %v12149_v62  ;;  %v584_v59 = vld [vmem:[%s13431_s6 + $0x20] sm:$0xff] }
 0x95f   : > { %v3317_v39 = vmul.f32 %v3315_v36, %v3311_v54  ;;  %v3663_v55 = vmul.f32 %v3662_v16, %v3654_v19  ;;  %v3632_v54 = vand.u32 2147483647, %v3631_v29  ;;  %v3917_v26 = vand.u32 2147483647, %v3916_v22 }
 0x960   : > { %10532 = vmatpush3.bf16.msra.mxu0 %v10531_v44  ;;  %v10905_v27 = vpop.permute.xlu0 %10904  ;;  %v3689_v46 = vmax.f32 %v3688_v21, 0.0  ;;  %v10897_v44 = vunpack.i.h.bf16 %v10895_v60  ;;  %v3597_v20 = vmax.f32 %v3596_v24, 0.0  ;;  %v3626_v40 = vmax.f32 %v3625_v56, 0.0 }
 0x961   : > { %10533 = vmatprep.subr.bf16.mxu0 %v13509_v30  ;;  %v3633_v0 = vsub.f32 1.0, %v3632_v54  ;;  %v3909_v5 = vand.u32 2147483647, %v3908_v41  ;;  %v3880_v19 = vand.u32 2147483647, %v3879_v4 }
 0x962   : > { %v3690_v42 = vmul.f32 %v3689_v46, %v3681_v9  ;;  %v10540_v35 = vpack.c.bf16 %v10897_v44, %v10896_v17  ;;  %v3918_v9 = vsub.f32 1.0, %v3917_v26 }
 0x963   : > { %v3343_v11 = vpop.permute.xlu1 %3342  ;;  %v3881_v44 = vsub.f32 1.0, %v3880_v19 }
 0x964   : > { %v3345_v2 = vmul.f32 %v3343_v11, %v3340_v6  ;;  %10535 = vmatpush3.bf16.msra.mxu0 %v10534_v52  ;;  %v10907_v52 = vunpack.i.h.bf16 %v10905_v27  ;;  %v10906_v6 = vunpack.i.l.bf16 %v10905_v27  ;;  %v3919_v17 = vmax.f32 %v3918_v9, 0.0  ;;  %v13515_v9 = vld [vmem:[#allocation13_spill] sm:$0xff] }
 0x965   : > { %10551 = vmatprep.subr.bf16.mxu0 %v13509_v30  ;;  %v3882_v54 = vmax.f32 %v3881_v44, 0.0 }
 0x966   : > { %v3346_v47 = vadd.f32 %v3345_v2, %v3317_v39  ;;  %v3604_v39 = vsub.f32 1.0, %v3603_v48  ;;  %v10543_v2 = vpack.c.bf16 %v10907_v52, %v10906_v6 }
 0x968   : > { %9885 = vmatmul.mubr.msk.f32.vlgmr.msra.gmra.mrb[38].mxu0 %vm3219_vm6, %v3346_v47  ;;  %v3605_v61 = vmax.f32 %v3604_v39, 0.0 }
 0x969   : > { %10553 = vmatpush3.bf16.msra.mxu0 %v10552_v58  ;;  %9917 = vmatprep.mubr.msk.f32.mxu0 %vm11219_vm0, %v13508_v13 }
 0x96a   : > { %10554 = vmatprep.subr.bf16.mxu0 %v13509_v30  ;;  %v3606_v21 = vmul.f32 %v3605_v61, %v3597_v20 }
 0x96c   : > { %9918 = vmatmul.mubr.msk.f32.vlgmr.msra.gmra.mrb[40].mxu0 %vm3145_vm5, %v3981_v1 }
 0x96d   : > { %10556 = vmatpush3.bf16.msra.mxu0 %v10555_v15  ;;  %9936 = vmatprep.mubr.msk.f32.mxu0 %vm11219_vm0, %v13508_v13  ;;  %v3634_v15 = vmax.f32 %v3633_v0, 0.0 }
 0x96e   : > { %10557 = vmatprep.subr.bf16.mxu0 %v13509_v30 }
 0x96f   : > { %v3635_v3 = vmul.f32 %v3634_v15, %v3626_v40  ;;  %v13514_v40 = vld [vmem:[#allocation9_spill] sm:$0xff] }
 0x97b   : > { %v3693_v32 = vpop.permute.xlu0 %3692  ;;  %v3666_v36 = vpop.permute.xlu1 %3665 }
 0x97c   : > { %v3695_v18 = vmul.f32 %v3693_v32, %v3690_v42  ;;  %v3668_v63 = vmul.f32 %v3666_v36, %v3663_v55  ;;  %v3910_v42 = vsub.f32 1.0, %v3909_v5  ;;  %v3889_v55 = vsub.f32 1.0, %v3888_v23  ;;  %v12328_v23 = vld [vmem:[%s13436_s11] sm:$0xff] }
 0x97e   : > { %v3696_v33 = vadd.f32 %v3695_v18, %v3668_v63  ;;  %v3911_v63 = vmax.f32 %v3910_v42, 0.0  ;;  %v3890_v14 = vmax.f32 %v3889_v55, 0.0 }
 0x97f   : > { %v10913_v10 = vpop.permute.xlu1 %10912 }
 0x980   : > { %v10915_v51 = vunpack.i.h.bf16 %v10913_v10  ;;  %v10914_v25 = vunpack.i.l.bf16 %v10913_v10  ;;  %v12264_v11 = vpop.permute.xlu0 %3894  ;;  %9892 = vmatmul.mubr.msk.f32.vlgmr.msra.gmra.mrb[30].mxu1 %vm3145_vm5, %v3696_v33  ;;  %v3920_v33 = vmul.f32 %v3919_v17, %v3911_v63  ;;  %v3891_v6 = vmul.f32 %v3890_v14, %v3882_v54 }
 0x981   : > { %10541 = vmatpush3.bf16.msra.mxu1 %v10540_v35  ;;  %9910 = vmatprep.mubr.msk.f32.mxu1 %vm11219_vm0, %v13508_v13 }
 0x982   : > { %v10558_v34 = vpack.c.bf16 %v10915_v51, %v10914_v25  ;;  %10542 = vmatprep.subr.bf16.mxu1 %v13509_v30  ;;  %v3897_v25 = vmul.f32 %v12264_v11, %v3891_v6  ;;  %v585_v11 = vld [vmem:[%s13431_s6 + $0x28] sm:$0xff] }
 0x983   : > { %v10918_v50 = vpop.permute.xlu1 %10917 }
 0x984   : > { %v10920_v47 = vunpack.i.h.bf16 %v10918_v50  ;;  %v10919_v58 = vunpack.i.l.bf16 %v10918_v50  ;;  %10559 = vmatpush3.bf16.msra.mxu0 %v10558_v34  ;;  %v586_v34 = vld [vmem:[%s13431_s6 + $0x30] sm:$0xff] }
 0x985   : > { %10544 = vmatpush3.bf16.msra.mxu1 %v10543_v2  ;;  %v3638_v49 = vpop.permute.xlu0 %3637  ;;  %10560 = vmatprep.subr.bf16.mxu0 %v13509_v30  ;;  %v587_v2 = vld [vmem:[%s13431_s6 + $0x38] sm:$0xff] }
 0x986   : > { %v10546_v1 = vpack.c.bf16 %v10920_v47, %v10919_v58  ;;  %10545 = vmatprep.subr.bf16.mxu1 %v13509_v30  ;;  %v3640_v46 = vmul.f32 %v3638_v49, %v3635_v3 }
 0x987   : > { %v3923_v7 = vpop.permute.xlu1 %3922 }
 0x988   : > { %v3925_v10 = vmul.f32 %v3923_v7, %v3920_v33 }
 0x989   : > { %10547 = vmatpush3.bf16.msra.mxu1 %v10546_v1  ;;  %v10933_v60 = vpop.permute.xlu0 %10932 }
 0x98a   : > { %v10935_v28 = vunpack.i.h.bf16 %v10933_v60  ;;  %v10934_v38 = vunpack.i.l.bf16 %v10933_v60  ;;  %10548 = vmatprep.subr.bf16.mxu1 %v13509_v30  ;;  %v3926_v37 = vadd.f32 %v3925_v10, %v3897_v25  ;;  %v12323_v60 = vsub.s32 1, %v13514_v40  ;;  %v615_v10 = vld [vmem:[%s13435_s10 + $0x18] sm:$0xff]  ;;  %v616_v25 = vld [vmem:[%s13435_s10 + $0x20] sm:$0xff] }
 0x98c   : > { %v10549_v27 = vpack.c.bf16 %v10935_v28, %v10934_v38  ;;  %v3610_v16 = vpop.permute.xlu1 %3609  ;;  %v4460_v28 = vrot.slane %v12328_v23, %v12323_v60 }
 0x98d   : > { %v3612_v29 = vmul.f32 %v3610_v16, %v3606_v21 }
 0x98e   : > { %10550 = vmatpush3.bf16.msra.mxu1 %v10549_v27 }
 0x98f   : > { %v3641_v45 = vadd.f32 %v3640_v46, %v3612_v29  ;;  %9939 = vmatprep.subr.mxu1 %v13508_v13  ;;  %v11140_v46 = vld [vmem:[%s13434_s9] sm:$0xff]  ;;  %v11141_v29 = vld [vmem:[%s13434_s9 + $0x8] sm:$0xff] }
 0x990   : > { %v10927_v32 = vpop.permute.xlu1 %10926  ;;  %v10941_v42 = vpack.i.bf16 %v11141_v29, %v11140_v46 }
 0x991   : > { %v10929_v36 = vunpack.i.h.bf16 %v10927_v32  ;;  %v10928_v18 = vunpack.i.l.bf16 %v10927_v32  ;;  %9911 = vmatmul.mubr.msk.f32.vlgmr.msra.gmra.mrb[30].mxu1 %vm3219_vm6, %v3641_v45 }
 0x992   : > { %9941 = vmatprep.mubr.msk.f32.mxu1 %vm11219_vm0, %v13508_v13  ;;  %9940 = vmatpush3.msra.mxu1 %v584_v59  ;;  %v617_v59 = vld [vmem:[%s13435_s10 + $0x28] sm:$0xff] }
 0x993   : > { %v10561_v57 = vpack.c.bf16 %v10929_v36, %v10928_v18  ;;  %9949 = vmatprep.subr.mxu1 %v13508_v13  ;;  %v13516_v36 = vld [vmem:[#allocation12_spill] sm:$0xff]  ;;  %v13517_v18 = vld [vmem:[#allocation11_spill] sm:$0xff] }
 0x994   : > { %v10938_v48 = vpop.permute.xlu1 %10937  ;;  %v13518_v63 = vpack.i.bf16 %v13516_v36, %v13517_v18  ;;  %v9019_v18 = vld [vmem:[%s13429_s4 + $0x190] sm:$0xff] }
 0x995   : > { %v10940_v35 = vunpack.i.h.bf16 %v10938_v48  ;;  %v10939_v52 = vunpack.i.l.bf16 %v10938_v48  ;;  %10562 = vmatpush3.bf16.msra.mxu0 %v10561_v57  ;;  %v612_v48 = vld [vmem:[%s13435_s10] sm:$0xff] }
 0x996   : > { %10563 = vmatprep.subr.bf16.mxu0 %v13509_v30 }
 0x997   : > { %v10564_v51 = vpack.c.bf16 %v10940_v35, %v10939_v52  ;;  %v613_v35 = vld [vmem:[%s13435_s10 + $0x8] sm:$0xff]  ;;  %v614_v52 = vld [vmem:[%s13435_s10 + $0x10] sm:$0xff] }
 0x998   : > { %v10573_v6 = vpack.c.bf16 %v613_v35, %v612_v48 }
 0x999   : > { %10565 = vmatpush3.bf16.msra.mxu0 %v10564_v51  ;;  %v10576_v51 = vpack.c.bf16 %v615_v10, %v614_v52  ;;  %v13519_v10 = vld [vmem:[#allocation10_spill] sm:$0xff] }
 0x99a   : > { %9944 = vmatprep.subr.mxu0 %v13508_v13 }
 0x99c   : > { %9937 = vmatmul.mubr.msk.f32.vlgmr.msra.gmra.mrb[40].mxu0 %vm3219_vm6, %v3926_v37  ;;  %v10579_v37 = vpack.c.bf16 %v617_v59, %v616_v25 }
 0x99d   : > { %9946 = vmatprep.mubr.msk.f32.mxu0 %vm11219_vm0, %v13508_v13  ;;  %9945 = vmatpush3.msra.mxu0 %v585_v11 }
 0x99e   : > { %9954 = vmatprep.subr.mxu0 %v13508_v13 }
 0xa1a   : > { %v3289_v0 = vpop.f32.mrb[28].mxu1 }
 0xa1b   : > { %v9860_v39 = vpop.f32.mrb[29].mxu1  ;;  %9942 = vmatmul.mubr.msk.f32.vlgmr.msra.gmra.mrb[32].mxu1 %vm1547_vm2, %v3289_v0 }
 0xa1c   : > { %9950 = vmatpush3.msra.mxu1 %v586_v34  ;;  %9951 = vmatprep.mubr.msk.f32.mxu1 %vm11219_vm0, %v13508_v13 }
 0xa1d   : > { %10566 = vmatprep.subr.bf16.mxu1 %v13509_v30 }
 0xa3b   : > { %v3584_v50 = vpop.f32.mrb[38].mxu0 }
 0xa3c   : > { %v9886_v22 = vpop.f32.mrb[39].mxu0  ;;  %9947 = vmatmul.mubr.msk.f32.vlgmr.msra.gmra.mrb[42].mxu0 %vm1547_vm2, %v3584_v50 }
 0xa3d   : > { %9955 = vmatpush3.msra.mxu0 %v587_v2  ;;  %9956 = vmatprep.mubr.msk.f32.mxu0 %vm11219_vm0, %v13508_v13 }
 0xa3e   : > { %10572 = vmatprep.subr.bf16.mxu0 %v13509_v30 }
 0xa64   : > { %v3869_v47 = vpop.f32.mrb[30].mxu1 }
 0xa65   : > { %v9912_v58 = vpop.f32.mrb[31].mxu1  ;;  %9952 = vmatmul.mubr.msk.f32.vlgmr.msra.gmra.mrb[34].mxu1 %vm1547_vm2, %v3869_v47  ;;  %v13488_v47 = vsub.s32 6, %v13514_v40 }
 0xa66   : > { %9967 = vmatprep.mubr.msk.f32.mxu1 %vm11219_vm0, %v13508_v13  ;;  %v13487_v58 = vsub.s32 7, %v13514_v40 }
 0xa6f   : > { %v4154_v24 = vpop.f32.mrb[40].mxu0 }
 0xa70   : > { %v9938_v56 = vpop.f32.mrb[41].mxu0  ;;  %9957 = vmatmul.mubr.msk.f32.vlgmr.msra.gmra.mrb[44].mxu0 %vm1547_vm2, %v4154_v24  ;;  %v4479_v24 = vrot.slane %v12328_v23, %v13488_v47 }
 0xa71   : > { %9986 = vmatprep.mubr.msk.f32.mxu0 %vm11219_vm0, %v13508_v13  ;;  %10574 = vmatpush3.bf16.msra.mxu0 %v10573_v6  ;;  %v621_v6 = vld [vmem:[%s13436_s11 + $0x8] sm:$0x3] }
 0xa72   : > { %10575 = vmatprep.subr.bf16.mxu0 %v13509_v30  ;;  %v4681_v59 = vrot.slane %v621_v6, %v12323_v60 }
 0xa75   : > { %10577 = vmatpush3.bf16.msra.mxu0 %v10576_v51  ;;  %v4676_v51 = vrot.slane %v621_v6, %v13519_v10  ;;  %v9048_v6 = vld [vmem:[%s13429_s4 + $0x278] sm:$0xff] }
 0xa76   : > { %10578 = vmatprep.subr.bf16.mxu0 %v13509_v30 }
 0xa79   : > { %10580 = vmatpush3.bf16.msra.mxu0 %v10579_v37 }
 0xa7a   : > { %10581 = vmatprep.subr.bf16.mxu0 %v13509_v30 }
 0xaee   : > { %v4227_v49 = vpop.f32.mrb[32].mxu1 }
 0xaef   : > { %v9943_v41 = vpop.f32.mrb[33].mxu1  ;;  %v4450_v1 = vsel %vm648_vm1, %v4227_v49, 0.0 }
 0xaf0   : > { %v4484_v41 = vrot.slane %v12328_v23, %v13487_v58 }
 0xb0f   : > { %v4300_v8 = vpop.f32.mrb[42].mxu0 }
 0xb10   : > { %v4451_v15 = vsel %vm648_vm1, %v4300_v8, 0.0  ;;  %v9948_v61 = vpop.f32.mrb[43].mxu0 }
 0xb11   : > { %v4452_v7 = vadd.f32 %v4451_v15, %v4450_v1  ;;  %v618_v15 = vld [vmem:[%s13435_s10 + $0x30] sm:$0xff]  ;;  %v619_v61 = vld [vmem:[%s13435_s10 + $0x38] sm:$0xff] }
 0xb38   : > { %v4373_v43 = vpop.f32.mrb[34].mxu1 }
 0xb39   : > { %v4453_v4 = vsel %vm648_vm1, %v4373_v43, 0.0  ;;  %v9953_v26 = vpop.f32.mrb[35].mxu1  ;;  %v9014_v43 = vld [vmem:[%s13437_s12] ss:$0 sm:$0xff] }
 0xb3a   : > { %v4454_v20 = vadd.f32 %v4453_v4, %v4452_v7  ;;  %v10582_v7 = vpack.c.bf16 %v619_v61, %v618_v15  ;;  %v9036_v15 = vld [vmem:[%s13429_s4 + $0x218] sm:$0xff] }
 0xb3c   : > { %10583 = vmatpush3.bf16.msra.mxu0 %v10582_v7 }
 0xb3d   : > { %10596 = vmatprep.subr.bf16.mxu0 %v13509_v30 }
 0xb43   : > { %v4446_v5 = vpop.f32.mrb[44].mxu0 }
 0xb44   : > { %v4455_v38 = vsel %vm648_vm1, %v4446_v5, 0.0  ;;  %v9958_v3 = vpop.f32.mrb[45].mxu0 }
 0xb45   : > { %v4456_v21 = vadd.f32 %v4455_v38, %v4454_v20 }
 0xb47   : > { %v4461_v19 = vadd.f32 %v4460_v28, %v4456_v21  ;;  %v13486_v28 = vsub.s32 3, %v13514_v40 }
 0xb49   : > { %v4462_v27 = vadd.f32 %v4461_v19, %v13515_v9  ;;  %v4585_v38 = vrot.slane %v12328_v23, %v13486_v28  ;;  %v9018_v23 = vld [vmem:[%s13429_s4 + $0x188] sm:$0xff] }
 0xb4b   : > { %v4463_v16 = vsel %vm648_vm1, %v4462_v27, 0.0 }
 0xb4c   : > { %4464 = vadd.xlane.f32.xlu0 %v4463_v16 }
 0xb62   : > { %10942 = vrot.lane.b32.xlu0 %v10941_v42, %s13477_s16 }
 0xbd9   : > { %v4465_v55 = vpop.xlane.xlu0 %4464 }
 0xbda   : > { %v4466_v45 = vmul.f32 0.03125, %v4465_v55 }
 0xbdc   : > { %v4467_v44 = vsub.f32 %v4462_v27, %v4466_v45  ;;  %v9017_v45 = vld [vmem:[%s13429_s4 + $0x180] sm:$0xff] }
 0xbdd   : > { %v10943_v14 = vpop.permute.xlu0 %10942 }
 0xbde   : > { %v4468_v17 = vmul.f32 %v4467_v44, %v4467_v44  ;;  %v10945_v57 = vunpack.i.h.bf16 %v10943_v14  ;;  %v10944_v54 = vunpack.i.l.bf16 %v10943_v14  ;;  %v9027_v14 = vld [vmem:[%s13429_s4 + $0x1d0] sm:$0xff] }
 0xbe0   : > { %v4469_v32 = vsel %vm648_vm1, %v4468_v17, 0.0  ;;  %v10567_v33 = vpack.c.bf16 %v10945_v57, %v10944_v54  ;;  %v10585_v17 = vpack.c.bf16 %v9018_v23, %v9017_v45  ;;  %v9028_v54 = vld [vmem:[%s13429_s4 + $0x1d8] sm:$0xff] }
 0xbe1   : > { %4470 = vadd.xlane.f32.xlu1 %v4469_v32  ;;  %v9026_v32 = vld [vmem:[%s13429_s4 + $0x1c8] sm:$0xff] }
 0xbe2   : > { %10568 = vmatpush3.bf16.msra.mxu1 %v10567_v33  ;;  %v10600_v33 = vpack.c.bf16 %v9028_v54, %v9027_v14  ;;  %v9045_v14 = vld [vmem:[%s13429_s4 + $0x260] sm:$0xff] }
 0xbe3   : > { %10569 = vmatprep.subr.bf16.mxu1 %v13509_v30  ;;  %v9057_v54 = vld [vmem:[%s13429_s4 + $0x2c0] sm:$0xff] }
 0xbf2   : > { %10947 = vrot.lane.b32.xlu1 %v13518_v63, %s13477_s16  ;;  %v9020_v63 = vld [vmem:[%s13429_s4 + $0x198] sm:$0xff]  ;;  %s11158_s16 = sshll.u32 %s11234_s29, 4  ;;  %s11159_s16 = int_to_ptr.vmem [resolvable:$false] %s11158_s16 }
 0xbf3   : > { %v10588_v57 = vpack.c.bf16 %v9020_v63, %v9019_v18  ;;  %p11161_p0 = scmp.lt.s32.totalorder %s13378_s30, %s11159_s16 }
 0xc6e   : > { %v4471_v11 = vpop.xlane.xlu1 %4470 }
 0xc6f   : > { %v4472_v34 = vmul.f32 0.03125, %v4471_v11  ;;  %v9021_v11 = vld [vmem:[%s13429_s4 + $0x1a0] sm:$0xff] }
 0xc71   : > { %v4473_v0 = vadd.f32 1e-05, %v4472_v34 }
 0xc72   : > { %v10948_v39 = vpop.permute.xlu1 %10947 }
 0xc73   : > { %11097 = vrsqrt.f32 %v4473_v0  ;;  %v10950_v2 = vunpack.i.h.bf16 %v10948_v39  ;;  %v10949_v50 = vunpack.i.l.bf16 %v10948_v39  ;;  %v9022_v0 = vld [vmem:[%s13429_s4 + $0x1a8] sm:$0xff]  ;;  %v9033_v39 = vld [vmem:[%s13429_s4 + $0x200] sm:$0xff] }
 0xc75   : > { %v10570_v22 = vpack.c.bf16 %v10950_v2, %v10949_v50  ;;  %v9034_v2 = vld [vmem:[%s13429_s4 + $0x208] sm:$0xff] }
 0xc77   : > { %10571 = vmatpush3.bf16.msra.mxu1 %v10570_v22  ;;  %v10591_v22 = vpack.c.bf16 %v9022_v0, %v9021_v11  ;;  %v9053_v11 = vld [vmem:[%s13429_s4 + $0x2a0] sm:$0xff] }
 0xc78   : > { %10584 = vmatprep.subr.bf16.mxu1 %v13509_v30 }
 0xc7d   : > { %v11098_v56 = vpop.eup %11097 }
 0xc7e   : > { %v4475_v49 = vmul.f32 %v11098_v56, %v4467_v44  ;;  %v9025_v44 = vld [vmem:[%s13429_s4 + $0x1c0] sm:$0xff]  ;;  %v9023_v56 = vld [vmem:[%s13429_s4 + $0x1b0] sm:$0xff] }
 0xc7f   : > { %v10597_v36 = vpack.c.bf16 %v9026_v32, %v9025_v44  ;;  %v9039_v44 = vld [vmem:[%s13429_s4 + $0x230] sm:$0xff] }
 0xc80   : > { %v4480_v8 = vmul.f32 %v4479_v24, %v4475_v49  ;;  %v10609_v24 = vpack.c.bf16 %v9034_v2, %v9033_v39  ;;  %v12454_v49 = vld [vmem:[%s11414_s19] sm:$0xff]  ;;  %v9051_v32 = vld [vmem:[%s13429_s4 + $0x290] sm:$0xff]  ;;  %v9056_v2 = vld [vmem:[%s13429_s4 + $0x2b8] sm:$0xff]  ;;  %s13523_s19 = smov 122  }
 0xc81   : > { %v9055_v39 = vld [vmem:[%s13429_s4 + $0x2b0] sm:$0xff] }
 0xc82   : > { %v4485_v1 = vadd.f32 %v4484_v41, %v4480_v8  ;;  %v9024_v8 = vld [vmem:[%s13429_s4 + $0x1b8] sm:$0xff] }
 0xc83   : > { %v10594_v61 = vpack.c.bf16 %v9024_v8, %v9023_v56  ;;  %v9062_v56 = vld [vmem:[%s13429_s4 + $0x2e8] sm:$0xff]  ;;  %v9063_v8 = vld [vmem:[%s13429_s4 + $0x2f0] sm:$0xff] }
 0xc84   : > { %9968 = vmatmul.mubr.msk.f32.vlgmr.msra.gmra.mrb[36].mxu1 %vm648_vm1, %v4485_v1 }
 0xc85   : > { %9997 = vmatprep.mubr.msk.f32.mxu1 %vm11219_vm0, %v13508_v13  ;;  %10586 = vmatpush3.bf16.msra.mxu1 %v10585_v17  ;;  %v9040_v17 = vld [vmem:[%s13429_s4 + $0x238] sm:$0xff] }
 0xc86   : > { %10587 = vmatprep.subr.bf16.mxu1 %v13509_v30  ;;  %v10618_v18 = vpack.c.bf16 %v9040_v17, %v9039_v44 }
 0xc89   : > { %10589 = vmatpush3.bf16.msra.mxu1 %v10588_v57  ;;  %v9046_v57 = vld [vmem:[%s13429_s4 + $0x268] sm:$0xff] }
 0xc8a   : > { %10590 = vmatprep.subr.bf16.mxu1 %v13509_v30 }
 0xd57   : > { %v4577_v4 = vpop.f32.mrb[36].mxu1 }
 0xd58   : > { %v4578_v26 = vadd.f32 %v9014_v43, %v4577_v4  ;;  %v9969_v20 = vpop.f32.mrb[37].mxu1  ;;  %v9029_v43 = vld [vmem:[%s13429_s4 + $0x1e0] sm:$0xff]  ;;  %v9030_v4 = vld [vmem:[%s13429_s4 + $0x1e8] sm:$0xff] }
 0xd59   : > { %v9042_v20 = vld [vmem:[%s13429_s4 + $0x248] sm:$0xff] }
 0xd5a   : > { %v4581_v5 = vmax.f32 %v4578_v26, 0.0  ;;  %v9041_v26 = vld [vmem:[%s13429_s4 + $0x240] sm:$0xff] }
 0xd5c   : > { %9987 = vmatmul.mubr.msk.f32.vlgmr.msra.gmra.mrb[46].mxu0 %vm3219_vm6, %v4581_v5  ;;  %v10603_v5 = vpack.c.bf16 %v9030_v4, %v9029_v43 }
 0xd5d   : > { %10019 = vmatprep.mubr.msk.f32.mxu0 %vm11219_vm0, %v13508_v13  ;;  %10598 = vmatpush3.bf16.msra.mxu0 %v10597_v36  ;;  %v9052_v36 = vld [vmem:[%s13429_s4 + $0x298] sm:$0xff] }
 0xd5e   : > { %10599 = vmatprep.subr.bf16.mxu0 %v13509_v30  ;;  %v10636_v63 = vpack.c.bf16 %v9052_v36, %v9051_v32  ;;  %v9121_v32 = vld [vmem:[%s13430_s5 + $0xd] ss:$0 sm:$0xff]  ;;  %v9129_v36 = vld [vmem:[%s13430_s5 + $0x11] ss:$0 sm:$0xff] }
 0xd61   : > { %10601 = vmatpush3.bf16.msra.mxu0 %v10600_v33  ;;  %v9058_v33 = vld [vmem:[%s13429_s4 + $0x2c8] sm:$0xff] }
 0xd62   : > { %10608 = vmatprep.subr.bf16.mxu0 %v13509_v30 }
 0xe2f   : > { %v4655_v3 = vpop.f32.mrb[46].mxu0 }
 0xe30   : > { %v4656_v21 = vadd.f32 %v4655_v3, %v4585_v38  ;;  %v9988_v19 = vpop.f32.mrb[47].mxu0  ;;  %v10621_v38 = vpack.c.bf16 %v9042_v20, %v9041_v26  ;;  %v9031_v3 = vld [vmem:[%s13429_s4 + $0x1f0] sm:$0xff]  ;;  %v9120_v26 = vld [vmem:[%s13430_s5 + $0xc] ss:$0 sm:$0xff] }
 0xe31   : > { %v9043_v19 = vld [vmem:[%s13429_s4 + $0x250] sm:$0xff] }
 0xe32   : > { %v4659_v9 = vadd.f32 %v4656_v21, %v4485_v1  ;;  %v9035_v1 = vld [vmem:[%s13429_s4 + $0x210] sm:$0xff]  ;;  %v9032_v21 = vld [vmem:[%s13429_s4 + $0x1f8] sm:$0xff] }
 0xe33   : > { %v10612_v7 = vpack.c.bf16 %v9036_v15, %v9035_v1  ;;  %v9064_v1 = vld [vmem:[%s13429_s4 + $0x2f8] sm:$0xff]  ;;  %v9128_v20 = vld [vmem:[%s13430_s5 + $0x10] ss:$0 sm:$0xff] }
 0xe34   : > { %v4660_v27 = vsel %vm648_vm1, %v4659_v9, 0.0  ;;  %v10654_v15 = vpack.c.bf16 %v9064_v1, %v9063_v8 }
 0xe35   : > { %4661 = vadd.xlane.f32.xlu0 %v4660_v27  ;;  %v10606_v27 = vpack.c.bf16 %v9032_v21, %v9031_v3 }
 0xec2   : > { %v4662_v16 = vpop.xlane.xlu0 %4661 }
 0xec3   : > { %v4663_v46 = vmul.f32 0.03125, %v4662_v16 }
 0xec5   : > { %v4664_v29 = vsub.f32 %v4659_v9, %v4663_v46  ;;  %v9044_v9 = vld [vmem:[%s13429_s4 + $0x258] sm:$0xff]  ;;  %v9037_v46 = vld [vmem:[%s13429_s4 + $0x220] sm:$0xff] }
 0xec6   : > { %v10624_v16 = vpack.c.bf16 %v9044_v9, %v9043_v19 }
 0xec7   : > { %v4665_v42 = vmul.f32 %v4664_v29, %v4664_v29 }
 0xec9   : > { %v4666_v55 = vsel %vm648_vm1, %v4665_v42, 0.0  ;;  %v9049_v42 = vld [vmem:[%s13429_s4 + $0x280] sm:$0xff] }
 0xeca   : > { %4667 = vadd.xlane.f32.xlu1 %v4666_v55  ;;  %v9050_v55 = vld [vmem:[%s13429_s4 + $0x288] sm:$0xff] }
 0xecb   : > { %v10633_v23 = vpack.c.bf16 %v9050_v55, %v9049_v42 }
 0xf57   : > { %v4668_v48 = vpop.xlane.xlu1 %4667 }
 0xf58   : > { %v4669_v35 = vmul.f32 0.03125, %v4668_v48  ;;  %v10627_v48 = vpack.c.bf16 %v9046_v57, %v9045_v14 }
 0xf5a   : > { %v4670_v52 = vadd.f32 1e-05, %v4669_v35  ;;  %v10645_v35 = vpack.c.bf16 %v9058_v33, %v9057_v54 }
 0xf5c   : > { %11099 = vrsqrt.f32 %v4670_v52  ;;  %v9047_v52 = vld [vmem:[%s13429_s4 + $0x270] sm:$0xff] }
 0xf66   : > { %v11100_v25 = vpop.eup %11099 }
 0xf67   : > { %v4672_v37 = vmul.f32 %v11100_v25, %v4664_v29  ;;  %v9038_v29 = vld [vmem:[%s13429_s4 + $0x228] sm:$0xff]  ;;  %v9060_v25 = vld [vmem:[%s13429_s4 + $0x2d8] sm:$0xff] }
 0xf68   : > { %v10615_v45 = vpack.c.bf16 %v9038_v29, %v9037_v46  ;;  %v9130_v46 = vld [vmem:[%s13430_s5 + $0x12] ss:$0 sm:$0xff] }
 0xf69   : > { %v4677_v34 = vmul.f32 %v4676_v51, %v4672_v37  ;;  %v9059_v51 = vld [vmem:[%s13429_s4 + $0x2d0] sm:$0xff] }
 0xf6a   : > { %v10648_v37 = vpack.c.bf16 %v9060_v25, %v9059_v51  ;;  %v9131_v51 = vld [vmem:[%s13430_s5 + $0x13] ss:$0 sm:$0xff] }
 0xf6b   : > { %v12448_v50 = vadd.f32 %v4681_v59, %v4677_v34  ;;  %v10630_v59 = vpack.c.bf16 %v9048_v6, %v9047_v52  ;;  %v9054_v34 = vld [vmem:[%s13429_s4 + $0x2a8] sm:$0xff] }
 0xf6c   : > { %v10639_v0 = vpack.c.bf16 %v9054_v34, %v9053_v11  ;;  %v9123_v6 = vld [vmem:[%s13430_s5 + $0xf] ss:$0 sm:$0xff] }
 0xf6d   : > { %v12458_v41 = vadd.f32 %v12454_v49, %v12448_v50  ;;  %4683 = vst.msk [vmem:[%s12469_s15] sm:$0xff] %vm648_vm1, %v12448_v50 }
 0xf6f   : > { %9998 = vmatmul.mubr.msk.f32.vlgmr.msra.gmra.mrb[38].mxu1 %vm648_vm1, %v12458_v41  ;;  %10020 = vmatmul.mubr.msk.f32.vlgmr.msra.gmra.mrb[48].mxu0 %vm648_vm1, %v12458_v41 }
 0xf70   : > { %10592 = vmatpush3.bf16.msra.mxu1 %v10591_v22  ;;  %10610 = vmatpush3.bf16.msra.mxu0 %v10609_v24  ;;  %v10642_v22 = vpack.c.bf16 %v9056_v2, %v9055_v39  ;;  %v9061_v24 = vld [vmem:[%s13429_s4 + $0x2e0] sm:$0xff]  ;;  %v9137_v2 = vld [vmem:[%s13430_s5 + $0x15] ss:$0 sm:$0xff] }
 0xf71   : > { %10593 = vmatprep.subr.bf16.mxu1 %v13509_v30  ;;  %10611 = vmatprep.subr.bf16.mxu0 %v13509_v30 }
 0xf72   : > { %10008 = vmatprep.mubr.msk.f32.mxu1 %vm11219_vm0, %v13508_v13  ;;  %10041 = vmatprep.mubr.msk.f32.mxu0 %vm11219_vm0, %v13508_v13 }
 0xf74   : > { %10595 = vmatpush3.bf16.msra.mxu1 %v10594_v61  ;;  %10613 = vmatpush3.bf16.msra.mxu0 %v10612_v7 }
 0xf75   : > { %10602 = vmatprep.subr.bf16.mxu1 %v13509_v30  ;;  %10620 = vmatprep.subr.bf16.mxu0 %v13509_v30 }
 0xf77   : > { %10009 = vmatmul.mubr.msk.f32.vlgmr.msra.gmra.mrb[40].mxu1 %vm648_vm1, %v12458_v41  ;;  %10042 = vmatmul.mubr.msk.f32.vlgmr.msra.gmra.mrb[50].mxu0 %vm648_vm1, %v12458_v41 }
 0xf78   : > { %10604 = vmatpush3.bf16.msra.mxu1 %v10603_v5  ;;  %10622 = vmatpush3.bf16.msra.mxu0 %v10621_v38 }
 0xf79   : > { %10605 = vmatprep.subr.bf16.mxu1 %v13509_v30  ;;  %10623 = vmatprep.subr.bf16.mxu0 %v13509_v30 }
 0xf7a   : > { %10030 = vmatprep.mubr.msk.f32.mxu1 %vm11219_vm0, %v13508_v13  ;;  %10063 = vmatprep.mubr.msk.f32.mxu0 %vm11219_vm0, %v13508_v13 }
 0xf7c   : > { %10607 = vmatpush3.bf16.msra.mxu1 %v10606_v27  ;;  %10625 = vmatpush3.bf16.msra.mxu0 %v10624_v16  ;;  %v9122_v16 = vld [vmem:[%s13430_s5 + $0xe] ss:$0 sm:$0xff] }
 0xf7d   : > { %10614 = vmatprep.subr.bf16.mxu1 %v13509_v30  ;;  %10632 = vmatprep.subr.bf16.mxu0 %v13509_v30 }
 0xf7f   : > { %10031 = vmatmul.mubr.msk.f32.vlgmr.msra.gmra.mrb[42].mxu1 %vm648_vm1, %v12458_v41  ;;  %10064 = vmatmul.mubr.msk.f32.vlgmr.msra.gmra.mrb[52].mxu0 %vm648_vm1, %v12458_v41 }
 0xf80   : > { %10616 = vmatpush3.bf16.msra.mxu1 %v10615_v45  ;;  %10634 = vmatpush3.bf16.msra.mxu0 %v10633_v23 }
 0xf81   : > { %10617 = vmatprep.subr.bf16.mxu1 %v13509_v30  ;;  %10635 = vmatprep.subr.bf16.mxu0 %v13509_v30 }
 0xf82   : > { %10052 = vmatprep.mubr.msk.f32.mxu1 %vm11219_vm0, %v13508_v13  ;;  %10085 = vmatprep.mubr.msk.f32.mxu0 %vm11219_vm0, %v13508_v13 }
 0xf84   : > { %10619 = vmatpush3.bf16.msra.mxu1 %v10618_v18  ;;  %10637 = vmatpush3.bf16.msra.mxu0 %v10636_v63  ;;  %v9136_v18 = vld [vmem:[%s13430_s5 + $0x14] ss:$0 sm:$0xff] }
 0xf85   : > { %10626 = vmatprep.subr.bf16.mxu1 %v13509_v30  ;;  %10644 = vmatprep.subr.bf16.mxu0 %v13509_v30 }
 0xf87   : > { %10053 = vmatmul.mubr.msk.f32.vlgmr.msra.gmra.mrb[44].mxu1 %vm648_vm1, %v12458_v41  ;;  %10086 = vmatmul.mubr.msk.f32.vlgmr.msra.gmra.mrb[54].mxu0 %vm648_vm1, %v12448_v50 }
 0xf88   : > { %10628 = vmatpush3.bf16.msra.mxu1 %v10627_v48  ;;  %10646 = vmatpush3.bf16.msra.mxu0 %v10645_v35 }
 0xf89   : > { %10629 = vmatprep.subr.bf16.mxu1 %v13509_v30  ;;  %10647 = vmatprep.subr.bf16.mxu0 %v13509_v30 }
 0xf8a   : > { %10074 = vmatprep.mubr.msk.f32.mxu1 %vm11219_vm0, %v13508_v13  ;;  %10107 = vmatprep.mubr.msk.f32.mxu0 %vm11219_vm0, %v13508_v13 }
 0xf8c   : > { %10631 = vmatpush3.bf16.msra.mxu1 %v10630_v59  ;;  %10649 = vmatpush3.bf16.msra.mxu0 %v10648_v37 }
 0xf8d   : > { %10638 = vmatprep.subr.bf16.mxu1 %v13509_v30  ;;  %10121 = vmatprep.subr.mxu0 %v13508_v13 }
 0xf8f   : > { %10075 = vmatmul.mubr.msk.f32.vlgmr.msra.gmra.mrb[46].mxu1 %vm648_vm1, %v12458_v41  ;;  %10108 = vmatmul.mubr.msk.f32.vlgmr.msra.gmra.mrb[56].mxu0 %vm648_vm1, %v12448_v50  ;;  %v10651_v41 = vpack.c.bf16 %v9062_v56, %v9061_v24 }
 0xf90   : > { %10640 = vmatpush3.bf16.msra.mxu1 %v10639_v0  ;;  %10096 = vmatprep.mubr.msk.f32.mxu1 %vm11219_vm0, %v13508_v13 }
 0xf91   : > { %10641 = vmatprep.subr.bf16.mxu1 %v13509_v30  ;;  %10123 = vmatprep.mubr.msk.f32.mxu0 %vm11219_vm0, %v13508_v13 }
 0xf94   : > { %10643 = vmatpush3.bf16.msra.mxu1 %v10642_v22 }
 0xf95   : > { %10650 = vmatprep.subr.bf16.mxu1 %v13509_v30 }
 0xf97   : > { %10097 = vmatmul.mubr.msk.f32.vlgmr.msra.gmra.mrb[48].mxu1 %vm648_vm1, %v12448_v50 }
 0xf98   : > { %10652 = vmatpush3.bf16.msra.mxu1 %v10651_v41  ;;  %10118 = vmatprep.mubr.msk.f32.mxu1 %vm11219_vm0, %v13508_v13 }
 0xf99   : > { %10653 = vmatprep.subr.bf16.mxu1 %v13509_v30 }
 0xf9c   : > { %10655 = vmatpush3.bf16.msra.mxu1 %v10654_v15 }
 0xf9d   : > { %10131 = vmatprep.subr.mxu1 %v13508_v13 }
 0xf9f   : > { %10119 = vmatmul.mubr.msk.f32.vlgmr.msra.gmra.mrb[50].mxu1 %vm648_vm1, %v12448_v50 }
 0xfa0   : > { %10133 = vmatprep.mubr.msk.f32.mxu1 %vm11219_vm0, %v13508_v13 }
0x1042   : > { %v4890_v61 = vpop.f32.mrb[38].mxu1  ;;  %v5030_v7 = vpop.f32.mrb[48].mxu0 }
0x1043   : > { %v9999_v43 = vpop.f32.mrb[39].mxu1  ;;  %v10021_v4 = vpop.f32.mrb[49].mxu0  ;;  %v4891_v5 = vadd.f32 %v9120_v26, %v4890_v61  ;;  %v5031_v29 = vadd.f32 %v9122_v16, %v5030_v7 }
0x1045   : > { %v5715_v27 = vmul.f32 0.35355338, %v4891_v5  ;;  %v5717_v17 = vmul.f32 0.35355338, %v5031_v29 }
0x104a   : > { %v4960_v38 = vpop.f32.mrb[40].mxu1  ;;  %v5194_v3 = vpop.f32.mrb[50].mxu0 }
0x104b   : > { %v5195_v21 = vadd.f32 %v9128_v20, %v5194_v3  ;;  %v10010_v19 = vpop.f32.mrb[41].mxu1  ;;  %v10043_v9 = vpop.f32.mrb[51].mxu0  ;;  %v4961_v63 = vadd.f32 %v9121_v32, %v4960_v38 }
0x104d   : > { %10122 = vmatpush3.xpose.msk.msra.mxu0 %vm1547_vm2, %v5195_v21  ;;  %v5716_v52 = vmul.f32 0.35355338, %v4961_v63 }
0x104e   : > { %10126 = vmatprep.subr.mxu0 %v13508_v13 }
0x1050   : > { %10124 = vmatmul.mubr.msk.f32.vlgmr.msra.gmra.mrb[58].mxu0 %vm1547_vm2, %v5715_v27 }
0x1051   : > { %10128 = vmatprep.mubr.msk.f32.mxu0 %vm11219_vm0, %v13508_v13 }
0x1052   : > { %v5100_v42 = vpop.f32.mrb[42].mxu1  ;;  %v5334_v55 = vpop.f32.mrb[52].mxu0 }
0x1053   : > { %v5335_v45 = vadd.f32 %v9130_v46, %v5334_v55  ;;  %v10032_v23 = vpop.f32.mrb[43].mxu1  ;;  %v10065_v44 = vpop.f32.mrb[53].mxu0  ;;  %v5101_v25 = vadd.f32 %v9123_v6, %v5100_v42 }
0x1055   : > { %10132 = vmatpush3.xpose.msk.msra.mxu1 %vm1547_vm2, %v5335_v45  ;;  %v5718_v39 = vmul.f32 0.35355338, %v5101_v25 }
0x1056   : > { %10141 = vmatprep.subr.mxu1 %v13508_v13 }
0x1058   : > { %10134 = vmatmul.mubr.msk.f32.vlgmr.msra.gmra.mrb[52].mxu1 %vm1547_vm2, %v5717_v17 }
0x1059   : > { %10143 = vmatprep.mubr.msk.f32.mxu1 %vm11219_vm0, %v13508_v13 }
0x105a   : > { %v5264_v14 = vpop.f32.mrb[44].mxu1  ;;  %v5501_v57 = vpop.f32.mrb[54].mxu0 }
0x105b   : > { %v5265_v54 = vadd.f32 %v9129_v36, %v5264_v14  ;;  %v5502_v33 = vadd.f32 %v9136_v18, %v5501_v57  ;;  %v10054_v48 = vpop.f32.mrb[45].mxu1  ;;  %v10087_v35 = vpop.f32.mrb[55].mxu0 }
0x105c   : > { %v9138_v35 = vld [vmem:[%s13430_s5 + $0x16] ss:$0 sm:$0xff] }
0x105d   : > { %10127 = vmatpush3.xpose.msk.msra.mxu0 %vm1547_vm2, %v5265_v54  ;;  %10142 = vmatpush3.msra.mxu1 %v5502_v33 }
0x105e   : > { %10136 = vmatprep.subr.mxu0 %v13508_v13  ;;  %10151 = vmatprep.subr.mxu1 %v13508_v13 }
0x1060   : > { %10129 = vmatmul.mubr.msk.f32.vlgmr.msra.gmra.mrb[60].mxu0 %vm1547_vm2, %v5716_v52 }
0x1061   : > { %10138 = vmatprep.mubr.msk.f32.mxu0 %vm11219_vm0, %v13508_v13 }
0x1062   : > { %v5404_v59 = vpop.f32.mrb[46].mxu1  ;;  %v12681_v37 = vpop.f32.mrb[56].mxu0 }
0x1063   : > { %v5405_v11 = vadd.f32 %v9131_v51, %v5404_v59  ;;  %v10076_v34 = vpop.f32.mrb[47].mxu1  ;;  %v10109_v0 = vpop.f32.mrb[57].mxu0  ;;  %v5642_v51 = vadd.f32 %v9138_v35, %v12681_v37 }
0x1064   : > { %v9139_v34 = vld [vmem:[%s13430_s5 + $0x17] ss:$0 sm:$0xff] }
0x1065   : > { %10137 = vmatpush3.xpose.msk.msra.mxu0 %vm1547_vm2, %v5405_v11 }
0x1066   : > { %10146 = vmatprep.subr.mxu0 %v13508_v13 }
0x1068   : > { %10139 = vmatmul.mubr.msk.f32.vlgmr.msra.gmra.mrb[62].mxu0 %vm1547_vm2, %v5718_v39 }
0x1069   : > { %10148 = vmatprep.mubr.msk.f32.mxu0 %vm11219_vm0, %v13508_v13 }
0x106a   : > { %v5571_v22 = vpop.f32.mrb[48].mxu1 }
0x106b   : > { %v5572_v24 = vadd.f32 %v9137_v2, %v5571_v22  ;;  %v10098_v56 = vpop.f32.mrb[49].mxu1 }
0x106d   : > { %10147 = vmatpush3.msra.mxu0 %v5572_v24 }
0x106e   : > { %10156 = vmatprep.subr.mxu0 %v13508_v13 }
0x1072   : > { %v12692_v41 = vpop.f32.mrb[50].mxu1 }
0x1073   : > { %v10120_v8 = vpop.f32.mrb[51].mxu1  ;;  %v5712_v39 = vadd.f32 %v9139_v34, %v12692_v41  ;;  %v9077_v41 = vld [vmem:[%s13431_s6 + $0x40] sm:$0xff]  ;;  %v11146_v34 = vld [vmem:[%s11756_s24 + $0x18] sm:$0xff] }
0x1074   : > { %v9078_v8 = vld [vmem:[%s13431_s6 + $0x48] sm:$0xff] }
0x1123   : > { %v5791_v1 = vpop.f32.mrb[58].mxu0 }
0x1124   : > { %v10125_v15 = vpop.f32.mrb[59].mxu0  ;;  %v6023_v61 = vsel %vm1547_vm2, %v5791_v1, -inf }
0x1125   : > { %6024 = vmax.xlane.f32.xlu0 %v6023_v61 }
0x112b   : > { %v5943_v7 = vpop.f32.mrb[52].mxu1 }
0x112c   : > { %v10135_v43 = vpop.f32.mrb[53].mxu1  ;;  %v6029_v5 = vsel %vm1547_vm2, %v5943_v7, -inf }
0x1133   : > { %v5867_v4 = vpop.f32.mrb[60].mxu0 }
0x1134   : > { %v10130_v26 = vpop.f32.mrb[61].mxu0  ;;  %v6026_v20 = vsel %vm1547_vm2, %v5867_v4, -inf }
0x1135   : > { %6027 = vmax.xlane.f32.xlu0 %v6026_v20 }
0x1139   : > { %6030 = vmax.xlane.f32.xlu0 %v6029_v5  ;;  %v11143_v5 = vld [vmem:[%s11756_s24] sm:$0xff] }
0x113b   : > { %v6019_v38 = vpop.f32.mrb[62].mxu0 }
0x113c   : > { %v10140_v3 = vpop.f32.mrb[63].mxu0  ;;  %v6032_v21 = vsel %vm1547_vm2, %v6019_v38, -inf }
0x113d   : > { %6033 = vmax.xlane.f32.xlu1 %v6032_v21 }
0x11b2   : > { %v6025_v19 = vpop.xlane.xlu0 %6024 }
0x11b3   : > { %v6035_v9 = vsub.f32 %v5791_v1, %v6025_v19  ;;  %v9079_v1 = vld [vmem:[%s13431_s6 + $0x50] sm:$0xff] }
0x11b5   : > { %v6039_v27 = vmul.f32 1.442695, %v6035_v9 }
0x11b7   : > { %11101 = vpow2.f32 %v6039_v27 }
0x11c1   : > { %v11102_v16 = vpop.eup %11101 }
0x11c2   : > { %v6028_v46 = vpop.xlane.xlu0 %6027  ;;  %v6047_v29 = vsel %vm1547_vm2, %v11102_v16, 0.0 }
0x11c3   : > { %v6036_v42 = vsub.f32 %v5867_v4, %v6028_v46  ;;  %6048 = vadd.xlane.f32.xlu0 %v6047_v29 }
0x11c5   : > { %v6041_v55 = vmul.f32 1.442695, %v6036_v42 }
0x11c6   : > { %v6031_v45 = vpop.xlane.xlu0 %6030 }
0x11c7   : > { %11103 = vpow2.f32 %v6041_v55  ;;  %v6037_v23 = vsub.f32 %v5943_v7, %v6031_v45  ;;  %v9080_v7 = vld [vmem:[%s13431_s6 + $0x58] sm:$0xff] }
0x11c9   : > { %v6043_v44 = vmul.f32 1.442695, %v6037_v23  ;;  %v12757_v23 = vld [vmem:[%s13436_s11 + $0x10] sm:$0xff] }
0x11ca   : > { %v6034_v17 = vpop.xlane.xlu1 %6033 }
0x11cb   : > { %11105 = vpow2.f32 %v6043_v44  ;;  %v6038_v32 = vsub.f32 %v6019_v38, %v6034_v17 }
0x11cd   : > { %v6045_v36 = vmul.f32 1.442695, %v6038_v32  ;;  %v6661_v32 = vrot.slane %v12757_v23, %v13519_v10 }
0x11cf   : > { %11107 = vpow2.f32 %v6045_v36 }
0x11d1   : > { %v11104_v18 = vpop.eup %11103 }
0x11d2   : > { %v6050_v63 = vsel %vm1547_vm2, %v11104_v18, 0.0 }
0x11d3   : > { %6051 = vadd.xlane.f32.xlu1 %v6050_v63 }
0x11d5   : > { %v11106_v14 = vpop.eup %11105 }
0x11d6   : > { %v6053_v57 = vsel %vm1547_vm2, %v11106_v14, 0.0 }
0x11d7   : > { %6054 = vadd.xlane.f32.xlu0 %v6053_v57 }
0x11d9   : > { %v11108_v54 = vpop.eup %11107 }
0x11da   : > { %v6056_v33 = vsel %vm1547_vm2, %v11108_v54, 0.0 }
0x11db   : > { %6057 = vadd.xlane.f32.xlu1 %v6056_v33  ;;  %v12767_v33 = vld [vmem:[%s13434_s9 + $0x20] sm:$0xff] }
0x1250   : > { %v6049_v48 = vpop.xlane.xlu0 %6048 }
0x1251   : > { %11109 = vrcp.f32 %v6049_v48  ;;  %v12772_v48 = vld [vmem:[%s13434_s9 + $0x28] sm:$0xff] }
0x125b   : > { %v11110_v52 = vpop.eup %11109 }
0x125c   : > { %v6063_v6 = vmul.f32 %v11110_v52, %v11102_v16  ;;  %v10656_v52 = vpack.c.bf16 %v12772_v48, %v12767_v33 }
0x125e   : > { %10144 = vmatmul.mubr.msk.f32.vlgmr.msra.gmra.mrb[54].mxu1 %vm1547_vm2, %v6063_v6  ;;  %v12786_v6 = vld [vmem:[%s13434_s9 + $0x38] sm:$0xff] }
0x125f   : > { %10152 = vmatpush3.msra.mxu1 %v5642_v51  ;;  %10153 = vmatprep.mubr.msk.f32.mxu1 %vm11219_vm0, %v13508_v13 }
0x1260   : > { %v6052_v25 = vpop.xlane.xlu1 %6051  ;;  %10161 = vmatprep.subr.mxu1 %v13508_v13 }
0x1261   : > { %11111 = vrcp.f32 %v6052_v25 }
0x1264   : > { %v6055_v59 = vpop.xlane.xlu0 %6054 }
0x1265   : > { %11113 = vrcp.f32 %v6055_v59  ;;  %v11144_v59 = vld [vmem:[%s11756_s24 + $0x8] sm:$0xff] }
0x1268   : > { %v6058_v11 = vpop.xlane.xlu1 %6057 }
0x1269   : > { %11115 = vrcp.f32 %v6058_v11  ;;  %v11145_v11 = vld [vmem:[%s11756_s24 + $0x10] sm:$0xff] }
0x126b   : > { %v11112_v0 = vpop.eup %11111 }
0x126c   : > { %v6064_v37 = vmul.f32 %v11112_v0, %v11104_v18  ;;  %v11147_v0 = vld [vmem:[%s11756_s24 + $0x20] sm:$0xff] }
0x126e   : > { %10149 = vmatmul.mubr.msk.f32.vlgmr.msra.gmra.mrb[64].mxu0 %vm1547_vm2, %v6064_v37  ;;  %v11148_v37 = vld [vmem:[%s11756_s24 + $0x28] sm:$0xff] }
0x126f   : > { %v11114_v2 = vpop.eup %11113  ;;  %10157 = vmatpush3.msra.mxu0 %v5712_v39  ;;  %10158 = vmatprep.mubr.msk.f32.mxu0 %vm11219_vm0, %v13508_v13  ;;  %v11149_v39 = vld [vmem:[%s11756_s24 + $0x30] sm:$0xff] }
0x1270   : > { %v6065_v22 = vmul.f32 %v11114_v2, %v11106_v14  ;;  %10166 = vmatprep.subr.mxu0 %v13508_v13  ;;  %v11150_v2 = vld [vmem:[%s11756_s24 + $0x38] sm:$0xff] }
0x1272   : > { %10154 = vmatmul.mubr.msk.f32.vlgmr.msra.gmra.mrb[56].mxu1 %vm1547_vm2, %v6065_v22  ;;  %v11151_v22 = vld [vmem:[%s11756_s24 + $0x40] sm:$0xff] }
0x1273   : > { %v11116_v24 = vpop.eup %11115  ;;  %10163 = vmatprep.mubr.msk.f32.mxu1 %vm11219_vm0, %v13508_v13  ;;  %10162 = vmatpush3.msra.mxu1 %v9077_v41 }
0x1274   : > { %v6066_v56 = vmul.f32 %v11116_v24, %v11108_v54  ;;  %10171 = vmatprep.subr.mxu1 %v13508_v13  ;;  %v11152_v24 = vld [vmem:[%s11756_s24 + $0x48] sm:$0xff]  ;;  %s11160_s24 = scalar_lea.vmem %s11159_s16, 512 }
0x1275   : > { %p11162_p1 = scmp.lt.s32.totalorder %s11160_s24, %s11154_s22 }
0x1276   : > { %10159 = vmatmul.mubr.msk.f32.vlgmr.msra.gmra.mrb[66].mxu0 %vm1547_vm2, %v6066_v56 }
0x1277   : > { %10168 = vmatprep.mubr.msk.f32.mxu0 %vm11219_vm0, %v13508_v13  ;;  %10167 = vmatpush3.msra.mxu0 %v9078_v8  ;;  %p11163_p2 = por %p11162_p1, %p11161_p0 }
0x1278   : > { %10176 = vmatprep.subr.mxu0 %v13508_v13 }
0x1279   : > { %p11164_p3 = pnand %p11163_p2, %p11157_p13 }
0x1331   : > { %v6136_v15 = vpop.f32.mrb[54].mxu1 }
0x1332   : > { %v10145_v61 = vpop.f32.mrb[55].mxu1  ;;  %10164 = vmatmul.mubr.msk.f32.vlgmr.msra.gmra.mrb[58].mxu1 %vm1547_vm2, %v6136_v15 }
0x1333   : > { %10172 = vmatpush3.msra.mxu1 %v9079_v1  ;;  %10173 = vmatprep.mubr.msk.f32.mxu1 %vm11219_vm0, %v13508_v13  ;;  %v9085_v61 = vld [vmem:[%s13432_s7 + $0x80] sm:$0xff] }
0x1334   : > { %10657 = vmatprep.subr.bf16.mxu1 %v10656_v52 }
0x1341   : > { %v6209_v43 = vpop.f32.mrb[64].mxu0 }
0x1342   : > { %v10150_v4 = vpop.f32.mrb[65].mxu0  ;;  %10169 = vmatmul.mubr.msk.f32.vlgmr.msra.gmra.mrb[68].mxu0 %vm1547_vm2, %v6209_v43 }
0x1343   : > { %10177 = vmatpush3.msra.mxu0 %v9080_v7  ;;  %10178 = vmatprep.mubr.msk.f32.mxu0 %vm11219_vm0, %v13508_v13  ;;  %v9086_v7 = vld [vmem:[%s13432_s7 + $0x88] sm:$0xff]  ;;  %v9097_v4 = vld [vmem:[%s13432_s7 + $0xe0] sm:$0xff] }
0x1344   : > { %10664 = vmatprep.subr.bf16.mxu0 %v13509_v30  ;;  %v10665_v43 = vpack.c.bf16 %v9086_v7, %v9085_v61  ;;  %v9090_v61 = vld [vmem:[%s13432_s7 + $0xa8] sm:$0xff] }
0x1345   : > { %v6282_v26 = vpop.f32.mrb[56].mxu1 }
0x1346   : > { %v10155_v20 = vpop.f32.mrb[57].mxu1  ;;  %10174 = vmatmul.mubr.msk.f32.vlgmr.msra.gmra.mrb[60].mxu1 %vm1547_vm2, %v6282_v26  ;;  %v9098_v26 = vld [vmem:[%s13432_s7 + $0xe8] sm:$0xff] }
0x1347   : > { %10189 = vmatprep.mubr.msk.f32.mxu1 %vm648_vm1, %v11143_v5  ;;  %10659 = vmatpush3.bf16.msra.mxu1 %v10656_v52  ;;  %v10683_v20 = vpack.c.bf16 %v9098_v26, %v9097_v4  ;;  %v9087_v5 = vld [vmem:[%s13432_s7 + $0x90] sm:$0xff] }
0x1349   : > { %v6355_v38 = vpop.f32.mrb[66].mxu0 }
0x134a   : > { %v10160_v3 = vpop.f32.mrb[67].mxu0  ;;  %10179 = vmatmul.mubr.msk.f32.vlgmr.msra.gmra.mrb[70].mxu0 %vm1547_vm2, %v6355_v38  ;;  %v9088_v38 = vld [vmem:[%s13432_s7 + $0x98] sm:$0xff] }
0x134b   : > { %10212 = vmatprep.mubr.msk.f32.mxu0 %vm11219_vm0, %v13508_v13  ;;  %10666 = vmatpush3.bf16.msra.mxu0 %v10665_v43  ;;  %v9099_v3 = vld [vmem:[%s13432_s7 + $0xf0] sm:$0xff] }
0x134c   : > { %10667 = vmatprep.subr.bf16.mxu0 %v13509_v30 }
0x1405   : > { %v6428_v21 = vpop.f32.mrb[58].mxu1 }
0x1406   : > { %v10165_v19 = vpop.f32.mrb[59].mxu1  ;;  %v6651_v27 = vsel %vm648_vm1, %v6428_v21, 0.0  ;;  %v10668_v21 = vpack.c.bf16 %v9088_v38, %v9087_v5  ;;  %v9095_v38 = vld [vmem:[%s13432_s7 + $0xd0] sm:$0xff] }
0x1407   : > { %v9100_v19 = vld [vmem:[%s13432_s7 + $0xf8] sm:$0xff] }
0x1408   : > { %10669 = vmatpush3.bf16.msra.mxu0 %v10668_v21 }
0x1409   : > { %10670 = vmatprep.subr.bf16.mxu0 %v13509_v30 }
0x1415   : > { %v6501_v9 = vpop.f32.mrb[68].mxu0 }
0x1416   : > { %v6652_v16 = vsel %vm648_vm1, %v6501_v9, 0.0  ;;  %v10170_v46 = vpop.f32.mrb[69].mxu0  ;;  %v10686_v9 = vpack.c.bf16 %v9100_v19, %v9099_v3  ;;  %v9096_v3 = vld [vmem:[%s13432_s7 + $0xd8] sm:$0xff] }
0x1417   : > { %v6653_v29 = vadd.f32 %v6652_v16, %v6651_v27  ;;  %v13520_v27 = vsub.s32 2, %v13514_v40  ;;  %v10680_v21 = vpack.c.bf16 %v9096_v3, %v9095_v38  ;;  %v13526_v3 = vld [vmem:[#allocation15_spill] sm:$0xff] }
0x1419   : > { %v6574_v42 = vpop.f32.mrb[60].mxu1  ;;  %v12845_v16 = vrot.slane %v12757_v23, %v13520_v27 }
0x141a   : > { %v6654_v55 = vsel %vm648_vm1, %v6574_v42, 0.0  ;;  %v10175_v45 = vpop.f32.mrb[61].mxu1 }
0x141b   : > { %v6655_v44 = vadd.f32 %v6654_v55, %v6653_v29 }
0x141d   : > { %v6647_v17 = vpop.f32.mrb[70].mxu0 }
0x141e   : > { %v6656_v36 = vsel %vm648_vm1, %v6647_v17, 0.0  ;;  %v10180_v18 = vpop.f32.mrb[71].mxu0 }
0x141f   : > { %v6657_v63 = vadd.f32 %v6656_v36, %v6655_v44 }
0x1421   : > { %v6662_v14 = vadd.f32 %v6661_v32, %v6657_v63 }
0x1423   : > { %v6663_v57 = vadd.f32 %v6662_v14, %v12448_v50  ;;  %v12777_v50 = vld [vmem:[%s13434_s9 + $0x30] sm:$0xff] }
0x1424   : > { %v10660_v25 = vpack.c.bf16 %v12786_v6, %v12777_v50 }
0x1425   : > { %v6664_v54 = vsel %vm648_vm1, %v6663_v57, 0.0 }
0x1426   : > { %6665 = vadd.xlane.f32.xlu0 %v6664_v54  ;;  %10661 = vmatprep.subr.bf16.mxu1 %v10660_v25 }
0x1427   : > { %10663 = vmatpush3.bf16.msra.mxu1 %v10660_v25 }
0x1428   : > { %10682 = vmatprep.subr.bf16.mxu1 %v13509_v30 }
0x142a   : > { %10190 = vmatmul.mubr.msk.f32.vlgmr.msra.gmra.mrb[62].mxu1 %vm648_vm1, %v11144_v59 }
0x142b   : > { %10192 = vmatprep.mubr.msk.f32.mxu1 %vm648_vm1, %v11145_v11  ;;  %10684 = vmatpush3.bf16.msra.mxu1 %v10683_v20  ;;  %v9094_v20 = vld [vmem:[%s13432_s7 + $0xc8] sm:$0xff] }
0x142c   : > { %10685 = vmatprep.subr.bf16.mxu1 %v13509_v30 }
0x142e   : > { %10193 = vmatmul.mubr.msk.f32.gmra.mrb[64].mxu1 %vm648_vm1, %v11146_v34 }
0x142f   : > { %10195 = vmatprep.mubr.msk.f32.mxu1 %vm648_vm1, %v11147_v0  ;;  %10687 = vmatpush3.bf16.msra.mxu1 %v10686_v9 }
0x1430   : > { %10703 = vmatprep.subr.bf16.mxu1 %v13509_v30 }
0x1432   : > { %10196 = vmatmul.mubr.msk.f32.gmra.mrb[66].mxu1 %vm648_vm1, %v11148_v37 }
0x1433   : > { %10198 = vmatprep.mubr.msk.f32.mxu1 %vm648_vm1, %v11149_v39  ;;  %v13521_v39 = vsub.s32 4, %v13514_v40 }
0x1436   : > { %10199 = vmatmul.mubr.msk.f32.gmra.mrb[68].mxu1 %vm648_vm1, %v11150_v2  ;;  %v6680_v2 = vrot.slane %v12757_v23, %v13521_v39 }
0x1437   : > { %10201 = vmatprep.mubr.msk.f32.mxu1 %vm648_vm1, %v11151_v22 }
0x143a   : > { %10202 = vmatmul.mubr.msk.f32.gmra.mrb[70].mxu1 %vm648_vm1, %v11152_v24 }
0x143b   : > { %10245 = vmatprep.mubr.msk.f32.mxu1 %vm11219_vm0, %v13508_v13 }
0x14b3   : > { %v6666_v56 = vpop.xlane.xlu0 %6665 }
0x14b4   : > { %v6667_v41 = vmul.f32 0.03125, %v6666_v56  ;;  %v13522_v56 = vsub.s32 5, %v13514_v40 }
0x14b6   : > { %v6668_v8 = vsub.f32 %v6663_v57, %v6667_v41  ;;  %v6685_v41 = vrot.slane %v12757_v23, %v13522_v56  ;;  %v9092_v23 = vld [vmem:[%s13432_s7 + $0xb8] sm:$0xff]  ;;  %v9171_v56 = vld [vmem:[%s13433_s8 + $0x5] ss:$0 sm:$0xff] }
0x14b8   : > { %v6669_v1 = vmul.f32 %v6668_v8, %v6668_v8 }
0x14ba   : > { %v6670_v15 = vsel %vm648_vm1, %v6669_v1, 0.0 }
0x14bb   : > { %6671 = vadd.xlane.f32.xlu1 %v6670_v15  ;;  %v9089_v15 = vld [vmem:[%s13432_s7 + $0xa0] sm:$0xff] }
0x14bc   : > { %v10671_v43 = vpack.c.bf16 %v9090_v61, %v9089_v15 }
0x14fd   : > { %v10191_v46 = vpop.f32.mrb[62].mxu1 }
0x14fe   : > { %v12848_v29 = vadd.f32 %v10191_v46, %v12845_v16  ;;  %v6758_v42 = vpop.f32.mrb[63].mxu1 }
0x14ff   : > { %v12851_v55 = vadd.f32 %v6758_v42, %v12845_v16 }
0x1501   : > { %v10194_v45 = vpop.f32.mrb[64].mxu1  ;;  %v12923_v19 = vpack.i.bf16 %v12848_v29, %v12851_v55 }
0x1502   : > { %v12854_v44 = vadd.f32 %v10194_v45, %v12845_v16  ;;  %v6768_v17 = vpop.f32.mrb[65].mxu1 }
0x1503   : > { %v12857_v32 = vadd.f32 %v6768_v17, %v12845_v16 }
0x1505   : > { %v10197_v36 = vpop.f32.mrb[66].mxu1  ;;  %v12929_v27 = vpack.i.bf16 %v12854_v44, %v12857_v32 }
0x1506   : > { %v12860_v18 = vadd.f32 %v10197_v36, %v12845_v16  ;;  %v6778_v63 = vpop.f32.mrb[67].mxu1 }
0x1507   : > { %v12863_v14 = vadd.f32 %v6778_v63, %v12845_v16 }
0x1509   : > { %v10200_v57 = vpop.f32.mrb[68].mxu1  ;;  %v12935_v42 = vpack.i.bf16 %v12860_v18, %v12863_v14 }
0x150a   : > { %v12866_v54 = vadd.f32 %v10200_v57, %v12845_v16  ;;  %v6788_v52 = vpop.f32.mrb[69].mxu1 }
0x150b   : > { %v12869_v25 = vadd.f32 %v6788_v52, %v12845_v16 }
0x150d   : > { %v10203_v59 = vpop.f32.mrb[70].mxu1  ;;  %v12943_v63 = vpack.i.bf16 %v12866_v54, %v12869_v25 }
0x150e   : > { %v6798_v11 = vpop.f32.mrb[71].mxu1  ;;  %v6804_v17 = vadd.f32 %v10203_v59, %v12845_v16 }
0x150f   : > { %v6799_v36 = vadd.f32 %v6798_v11, %v12845_v16  ;;  %v9173_v16 = vld [vmem:[%s13433_s8 + $0x7] ss:$0 sm:$0xff] }
0x1511   : > { %v10689_v52 = vpack.c.bf16 %v6804_v17, %v6799_v36 }
0x1548   : > { %v6672_v34 = vpop.xlane.xlu1 %6671 }
0x1549   : > { %v6673_v0 = vmul.f32 0.03125, %v6672_v34  ;;  %v12947_v34 = vpack.i.bf16 %v6804_v17, %v6799_v36  ;;  %v13527_v17 = vmov 1  }
0x154b   : > { %v6674_v37 = vadd.f32 1e-05, %v6673_v0  ;;  %v9170_v0 = vld [vmem:[%s13433_s8 + $0x4] ss:$0 sm:$0xff] }
0x154d   : > { %11117 = vrsqrt.f32 %v6674_v37 }
0x1557   : > { %v11118_v22 = vpop.eup %11117 }
0x1558   : > { %v6676_v24 = vmul.f32 %v11118_v22, %v6668_v8  ;;  %v9091_v8 = vld [vmem:[%s13432_s7 + $0xb0] sm:$0xff] }
0x1559   : > { %v10674_v26 = vpack.c.bf16 %v9092_v23, %v9091_v8  ;;  %v13525_v23 = vld [vmem:[#allocation14_spill] sm:$0xff] }
0x155a   : > { %v6681_v1 = vmul.f32 %v6680_v2, %v6676_v24 }
0x155c   : > { %v12883_v7 = vadd.f32 %v6685_v41, %v6681_v1 }
0x155e   : > { %v6687_v4 = vadd.f32 %v12454_v49, %v12883_v7  ;;  %v9093_v49 = vld [vmem:[%s13432_s7 + $0xc0] sm:$0xff] }
0x155f   : > { %v10677_v5 = vpack.c.bf16 %v9094_v20, %v9093_v49  ;;  %v9172_v49 = vld [vmem:[%s13433_s8 + $0x6] ss:$0 sm:$0xff] }
0x1560   : > { %10213 = vmatmul.mubr.msk.f32.vlgmr.msra.gmra.mrb[72].mxu0 %vm648_vm1, %v6687_v4  ;;  %10246 = vmatmul.mubr.msk.f32.vlgmr.msra.gmra.mrb[72].mxu1 %vm648_vm1, %v6687_v4 }
0x1561   : > { %10672 = vmatpush3.bf16.msra.mxu0 %v10671_v43  ;;  %10223 = vmatprep.mubr.msk.f32.mxu0 %vm11219_vm0, %v13508_v13 }
0x1562   : > { %10673 = vmatprep.subr.bf16.mxu0 %v13509_v30  ;;  %10278 = vmatprep.mubr.msk.f32.mxu1 %vm11219_vm0, %v13508_v13 }
0x1565   : > { %10675 = vmatpush3.bf16.msra.mxu0 %v10674_v26 }
0x1566   : > { %10676 = vmatprep.subr.bf16.mxu0 %v13509_v30 }
0x1568   : > { %10224 = vmatmul.mubr.msk.f32.vlgmr.msra.gmra.mrb[74].mxu0 %vm648_vm1, %v6687_v4 }
0x1569   : > { %10678 = vmatpush3.bf16.msra.mxu0 %v10677_v5  ;;  %10234 = vmatprep.mubr.msk.f32.mxu0 %vm11219_vm0, %v13508_v13 }
0x156a   : > { %10679 = vmatprep.subr.bf16.mxu0 %v13509_v30 }
0x156d   : > { %10681 = vmatpush3.bf16.msra.mxu0 %v10680_v21 }
0x156e   : > { %10688 = vmatprep.subr.bf16.mxu0 %v13509_v30 }
0x1570   : > { %10235 = vmatmul.mubr.msk.f32.vlgmr.msra.gmra.mrb[76].mxu0 %vm648_vm1, %v6687_v4 }
0x1571   : > { %10252 = vmatprep.mubr.msk.f32.mxu0 %vm11219_vm0, %v13508_v13  ;;  %10690 = vmatpush3.bf16.msra.mxu0 %v10689_v52 }
0x1572   : > { %10691 = vmatprep.subr.bf16.mxu0 %v13509_v30 }
0x1633   : > { %v6900_v59 = vpop.f32.mrb[72].mxu0  ;;  %v7110_v11 = vpop.f32.mrb[72].mxu1 }
0x1634   : > { %v6901_v37 = vadd.f32 %v9170_v0, %v6900_v59  ;;  %v12956_v39 = vadd.f32 %v9173_v16, %v7110_v11  ;;  %v10214_v2 = vpop.f32.mrb[73].mxu0  ;;  %v10247_v22 = vpop.f32.mrb[73].mxu1 }
0x1636   : > { %7228 = vrot.lane.b32.xlu0 %v6901_v37, %s11223_s17  ;;  %v7123_v24 = vsel %vm2974_vm3, %v12956_v39, -inf  ;;  %v7114_v8 = vsel %vm2974_vm3, %v6901_v37, -inf  ;;  %v7174_v26 = vadd.f32 %v13525_v23, %v6901_v37 }
0x1637   : > { %7124 = vmax.xlane.f32.xlu1 %v7123_v24 }
0x163b   : > { %v6970_v41 = vpop.f32.mrb[74].mxu0 }
0x163c   : > { %v12964_v1 = vadd.f32 %v9171_v56, %v6970_v41  ;;  %v10225_v15 = vpop.f32.mrb[75].mxu0 }
0x163e   : > { %v7117_v61 = vsel %vm2974_vm3, %v12964_v1, -inf }
0x163f   : > { %7118 = vmax.xlane.f32.xlu1 %v7117_v61 }
0x1643   : > { %v7040_v43 = vpop.f32.mrb[76].mxu0 }
0x1644   : > { %v10236_v4 = vpop.f32.mrb[77].mxu0  ;;  %v12982_v20 = vadd.f32 %v9172_v49, %v7040_v43 }
0x1646   : > { %v7120_v5 = vsel %vm2974_vm3, %v12982_v20, -inf }
0x1650   : > { %7255 = vrot.lane.b32.xlu1 %v6901_v37, %s13523_s19 }
0x1654   : > { %7510 = vrot.lane.b32.xlu1 %v12964_v1, %s13523_s19 }
0x1655   : > { %7115 = vmax.xlane.f32.xlu0 %v7114_v8 }
0x1658   : > { %7455 = vrot.lane.b32.xlu1 %v12964_v1, %s13524_s21 }
0x165c   : > { %8090 = vrot.lane.b32.xlu1 %v12956_v39, %s13523_s19 }
0x1660   : > { %8035 = vrot.lane.b32.xlu1 %v12956_v39, %s13524_s21 }
0x1664   : > { %7185 = vperm.xlu1 %10952, %v7174_v26  }
0x1668   : > { %7805 = vrot.lane.b32.xlu1 %v12982_v20, %s13523_s19 }
0x166b   : > { %7483 = vrot.lane.b32.xlu0 %v12964_v1, %s11223_s17 }
0x166f   : > { %7200 = vrot.lane.b32.xlu0 %v6901_v37, %s13524_s21 }
0x1673   : > { %8063 = vrot.lane.b32.xlu0 %v12956_v39, %s11223_s17 }
0x1677   : > { %7177 = vperm.xlu0 %10951, %v7174_v26  }
0x167b   : > { %7778 = vrot.lane.b32.xlu0 %v12982_v20, %s11223_s17  ;;  %s13529_s17 = smov 120  }
0x167f   : > { %7750 = vrot.lane.b32.xlu0 %v12982_v20, %s13524_s21 }
0x169e   : > { %7121 = vmax.xlane.f32.xlu0 %v7120_v5 }
0x16a8   : > { %v7229_v38 = vpop.permute.xlu0 %7228 }
0x16a9   : > { %v7231_v21 = vadd.f32 %v13526_v3, %v7229_v38  ;;  %v13528_v38 = vmov 0  }
0x16ab   : > { %7242 = vperm.xlu1 %10952, %v7231_v21  }
0x16af   : > { %10953 = vset.pattern.permute.xlu1 %v13527_v17 }
0x16b4   : > { %7234 = vperm.xlu0 %10951, %v7231_v21  }
0x16c4   : > { %v7125_v36 = vpop.xlane.xlu1 %7124 }
0x16c5   : > { %v7129_v56 = vsub.f32 %v12956_v39, %v7125_v36 }
0x16c7   : > { %v7136_v43 = vmul.f32 1.442695, %v7129_v56 }
0x16cc   : > { %v7119_v52 = vpop.xlane.xlu1 %7118 }
0x16cd   : > { %v7127_v4 = vsub.f32 %v12964_v1, %v7119_v52 }
0x16cf   : > { %v7132_v49 = vmul.f32 1.442695, %v7127_v4 }
0x16d0   : > { %v7256_v0 = vpop.permute.xlu1 %7255 }
0x16d1   : > { %v7258_v16 = vadd.f32 %v13526_v3, %v7256_v0 }
0x16d3   : > { %7261 = vperm.xlu1 %10953, %v7258_v16  }
0x16d4   : > { %v7511_v59 = vpop.permute.xlu1 %7510 }
0x16d5   : > { %v7513_v11 = vadd.f32 %v13526_v3, %v7511_v59 }
0x16d7   : > { %7516 = vperm.xlu0 %10951, %v7513_v11  }
0x16d8   : > { %v7456_v2 = vpop.permute.xlu1 %7455 }
0x16dc   : > { %v13001_v22 = vpop.permute.xlu1 %8090 }
0x16e0   : > { %v13006_v26 = vpop.permute.xlu1 %8035 }
0x16e2   : > { %v7116_v24 = vpop.xlane.xlu0 %7115 }
0x16e3   : > { %v7126_v41 = vsub.f32 %v6901_v37, %v7116_v24 }
0x16e4   : > { %v7186_v21 = vpop.permute.xlu1 %7185 }
0x16e5   : > { %v7130_v15 = vmul.f32 1.442695, %v7126_v41  ;;  %v7188_v36 = vsub.f32 %v7186_v21, %v12156_v12 }
0x16e6   : > { %v7484_v61 = vpop.permute.xlu0 %7483 }
0x16e7   : > { %11119 = vpow2.f32 %v7130_v15  ;;  %v7486_v8 = vadd.f32 %v13526_v3, %v7484_v61  ;;  %v7189_v24 = vand.u32 2147483647, %v7188_v36  ;;  %v7429_v36 = vadd.f32 %v13525_v23, %v12964_v1 }
0x16e8   : > { %11121 = vpow2.f32 %v7136_v43 }
0x16e9   : > { %7489 = vperm.xlu1 %10953, %v7486_v8   ;;  %11123 = vpow2.f32 %v7132_v49 }
0x16ea   : > { %v7201_v5 = vpop.permute.xlu0 %7200 }
0x16eb   : > { %v7203_v4 = vadd.f32 %v13525_v23, %v7201_v5  ;;  %v7806_v5 = vpop.permute.xlu1 %7805 }
0x16ed   : > { %10954 = vset.pattern.permute.xlu1 %v13528_v38 }
0x16ee   : > { %7497 = vperm.xlu1 %10954, %v7486_v8   ;;  %v8064_v0 = vpop.permute.xlu0 %8063 }
0x16ef   : > { %v8066_v52 = vadd.f32 %v13526_v3, %v8064_v0  ;;  %v7458_v0 = vadd.f32 %v13525_v23, %v7456_v2 }
0x16f1   : > { %v13009_v37 = vpop.eup %11119 }
0x16f2   : > { %7524 = vperm.xlu1 %10954, %v7513_v11   ;;  %7142 = vrot.lane.b32.xlu0 %v13009_v37, %s13529_s17  ;;  %v13015_v59 = vpop.eup %11121  ;;  %v7190_v11 = vsub.f32 1.0, %v7189_v24 }
0x16f3   : > { %v13021_v15 = vpop.eup %11123 }
0x16f4   : > { %v7191_v8 = vmax.f32 %v7190_v11, 0.0 }
0x16f6   : > { %v7178_v56 = vpop.permute.xlu0 %7177  ;;  %7148 = vrot.lane.b32.xlu1 %v13015_v59, %s13529_s17  ;;  %8069 = vperm.xlu0 %10951, %v8066_v52  }
0x16f7   : > { %v7180_v41 = vsub.f32 %v7178_v56, %v12149_v62  ;;  %10955 = vset.pattern.permute.xlu1 %v13527_v17  ;;  %v7808_v56 = vadd.f32 %v13526_v3, %v7806_v5 }
0x16f9   : > { %v7181_v61 = vand.u32 2147483647, %v7180_v41 }
0x16fa   : > { %7144 = vrot.lane.b32.xlu1 %v13021_v15, %s13529_s17  ;;  %10966 = vset.pattern.permute.xlu0 %v13528_v38  ;;  %v7779_v24 = vpop.permute.xlu0 %7778 }
0x16fb   : > { %v7182_v43 = vsub.f32 1.0, %v7181_v61  ;;  %7269 = vperm.xlu0 %10966, %v7258_v16   ;;  %v7781_v16 = vadd.f32 %v13526_v3, %v7779_v24 }
0x16fd   : > { %v7183_v49 = vmax.f32 %v7182_v43, 0.0 }
0x16fe   : > { %7206 = vperm.xlu1 %10955, %v7203_v4   ;;  %v13036_v41 = vpop.permute.xlu0 %7750 }
0x16ff   : > { %7214 = vperm.xlu0 %10966, %v7203_v4   ;;  %v13027_v21 = vmul.f32 %v7191_v8, %v7183_v49 }
0x1702   : > { %10957 = vrot.lane.b32.xlu1 %v12947_v34, %s13529_s17 }
0x1703   : > { %7440 = vperm.xlu0 %10966, %v7429_v36  }
0x1706   : > { %7432 = vperm.xlu1 %10955, %v7429_v36  }
0x1707   : > { %7469 = vperm.xlu0 %10966, %v7458_v0  }
0x170b   : > { %7792 = vperm.xlu0 %10966, %v7781_v16  }
0x170f   : > { %7819 = vperm.xlu0 %10966, %v7808_v56  }
0x172a   : > { %v7243_v11 = vpop.permute.xlu1 %7242 }
0x172b   : > { %v7122_v1 = vpop.xlane.xlu0 %7121  ;;  %v7245_v43 = vsub.f32 %v7243_v11, %v12135_v53 }
0x172c   : > { %v7128_v61 = vsub.f32 %v12982_v20, %v7122_v1 }
0x172d   : > { %v7246_v2 = vand.u32 2147483647, %v7245_v43 }
0x172e   : > { %v7134_v4 = vmul.f32 1.442695, %v7128_v61 }
0x172f   : > { %v7247_v36 = vsub.f32 1.0, %v7246_v2 }
0x1730   : > { %11125 = vpow2.f32 %v7134_v4 }
0x1731   : > { %v7248_v5 = vmax.f32 %v7247_v36, 0.0 }
0x1733   : > { %v7235_v8 = vpop.permute.xlu0 %7234 }
0x1734   : > { %v7237_v49 = vsub.f32 %v7235_v8, %v12126_v31 }
0x1736   : > { %v7238_v24 = vand.u32 2147483647, %v7237_v49 }
0x1738   : > { %v7239_v28 = vsub.f32 1.0, %v7238_v24 }
0x173a   : > { %v13041_v58 = vpop.eup %11125  ;;  %v7240_v47 = vmax.f32 %v7239_v28, 0.0 }
0x173b   : > { %7146 = vrot.lane.b32.xlu1 %v13041_v58, %s13529_s17 }
0x173c   : > { %v13045_v51 = vmul.f32 %v7248_v5, %v7240_v47 }
0x173f   : > { %7461 = vperm.xlu1 %10955, %v7458_v0  }
0x1743   : > { %7784 = vperm.xlu1 %10955, %v7781_v16  }
0x1747   : > { %7811 = vperm.xlu1 %10955, %v7808_v56  }
0x174b   : > { %10962 = vrot.lane.b32.xlu1 %v12923_v19, %s13529_s17 }
0x174c   : > { %10967 = vset.pattern.permute.xlu1 %v13528_v38 }
0x174f   : > { %8077 = vperm.xlu1 %10967, %v8066_v52  }
0x1752   : > { %v7262_v1 = vpop.permute.xlu1 %7261 }
0x1753   : > { %10968 = vset.pattern.permute.xlu1 %v13527_v17  ;;  %v7264_v57 = vsub.f32 %v7262_v1, %v12126_v31 }
0x1756   : > { %v7517_v11 = vpop.permute.xlu0 %7516 }
0x1757   : > { %v7519_v0 = vsub.f32 %v7517_v11, %v12126_v31 }
0x1759   : > { %v7520_v2 = vand.u32 2147483647, %v7519_v0 }
0x175b   : > { %v7521_v5 = vsub.f32 1.0, %v7520_v2  ;;  %v8093_v2 = vadd.f32 %v13526_v3, %v13001_v22 }
0x175d   : > { %v7522_v0 = vmax.f32 %v7521_v5, 0.0 }
0x1764   : > { %v7143_v61 = vpop.permute.xlu0 %7142 }
0x1765   : > { %v7154_v28 = vsel %vm3015_vm4, %v7143_v61, 0.0 }
0x1766   : > { %7155 = vadd.xlane.f32.xlu0 %v7154_v28 }
0x1768   : > { %v7490_v43 = vpop.permute.xlu1 %7489 }
0x1769   : > { %v7492_v47 = vsub.f32 %v7490_v43, %v12126_v31 }
0x176b   : > { %v7493_v16 = vand.u32 2147483647, %v7492_v47 }
0x176d   : > { %v7498_v56 = vpop.permute.xlu1 %7497  ;;  %v7494_v8 = vsub.f32 1.0, %v7493_v16 }
0x176e   : > { %v7500_v4 = vsub.f32 %v7498_v56, %v12135_v53 }
0x176f   : > { %v7495_v35 = vmax.f32 %v7494_v8, 0.0 }
0x1770   : > { %v7501_v52 = vand.u32 2147483647, %v7500_v4  ;;  %v7265_v4 = vand.u32 2147483647, %v7264_v57 }
0x1771   : > { %v7525_v49 = vpop.permute.xlu1 %7524 }
0x1772   : > { %v7502_v36 = vsub.f32 1.0, %v7501_v52  ;;  %v7527_v24 = vsub.f32 %v7525_v49, %v12135_v53 }
0x1774   : > { %v7503_v61 = vmax.f32 %v7502_v36, 0.0  ;;  %v7528_v28 = vand.u32 2147483647, %v7527_v24  ;;  %v7266_v24 = vsub.f32 1.0, %v7265_v4 }
0x1775   : > { %v13057_v43 = vpop.permute.xlu0 %8069  ;;  %v7149_v11 = vpop.permute.xlu1 %7148 }
0x1776   : > { %v7529_v47 = vsub.f32 1.0, %v7528_v28  ;;  %v7163_v45 = vsel %vm3015_vm4, %v7149_v11, 0.0  ;;  %v13060_v56 = vmul.f32 %v7503_v61, %v7495_v35  ;;  %v7267_v3 = vmax.f32 %v7266_v24, 0.0 }
0x1777   : > { %7164 = vadd.xlane.f32.xlu1 %v7163_v45 }
0x1778   : > { %v7530_v16 = vmax.f32 %v7529_v47, 0.0 }
0x1779   : > { %v7145_v52 = vpop.permute.xlu1 %7144 }
0x177a   : > { %v7157_v8 = vsel %vm3015_vm4, %v7145_v52, 0.0  ;;  %v7270_v49 = vpop.permute.xlu0 %7269  ;;  %v13065_v1 = vmul.f32 %v7530_v16, %v7522_v0 }
0x177b   : > { %v7272_v36 = vsub.f32 %v7270_v49, %v12135_v53  ;;  %7158 = vadd.xlane.f32.xlu1 %v7157_v8 }
0x177c   : > { %8104 = vperm.xlu0 %10966, %v8093_v2  }
0x177d   : > { %v7273_v35 = vand.u32 2147483647, %v7272_v36  ;;  %v7207_v61 = vpop.permute.xlu1 %7206 }
0x177e   : > { %v7209_v45 = vsub.f32 %v7207_v61, %v12149_v62  ;;  %v7215_v5 = vpop.permute.xlu0 %7214 }
0x177f   : > { %v7274_v57 = vsub.f32 1.0, %v7273_v35  ;;  %v7217_v28 = vsub.f32 %v7215_v5, %v12156_v12 }
0x1780   : > { %v7210_v11 = vand.u32 2147483647, %v7209_v45 }
0x1781   : > { %v7275_v22 = vmax.f32 %v7274_v57, 0.0  ;;  %v7218_v47 = vand.u32 2147483647, %v7217_v28  ;;  %v10958_v52 = vpop.permute.xlu1 %10957 }
0x1782   : > { %v7211_v0 = vsub.f32 1.0, %v7210_v11  ;;  %v10960_v16 = vunpack.i.h.bf16 %v10958_v52  ;;  %v10959_v46 = vunpack.i.l.bf16 %v10958_v52  ;;  %v7441_v49 = vpop.permute.xlu0 %7440 }
0x1783   : > { %v7219_v8 = vsub.f32 1.0, %v7218_v47  ;;  %v7443_v4 = vsub.f32 %v7441_v49, %v12156_v12  ;;  %v13071_v36 = vmul.f32 %v7275_v22, %v7267_v3 }
0x1784   : > { %v7212_v9 = vmax.f32 %v7211_v0, 0.0  ;;  %v10704_v61 = vpack.c.bf16 %v10960_v16, %v10959_v46  ;;  %v7724_v46 = vadd.f32 %v13525_v23, %v12982_v20 }
0x1785   : > { %v7220_v10 = vmax.f32 %v7219_v8, 0.0  ;;  %v7444_v35 = vand.u32 2147483647, %v7443_v4  ;;  %v7433_v40 = vpop.permute.xlu1 %7432 }
0x1786   : > { %v7435_v45 = vsub.f32 %v7433_v40, %v12149_v62  ;;  %10705 = vmatpush3.bf16.msra.mxu1 %v10704_v61  ;;  %v7753_v40 = vadd.f32 %v13525_v23, %v13036_v41  ;;  %v7470_v41 = vpop.permute.xlu0 %7469 }
0x1787   : > { %v13074_v24 = vmul.f32 %v7220_v10, %v7212_v9  ;;  %10706 = vmatprep.subr.bf16.mxu1 %v13509_v30  ;;  %v7445_v5 = vsub.f32 1.0, %v7444_v35  ;;  %v8009_v10 = vadd.f32 %v13525_v23, %v12956_v39  ;;  %v8038_v9 = vadd.f32 %v13525_v23, %v13006_v26 }
0x1788   : > { %v7436_v57 = vand.u32 2147483647, %v7435_v45 }
0x1789   : > { %v7446_v11 = vmax.f32 %v7445_v5, 0.0 }
0x178a   : > { %v7437_v28 = vsub.f32 1.0, %v7436_v57  ;;  %v7793_v52 = vpop.permute.xlu0 %7792 }
0x178b   : > { %v7795_v39 = vsub.f32 %v7793_v52, %v12135_v53 }
0x178c   : > { %v7438_v47 = vmax.f32 %v7437_v28, 0.0  ;;  %8096 = vperm.xlu1 %10968, %v8093_v2   ;;  %v13530_v2 = vmov 10  }
0x178d   : > { %v7796_v8 = vand.u32 2147483647, %v7795_v39 }
0x178e   : > { %v13077_v3 = vmul.f32 %v7446_v11, %v7438_v47 }
0x178f   : > { %v7797_v45 = vsub.f32 1.0, %v7796_v8 }
0x1790   : > { %10970 = vrot.lane.b32.xlu1 %v12929_v27, %s13529_s17 }
0x1794   : > { %7727 = vperm.xlu1 %10968, %v7724_v46  }
0x1798   : > { %7756 = vperm.xlu1 %10968, %v7753_v40  }
0x179c   : > { %10984 = vset.pattern.permute.xlu1 %v13528_v38  ;;  %v7472_v38 = vsub.f32 %v7470_v41, %v12156_v12 }
0x179d   : > { %7764 = vperm.xlu1 %10984, %v7753_v40   ;;  %v8072_v40 = vsub.f32 %v13057_v43, %v12126_v31 }
0x179e   : > { %v7473_v0 = vand.u32 2147483647, %v7472_v38 }
0x179f   : > { %v8073_v52 = vand.u32 2147483647, %v8072_v40 }
0x17a0   : > { %v7474_v49 = vsub.f32 1.0, %v7473_v0 }
0x17a1   : > { %10990 = vset.pattern.permute.xlu1 %v13527_v17 }
0x17a2   : > { %8012 = vperm.xlu1 %10990, %v8009_v10   ;;  %v7475_v35 = vmax.f32 %v7474_v49, 0.0 }
0x17a6   : > { %8041 = vperm.xlu1 %10990, %v8038_v9  }
0x17aa   : > { %10991 = vset.pattern.permute.xlu1 %v13530_v2 }
0x17ad   : > { %v7147_v20 = vpop.permute.xlu1 %7146 }
0x17ae   : > { %v7160_v22 = vsel %vm3015_vm4, %v7147_v20, 0.0  ;;  %v7798_v20 = vmax.f32 %v7797_v45, 0.0 }
0x17af   : > { %7161 = vadd.xlane.f32.xlu0 %v7160_v22 }
0x17be   : > { %v7462_v16 = vpop.permute.xlu1 %7461 }
0x17bf   : > { %v7464_v17 = vsub.f32 %v7462_v16, %v12149_v62  ;;  %v8074_v16 = vsub.f32 1.0, %v8073_v52 }
0x17c1   : > { %v7465_v23 = vand.u32 2147483647, %v7464_v17  ;;  %v8075_v49 = vmax.f32 %v8074_v16, 0.0 }
0x17c2   : > { %v7785_v26 = vpop.permute.xlu1 %7784 }
0x17c3   : > { %v7466_v4 = vsub.f32 1.0, %v7465_v23  ;;  %v7787_v61 = vsub.f32 %v7785_v26, %v12126_v31  ;;  %v13532_v26 = vmov 11  }
0x17c5   : > { %v7467_v5 = vmax.f32 %v7466_v4, 0.0  ;;  %v7788_v57 = vand.u32 2147483647, %v7787_v61  ;;  %10975 = vrot.lane.b32.xlu0 %v12935_v42, %s13529_s17  ;;  %v13117_v4 = vpop.permute.xlu0 %7819 }
0x17c6   : > { %v13099_v28 = vpop.permute.xlu1 %7811 }
0x17c7   : > { %v7789_v11 = vsub.f32 1.0, %v7788_v57  ;;  %v13101_v47 = vmul.f32 %v7475_v35, %v7467_v5  ;;  %v13533_v57 = vmov 9  }
0x17c9   : > { %v7790_v22 = vmax.f32 %v7789_v11, 0.0  ;;  %10980 = vrot.lane.b32.xlu0 %v12943_v63, %s13529_s17 }
0x17ca   : > { %v13107_v41 = vpop.permute.xlu1 %10962 }
0x17cb   : > { %v13109_v38 = vmul.f32 %v7798_v20, %v7790_v22 }
0x17cd   : > { %7735 = vperm.xlu0 %10966, %v7724_v46  }
0x17ce   : > { %v8078_v0 = vpop.permute.xlu1 %8077 }
0x17cf   : > { %v8080_v39 = vsub.f32 %v8078_v0, %v12135_v53 }
0x17d1   : > { %v8081_v17 = vand.u32 2147483647, %v8080_v39  ;;  %10986 = vrot.lane.b32.xlu0 %v12947_v34, %s13531_s14 }
0x17d3   : > { %v8082_v43 = vsub.f32 1.0, %v8081_v17 }
0x17d5   : > { %v8083_v8 = vmax.f32 %v8082_v43, 0.0  ;;  %8020 = vperm.xlu0 %10966, %v8009_v10   ;;  %v13534_v10 = vmov 8  }
0x17d7   : > { %v13114_v23 = vmul.f32 %v8083_v8, %v8075_v49 }
0x17d9   : > { %8049 = vperm.xlu0 %10966, %v8038_v9  }
0x17dd   : > { %10992 = vset.pattern.permute.xlu0 %v13532_v26 }
0x17f3   : > { %v7156_v46 = vpop.xlane.xlu0 %7155 }
0x17f4   : > { %11127 = vrcp.f32 %v7156_v46 }
0x17fb   : > { %v8105_v45 = vpop.permute.xlu0 %8104 }
0x17fc   : > { %v8107_v9 = vsub.f32 %v8105_v45, %v12135_v53 }
0x17fe   : > { %v11128_v61 = vpop.eup %11127 }
0x17ff   : > { %v7170_v35 = vmul.f32 %v11128_v61, %v13009_v37  ;;  %v8108_v37 = vand.u32 2147483647, %v8107_v9 }
0x1801   : > { %7278 = vperm.xlu0 %10992, %v7170_v35   ;;  %7251 = vperm.xlu1 %10991, %v7170_v35   ;;  %v8109_v52 = vsub.f32 1.0, %v8108_v37 }
0x1803   : > { %v8110_v43 = vmax.f32 %v8109_v52, 0.0 }
0x1804   : > { %v7165_v5 = vpop.xlane.xlu1 %7164 }
0x1805   : > { %11129 = vrcp.f32 %v7165_v5  ;;  %10994 = vset.pattern.permute.xlu0 %v13533_v57  ;;  %10993 = vset.pattern.permute.xlu1 %v13534_v10 }
0x1806   : > { %7223 = vperm.xlu0 %10994, %v7170_v35   ;;  %7195 = vperm.xlu1 %10993, %v7170_v35  }
0x1808   : > { %v7159_v11 = vpop.xlane.xlu1 %7158 }
0x1809   : > { %11131 = vrcp.f32 %v7159_v11 }
0x180a   : > { %11005 = vrot.lane.b32.xlu0 %v12923_v19, %s13531_s14  ;;  %10995 = vset.pattern.permute.xlu1 %v13530_v2 }
0x180b   : > { %11032 = vset.pattern.permute.xlu0 %v13532_v26 }
0x180c   : > { %v8097_v40 = vpop.permute.xlu1 %8096 }
0x180d   : > { %v8099_v20 = vsub.f32 %v8097_v40, %v12126_v31 }
0x180e   : > { %11015 = vrot.lane.b32.xlu0 %v12929_v27, %s13531_s14 }
0x180f   : > { %v11130_v22 = vpop.eup %11129  ;;  %v8100_v0 = vand.u32 2147483647, %v8099_v20 }
0x1810   : > { %v13130_v39 = vpop.permute.xlu1 %10970  ;;  %v13133_v16 = vmul.f32 %v11130_v22, %v13015_v59 }
0x1811   : > { %v8101_v17 = vsub.f32 1.0, %v8100_v0 }
0x1812   : > { %8086 = vperm.xlu1 %10995, %v13133_v16  }
0x1813   : > { %v8102_v49 = vmax.f32 %v8101_v17, 0.0  ;;  %v11132_v61 = vpop.eup %11131 }
0x1814   : > { %v7728_v8 = vpop.permute.xlu1 %7727  ;;  %v7171_v5 = vmul.f32 %v11132_v61, %v13021_v15 }
0x1815   : > { %v13136_v46 = vmul.f32 %v8110_v43, %v8102_v49 }
0x1816   : > { %10996 = vset.pattern.permute.xlu1 %v13532_v26 }
0x1817   : > { %8113 = vperm.xlu1 %10996, %v13133_v16  }
0x1818   : > { %v7757_v35 = vpop.permute.xlu1 %7756 }
0x1819   : > { %v7759_v45 = vsub.f32 %v7757_v35, %v12149_v62 }
0x181b   : > { %v7760_v59 = vand.u32 2147483647, %v7759_v45  ;;  %10997 = vset.pattern.permute.xlu1 %v13530_v2 }
0x181c   : > { %7506 = vperm.xlu1 %10997, %v7171_v5   ;;  %v7765_v9 = vpop.permute.xlu1 %7764 }
0x181d   : > { %v7767_v11 = vsub.f32 %v7765_v9, %v12156_v12  ;;  %v7761_v37 = vsub.f32 1.0, %v7760_v59 }
0x181f   : > { %v7768_v40 = vand.u32 2147483647, %v7767_v11  ;;  %v7762_v22 = vmax.f32 %v7761_v37, 0.0 }
0x1820   : > { %10998 = vset.pattern.permute.xlu1 %v13532_v26 }
0x1821   : > { %v7769_v20 = vsub.f32 1.0, %v7768_v40  ;;  %7533 = vperm.xlu1 %10998, %v7171_v5   ;;  %v8013_v35 = vpop.permute.xlu1 %8012 }
0x1822   : > { %v8015_v59 = vsub.f32 %v8013_v35, %v12149_v62 }
0x1823   : > { %v7770_v52 = vmax.f32 %v7769_v20, 0.0 }
0x1824   : > { %v8016_v37 = vand.u32 2147483647, %v8015_v59 }
0x1825   : > { %11000 = vrot.lane.b32.xlu1 %v12947_v34, %s13535_s27  ;;  %v13147_v0 = vmul.f32 %v7770_v52, %v7762_v22  ;;  %v7730_v34 = vsub.f32 %v7728_v8, %v12149_v62 }
0x1826   : > { %11019 = vset.pattern.permute.xlu1 %v13534_v10  ;;  %v8017_v52 = vsub.f32 1.0, %v8016_v37 }
0x1829   : > { %11010 = vrot.lane.b32.xlu1 %v12923_v19, %s13535_s27  ;;  %v7731_v19 = vand.u32 2147483647, %v7730_v34  ;;  %v8018_v34 = vmax.f32 %v8017_v52, 0.0 }
0x182d   : > { %7450 = vperm.xlu1 %11019, %v7171_v5  }
0x1831   : > { %11020 = vset.pattern.permute.xlu1 %v13533_v57 }
0x1832   : > { %7478 = vperm.xlu1 %11020, %v7171_v5  }
0x1836   : > { %11021 = vset.pattern.permute.xlu1 %v13530_v2  ;;  %v7732_v2 = vsub.f32 1.0, %v7731_v19 }
0x1838   : > { %v7733_v11 = vmax.f32 %v7732_v2, 0.0 }
0x183c   : > { %v7162_v15 = vpop.xlane.xlu0 %7161 }
0x183d   : > { %11133 = vrcp.f32 %v7162_v15 }
0x1840   : > { %v13154_v17 = vpop.permute.xlu0 %10975 }
0x1844   : > { %v13157_v49 = vpop.permute.xlu0 %10980 }
0x1847   : > { %v11134_v43 = vpop.eup %11133 }
0x1848   : > { %v7172_v61 = vmul.f32 %v11134_v43, %v13041_v58 }
0x184a   : > { %7828 = vperm.xlu0 %11032, %v7172_v61   ;;  %7801 = vperm.xlu1 %11021, %v7172_v61  }
0x184c   : > { %v7736_v45 = vpop.permute.xlu0 %7735 }
0x184d   : > { %v7738_v5 = vsub.f32 %v7736_v45, %v12156_v12 }
0x184e   : > { %11033 = vset.pattern.permute.xlu0 %v13534_v10  ;;  %11023 = vrot.lane.b32.xlu1 %v12929_v27, %s13535_s27 }
0x184f   : > { %v7739_v8 = vand.u32 2147483647, %v7738_v5  ;;  %8030 = vperm.xlu0 %11033, %v13133_v16   ;;  %11034 = vset.pattern.permute.xlu1 %v13533_v57 }
0x1850   : > { %v10987_v58 = vpop.permute.xlu0 %10986 }
0x1851   : > { %v7740_v9 = vsub.f32 1.0, %v7739_v8 }
0x1852   : > { %11028 = vrot.lane.b32.xlu1 %v12935_v42, %s13531_s14 }
0x1853   : > { %v7741_v40 = vmax.f32 %v7740_v9, 0.0  ;;  %11041 = vset.pattern.permute.xlu0 %v13533_v57  ;;  %v13539_v9 = vpack.c.bf16 %v12866_v54, %v12869_v25  ;;  %v10965_v54 = vunpack.i.h.bf16 %v13107_v41  ;;  %v10964_v25 = vunpack.i.l.bf16 %v13107_v41 }
0x1854   : > { %v8021_v20 = vpop.permute.xlu0 %8020  ;;  %7773 = vperm.xlu0 %11041, %v7172_v61  }
0x1855   : > { %v8023_v27 = vsub.f32 %v8021_v20, %v12156_v12  ;;  %v13171_v22 = vmul.f32 %v7741_v40, %v7733_v11  ;;  %v10707_v52 = vpack.c.bf16 %v10965_v54, %v10964_v25 }
0x1856   : > { %8058 = vperm.xlu1 %11034, %v13133_v16   ;;  %v13184_v16 = vpop.permute.xlu1 %8041 }
0x1857   : > { %v8024_v15 = vand.u32 2147483647, %v8023_v27 }
0x1858   : > { %11043 = vrot.lane.b32.xlu0 %v12943_v63, %s13531_s14  ;;  %v13186_v35 = vpop.permute.xlu0 %8049  ;;  %s13540_s14 = smov 96  }
0x1859   : > { %v8025_v43 = vsub.f32 1.0, %v8024_v15  ;;  %11062 = vset.pattern.permute.xlu0 %v13532_v26  ;;  %v10973_v15 = vunpack.i.h.bf16 %v13130_v39 }
0x185a   : > { %11035 = vset.pattern.permute.xlu1 %v13534_v10 }
0x185b   : > { %v8026_v57 = vmax.f32 %v8025_v43, 0.0  ;;  %7745 = vperm.xlu1 %11035, %v7172_v61  }
0x185d   : > { %v13178_v19 = vmul.f32 %v8026_v57, %v8018_v34  ;;  %v10982_v57 = vunpack.i.l.bf16 %v13157_v49 }
0x185f   : > { %11037 = vrot.lane.b32.xlu1 %v12935_v42, %s13535_s27 }
0x1863   : > { %11048 = vrot.lane.b32.xlu1 %v12943_v63, %s13535_s27  ;;  %v13536_v63 = vpack.c.bf16 %v12848_v29, %v12851_v55  ;;  %v10989_v29 = vunpack.i.h.bf16 %v10987_v58  ;;  %v10988_v55 = vunpack.i.l.bf16 %v10987_v58  ;;  %s13376_s27 = scalar_lea.hbm %s13438_s13, %s9199_s0 }
0x1865   : > { %v10719_v11 = vpack.c.bf16 %v10989_v29, %v10988_v55 }
0x1880   : > { %v7279_v45 = vpop.permute.xlu0 %7278  ;;  %v7252_v5 = vpop.permute.xlu1 %7251 }
0x1881   : > { %v7281_v26 = vmul.f32 %v7279_v45, %v13071_v36  ;;  %v7254_v10 = vmul.f32 %v7252_v5, %v13045_v51  ;;  %v13537_v51 = vpack.c.bf16 %v12854_v44, %v12857_v32 }
0x1883   : > { %v7282_v2 = vadd.f32 %v7281_v26, %v7254_v10 }
0x1885   : > { %v7224_v61 = vpop.permute.xlu0 %7223  ;;  %10253 = vmatmul.mubr.msk.f32.vlgmr.msra.gmra.mrb[78].mxu0 %vm3145_vm5, %v7282_v2  ;;  %v7196_v59 = vpop.permute.xlu1 %7195 }
0x1886   : > { %v7226_v42 = vmul.f32 %v7224_v61, %v13074_v24  ;;  %v7198_v8 = vmul.f32 %v7196_v59, %v13027_v21  ;;  %10693 = vmatpush3.bf16.msra.mxu0 %v13536_v63  ;;  %10271 = vmatprep.mubr.msk.f32.mxu0 %vm11219_vm0, %v13508_v13  ;;  %v13538_v24 = vpack.c.bf16 %v12860_v18, %v12863_v14 }
0x1887   : > { %10694 = vmatprep.subr.bf16.mxu0 %v13509_v30 }
0x1888   : > { %v7227_v36 = vadd.f32 %v7226_v42, %v7198_v8 }
0x188a   : > { %10696 = vmatpush3.bf16.msra.mxu0 %v13537_v51 }
0x188b   : > { %10697 = vmatprep.subr.bf16.mxu0 %v13509_v30 }
0x188e   : > { %10699 = vmatpush3.bf16.msra.mxu0 %v13538_v24  ;;  %v11006_v24 = vpop.permute.xlu0 %11005 }
0x188f   : > { %10700 = vmatprep.subr.bf16.mxu0 %v13509_v30 }
0x1891   : > { %v8087_v21 = vpop.permute.xlu1 %8086 }
0x1892   : > { %10702 = vmatpush3.bf16.msra.mxu0 %v13539_v9  ;;  %v8089_v32 = vmul.f32 %v8087_v21, %v13114_v23  ;;  %v10972_v23 = vunpack.i.l.bf16 %v13130_v39  ;;  %v10983_v39 = vunpack.i.h.bf16 %v13157_v49  ;;  %v7814_v49 = vsub.f32 %v13099_v28, %v12126_v31  ;;  %v11016_v21 = vpop.permute.xlu0 %11015 }
0x1893   : > { %10718 = vmatprep.subr.bf16.mxu0 %v13509_v30  ;;  %v8052_v28 = vsub.f32 %v13186_v35, %v12156_v12  ;;  %v11017_v12 = vunpack.i.l.bf16 %v11016_v21 }
0x1894   : > { %v10710_v41 = vpack.c.bf16 %v10973_v15, %v10972_v23  ;;  %v10716_v5 = vpack.c.bf16 %v10983_v39, %v10982_v57 }
0x1895   : > { %10272 = vmatmul.mubr.msk.f32.vlgmr.msra.gmra.mrb[78].mxu0 %vm3219_vm6, %v7227_v36  ;;  %v7815_v36 = vand.u32 2147483647, %v7814_v49 }
0x1896   : > { %10720 = vmatpush3.bf16.msra.mxu0 %v10719_v11  ;;  %v8114_v44 = vpop.permute.xlu1 %8113  ;;  %10304 = vmatprep.mubr.msk.f32.mxu0 %vm11219_vm0, %v13508_v13 }
0x1897   : > { %v8116_v18 = vmul.f32 %v8114_v44, %v13136_v46  ;;  %10721 = vmatprep.subr.bf16.mxu0 %v13509_v30  ;;  %v7816_v29 = vsub.f32 1.0, %v7815_v36  ;;  %v11008_v44 = vunpack.i.h.bf16 %v11006_v24 }
0x1899   : > { %v8117_v14 = vadd.f32 %v8116_v18, %v8089_v32  ;;  %v7817_v31 = vmax.f32 %v7816_v29, 0.0  ;;  %v11007_v32 = vunpack.i.l.bf16 %v11006_v24 }
0x189b   : > { %v7507_v58 = vpop.permute.xlu1 %7506 }
0x189c   : > { %v7509_v40 = vmul.f32 %v7507_v58, %v13060_v56  ;;  %v10978_v56 = vunpack.i.h.bf16 %v13154_v17 }
0x18a0   : > { %v7534_v37 = vpop.permute.xlu1 %7533 }
0x18a1   : > { %v7536_v20 = vmul.f32 %v7534_v37, %v13065_v1  ;;  %v10977_v1 = vunpack.i.l.bf16 %v13154_v17 }
0x18a3   : > { %v7537_v27 = vadd.f32 %v7536_v20, %v7509_v40  ;;  %v10713_v34 = vpack.c.bf16 %v10978_v56, %v10977_v1  ;;  %v10722_v20 = vpack.c.bf16 %v11008_v44, %v11007_v32 }
0x18a4   : > { %v11001_v46 = vpop.permute.xlu1 %11000 }
0x18a5   : > { %10279 = vmatmul.mubr.msk.f32.vlgmr.msra.gmra.mrb[74].mxu1 %vm3145_vm5, %v7537_v27  ;;  %v11003_v26 = vunpack.i.h.bf16 %v11001_v46  ;;  %v11002_v10 = vunpack.i.l.bf16 %v11001_v46  ;;  %v11018_v27 = vunpack.i.h.bf16 %v11016_v21 }
0x18a6   : > { %10708 = vmatpush3.bf16.msra.mxu1 %v10707_v52  ;;  %10297 = vmatprep.mubr.msk.f32.mxu1 %vm11219_vm0, %v13508_v13 }
0x18a7   : > { %10709 = vmatprep.subr.bf16.mxu1 %v13509_v30  ;;  %v10734_v42 = vpack.c.bf16 %v11003_v26, %v11002_v10 }
0x18a8   : > { %v11011_v43 = vpop.permute.xlu1 %11010 }
0x18a9   : > { %v11013_v8 = vunpack.i.h.bf16 %v11011_v43  ;;  %v11012_v63 = vunpack.i.l.bf16 %v11011_v43 }
0x18aa   : > { %10711 = vmatpush3.bf16.msra.mxu1 %v10710_v41 }
0x18ab   : > { %10712 = vmatprep.subr.bf16.mxu1 %v13509_v30 }
0x18ac   : > { %v7451_v45 = vpop.permute.xlu1 %7450 }
0x18ad   : > { %v7453_v61 = vmul.f32 %v7451_v45, %v13077_v3  ;;  %v10737_v3 = vpack.c.bf16 %v11013_v8, %v11012_v63 }
0x18ae   : > { %10714 = vmatpush3.bf16.msra.mxu1 %v10713_v34 }
0x18af   : > { %10715 = vmatprep.subr.bf16.mxu1 %v13509_v30 }
0x18b1   : > { %v7479_v2 = vpop.permute.xlu1 %7478 }
0x18b2   : > { %v7481_v17 = vmul.f32 %v7479_v2, %v13101_v47  ;;  %10717 = vmatpush3.bf16.msra.mxu1 %v10716_v5  ;;  %v7822_v47 = vsub.f32 %v13117_v4, %v12135_v53  ;;  %v8044_v53 = vsub.f32 %v13184_v16, %v12149_v62  ;;  %v8053_v4 = vand.u32 2147483647, %v8052_v28 }
0x18b3   : > { %10733 = vmatprep.subr.bf16.mxu1 %v13509_v30 }
0x18b4   : > { %v7482_v59 = vadd.f32 %v7481_v17, %v7453_v61  ;;  %v7823_v51 = vand.u32 2147483647, %v7822_v47  ;;  %v8045_v58 = vand.u32 2147483647, %v8044_v53  ;;  %v8054_v37 = vsub.f32 1.0, %v8053_v4 }
0x18b6   : > { %10298 = vmatmul.mubr.msk.f32.vlgmr.msra.gmra.mrb[74].mxu1 %vm3219_vm6, %v7482_v59  ;;  %v7824_v55 = vsub.f32 1.0, %v7823_v51  ;;  %v8046_v52 = vsub.f32 1.0, %v8045_v58  ;;  %v8055_v16 = vmax.f32 %v8054_v37, 0.0 }
0x18b7   : > { %10735 = vmatpush3.bf16.msra.mxu1 %v10734_v42  ;;  %10330 = vmatprep.mubr.msk.f32.mxu1 %vm11219_vm0, %v13508_v13 }
0x18b8   : > { %10736 = vmatprep.subr.bf16.mxu1 %v13509_v30  ;;  %v7825_v9 = vmax.f32 %v7824_v55, 0.0  ;;  %v8047_v56 = vmax.f32 %v8046_v52, 0.0  ;;  %v9082_v55 = vld [vmem:[%s13431_s6 + $0x68] sm:$0xff] }
0x18ba   : > { %10331 = vmatmul.mubr.msk.f32.vlgmr.msra.gmra.mrb[76].mxu1 %vm3145_vm5, %v8117_v14  ;;  %v7826_v11 = vmul.f32 %v7825_v9, %v7817_v31  ;;  %v8056_v57 = vmul.f32 %v8055_v16, %v8047_v56  ;;  %v9083_v31 = vld [vmem:[%s13431_s6 + $0x70] sm:$0xff]  ;;  %v9084_v9 = vld [vmem:[%s13431_s6 + $0x78] sm:$0xff] }
0x18bb   : > { %10738 = vmatpush3.bf16.msra.mxu1 %v10737_v3  ;;  %10349 = vmatprep.mubr.msk.f32.mxu1 %vm11219_vm0, %v13508_v13 }
0x18bc   : > { %10739 = vmatprep.subr.bf16.mxu1 %v13509_v30 }
0x18c9   : > { %v7829_v18 = vpop.permute.xlu0 %7828  ;;  %v7802_v14 = vpop.permute.xlu1 %7801 }
0x18ca   : > { %v7831_v54 = vmul.f32 %v7829_v18, %v7826_v11  ;;  %v7804_v25 = vmul.f32 %v7802_v14, %v13109_v38  ;;  %v10725_v38 = vpack.c.bf16 %v11018_v27, %v11017_v12 }
0x18cc   : > { %v7832_v40 = vadd.f32 %v7831_v54, %v7804_v25 }
0x18cd   : > { %v11024_v35 = vpop.permute.xlu1 %11023 }
0x18ce   : > { %v11026_v15 = vunpack.i.h.bf16 %v11024_v35  ;;  %v11025_v23 = vunpack.i.l.bf16 %v11024_v35  ;;  %v8031_v62 = vpop.permute.xlu0 %8030  ;;  %10305 = vmatmul.mubr.msk.f32.vlgmr.msra.gmra.mrb[80].mxu0 %vm3145_vm5, %v7832_v40 }
0x18cf   : > { %10723 = vmatpush3.bf16.msra.mxu0 %v10722_v20  ;;  %10323 = vmatprep.mubr.msk.f32.mxu0 %vm11219_vm0, %v13508_v13  ;;  %v8033_v5 = vmul.f32 %v8031_v62, %v13178_v19 }
0x18d0   : > { %v10740_v46 = vpack.c.bf16 %v11026_v15, %v11025_v23  ;;  %10724 = vmatprep.subr.bf16.mxu0 %v13509_v30  ;;  %v13306_v23 = vld [vmem:[%s13436_s11 + $0x10] sm:$0xff] }
0x18d1   : > { %v11029_v41 = vpop.permute.xlu1 %11028 }
0x18d2   : > { %v11031_v1 = vunpack.i.h.bf16 %v11029_v41  ;;  %v11030_v43 = vunpack.i.l.bf16 %v11029_v41  ;;  %10741 = vmatpush3.bf16.msra.mxu1 %v10740_v46 }
0x18d3   : > { %10726 = vmatpush3.bf16.msra.mxu0 %v10725_v38  ;;  %v7774_v34 = vpop.permute.xlu0 %7773  ;;  %10742 = vmatprep.subr.bf16.mxu1 %v13509_v30 }
0x18d4   : > { %v10728_v39 = vpack.c.bf16 %v11031_v1, %v11030_v43  ;;  %10727 = vmatprep.subr.bf16.mxu0 %v13509_v30  ;;  %v7776_v8 = vmul.f32 %v7774_v34, %v13147_v0  ;;  %v13541_v1 = vpack.i.bf16 %v12772_v48, %v12767_v33  ;;  %v9109_v33 = vld [vmem:[%s13435_s10 + $0x40] sm:$0xff]  ;;  %v9110_v48 = vld [vmem:[%s13435_s10 + $0x48] sm:$0xff] }
0x18d5   : > { %v8059_v45 = vpop.permute.xlu1 %8058 }
0x18d6   : > { %v8061_v26 = vmul.f32 %v8059_v45, %v8056_v57 }
0x18d7   : > { %10729 = vmatpush3.bf16.msra.mxu0 %v10728_v39  ;;  %v11044_v10 = vpop.permute.xlu0 %11043 }
0x18d8   : > { %v8062_v2 = vadd.f32 %v8061_v26, %v8033_v5  ;;  %v11046_v61 = vunpack.i.h.bf16 %v11044_v10  ;;  %v11045_v17 = vunpack.i.l.bf16 %v11044_v10  ;;  %10730 = vmatprep.subr.bf16.mxu0 %v13509_v30  ;;  %v13542_v5 = vpack.i.bf16 %v12786_v6, %v12777_v50  ;;  %v9111_v50 = vld [vmem:[%s13435_s10 + $0x50] sm:$0xff] }
0x18d9   : > { %v10755_v6 = vpack.c.bf16 %v9110_v48, %v9109_v33 }
0x18da   : > { %v10731_v59 = vpack.c.bf16 %v11046_v61, %v11045_v17  ;;  %v7746_v42 = vpop.permute.xlu1 %7745  ;;  %v9112_v61 = vld [vmem:[%s13435_s10 + $0x58] sm:$0xff] }
0x18db   : > { %v7748_v63 = vmul.f32 %v7746_v42, %v13171_v22  ;;  %v9081_v22 = vld [vmem:[%s13431_s6 + $0x60] sm:$0xff]  ;;  %v10758_v17 = vpack.c.bf16 %v9112_v61, %v9111_v50  ;;  %v9114_v42 = vld [vmem:[%s13435_s10 + $0x68] sm:$0xff] }
0x18dc   : > { %10732 = vmatpush3.bf16.msra.mxu0 %v10731_v59  ;;  %v9113_v59 = vld [vmem:[%s13435_s10 + $0x60] sm:$0xff] }
0x18dd   : > { %v7777_v49 = vadd.f32 %v7776_v8, %v7748_v63  ;;  %10352 = vmatprep.subr.mxu0 %v13508_v13  ;;  %v10761_v8 = vpack.c.bf16 %v9114_v42, %v9113_v59 }
0x18de   : > { %v11038_v3 = vpop.permute.xlu1 %11037 }
0x18df   : > { %v11040_v19 = vunpack.i.h.bf16 %v11038_v3  ;;  %v11039_v47 = vunpack.i.l.bf16 %v11038_v3  ;;  %10324 = vmatmul.mubr.msk.f32.vlgmr.msra.gmra.mrb[80].mxu0 %vm3219_vm6, %v7777_v49 }
0x18e0   : > { %10354 = vmatprep.mubr.msk.f32.mxu0 %vm11219_vm0, %v13508_v13  ;;  %10353 = vmatpush3.msra.mxu0 %v9081_v22 }
0x18e1   : > { %v10743_v36 = vpack.c.bf16 %v11040_v19, %v11039_v47  ;;  %10362 = vmatprep.subr.mxu0 %v13508_v13 }
0x18e2   : > { %v11049_v51 = vpop.permute.xlu1 %11048 }
0x18e3   : > { %v11051_v24 = vunpack.i.h.bf16 %v11049_v51  ;;  %v11050_v29 = vunpack.i.l.bf16 %v11049_v51  ;;  %10744 = vmatpush3.bf16.msra.mxu1 %v10743_v36 }
0x18e4   : > { %10745 = vmatprep.subr.bf16.mxu1 %v13509_v30 }
0x18e5   : > { %v10746_v0 = vpack.c.bf16 %v11051_v24, %v11050_v29  ;;  %v13543_v24 = vld [vmem:[#allocation9_spill] sm:$0xff] }
0x18e6   : > { %v13544_v29 = vsub.s32 6, %v13543_v24 }
0x18e7   : > { %10747 = vmatpush3.bf16.msra.mxu1 %v10746_v0 }
0x18e8   : > { %10357 = vmatprep.subr.mxu1 %v13508_v13  ;;  %v8615_v0 = vrot.slane %v13306_v23, %v13544_v29 }
0x18ea   : > { %10350 = vmatmul.mubr.msk.f32.vlgmr.msra.gmra.mrb[76].mxu1 %vm3219_vm6, %v8062_v2 }
0x18eb   : > { %10359 = vmatprep.mubr.msk.f32.mxu1 %vm11219_vm0, %v13508_v13  ;;  %10358 = vmatpush3.msra.mxu1 %v9082_v55 }
0x18ec   : > { %10367 = vmatprep.subr.mxu1 %v13508_v13 }
0x1968   : > { %v7425_v28 = vpop.f32.mrb[78].mxu0 }
0x1969   : > { %v10273_v21 = vpop.f32.mrb[79].mxu0  ;;  %10355 = vmatmul.mubr.msk.f32.vlgmr.msra.gmra.mrb[82].mxu0 %vm1547_vm2, %v7425_v28 }
0x196a   : > { %10363 = vmatpush3.msra.mxu0 %v9083_v31  ;;  %10364 = vmatprep.mubr.msk.f32.mxu0 %vm11219_vm0, %v13508_v13  ;;  %v13545_v31 = vsub.s32 7, %v13543_v24 }
0x196b   : > { %10748 = vmatprep.subr.bf16.mxu0 %v13509_v30 }
0x196c   : > { %v8620_v28 = vrot.slane %v13306_v23, %v13545_v31 }
0x1989   : > { %v7720_v53 = vpop.f32.mrb[74].mxu1 }
0x198a   : > { %v10299_v4 = vpop.f32.mrb[75].mxu1  ;;  %10360 = vmatmul.mubr.msk.f32.vlgmr.msra.gmra.mrb[78].mxu1 %vm1547_vm2, %v7720_v53  ;;  %v9116_v53 = vld [vmem:[%s13435_s10 + $0x78] sm:$0xff] }
0x198b   : > { %10368 = vmatpush3.msra.mxu1 %v9084_v9  ;;  %10369 = vmatprep.mubr.msk.f32.mxu1 %vm11219_vm0, %v13508_v13  ;;  %v9115_v9 = vld [vmem:[%s13435_s10 + $0x70] sm:$0xff] }
0x198c   : > { %10754 = vmatprep.subr.bf16.mxu1 %v13509_v30  ;;  %v10764_v4 = vpack.c.bf16 %v9116_v53, %v9115_v9 }
0x19b2   : > { %v8005_v11 = vpop.f32.mrb[80].mxu0 }
0x19b3   : > { %v10325_v44 = vpop.f32.mrb[81].mxu0  ;;  %10365 = vmatmul.mubr.msk.f32.vlgmr.msra.gmra.mrb[84].mxu0 %vm1547_vm2, %v8005_v11  ;;  %v9190_v11 = vld [vmem:[%s13437_s12 + $0x1] ss:$0 sm:$0xff] }
0x19b4   : > { %10380 = vmatprep.mubr.msk.f32.mxu0 %vm11219_vm0, %v13508_v13 }
0x19bd   : > { %v8290_v32 = vpop.f32.mrb[76].mxu1 }
0x19be   : > { %v10351_v18 = vpop.f32.mrb[77].mxu1  ;;  %10370 = vmatmul.mubr.msk.f32.vlgmr.msra.gmra.mrb[80].mxu1 %vm1547_vm2, %v8290_v32 }
0x19bf   : > { %10399 = vmatprep.mubr.msk.f32.mxu1 %vm11219_vm0, %v13508_v13  ;;  %v8596_v13 = vrot.slane %v13306_v23, %v12323_v60  ;;  %10756 = vmatpush3.bf16.msra.mxu1 %v10755_v6 }
0x19c0   : > { %10757 = vmatprep.subr.bf16.mxu1 %v13509_v30 }
0x19c3   : > { %10759 = vmatpush3.bf16.msra.mxu1 %v10758_v17 }
0x19c4   : > { %10760 = vmatprep.subr.bf16.mxu1 %v13509_v30 }
0x19c7   : > { %10762 = vmatpush3.bf16.msra.mxu1 %v10761_v8 }
0x19c8   : > { %10763 = vmatprep.subr.bf16.mxu1 %v13509_v30 }
0x19cb   : > { %10765 = vmatpush3.bf16.msra.mxu1 %v10764_v4 }
0x1a3c   : > { %v8363_v14 = vpop.f32.mrb[82].mxu0 }
0x1a3d   : > { %v10356_v58 = vpop.f32.mrb[83].mxu0  ;;  %v8586_v25 = vsel %vm648_vm1, %v8363_v14, 0.0 }
0x1a3e   : > { %v13546_v58 = vsub.s32 3, %v13543_v24 }
0x1a5d   : > { %v8436_v54 = vpop.f32.mrb[78].mxu1 }
0x1a5e   : > { %v8587_v37 = vsel %vm648_vm1, %v8436_v54, 0.0  ;;  %v10361_v40 = vpop.f32.mrb[79].mxu1  ;;  %v8721_v54 = vrot.slane %v13306_v23, %v13546_v58 }
0x1a5f   : > { %v8588_v20 = vadd.f32 %v8587_v37, %v8586_v25 }
0x1a86   : > { %v8509_v27 = vpop.f32.mrb[84].mxu0 }
0x1a87   : > { %v8589_v12 = vsel %vm648_vm1, %v8509_v27, 0.0  ;;  %v10366_v35 = vpop.f32.mrb[85].mxu0 }
0x1a88   : > { %v8590_v52 = vadd.f32 %v8589_v12, %v8588_v20 }
0x1a91   : > { %v8582_v15 = vpop.f32.mrb[80].mxu1 }
0x1a92   : > { %v8591_v62 = vsel %vm648_vm1, %v8582_v15, 0.0  ;;  %v10371_v16 = vpop.f32.mrb[81].mxu1 }
0x1a93   : > { %v8592_v46 = vadd.f32 %v8591_v62, %v8590_v52 }
0x1a95   : > { %v8597_v38 = vadd.f32 %v8596_v13, %v8592_v46  ;;  %v9118_v46 = vld [vmem:[%s13436_s11 + $0x18] sm:$0x3] }
0x1a97   : > { %v8598_v41 = vadd.f32 %v8597_v38, %v12883_v7  ;;  %v13547_v38 = vld [vmem:[#allocation10_spill] sm:$0xff] }
0x1a99   : > { %v8599_v56 = vsel %vm648_vm1, %v8598_v41, 0.0 }
0x1a9a   : > { %8600 = vadd.xlane.f32.xlu0 %v8599_v56 }
0x1ab0   : > { %11053 = vrot.lane.b32.xlu0 %v13541_v1, %s13540_s14  ;;  %v8817_v1 = vrot.slane %v9118_v46, %v12323_v60 }
0x1b27   : > { %v8601_v43 = vpop.xlane.xlu0 %8600 }
0x1b28   : > { %v8602_v34 = vmul.f32 0.03125, %v8601_v43 }
0x1b2a   : > { %v8603_v39 = vsub.f32 %v8598_v41, %v8602_v34  ;;  %v8812_v41 = vrot.slane %v9118_v46, %v13547_v38 }
0x1b2b   : > { %v11054_v7 = vpop.permute.xlu0 %11053 }
0x1b2c   : > { %v8604_v57 = vmul.f32 %v8603_v39, %v8603_v39  ;;  %v11056_v26 = vunpack.i.h.bf16 %v11054_v7  ;;  %v11055_v10 = vunpack.i.l.bf16 %v11054_v7 }
0x1b2e   : > { %v8605_v45 = vsel %vm648_vm1, %v8604_v57, 0.0  ;;  %v10749_v2 = vpack.c.bf16 %v11056_v26, %v11055_v10 }
0x1b2f   : > { %8606 = vadd.xlane.f32.xlu1 %v8605_v45 }
0x1b30   : > { %10750 = vmatpush3.bf16.msra.mxu0 %v10749_v2 }
0x1b31   : > { %10751 = vmatprep.subr.bf16.mxu0 %v13509_v30 }
0x1b40   : > { %11058 = vrot.lane.b32.xlu1 %v13542_v5, %s13540_s14 }
0x1bbc   : > { %v8607_v63 = vpop.xlane.xlu1 %8606 }
0x1bbd   : > { %v8608_v49 = vmul.f32 0.03125, %v8607_v63 }
0x1bbf   : > { %v8609_v3 = vadd.f32 1e-05, %v8608_v49 }
0x1bc0   : > { %v11059_v19 = vpop.permute.xlu1 %11058 }
0x1bc1   : > { %11135 = vrsqrt.f32 %v8609_v3  ;;  %v11061_v47 = vunpack.i.h.bf16 %v11059_v19  ;;  %v11060_v36 = vunpack.i.l.bf16 %v11059_v19 }
0x1bc3   : > { %v10752_v51 = vpack.c.bf16 %v11061_v47, %v11060_v36 }
0x1bc5   : > { %10753 = vmatpush3.bf16.msra.mxu0 %v10752_v51 }
0x1bcb   : > { %v11136_v22 = vpop.eup %11135 }
0x1bcc   : > { %v8611_v55 = vmul.f32 %v11136_v22, %v8603_v39 }
0x1bce   : > { %v8616_v30 = vmul.f32 %v8615_v0, %v8611_v55 }
0x1bd0   : > { %v8621_v21 = vadd.f32 %v8620_v28, %v8616_v30 }
0x1bd2   : > { %10381 = vmatmul.mubr.msk.f32.vlgmr.msra.gmra.mrb[86].mxu0 %vm648_vm1, %v8621_v21 }
0x1ca5   : > { %v8713_v44 = vpop.f32.mrb[86].mxu0 }
0x1ca6   : > { %v8714_v32 = vadd.f32 %v9190_v11, %v8713_v44  ;;  %v10382_v18 = vpop.f32.mrb[87].mxu0 }
0x1ca8   : > { %v8717_v14 = vmax.f32 %v8714_v32, 0.0 }
0x1caa   : > { %10400 = vmatmul.mubr.msk.f32.vlgmr.msra.gmra.mrb[82].mxu1 %vm3219_vm6, %v8717_v14 }
0x1d7d   : > { %v8791_v25 = vpop.f32.mrb[82].mxu1 }
0x1d7e   : > { %v8792_v37 = vadd.f32 %v8791_v25, %v8721_v54  ;;  %v10401_v40 = vpop.f32.mrb[83].mxu1 }
0x1d80   : > { %v8795_v20 = vadd.f32 %v8792_v37, %v8621_v21 }
0x1d82   : > { %v8796_v27 = vsel %vm648_vm1, %v8795_v20, 0.0 }
0x1d83   : > { %8797 = vadd.xlane.f32.xlu0 %v8796_v27 }
0x1e10   : > { %v8798_v12 = vpop.xlane.xlu0 %8797 }
0x1e11   : > { %v8799_v35 = vmul.f32 0.03125, %v8798_v12 }
0x1e13   : > { %v8800_v52 = vsub.f32 %v8795_v20, %v8799_v35 }
0x1e15   : > { %v8801_v15 = vmul.f32 %v8800_v52, %v8800_v52 }
0x1e17   : > { %v8802_v13 = vsel %vm648_vm1, %v8801_v15, 0.0 }
0x1e18   : > { %8803 = vadd.xlane.f32.xlu1 %v8802_v13 }
0x1ea5   : > { %v8804_v62 = vpop.xlane.xlu1 %8803 }
0x1ea6   : > { %v8805_v23 = vmul.f32 0.03125, %v8804_v62 }
0x1ea8   : > { %v8806_v16 = vadd.f32 1e-05, %v8805_v23 }
0x1eaa   : > { %11137 = vrsqrt.f32 %v8806_v16 }
0x1eb4   : > { %v11138_v56 = vpop.eup %11137 }
0x1eb5   : > { %v8808_v43 = vmul.f32 %v11138_v56, %v8800_v52 }
0x1eb7   : > { %v8813_v34 = vmul.f32 %v8812_v41, %v8808_v43 }
0x1eb9   : > { %v8818_v39 = vadd.f32 %v8817_v1, %v8813_v34 }
0x1ebb   : > { %9193 = vst.msk [vmem:[%s12469_s15 + $0x8] sm:$0xff] %vm648_vm1, %v8818_v39 }
0x1ebc   : > { %11167 = shalt.err (!%p11164_p3)
}
0x1ebd   : > { %s11168_s15 = scalar_lea.hbm %s13376_s27, 256  ;;  %s11172_s0 = scalar_lea.hbm %s13438_s13, 512 }
0x1ebe   : > { %p11169_p4 = scmp.ne.s32.totalorder %s13376_s27, %s11168_s15  ;;  %p11173_p9 = scmp.lt.u32.totalorder %s13376_s27, %s13438_s13 }
0x1ebf   : > { %p11174_p10 = scmp.lt.u32.totalorder %s11172_s0, %s11168_s15  ;;  %p11176_p12 = scmp.lt.u32.totalorder %s11168_s15, %s13376_s27 }
0x1ec0   : > { %p11170_p7 = pnand %p11169_p4, %p11345_p5 }
0x1ec1   : > { %p11175_p11 = por %p11174_p10, %p11173_p9 }
0x1ec2   : > { %p11171_p8 = pneg %p11170_p7 }
0x1ec3   : > { %p11177_p13 = por %p11176_p12, %p11175_p11 }
0x1ec5   : > { %p11178_p0 = pnand %p11177_p13, %p11171_p8 }
0x1ec7   : > { %11181 = shalt.err (!%p11178_p0)
}
0x1ec8   : > { %s11235_s23 = smov 128   ;;  %s11236_s22 = smov 8  }
0x1ec9   : > { %10783 = dma.vmem_to_hbm [thread:$0]  (%p11345_p5), %s13378_s30, 256, %s13376_s27, %s13384_s20, %s11235_s23, %s11235_s23, %s11236_s22  }
0x1eca PF: > { %p10789_p1 = scmp.ge.s32.totalorder %s11216_s28, 2  ;;  %s8850_s16 = sand.u32 1, %s11204_s25  }
0x1ecb   : > { %s8851_s24 = scalar_lea.sflag [#allocation3], %s8850_s16 }
0x1ecc   : > { %p10786_p2 = pnand %p10789_p1, %p11349_p6 }
0x1ece   : > { %11199 = dma.done.wait (!%p10786_p2), %s8851_s24, 256  }
0x1ecf   : > { %11201 = vsyncadd (!%p10786_p2), %s8851_s24, 4294967040  ;;  %s13550_s28 = sld [smem:[#allocation6_spill]]  ;;  %s13551_s15 = sld [smem:[#allocation5_spill]] }
0x1ed0   : > { %s13552_s27 = sld [smem:[#allocation7_spill]]  ;;  %s13553_s25 = smov %s11208_s26 }
0x1ed5   : > { %p23_p3 = scmp.ge.s32.totalorder %s13550_s28, 4   ;;  %s13554_s26 = smov %s13551_s15 }
0x1ed7   :  { %25 = sbr.rel (!%p23_p3) target bundleno = 5 (0x5), region = 126 }
0x1ede   :  { %8856 = vsyncpa [#allocation3], 1 }
0x1edf   :  { %8858 = vsyncpa [#allocation3 + $0x1], 1 }

</bundles_post_ra>
